<compile_context>
chip_gen: v5e
topology: v5e:2x2
jax: 0.10.0
libtpu: 0.0.40
codegen_flags: <defaults>
</compile_context>

<pallas_src>
import jax
import jax.numpy as jnp
from jax.experimental import pallas as pl
from jax.experimental.pallas import tpu as pltpu


INPUT_DIM = 98
OUT_DIM = 2
IN_PAD = 128          # 98  -> 128 (lane-aligned K for the first matmul)
OUT_PAD = 128         # 2   -> 128 (lane-dense output stores)
MAX_WIDTH = 1024      # widest feature dim (bias packing width)
N_LAYERS = 18
BATCH_TILE = 512      # max batch rows per grid step


def _round_up(x, m):
    return ((x + m - 1) // m) * m


def _cdiv(a, b):
    return -(-a // b)


def basic_model7_dims(input_dim=INPUT_DIM, out_dim=OUT_DIM, size=1024):
    """Feature sizes along the BasicModel(model_id=7) chain (19 sizes -> 18 linears)."""
    dims = [input_dim, size]
    s = size
    for _ in range(3):            # layer1: d_factor = 2
        s = int(s // 2)
        dims.append(s)
    for _ in range(10):           # layer2: d_factor = 1
        dims.append(s)
    for _ in range(3):            # layer3: d_factor = 1/2
        s = int(s // 0.5)
        dims.append(s)
    dims.append(out_dim)          # out: nn.Linear(1024 -> 2), no ReLU
    return dims


def init_linear_params(key, dims):
    """PyTorch nn.Linear default init: U(-1/sqrt(fan_in), 1/sqrt(fan_in)); stored (in, out)."""
    params = []
    for i in range(len(dims) - 1):
        fan_in, fan_out = dims[i], dims[i + 1]
        key, kw, kb = jax.random.split(key, 3)
        bound = 1.0 / float(fan_in) ** 0.5
        w = jax.random.uniform(kw, (fan_in, fan_out), jnp.float32, -bound, bound)
        b = jax.random.uniform(kb, (fan_out,), jnp.float32, -bound, bound)
        params.append((w, b))
    return params


def pack_params(params):
    """Pack 18 (w, b) pairs into a few DMA-friendly arrays (bf16 weights, f32 biases)."""
    assert len(params) == N_LAYERS
    b_all = jnp.zeros((N_LAYERS, MAX_WIDTH), jnp.float32)
    for i, (_, b) in enumerate(params):
        b_all = b_all.at[i, : b.shape[0]].set(b)

    def bf16(w):
        return w.astype(jnp.bfloat16)

    w_in = jnp.zeros((IN_PAD, 1024), jnp.float32).at[:INPUT_DIM, :].set(params[0][0])
    w_in = bf16(w_in)
    w1a, w1b, w1c = bf16(params[1][0]), bf16(params[2][0]), bf16(params[3][0])
    w2 = bf16(jnp.stack([params[4 + k][0] for k in range(10)], axis=0))   # (10,128,128)
    w3a, w3b, w3c = bf16(params[14][0]), bf16(params[15][0]), bf16(params[16][0])
    w_out = jnp.zeros((1024, OUT_PAD), jnp.float32).at[:, :OUT_DIM].set(params[17][0])
    w_out = bf16(w_out)
    return dict(w_in=w_in, w1a=w1a, w1b=w1b, w1c=w1c, w2=w2,
                w3a=w3a, w3b=w3b, w3c=w3c, w_out=w_out, b=b_all)


def _basic7_kernel(x_ref, w_in_ref, w1a_ref, w1b_ref, w1c_ref, w2_ref,
                   w3a_ref, w3b_ref, w3c_ref, w_out_ref, b_ref, o_ref):
    def layer(y, w, idx, fan_out, relu=True):
        b = b_ref[idx:idx + 1, 0:fan_out]                        # (1, fan_out) f32
        z = jnp.dot(y, w, preferred_element_type=jnp.float32) + b  # bf16 MXU, f32 acc
        if relu:
            # carry inter-layer activations in bf16 (identical math: the next dot
            # casts to bf16 anyway); halves VMEM/spill traffic on wide layers.
            return jnp.maximum(z, 0.0).astype(jnp.bfloat16)
        return z

    y = x_ref[...]                                               # (TB, 128) bf16, zero-padded
    y = layer(y, w_in_ref[...], 0, 1024)                         # in_ : 98(->128) -> 1024
    y = layer(y, w1a_ref[...], 1, 512)                           # layer1
    y = layer(y, w1b_ref[...], 2, 256)
    y = layer(y, w1c_ref[...], 3, 128)
    for k in range(10):                                          # layer2: 10 x (128 -> 128)
        y = layer(y, w2_ref[k], 4 + k, 128)
    y = layer(y, w3a_ref[...], 14, 256)                          # layer3
    y = layer(y, w3b_ref[...], 15, 512)
    y = layer(y, w3c_ref[...], 16, 1024)
    y = layer(y, w_out_ref[...], 17, OUT_PAD, relu=False)        # out: 1024 -> 2 (padded 128)
    o_ref[...] = y.astype(o_ref.dtype)


def _choose_batch_tiling(B):
    """Pick (block_b, n_tiles) to (a) keep >=2 grid steps for B>8 so v7x's two
    TensorCores both get work, and (b) minimize batch padding waste."""
    if B <= 8:
        return 8, 1
    n_tiles = max(2, _cdiv(B, BATCH_TILE))
    block_b = _round_up(_cdiv(B, n_tiles), 8)
    return block_b, n_tiles


@jax.jit
def basic7_forward(x, packed):
    """Fused 18-layer MLP forward; returns (B, OUT_DIM) float32."""
    B = x.shape[0]
    block_b, n_tiles = _choose_batch_tiling(B)
    B_pad = block_b * n_tiles
    # pad 98 -> 128 lanes and cast to bf16 (the first matmul is bf16 anyway).
    x_pad = jnp.zeros((B_pad, IN_PAD), jnp.bfloat16).at[:B, :INPUT_DIM].set(
        x.astype(jnp.bfloat16))

    weights = (packed["w_in"], packed["w1a"], packed["w1b"], packed["w1c"],
               packed["w2"], packed["w3a"], packed["w3b"], packed["w3c"],
               packed["w_out"])
    # Weights / biases: full-extent blocks with constant index_map -> fetched once,
    # stay VMEM-resident across batch-grid steps.
    const_specs = [pl.BlockSpec(w.shape, lambda i, nd=w.ndim: (0,) * nd)
                   for w in weights]
    bias_spec = pl.BlockSpec(packed["b"].shape, lambda i: (0, 0))
    x_spec = pl.BlockSpec((block_b, IN_PAD), lambda i: (i, 0))
    out_spec = pl.BlockSpec((block_b, OUT_PAD), lambda i: (i, 0))

    out_padded = pl.pallas_call(
        _basic7_kernel,
        out_shape=jax.ShapeDtypeStruct((B_pad, OUT_PAD), jnp.float32),
        grid=(n_tiles,),
        in_specs=[x_spec] + const_specs + [bias_spec],
        out_specs=out_spec,
        compiler_params=pltpu.CompilerParams(
            dimension_semantics=("parallel",),
            vmem_limit_bytes=32 << 20,   # ~10 MiB actual; fits v5e/v6e/v7x
        ),
    )(x_pad, *weights, packed["b"])
    return out_padded[:B, :OUT_DIM]


class E1E2E3ModelPallas:
    """E1E2E3Model(classes, model_id=1): dict of per-class BasicModel(model_id=7) MLPs."""

    def __init__(self, classes, model_id=1, input_dim=INPUT_DIM, out_dim=OUT_DIM, seed=0):
        assert model_id == 1, "only model_id=1 (-> BasicModel model_id=7) implemented"
        assert input_dim == INPUT_DIM and out_dim == OUT_DIM
        self.classes = list(classes)
        dims = basic_model7_dims(input_dim, out_dim)
        key = jax.random.PRNGKey(seed)
        self.params_f32 = {}
        self.packed = {}
        for c in self.classes:
            key, sub = jax.random.split(key)
            p = init_linear_params(sub, dims)
            self.params_f32[c] = p
            self.packed[c] = pack_params(p)

    def __call__(self, x, e1_mat, e2_mat, e3_mat):
        # nn.ModuleDict lookup: self.model[f'{e1_mat},{e2_mat},{e3_mat}'](x)
        key = f"{e1_mat},{e2_mat},{e3_mat}"
        return basic7_forward(x, self.packed[key])


def _reference_forward(x, params_f32):
    """Pure-JAX mixed-precision reference matching the kernel math (bf16 MXU, f32 acc)."""
    y = x.astype(jnp.float32)
    n = len(params_f32)
    for i, (w, b) in enumerate(params_f32):
        y = jnp.dot(y.astype(jnp.bfloat16), w.astype(jnp.bfloat16),
                    preferred_element_type=jnp.float32) + b
        if i < n - 1:
            y = jnp.maximum(y, 0.0)
    return y


if __name__ == "__main__":
    classes = ["a,b,c", "d,e,f"]
    model = E1E2E3ModelPallas(classes, model_id=1, input_dim=98, out_dim=2, seed=0)

    key = jax.random.PRNGKey(0)
    x = jax.random.normal(key, (4, 98), dtype=jnp.float32)   # (batch, input_dim)

    out = jax.block_until_ready(model(x, "a", "b", "c"))
    assert out.shape == (4, 2) and out.dtype == jnp.float32

    ref = jax.block_until_ready(_reference_forward(x, model.params_f32["a,b,c"]))
    assert jnp.allclose(out, ref, rtol=2e-2, atol=2e-2), (out, ref)

    # exercise the multi-tile grid path (n_tiles=2, padded batch) + second class
    key2 = jax.random.PRNGKey(1)
    x2 = jax.random.normal(key2, (20, 98), dtype=jnp.float32)
    out2 = jax.block_until_ready(model(x2, "d", "e", "f"))
    assert out2.shape == (20, 2)
    ref2 = jax.block_until_ready(_reference_forward(x2, model.params_f32["d,e,f"]))
    assert jnp.allclose(out2, ref2, rtol=2e-2, atol=2e-2), (out2, ref2)

    print("KERNEL_OK")
</pallas_src>

<mosaic_0001>
module attributes {stable_mosaic.version = 11 : i64} {
  func.func @_basic7_kernel(%arg0: i32, %arg1: memref<8x128xbf16, #tpu.memory_space<vmem>>, %arg2: memref<128x1024xbf16, #tpu.memory_space<vmem>>, %arg3: memref<1024x512xbf16, #tpu.memory_space<vmem>>, %arg4: memref<512x256xbf16, #tpu.memory_space<vmem>>, %arg5: memref<256x128xbf16, #tpu.memory_space<vmem>>, %arg6: memref<10x128x128xbf16, #tpu.memory_space<vmem>>, %arg7: memref<128x256xbf16, #tpu.memory_space<vmem>>, %arg8: memref<256x512xbf16, #tpu.memory_space<vmem>>, %arg9: memref<512x1024xbf16, #tpu.memory_space<vmem>>, %arg10: memref<1024x128xbf16, #tpu.memory_space<vmem>>, %arg11: memref<18x1024xf32, #tpu.memory_space<vmem>>, %arg12: memref<8x128xf32, #tpu.memory_space<vmem>>) attributes {dimension_semantics = [#tpu.dimension_semantics<parallel>], iteration_bounds = array<i64: 1>, scalar_prefetch = 0 : i64, scratch_operands = 0 : i64, tpu.core_type = #tpu.core_type<tc>, window_params = [{transform_indices = @transform_0, window_bounds = array<i64: 8, 128>}, {pipeline_mode = #tpu.pipeline_mode<synchronous>, transform_indices = @transform_1, window_bounds = array<i64: 128, 1024>}, {pipeline_mode = #tpu.pipeline_mode<synchronous>, transform_indices = @transform_2, window_bounds = array<i64: 1024, 512>}, {pipeline_mode = #tpu.pipeline_mode<synchronous>, transform_indices = @transform_3, window_bounds = array<i64: 512, 256>}, {pipeline_mode = #tpu.pipeline_mode<synchronous>, transform_indices = @transform_4, window_bounds = array<i64: 256, 128>}, {pipeline_mode = #tpu.pipeline_mode<synchronous>, transform_indices = @transform_5, window_bounds = array<i64: 10, 128, 128>}, {pipeline_mode = #tpu.pipeline_mode<synchronous>, transform_indices = @transform_6, window_bounds = array<i64: 128, 256>}, {pipeline_mode = #tpu.pipeline_mode<synchronous>, transform_indices = @transform_7, window_bounds = array<i64: 256, 512>}, {pipeline_mode = #tpu.pipeline_mode<synchronous>, transform_indices = @transform_8, window_bounds = array<i64: 512, 1024>}, {pipeline_mode = #tpu.pipeline_mode<synchronous>, transform_indices = @transform_9, window_bounds = array<i64: 1024, 128>}, {pipeline_mode = #tpu.pipeline_mode<synchronous>, transform_indices = @transform_10, window_bounds = array<i64: 18, 1024>}, {transform_indices = @transform_11, window_bounds = array<i64: 8, 128>}]} {
    %c0 = arith.constant 0 : index
    %c0_0 = arith.constant 0 : index
    %0 = vector.load %arg1[%c0, %c0_0] : memref<8x128xbf16, #tpu.memory_space<vmem>>, vector<8x128xbf16>
    %c0_1 = arith.constant 0 : index
    %c0_2 = arith.constant 0 : index
    %1 = vector.load %arg2[%c0_1, %c0_2] : memref<128x1024xbf16, #tpu.memory_space<vmem>>, vector<128x1024xbf16>
    %c0_3 = arith.constant 0 : index
    %c0_4 = arith.constant 0 : index
    %2 = vector.load %arg11[%c0_3, %c0_4] : memref<18x1024xf32, #tpu.memory_space<vmem>>, vector<1x1024xf32>
    %cst = arith.constant dense<0.000000e+00> : vector<8x1024xf32>
    %3 = tpu.matmul %0, %1, %cst {dimension_numbers = #tpu.dot_dimension_numbers<[1], [0], [0], [1], [0, 0, 1, 1], [], []>} : vector<8x128xbf16>, vector<128x1024xbf16>, vector<8x1024xf32> -> vector<8x1024xf32>
    %4 = vector.broadcast %2 : vector<1x1024xf32> to vector<8x1024xf32>
    %5 = arith.addf %3, %4 : vector<8x1024xf32>
    %cst_5 = arith.constant 0.000000e+00 : f32
    %6 = vector.broadcast %cst_5 : f32 to vector<8x1024xf32>
    %7 = arith.maximumf %5, %6 : vector<8x1024xf32>
    %8 = arith.truncf %7 : vector<8x1024xf32> to vector<8x1024xbf16>
    %c0_6 = arith.constant 0 : index
    %c0_7 = arith.constant 0 : index
    %9 = vector.load %arg3[%c0_6, %c0_7] : memref<1024x512xbf16, #tpu.memory_space<vmem>>, vector<1024x512xbf16>
    %c1 = arith.constant 1 : index
    %c0_8 = arith.constant 0 : index
    %10 = vector.load %arg11[%c1, %c0_8] : memref<18x1024xf32, #tpu.memory_space<vmem>>, vector<1x512xf32>
    %cst_9 = arith.constant dense<0.000000e+00> : vector<8x512xf32>
    %11 = tpu.matmul %8, %9, %cst_9 {dimension_numbers = #tpu.dot_dimension_numbers<[1], [0], [0], [1], [0, 0, 1, 1], [], []>} : vector<8x1024xbf16>, vector<1024x512xbf16>, vector<8x512xf32> -> vector<8x512xf32>
    %12 = vector.broadcast %10 : vector<1x512xf32> to vector<8x512xf32>
    %13 = arith.addf %11, %12 : vector<8x512xf32>
    %cst_10 = arith.constant 0.000000e+00 : f32
    %14 = vector.broadcast %cst_10 : f32 to vector<8x512xf32>
    %15 = arith.maximumf %13, %14 : vector<8x512xf32>
    %16 = arith.truncf %15 : vector<8x512xf32> to vector<8x512xbf16>
    %c0_11 = arith.constant 0 : index
    %c0_12 = arith.constant 0 : index
    %17 = vector.load %arg4[%c0_11, %c0_12] : memref<512x256xbf16, #tpu.memory_space<vmem>>, vector<512x256xbf16>
    %c2 = arith.constant 2 : index
    %c0_13 = arith.constant 0 : index
    %18 = vector.load %arg11[%c2, %c0_13] : memref<18x1024xf32, #tpu.memory_space<vmem>>, vector<1x256xf32>
    %cst_14 = arith.constant dense<0.000000e+00> : vector<8x256xf32>
    %19 = tpu.matmul %16, %17, %cst_14 {dimension_numbers = #tpu.dot_dimension_numbers<[1], [0], [0], [1], [0, 0, 1, 1], [], []>} : vector<8x512xbf16>, vector<512x256xbf16>, vector<8x256xf32> -> vector<8x256xf32>
    %20 = vector.broadcast %18 : vector<1x256xf32> to vector<8x256xf32>
    %21 = arith.addf %19, %20 : vector<8x256xf32>
    %cst_15 = arith.constant 0.000000e+00 : f32
    %22 = vector.broadcast %cst_15 : f32 to vector<8x256xf32>
    %23 = arith.maximumf %21, %22 : vector<8x256xf32>
    %24 = arith.truncf %23 : vector<8x256xf32> to vector<8x256xbf16>
    %c0_16 = arith.constant 0 : index
    %c0_17 = arith.constant 0 : index
    %25 = vector.load %arg5[%c0_16, %c0_17] : memref<256x128xbf16, #tpu.memory_space<vmem>>, vector<256x128xbf16>
    %c3 = arith.constant 3 : index
    %c0_18 = arith.constant 0 : index
    %26 = vector.load %arg11[%c3, %c0_18] : memref<18x1024xf32, #tpu.memory_space<vmem>>, vector<1x128xf32>
    %cst_19 = arith.constant dense<0.000000e+00> : vector<8x128xf32>
    %27 = tpu.matmul %24, %25, %cst_19 {dimension_numbers = #tpu.dot_dimension_numbers<[1], [0], [0], [1], [0, 0, 1, 1], [], []>} : vector<8x256xbf16>, vector<256x128xbf16>, vector<8x128xf32> -> vector<8x128xf32>
    %28 = vector.broadcast %26 : vector<1x128xf32> to vector<8x128xf32>
    %29 = arith.addf %27, %28 : vector<8x128xf32>
    %cst_20 = arith.constant 0.000000e+00 : f32
    %30 = vector.broadcast %cst_20 : f32 to vector<8x128xf32>
    %31 = arith.maximumf %29, %30 : vector<8x128xf32>
    %32 = arith.truncf %31 : vector<8x128xf32> to vector<8x128xbf16>
    %c0_21 = arith.constant 0 : index
    %c0_22 = arith.constant 0 : index
    %c0_23 = arith.constant 0 : index
    %33 = vector.load %arg6[%c0_21, %c0_22, %c0_23] : memref<10x128x128xbf16, #tpu.memory_space<vmem>>, vector<1x128x128xbf16>
    %34 = vector.shape_cast %33 : vector<1x128x128xbf16> to vector<128x128xbf16>
    %c4 = arith.constant 4 : index
    %c0_24 = arith.constant 0 : index
    %35 = vector.load %arg11[%c4, %c0_24] : memref<18x1024xf32, #tpu.memory_space<vmem>>, vector<1x128xf32>
    %cst_25 = arith.constant dense<0.000000e+00> : vector<8x128xf32>
    %36 = tpu.matmul %32, %34, %cst_25 {dimension_numbers = #tpu.dot_dimension_numbers<[1], [0], [0], [1], [0, 0, 1, 1], [], []>} : vector<8x128xbf16>, vector<128x128xbf16>, vector<8x128xf32> -> vector<8x128xf32>
    %37 = vector.broadcast %35 : vector<1x128xf32> to vector<8x128xf32>
    %38 = arith.addf %36, %37 : vector<8x128xf32>
    %cst_26 = arith.constant 0.000000e+00 : f32
    %39 = vector.broadcast %cst_26 : f32 to vector<8x128xf32>
    %40 = arith.maximumf %38, %39 : vector<8x128xf32>
    %41 = arith.truncf %40 : vector<8x128xf32> to vector<8x128xbf16>
    %c1_27 = arith.constant 1 : index
    %c0_28 = arith.constant 0 : index
    %c0_29 = arith.constant 0 : index
    %42 = vector.load %arg6[%c1_27, %c0_28, %c0_29] : memref<10x128x128xbf16, #tpu.memory_space<vmem>>, vector<1x128x128xbf16>
    %43 = vector.shape_cast %42 : vector<1x128x128xbf16> to vector<128x128xbf16>
    %c5 = arith.constant 5 : index
    %c0_30 = arith.constant 0 : index
    %44 = vector.load %arg11[%c5, %c0_30] : memref<18x1024xf32, #tpu.memory_space<vmem>>, vector<1x128xf32>
    %cst_31 = arith.constant dense<0.000000e+00> : vector<8x128xf32>
    %45 = tpu.matmul %41, %43, %cst_31 {dimension_numbers = #tpu.dot_dimension_numbers<[1], [0], [0], [1], [0, 0, 1, 1], [], []>} : vector<8x128xbf16>, vector<128x128xbf16>, vector<8x128xf32> -> vector<8x128xf32>
    %46 = vector.broadcast %44 : vector<1x128xf32> to vector<8x128xf32>
    %47 = arith.addf %45, %46 : vector<8x128xf32>
    %cst_32 = arith.constant 0.000000e+00 : f32
    %48 = vector.broadcast %cst_32 : f32 to vector<8x128xf32>
    %49 = arith.maximumf %47, %48 : vector<8x128xf32>
    %50 = arith.truncf %49 : vector<8x128xf32> to vector<8x128xbf16>
    %c2_33 = arith.constant 2 : index
    %c0_34 = arith.constant 0 : index
    %c0_35 = arith.constant 0 : index
    %51 = vector.load %arg6[%c2_33, %c0_34, %c0_35] : memref<10x128x128xbf16, #tpu.memory_space<vmem>>, vector<1x128x128xbf16>
    %52 = vector.shape_cast %51 : vector<1x128x128xbf16> to vector<128x128xbf16>
    %c6 = arith.constant 6 : index
    %c0_36 = arith.constant 0 : index
    %53 = vector.load %arg11[%c6, %c0_36] : memref<18x1024xf32, #tpu.memory_space<vmem>>, vector<1x128xf32>
    %cst_37 = arith.constant dense<0.000000e+00> : vector<8x128xf32>
    %54 = tpu.matmul %50, %52, %cst_37 {dimension_numbers = #tpu.dot_dimension_numbers<[1], [0], [0], [1], [0, 0, 1, 1], [], []>} : vector<8x128xbf16>, vector<128x128xbf16>, vector<8x128xf32> -> vector<8x128xf32>
    %55 = vector.broadcast %53 : vector<1x128xf32> to vector<8x128xf32>
    %56 = arith.addf %54, %55 : vector<8x128xf32>
    %cst_38 = arith.constant 0.000000e+00 : f32
    %57 = vector.broadcast %cst_38 : f32 to vector<8x128xf32>
    %58 = arith.maximumf %56, %57 : vector<8x128xf32>
    %59 = arith.truncf %58 : vector<8x128xf32> to vector<8x128xbf16>
    %c3_39 = arith.constant 3 : index
    %c0_40 = arith.constant 0 : index
    %c0_41 = arith.constant 0 : index
    %60 = vector.load %arg6[%c3_39, %c0_40, %c0_41] : memref<10x128x128xbf16, #tpu.memory_space<vmem>>, vector<1x128x128xbf16>
    %61 = vector.shape_cast %60 : vector<1x128x128xbf16> to vector<128x128xbf16>
    %c7 = arith.constant 7 : index
    %c0_42 = arith.constant 0 : index
    %62 = vector.load %arg11[%c7, %c0_42] : memref<18x1024xf32, #tpu.memory_space<vmem>>, vector<1x128xf32>
    %cst_43 = arith.constant dense<0.000000e+00> : vector<8x128xf32>
    %63 = tpu.matmul %59, %61, %cst_43 {dimension_numbers = #tpu.dot_dimension_numbers<[1], [0], [0], [1], [0, 0, 1, 1], [], []>} : vector<8x128xbf16>, vector<128x128xbf16>, vector<8x128xf32> -> vector<8x128xf32>
    %64 = vector.broadcast %62 : vector<1x128xf32> to vector<8x128xf32>
    %65 = arith.addf %63, %64 : vector<8x128xf32>
    %cst_44 = arith.constant 0.000000e+00 : f32
    %66 = vector.broadcast %cst_44 : f32 to vector<8x128xf32>
    %67 = arith.maximumf %65, %66 : vector<8x128xf32>
    %68 = arith.truncf %67 : vector<8x128xf32> to vector<8x128xbf16>
    %c4_45 = arith.constant 4 : index
    %c0_46 = arith.constant 0 : index
    %c0_47 = arith.constant 0 : index
    %69 = vector.load %arg6[%c4_45, %c0_46, %c0_47] : memref<10x128x128xbf16, #tpu.memory_space<vmem>>, vector<1x128x128xbf16>
    %70 = vector.shape_cast %69 : vector<1x128x128xbf16> to vector<128x128xbf16>
    %c8 = arith.constant 8 : index
    %c0_48 = arith.constant 0 : index
    %71 = vector.load %arg11[%c8, %c0_48] : memref<18x1024xf32, #tpu.memory_space<vmem>>, vector<1x128xf32>
    %cst_49 = arith.constant dense<0.000000e+00> : vector<8x128xf32>
    %72 = tpu.matmul %68, %70, %cst_49 {dimension_numbers = #tpu.dot_dimension_numbers<[1], [0], [0], [1], [0, 0, 1, 1], [], []>} : vector<8x128xbf16>, vector<128x128xbf16>, vector<8x128xf32> -> vector<8x128xf32>
    %73 = vector.broadcast %71 : vector<1x128xf32> to vector<8x128xf32>
    %74 = arith.addf %72, %73 : vector<8x128xf32>
    %cst_50 = arith.constant 0.000000e+00 : f32
    %75 = vector.broadcast %cst_50 : f32 to vector<8x128xf32>
    %76 = arith.maximumf %74, %75 : vector<8x128xf32>
    %77 = arith.truncf %76 : vector<8x128xf32> to vector<8x128xbf16>
    %c5_51 = arith.constant 5 : index
    %c0_52 = arith.constant 0 : index
    %c0_53 = arith.constant 0 : index
    %78 = vector.load %arg6[%c5_51, %c0_52, %c0_53] : memref<10x128x128xbf16, #tpu.memory_space<vmem>>, vector<1x128x128xbf16>
    %79 = vector.shape_cast %78 : vector<1x128x128xbf16> to vector<128x128xbf16>
    %c9 = arith.constant 9 : index
    %c0_54 = arith.constant 0 : index
    %80 = vector.load %arg11[%c9, %c0_54] : memref<18x1024xf32, #tpu.memory_space<vmem>>, vector<1x128xf32>
    %cst_55 = arith.constant dense<0.000000e+00> : vector<8x128xf32>
    %81 = tpu.matmul %77, %79, %cst_55 {dimension_numbers = #tpu.dot_dimension_numbers<[1], [0], [0], [1], [0, 0, 1, 1], [], []>} : vector<8x128xbf16>, vector<128x128xbf16>, vector<8x128xf32> -> vector<8x128xf32>
    %82 = vector.broadcast %80 : vector<1x128xf32> to vector<8x128xf32>
    %83 = arith.addf %81, %82 : vector<8x128xf32>
    %cst_56 = arith.constant 0.000000e+00 : f32
    %84 = vector.broadcast %cst_56 : f32 to vector<8x128xf32>
    %85 = arith.maximumf %83, %84 : vector<8x128xf32>
    %86 = arith.truncf %85 : vector<8x128xf32> to vector<8x128xbf16>
    %c6_57 = arith.constant 6 : index
    %c0_58 = arith.constant 0 : index
    %c0_59 = arith.constant 0 : index
    %87 = vector.load %arg6[%c6_57, %c0_58, %c0_59] : memref<10x128x128xbf16, #tpu.memory_space<vmem>>, vector<1x128x128xbf16>
    %88 = vector.shape_cast %87 : vector<1x128x128xbf16> to vector<128x128xbf16>
    %c10 = arith.constant 10 : index
    %c0_60 = arith.constant 0 : index
    %89 = vector.load %arg11[%c10, %c0_60] : memref<18x1024xf32, #tpu.memory_space<vmem>>, vector<1x128xf32>
    %cst_61 = arith.constant dense<0.000000e+00> : vector<8x128xf32>
    %90 = tpu.matmul %86, %88, %cst_61 {dimension_numbers = #tpu.dot_dimension_numbers<[1], [0], [0], [1], [0, 0, 1, 1], [], []>} : vector<8x128xbf16>, vector<128x128xbf16>, vector<8x128xf32> -> vector<8x128xf32>
    %91 = vector.broadcast %89 : vector<1x128xf32> to vector<8x128xf32>
    %92 = arith.addf %90, %91 : vector<8x128xf32>
    %cst_62 = arith.constant 0.000000e+00 : f32
    %93 = vector.broadcast %cst_62 : f32 to vector<8x128xf32>
    %94 = arith.maximumf %92, %93 : vector<8x128xf32>
    %95 = arith.truncf %94 : vector<8x128xf32> to vector<8x128xbf16>
    %c7_63 = arith.constant 7 : index
    %c0_64 = arith.constant 0 : index
    %c0_65 = arith.constant 0 : index
    %96 = vector.load %arg6[%c7_63, %c0_64, %c0_65] : memref<10x128x128xbf16, #tpu.memory_space<vmem>>, vector<1x128x128xbf16>
    %97 = vector.shape_cast %96 : vector<1x128x128xbf16> to vector<128x128xbf16>
    %c11 = arith.constant 11 : index
    %c0_66 = arith.constant 0 : index
    %98 = vector.load %arg11[%c11, %c0_66] : memref<18x1024xf32, #tpu.memory_space<vmem>>, vector<1x128xf32>
    %cst_67 = arith.constant dense<0.000000e+00> : vector<8x128xf32>
    %99 = tpu.matmul %95, %97, %cst_67 {dimension_numbers = #tpu.dot_dimension_numbers<[1], [0], [0], [1], [0, 0, 1, 1], [], []>} : vector<8x128xbf16>, vector<128x128xbf16>, vector<8x128xf32> -> vector<8x128xf32>
    %100 = vector.broadcast %98 : vector<1x128xf32> to vector<8x128xf32>
    %101 = arith.addf %99, %100 : vector<8x128xf32>
    %cst_68 = arith.constant 0.000000e+00 : f32
    %102 = vector.broadcast %cst_68 : f32 to vector<8x128xf32>
    %103 = arith.maximumf %101, %102 : vector<8x128xf32>
    %104 = arith.truncf %103 : vector<8x128xf32> to vector<8x128xbf16>
    %c8_69 = arith.constant 8 : index
    %c0_70 = arith.constant 0 : index
    %c0_71 = arith.constant 0 : index
    %105 = vector.load %arg6[%c8_69, %c0_70, %c0_71] : memref<10x128x128xbf16, #tpu.memory_space<vmem>>, vector<1x128x128xbf16>
    %106 = vector.shape_cast %105 : vector<1x128x128xbf16> to vector<128x128xbf16>
    %c12 = arith.constant 12 : index
    %c0_72 = arith.constant 0 : index
    %107 = vector.load %arg11[%c12, %c0_72] : memref<18x1024xf32, #tpu.memory_space<vmem>>, vector<1x128xf32>
    %cst_73 = arith.constant dense<0.000000e+00> : vector<8x128xf32>
    %108 = tpu.matmul %104, %106, %cst_73 {dimension_numbers = #tpu.dot_dimension_numbers<[1], [0], [0], [1], [0, 0, 1, 1], [], []>} : vector<8x128xbf16>, vector<128x128xbf16>, vector<8x128xf32> -> vector<8x128xf32>
    %109 = vector.broadcast %107 : vector<1x128xf32> to vector<8x128xf32>
    %110 = arith.addf %108, %109 : vector<8x128xf32>
    %cst_74 = arith.constant 0.000000e+00 : f32
    %111 = vector.broadcast %cst_74 : f32 to vector<8x128xf32>
    %112 = arith.maximumf %110, %111 : vector<8x128xf32>
    %113 = arith.truncf %112 : vector<8x128xf32> to vector<8x128xbf16>
    %c9_75 = arith.constant 9 : index
    %c0_76 = arith.constant 0 : index
    %c0_77 = arith.constant 0 : index
    %114 = vector.load %arg6[%c9_75, %c0_76, %c0_77] : memref<10x128x128xbf16, #tpu.memory_space<vmem>>, vector<1x128x128xbf16>
    %115 = vector.shape_cast %114 : vector<1x128x128xbf16> to vector<128x128xbf16>
    %c13 = arith.constant 13 : index
    %c0_78 = arith.constant 0 : index
    %116 = vector.load %arg11[%c13, %c0_78] : memref<18x1024xf32, #tpu.memory_space<vmem>>, vector<1x128xf32>
    %cst_79 = arith.constant dense<0.000000e+00> : vector<8x128xf32>
    %117 = tpu.matmul %113, %115, %cst_79 {dimension_numbers = #tpu.dot_dimension_numbers<[1], [0], [0], [1], [0, 0, 1, 1], [], []>} : vector<8x128xbf16>, vector<128x128xbf16>, vector<8x128xf32> -> vector<8x128xf32>
    %118 = vector.broadcast %116 : vector<1x128xf32> to vector<8x128xf32>
    %119 = arith.addf %117, %118 : vector<8x128xf32>
    %cst_80 = arith.constant 0.000000e+00 : f32
    %120 = vector.broadcast %cst_80 : f32 to vector<8x128xf32>
    %121 = arith.maximumf %119, %120 : vector<8x128xf32>
    %122 = arith.truncf %121 : vector<8x128xf32> to vector<8x128xbf16>
    %c0_81 = arith.constant 0 : index
    %c0_82 = arith.constant 0 : index
    %123 = vector.load %arg7[%c0_81, %c0_82] : memref<128x256xbf16, #tpu.memory_space<vmem>>, vector<128x256xbf16>
    %c14 = arith.constant 14 : index
    %c0_83 = arith.constant 0 : index
    %124 = vector.load %arg11[%c14, %c0_83] : memref<18x1024xf32, #tpu.memory_space<vmem>>, vector<1x256xf32>
    %cst_84 = arith.constant dense<0.000000e+00> : vector<8x256xf32>
    %125 = tpu.matmul %122, %123, %cst_84 {dimension_numbers = #tpu.dot_dimension_numbers<[1], [0], [0], [1], [0, 0, 1, 1], [], []>} : vector<8x128xbf16>, vector<128x256xbf16>, vector<8x256xf32> -> vector<8x256xf32>
    %126 = vector.broadcast %124 : vector<1x256xf32> to vector<8x256xf32>
    %127 = arith.addf %125, %126 : vector<8x256xf32>
    %cst_85 = arith.constant 0.000000e+00 : f32
    %128 = vector.broadcast %cst_85 : f32 to vector<8x256xf32>
    %129 = arith.maximumf %127, %128 : vector<8x256xf32>
    %130 = arith.truncf %129 : vector<8x256xf32> to vector<8x256xbf16>
    %c0_86 = arith.constant 0 : index
    %c0_87 = arith.constant 0 : index
    %131 = vector.load %arg8[%c0_86, %c0_87] : memref<256x512xbf16, #tpu.memory_space<vmem>>, vector<256x512xbf16>
    %c15 = arith.constant 15 : index
    %c0_88 = arith.constant 0 : index
    %132 = vector.load %arg11[%c15, %c0_88] : memref<18x1024xf32, #tpu.memory_space<vmem>>, vector<1x512xf32>
    %cst_89 = arith.constant dense<0.000000e+00> : vector<8x512xf32>
    %133 = tpu.matmul %130, %131, %cst_89 {dimension_numbers = #tpu.dot_dimension_numbers<[1], [0], [0], [1], [0, 0, 1, 1], [], []>} : vector<8x256xbf16>, vector<256x512xbf16>, vector<8x512xf32> -> vector<8x512xf32>
    %134 = vector.broadcast %132 : vector<1x512xf32> to vector<8x512xf32>
    %135 = arith.addf %133, %134 : vector<8x512xf32>
    %cst_90 = arith.constant 0.000000e+00 : f32
    %136 = vector.broadcast %cst_90 : f32 to vector<8x512xf32>
    %137 = arith.maximumf %135, %136 : vector<8x512xf32>
    %138 = arith.truncf %137 : vector<8x512xf32> to vector<8x512xbf16>
    %c0_91 = arith.constant 0 : index
    %c0_92 = arith.constant 0 : index
    %139 = vector.load %arg9[%c0_91, %c0_92] : memref<512x1024xbf16, #tpu.memory_space<vmem>>, vector<512x1024xbf16>
    %c16 = arith.constant 16 : index
    %c0_93 = arith.constant 0 : index
    %140 = vector.load %arg11[%c16, %c0_93] : memref<18x1024xf32, #tpu.memory_space<vmem>>, vector<1x1024xf32>
    %cst_94 = arith.constant dense<0.000000e+00> : vector<8x1024xf32>
    %141 = tpu.matmul %138, %139, %cst_94 {dimension_numbers = #tpu.dot_dimension_numbers<[1], [0], [0], [1], [0, 0, 1, 1], [], []>} : vector<8x512xbf16>, vector<512x1024xbf16>, vector<8x1024xf32> -> vector<8x1024xf32>
    %142 = vector.broadcast %140 : vector<1x1024xf32> to vector<8x1024xf32>
    %143 = arith.addf %141, %142 : vector<8x1024xf32>
    %cst_95 = arith.constant 0.000000e+00 : f32
    %144 = vector.broadcast %cst_95 : f32 to vector<8x1024xf32>
    %145 = arith.maximumf %143, %144 : vector<8x1024xf32>
    %146 = arith.truncf %145 : vector<8x1024xf32> to vector<8x1024xbf16>
    %c0_96 = arith.constant 0 : index
    %c0_97 = arith.constant 0 : index
    %147 = vector.load %arg10[%c0_96, %c0_97] : memref<1024x128xbf16, #tpu.memory_space<vmem>>, vector<1024x128xbf16>
    %c17 = arith.constant 17 : index
    %c0_98 = arith.constant 0 : index
    %148 = vector.load %arg11[%c17, %c0_98] : memref<18x1024xf32, #tpu.memory_space<vmem>>, vector<1x128xf32>
    %cst_99 = arith.constant dense<0.000000e+00> : vector<8x128xf32>
    %149 = tpu.matmul %146, %147, %cst_99 {dimension_numbers = #tpu.dot_dimension_numbers<[1], [0], [0], [1], [0, 0, 1, 1], [], []>} : vector<8x1024xbf16>, vector<1024x128xbf16>, vector<8x128xf32> -> vector<8x128xf32>
    %150 = vector.broadcast %148 : vector<1x128xf32> to vector<8x128xf32>
    %151 = arith.addf %149, %150 : vector<8x128xf32>
    %c0_100 = arith.constant 0 : index
    %c0_101 = arith.constant 0 : index
    %152 = vector.load %arg12[%c0_100, %c0_101] : memref<8x128xf32, #tpu.memory_space<vmem>>, vector<8x128xf32>
    tpu.vector_store %arg12[%c0_100, %c0_101], %151 {strides = array<i32>} : memref<8x128xf32, #tpu.memory_space<vmem>>, vector<8x128xf32>,
    return
  }
  func.func @transform_0(%arg0: i32) -> (i32, i32) {
    %c0_i32 = arith.constant 0 : i32
    %c0_i32_0 = arith.constant 0 : i32
    return %arg0, %c0_i32 : i32, i32
  }
  func.func @transform_1(%arg0: i32) -> (i32, i32) {
    %c0_i32 = arith.constant 0 : i32
    %c0_i32_0 = arith.constant 0 : i32
    %c0_i32_1 = arith.constant 0 : i32
    return %c0_i32, %c0_i32_0 : i32, i32
  }
  func.func @transform_2(%arg0: i32) -> (i32, i32) {
    %c0_i32 = arith.constant 0 : i32
    %c0_i32_0 = arith.constant 0 : i32
    %c0_i32_1 = arith.constant 0 : i32
    return %c0_i32, %c0_i32_0 : i32, i32
  }
  func.func @transform_3(%arg0: i32) -> (i32, i32) {
    %c0_i32 = arith.constant 0 : i32
    %c0_i32_0 = arith.constant 0 : i32
    %c0_i32_1 = arith.constant 0 : i32
    return %c0_i32, %c0_i32_0 : i32, i32
  }
  func.func @transform_4(%arg0: i32) -> (i32, i32) {
    %c0_i32 = arith.constant 0 : i32
    %c0_i32_0 = arith.constant 0 : i32
    %c0_i32_1 = arith.constant 0 : i32
    return %c0_i32, %c0_i32_0 : i32, i32
  }
  func.func @transform_5(%arg0: i32) -> (i32, i32, i32) {
    %c0_i32 = arith.constant 0 : i32
    %c0_i32_0 = arith.constant 0 : i32
    %c0_i32_1 = arith.constant 0 : i32
    %c0_i32_2 = arith.constant 0 : i32
    return %c0_i32, %c0_i32_0, %c0_i32_1 : i32, i32, i32
  }
  func.func @transform_6(%arg0: i32) -> (i32, i32) {
    %c0_i32 = arith.constant 0 : i32
    %c0_i32_0 = arith.constant 0 : i32
    %c0_i32_1 = arith.constant 0 : i32
    return %c0_i32, %c0_i32_0 : i32, i32
  }
  func.func @transform_7(%arg0: i32) -> (i32, i32) {
    %c0_i32 = arith.constant 0 : i32
    %c0_i32_0 = arith.constant 0 : i32
    %c0_i32_1 = arith.constant 0 : i32
    return %c0_i32, %c0_i32_0 : i32, i32
  }
  func.func @transform_8(%arg0: i32) -> (i32, i32) {
    %c0_i32 = arith.constant 0 : i32
    %c0_i32_0 = arith.constant 0 : i32
    %c0_i32_1 = arith.constant 0 : i32
    return %c0_i32, %c0_i32_0 : i32, i32
  }
  func.func @transform_9(%arg0: i32) -> (i32, i32) {
    %c0_i32 = arith.constant 0 : i32
    %c0_i32_0 = arith.constant 0 : i32
    %c0_i32_1 = arith.constant 0 : i32
    return %c0_i32, %c0_i32_0 : i32, i32
  }
  func.func @transform_10(%arg0: i32) -> (i32, i32) {
    %c0_i32 = arith.constant 0 : i32
    %c0_i32_0 = arith.constant 0 : i32
    %c0_i32_1 = arith.constant 0 : i32
    return %c0_i32, %c0_i32_0 : i32, i32
  }
  func.func @transform_11(%arg0: i32) -> (i32, i32) {
    %c0_i32 = arith.constant 0 : i32
    %c0_i32_0 = arith.constant 0 : i32
    return %arg0, %c0_i32 : i32, i32
  }
}

</mosaic_0001>

<bundles_post_ra>
// kernel: basic7_forward.1
= control target key start
LH: loop header
LB: loop body
LE: loop exit
PB: predicated region body
PF: predicated region fallthrough
CT: control target
= control target key end

     0   :  { %16 = vsyncpa [#allocation3], 0  ;;  %s12421_s0 = inlined_call_operand.vmem [shape: bf16[8,128], index: 0, kind: input, shape index: {}]   ;;  %s12422_s1 = inlined_call_operand.hbm [shape: bf16[128,1024], index: 1, kind: input, shape index: {}]   ;;  %s12423_s2 = inlined_call_operand.hbm [shape: bf16[1024,512], index: 2, kind: input, shape index: {}]   ;;  %s12424_s3 = inlined_call_operand.hbm [shape: bf16[512,256], index: 3, kind: input, shape index: {}]   ;;  %s12425_s4 = inlined_call_operand.hbm [shape: bf16[256,128], index: 4, kind: input, shape index: {}]   ;;  %s12426_s5 = inlined_call_operand.hbm [shape: bf16[10,128,128], index: 5, kind: input, shape index: {}]   ;;  %s12427_s6 = inlined_call_operand.hbm [shape: bf16[128,256], index: 6, kind: input, shape index: {}]   ;;  %s12428_s7 = inlined_call_operand.hbm [shape: bf16[256,512], index: 7, kind: input, shape index: {}]   ;;  %s12429_s8 = inlined_call_operand.hbm [shape: bf16[512,1024], index: 8, kind: input, shape index: {}]   ;;  %s12430_s9 = inlined_call_operand.hbm [shape: bf16[1024,128], index: 9, kind: input, shape index: {}]   ;;  %s12431_s10 = inlined_call_operand.hbm [shape: f32[18,1024], index: 10, kind: input, shape index: {}]   ;;  %s12432_s11 = inlined_call_operand.vmem [shape: f32[8,128], index: 11, kind: output, shape index: {}]  }
   0x1   :  { %17 = vsyncpa [#allocation5], 0 }
   0x2   :  { %18 = vsyncpa [#allocation8], 0 }
   0x3   :  { %19 = vsyncpa [#allocation11], 0 }
   0x4   :  { %20 = vsyncpa [#allocation14], 0  ;;  %s41_s19 = sshll.u32 %s12423_s2, 4  ;;  %s42_s19 = int_to_ptr.hbm [resolvable:$true] %s41_s19 }
   0x5   :  { %21 = vsyncpa [#allocation17], 0  ;;  %s12083_s20 = smov [#allocation4]   ;;  %s67_s24 = sshll.u32 %s12425_s4, 4  ;;  %s68_s24 = int_to_ptr.hbm [resolvable:$true] %s67_s24 }
   0x6   :  { %s43_s21 = sshll.u32 %s12083_s20, 4  ;;  %s12084_s25 = smov 256   ;;  %s44_s21 = int_to_ptr.vmem [resolvable:$true] %s43_s21 }
   0x7   :  { %s12085_s26 = smov 16   ;;  %s12086_s27 = smov [#allocation7]  }
   0x8   :  { %49 = dma.hbm_to_vmem [thread:$0]  %s42_s19, 32768, %s44_s21, [#allocation5], %s12084_s25, %s12084_s25, %s12085_s26  }
   0x9   :  { %s69_s28 = sshll.u32 %s12086_s27, 4  ;;  %s12087_s2 = smov 64   ;;  %s70_s28 = int_to_ptr.vmem [resolvable:$true] %s69_s28 }
   0xa   :  { %s12088_s29 = smov 4   ;;  %s93_s4 = sshll.u32 %s12427_s6, 4  ;;  %s94_s4 = int_to_ptr.hbm [resolvable:$true] %s93_s4 }
   0xb   :  { %75 = dma.hbm_to_vmem [thread:$0]  %s68_s24, 2048, %s70_s28, [#allocation8], %s12087_s2, %s12087_s2, %s12088_s29  }
   0xc   :  { %s12089_s13 = smov [#allocation10]   ;;  %s12090_s15 = smov 128  }
   0xd   :  { %s95_s14 = sshll.u32 %s12089_s13, 4  ;;  %s12091_s16 = smov 8   ;;  %s96_s14 = int_to_ptr.vmem [resolvable:$true] %s95_s14 }
   0xe   :  { %101 = dma.hbm_to_vmem [thread:$0]  %s94_s4, 2048, %s96_s14, [#allocation11], %s12090_s15, %s12090_s15, %s12091_s16  }
   0xf   :  { %s119_s19 = sshll.u32 %s12429_s8, 4  ;;  %s12092_s20 = smov [#allocation13]   ;;  %s120_s19 = int_to_ptr.hbm [resolvable:$true] %s119_s19 }
  0x10   :  { %s121_s21 = sshll.u32 %s12092_s20, 4  ;;  %s28_s24 = sshll.u32 %s12422_s1, 4  ;;  %s122_s21 = int_to_ptr.vmem [resolvable:$true] %s121_s21  ;;  %s29_s24 = int_to_ptr.hbm [resolvable:$true] %s28_s24 }
  0x11   :  { %s12093_s6 = smov 512   ;;  %s12094_s27 = smov 32  }
  0x12   :  { %127 = dma.hbm_to_vmem [thread:$0]  %s120_s19, 32768, %s122_s21, [#allocation14], %s12093_s6, %s12093_s6, %s12094_s27  }
  0x13   :  { %s54_s12 = sshll.u32 %s12424_s3, 4  ;;  %s12095_s4 = smov [#allocation2]   ;;  %s55_s12 = int_to_ptr.hbm [resolvable:$true] %s54_s12 }
  0x14   :  { %s30_s13 = sshll.u32 %s12095_s4, 4  ;;  %s12096_s8 = smov [#allocation6]   ;;  %s31_s13 = int_to_ptr.vmem [resolvable:$true] %s30_s13 }
  0x15   :  { %36 = dma.hbm_to_vmem [thread:$0]  %s29_s24, 8192, %s31_s13, [#allocation3], %s12093_s6, %s12093_s6, %s12094_s27  }
  0x16   :  { %s56_s14 = sshll.u32 %s12096_s8, 4  ;;  %s80_s1 = sshll.u32 %s12426_s5, 4  ;;  %s57_s14 = int_to_ptr.vmem [resolvable:$true] %s56_s14  ;;  %s81_s1 = int_to_ptr.hbm [resolvable:$true] %s80_s1 }
  0x17   :  { %62 = dma.hbm_to_vmem [thread:$0]  %s55_s12, 8192, %s57_s14, [#allocation5], %s12090_s15, %s12090_s15, %s12091_s16  }
  0x18   :  { %s106_s21 = sshll.u32 %s12428_s7, 4  ;;  %s12097_s22 = smov [#allocation9]   ;;  %s107_s21 = int_to_ptr.hbm [resolvable:$true] %s106_s21 }
  0x19   :  { %s82_s3 = sshll.u32 %s12097_s22, 4  ;;  %s12098_s23 = smov [#allocation12]   ;;  %s83_s3 = int_to_ptr.vmem [resolvable:$true] %s82_s3 }
  0x1a   :  { %88 = dma.hbm_to_vmem [thread:$0]  %s81_s1, 10240, %s83_s3, [#allocation8], %s12087_s2, %s12087_s2, %s12088_s29  }
  0x1b   :  { %s108_s24 = sshll.u32 %s12098_s23, 4  ;;  %s132_s5 = sshll.u32 %s12430_s9, 4  ;;  %s109_s24 = int_to_ptr.vmem [resolvable:$true] %s108_s24  ;;  %s133_s5 = int_to_ptr.hbm [resolvable:$true] %s132_s5 }
  0x1c   :  { %114 = dma.hbm_to_vmem [thread:$0]  %s107_s21, 8192, %s109_s24, [#allocation11], %s12084_s25, %s12084_s25, %s12085_s26  }
  0x1d   :  { %s145_s16 = sshll.u32 %s12431_s10, 4  ;;  %s12099_s28 = smov [#allocation15]   ;;  %s146_s16 = int_to_ptr.hbm [resolvable:$true] %s145_s16 }
  0x1e   :  { %s134_s30 = sshll.u32 %s12099_s28, 4  ;;  %s12100_s12 = smov [#allocation16]   ;;  %s135_s30 = int_to_ptr.vmem [resolvable:$true] %s134_s30 }
  0x1f   :  { %140 = dma.hbm_to_vmem [thread:$0]  %s133_s5, 8192, %s135_s30, [#allocation14], %s12087_s2, %s12087_s2, %s12088_s29  }
  0x20   :  { %s147_s9 = sshll.u32 %s12100_s12, 4  ;;  %s12101_s4 = smov 1024   ;;  %s148_s9 = int_to_ptr.vmem [resolvable:$true] %s147_s9 }
  0x21   :  { %153 = dma.hbm_to_vmem [thread:$0]  %s146_s16, 3072, %s148_s9, [#allocation17], %s12101_s4, %s12101_s4, %s12087_s2  }
  0x22   :  { %12071 = dma.done.wait [#allocation3], 8192  }
  0x23   :  { %12072 = vsyncadd [#allocation3], 4294959104 }
  0x24   :  { %12073 = dma.done.wait [#allocation5], 40960  }
  0x25   :  { %12074 = vsyncadd [#allocation5], 4294926336 }
  0x26   :  { %12075 = dma.done.wait [#allocation8], 12288  }
  0x27   :  { %12076 = vsyncadd [#allocation8], 4294955008 }
  0x28   :  { %12077 = dma.done.wait [#allocation11], 10240  }
  0x29   :  { %12078 = vsyncadd [#allocation11], 4294957056 }
  0x2a   :  { %12079 = dma.done.wait [#allocation14], 40960  }
  0x2b   :  { %12080 = vsyncadd [#allocation14], 4294926336 }
  0x2c   :  { %12081 = dma.done.wait [#allocation17], 3072  }
  0x2d   :  { %12082 = vsyncadd [#allocation17], 4294964224  ;;  %v7638_v0 = vld [vmem:[#allocation2 + $0x1c0] sm:$0xf]  ;;  %v10988_v2 = vld [vmem:[#allocation2 + $0x1c4] sm:$0xf] }
  0x2e   :  { %v10992_v1 = vld [vmem:[#allocation2 + $0x1dc] sm:$0xf0]  ;;  %v7640_v4 = vld [vmem:[#allocation2 + $0x1e0] sm:$0xf0]  ;;  %v7646_v5 = vld [vmem:[#allocation2 + $0x1c8] sm:$0xf] }
  0x2f   :  { %v7639_v3 = vor.u32 %v10992_v1, %v7638_v0  ;;  %v10993_v6 = vld [vmem:[#allocation2 + $0x1e4] sm:$0xf0]  ;;  %v7643_v7 = vor.u32 %v10988_v2, %v7640_v4  ;;  %v10989_v9 = vld [vmem:[#allocation2 + $0x1cc] sm:$0xf]  ;;  %v7606_v11 = vld [vmem:[#allocation2 + $0x180] sm:$0xf] }
  0x30   :  { %v7647_v8 = vor.u32 %v10993_v6, %v7646_v5  ;;  %v7648_v10 = vld [vmem:[#allocation2 + $0x1e8] sm:$0xf0]  ;;  %v10984_v13 = vld [vmem:[#allocation2 + $0x19c] sm:$0xf0]  ;;  %v10980_v14 = vld [vmem:[#allocation2 + $0x184] sm:$0xf] }
  0x31   :  { %599 = vmatpush.bf16.msra.mxu0 %v7639_v3  ;;  %v7651_v12 = vor.u32 %v10989_v9, %v7648_v10  ;;  %v7608_v15 = vld [vmem:[#allocation2 + $0x1a0] sm:$0xf0]  ;;  %612 = vmatpush.bf16.msra.mxu1 %v7643_v7  ;;  %v7607_v16 = vor.u32 %v10984_v13, %v7606_v11  ;;  %v7614_v18 = vld [vmem:[#allocation2 + $0x188] sm:$0xf]  ;;  %v10981_v20 = vld [vmem:[#allocation2 + $0x18c] sm:$0xf] }
  0x32   :  { %625 = vmatpush.bf16.msra.mxu2 %v7647_v8  ;;  %v7611_v17 = vor.u32 %v10980_v14, %v7608_v15  ;;  %v10985_v19 = vld [vmem:[#allocation2 + $0x1a4] sm:$0xf0]  ;;  %v7616_v22 = vld [vmem:[#allocation2 + $0x1a8] sm:$0xf0]  ;;  %v7574_v23 = vld [vmem:[#allocation2 + $0x140] sm:$0xf] }
  0x33   :  { %638 = vmatpush.bf16.msra.mxu3 %v7651_v12  ;;  %v7615_v21 = vor.u32 %v10985_v19, %v7614_v18  ;;  %v10976_v24 = vld [vmem:[#allocation2 + $0x15c] sm:$0xf0]  ;;  %v7619_v25 = vor.u32 %v10981_v20, %v7616_v22  ;;  %v10972_v26 = vld [vmem:[#allocation2 + $0x144] sm:$0xf]  ;;  %v7582_v28 = vld [vmem:[#allocation2 + $0x148] sm:$0xf] }
  0x34   :  { %v7576_v27 = vld [vmem:[#allocation2 + $0x160] sm:$0xf0]  ;;  %v7575_v29 = vor.u32 %v10976_v24, %v7574_v23  ;;  %v10977_v30 = vld [vmem:[#allocation2 + $0x164] sm:$0xf0]  ;;  %v10973_v31 = vld [vmem:[#allocation2 + $0x14c] sm:$0xf] }
  0x35   :  { %600 = vmatpush.bf16.msra.mxu0 %v7607_v16  ;;  %v7584_v32 = vld [vmem:[#allocation2 + $0x168] sm:$0xf0]  ;;  %613 = vmatpush.bf16.msra.mxu1 %v7611_v17  ;;  %v7579_v33 = vor.u32 %v10972_v26, %v7576_v27  ;;  %v7583_v34 = vor.u32 %v10977_v30, %v7582_v28  ;;  %v7542_v35 = vld [vmem:[#allocation2 + $0x100] sm:$0xf]  ;;  %v10964_v37 = vld [vmem:[#allocation2 + $0x104] sm:$0xf] }
  0x36   :  { %626 = vmatpush.bf16.msra.mxu2 %v7615_v21  ;;  %v10968_v36 = vld [vmem:[#allocation2 + $0x11c] sm:$0xf0]  ;;  %v7587_v38 = vor.u32 %v10973_v31, %v7584_v32  ;;  %v7544_v39 = vld [vmem:[#allocation2 + $0x120] sm:$0xf0]  ;;  %v7550_v40 = vld [vmem:[#allocation2 + $0x108] sm:$0xf] }
  0x37   :  { %639 = vmatpush.bf16.msra.mxu3 %v7619_v25  ;;  %v10969_v41 = vld [vmem:[#allocation2 + $0x124] sm:$0xf0]  ;;  %v10965_v42 = vld [vmem:[#allocation2 + $0x10c] sm:$0xf]  ;;  %v7543_v44 = vor.u32 %v10968_v36, %v7542_v35  ;;  %v7547_v45 = vor.u32 %v10964_v37, %v7544_v39  ;;  %v7510_v47 = vld [vmem:[#allocation2 + $0xc0] sm:$0xf] }
  0x38   :  { %v7552_v43 = vld [vmem:[#allocation2 + $0x128] sm:$0xf0]  ;;  %v7551_v46 = vor.u32 %v10969_v41, %v7550_v40  ;;  %v10960_v48 = vld [vmem:[#allocation2 + $0xdc] sm:$0xf0]  ;;  %v10956_v49 = vld [vmem:[#allocation2 + $0xc4] sm:$0xf] }
  0x39   :  { %601 = vmatpush.bf16.msra.mxu0 %v7575_v29  ;;  %614 = vmatpush.bf16.msra.mxu1 %v7579_v33  ;;  %v7555_v50 = vor.u32 %v10965_v42, %v7552_v43  ;;  %v7512_v51 = vld [vmem:[#allocation2 + $0xe0] sm:$0xf0]  ;;  %v7518_v52 = vld [vmem:[#allocation2 + $0xc8] sm:$0xf]  ;;  %v10957_v54 = vld [vmem:[#allocation2 + $0xcc] sm:$0xf]  ;;  %v7511_v56 = vor.u32 %v10960_v48, %v7510_v47 }
  0x3a   :  { %627 = vmatpush.bf16.msra.mxu2 %v7583_v34  ;;  %v10961_v53 = vld [vmem:[#allocation2 + $0xe4] sm:$0xf0]  ;;  %v7520_v55 = vld [vmem:[#allocation2 + $0xe8] sm:$0xf0]  ;;  %v7515_v57 = vor.u32 %v10956_v49, %v7512_v51  ;;  %v7478_v59 = vld [vmem:[#allocation2 + $0x80] sm:$0xf] }
  0x3b   :  { %640 = vmatpush.bf16.msra.mxu3 %v7587_v38  ;;  %v7519_v58 = vor.u32 %v10961_v53, %v7518_v52  ;;  %v10952_v60 = vld [vmem:[#allocation2 + $0x9c] sm:$0xf0]  ;;  %v10948_v61 = vld [vmem:[#allocation2 + $0x84] sm:$0xf]  ;;  %v7523_v62 = vor.u32 %v10957_v54, %v7520_v55  ;;  %v7486_v0 = vld [vmem:[#allocation2 + $0x88] sm:$0xf] }
  0x3c   :  { %v7480_v63 = vld [vmem:[#allocation2 + $0xa0] sm:$0xf0]  ;;  %v10953_v1 = vld [vmem:[#allocation2 + $0xa4] sm:$0xf0]  ;;  %v10949_v2 = vld [vmem:[#allocation2 + $0x8c] sm:$0xf]  ;;  %v7479_v4 = vor.u32 %v10952_v60, %v7478_v59 }
  0x3d   :  { %602 = vmatpush.bf16.msra.mxu0 %v7543_v44  ;;  %615 = vmatpush.bf16.msra.mxu1 %v7547_v45  ;;  %v7488_v3 = vld [vmem:[#allocation2 + $0xa8] sm:$0xf0]  ;;  %v7483_v5 = vor.u32 %v10948_v61, %v7480_v63  ;;  %v7487_v6 = vor.u32 %v10953_v1, %v7486_v0  ;;  %v7446_v7 = vld [vmem:[#allocation2 + $0x40] sm:$0xf]  ;;  %v10940_v9 = vld [vmem:[#allocation2 + $0x44] sm:$0xf] }
  0x3e   :  { %628 = vmatpush.bf16.msra.mxu2 %v7551_v46  ;;  %v10944_v8 = vld [vmem:[#allocation2 + $0x5c] sm:$0xf0]  ;;  %v7491_v10 = vor.u32 %v10949_v2, %v7488_v3  ;;  %v7448_v11 = vld [vmem:[#allocation2 + $0x60] sm:$0xf0]  ;;  %v7454_v12 = vld [vmem:[#allocation2 + $0x48] sm:$0xf] }
  0x3f   :  { %641 = vmatpush.bf16.msra.mxu3 %v7555_v50  ;;  %v10945_v13 = vld [vmem:[#allocation2 + $0x64] sm:$0xf0]  ;;  %v10941_v14 = vld [vmem:[#allocation2 + $0x4c] sm:$0xf]  ;;  %v7447_v16 = vor.u32 %v10944_v8, %v7446_v7  ;;  %v7414_v17 = vld [vmem:[#allocation2] sm:$0xf]  ;;  %v7451_v19 = vor.u32 %v10940_v9, %v7448_v11 }
  0x40   :  { %v7456_v15 = vld [vmem:[#allocation2 + $0x68] sm:$0xf0]  ;;  %v10936_v18 = vld [vmem:[#allocation2 + $0x1c] sm:$0xf0]  ;;  %v7455_v20 = vor.u32 %v10945_v13, %v7454_v12  ;;  %v10932_v21 = vld [vmem:[#allocation2 + $0x4] sm:$0xf] }
  0x41   :  { %603 = vmatpush.bf16.msra.mxu0 %v7511_v56  ;;  %616 = vmatpush.bf16.msra.mxu1 %v7515_v57  ;;  %v7416_v22 = vld [vmem:[#allocation2 + $0x20] sm:$0xf0]  ;;  %v7422_v23 = vld [vmem:[#allocation2 + $0x8] sm:$0xf]  ;;  %v7459_v24 = vor.u32 %v10941_v14, %v7456_v15  ;;  %v10933_v26 = vld [vmem:[#allocation2 + $0xc] sm:$0xf]  ;;  %v7415_v31 = vor.u32 %v10936_v18, %v7414_v17 }
  0x42   :  { %629 = vmatpush.bf16.msra.mxu2 %v7519_v58  ;;  %v10937_v25 = vld [vmem:[#allocation2 + $0x24] sm:$0xf0]  ;;  %v7424_v27 = vld [vmem:[#allocation2 + $0x28] sm:$0xf0]  ;;  %v7654_v28 = vld [vmem:[#allocation2 + $0x1d0] sm:$0xf]  ;;  %v7419_v35 = vor.u32 %v10932_v21, %v7416_v22 }
  0x43   :  { %642 = vmatpush.bf16.msra.mxu3 %v7523_v62  ;;  %v10994_v29 = vld [vmem:[#allocation2 + $0x1ec] sm:$0xf0]  ;;  %v10990_v30 = vld [vmem:[#allocation2 + $0x1d4] sm:$0xf]  ;;  %v7662_v33 = vld [vmem:[#allocation2 + $0x1d8] sm:$0xf]  ;;  %v7423_v36 = vor.u32 %v10937_v25, %v7422_v23  ;;  %v7427_v39 = vor.u32 %v10933_v26, %v7424_v27 }
  0x44   :  { %v7656_v32 = vld [vmem:[#allocation2 + $0x1f0] sm:$0xf0]  ;;  %v10995_v34 = vld [vmem:[#allocation2 + $0x1f4] sm:$0xf0]  ;;  %v10991_v37 = vld [vmem:[#allocation2 + $0x1dc] sm:$0xf]  ;;  %v7655_v40 = vor.u32 %v10994_v29, %v7654_v28 }
  0x45   :  { %604 = vmatpush.bf16.msra.mxu0 %v7479_v4  ;;  %617 = vmatpush.bf16.msra.mxu1 %v7483_v5  ;;  %v7664_v38 = vld [vmem:[#allocation2 + $0x1f8] sm:$0xf0]  ;;  %v7659_v41 = vor.u32 %v10990_v30, %v7656_v32  ;;  %v7663_v42 = vor.u32 %v10995_v34, %v7662_v33  ;;  %v7622_v43 = vld [vmem:[#allocation2 + $0x190] sm:$0xf]  ;;  %v10982_v45 = vld [vmem:[#allocation2 + $0x194] sm:$0xf] }
  0x46   :  { %630 = vmatpush.bf16.msra.mxu2 %v7487_v6  ;;  %v10986_v44 = vld [vmem:[#allocation2 + $0x1ac] sm:$0xf0]  ;;  %v7667_v46 = vor.u32 %v10991_v37, %v7664_v38  ;;  %v7624_v47 = vld [vmem:[#allocation2 + $0x1b0] sm:$0xf0]  ;;  %v7630_v48 = vld [vmem:[#allocation2 + $0x198] sm:$0xf] }
  0x47   :  { %643 = vmatpush.bf16.msra.mxu3 %v7491_v10  ;;  %v10987_v49 = vld [vmem:[#allocation2 + $0x1b4] sm:$0xf0]  ;;  %v12211_v50 = vld [vmem:[%s12421_s0] sm:$0xf]  ;;  %v10983_v51 = vld [vmem:[#allocation2 + $0x19c] sm:$0xf]  ;;  %v7623_v53 = vor.u32 %v10986_v44, %v7622_v43  ;;  %v7627_v54 = vor.u32 %v10982_v45, %v7624_v47 }
  0x48   :  { %v7632_v52 = vld [vmem:[#allocation2 + $0x1b8] sm:$0xf0]  ;;  %v7631_v55 = vor.u32 %v10987_v49, %v7630_v48  ;;  %v7590_v56 = vld [vmem:[#allocation2 + $0x150] sm:$0xf]  ;;  %v10974_v58 = vld [vmem:[#allocation2 + $0x154] sm:$0xf] }
  0x49   :  { %605 = vmatpush.bf16.msra.mxu0 %v7447_v16  ;;  %618 = vmatpush.bf16.msra.mxu1 %v7451_v19  ;;  %v10978_v57 = vld [vmem:[#allocation2 + $0x16c] sm:$0xf0]  ;;  %v7635_v59 = vor.u32 %v10983_v51, %v7632_v52  ;;  %v7592_v60 = vld [vmem:[#allocation2 + $0x170] sm:$0xf0]  ;;  %v7598_v61 = vld [vmem:[#allocation2 + $0x158] sm:$0xf] }
  0x4a   :  { %631 = vmatpush.bf16.msra.mxu2 %v7455_v20  ;;  %v10979_v62 = vld [vmem:[#allocation2 + $0x174] sm:$0xf0]  ;;  %v10975_v63 = vld [vmem:[#allocation2 + $0x15c] sm:$0xf]  ;;  %v7591_v1 = vor.u32 %v10978_v57, %v7590_v56  ;;  %v7595_v2 = vor.u32 %v10974_v58, %v7592_v60  ;;  %v7558_v4 = vld [vmem:[#allocation2 + $0x110] sm:$0xf] }
  0x4b   :  { %644 = vmatpush.bf16.msra.mxu3 %v7459_v24  ;;  %v7600_v0 = vld [vmem:[#allocation2 + $0x178] sm:$0xf0]  ;;  %v7599_v3 = vor.u32 %v10979_v62, %v7598_v61  ;;  %v10970_v5 = vld [vmem:[#allocation2 + $0x12c] sm:$0xf0]  ;;  %v10966_v6 = vld [vmem:[#allocation2 + $0x114] sm:$0xf] }
  0x4c   :  { %v7603_v7 = vor.u32 %v10975_v63, %v7600_v0  ;;  %v7560_v8 = vld [vmem:[#allocation2 + $0x130] sm:$0xf0]  ;;  %v7566_v9 = vld [vmem:[#allocation2 + $0x118] sm:$0xf]  ;;  %v10967_v11 = vld [vmem:[#allocation2 + $0x11c] sm:$0xf]  ;;  %v7559_v13 = vor.u32 %v10970_v5, %v7558_v4 }
  0x4d   :  { %606 = vmatpush.bf16.msra.mxu0 %v7415_v31  ;;  %619 = vmatpush.bf16.msra.mxu1 %v7419_v35  ;;  %v10971_v10 = vld [vmem:[#allocation2 + $0x134] sm:$0xf0]  ;;  %v7568_v12 = vld [vmem:[#allocation2 + $0x138] sm:$0xf0]  ;;  %v7563_v14 = vor.u32 %v10966_v6, %v7560_v8  ;;  %v7526_v16 = vld [vmem:[#allocation2 + $0xd0] sm:$0xf] }
  0x4e   :  { %632 = vmatpush.bf16.msra.mxu2 %v7423_v36  ;;  %v7567_v15 = vor.u32 %v10971_v10, %v7566_v9  ;;  %v10962_v17 = vld [vmem:[#allocation2 + $0xec] sm:$0xf0]  ;;  %v10958_v18 = vld [vmem:[#allocation2 + $0xd4] sm:$0xf]  ;;  %v7571_v19 = vor.u32 %v10967_v11, %v7568_v12  ;;  %v7534_v21 = vld [vmem:[#allocation2 + $0xd8] sm:$0xf] }
  0x4f   :  { %645 = vmatpush.bf16.msra.mxu3 %v7427_v39  ;;  %v7528_v20 = vld [vmem:[#allocation2 + $0xf0] sm:$0xf0]  ;;  %v10963_v22 = vld [vmem:[#allocation2 + $0xf4] sm:$0xf0]  ;;  %v10959_v23 = vld [vmem:[#allocation2 + $0xdc] sm:$0xf]  ;;  %v7527_v25 = vor.u32 %v10962_v17, %v7526_v16 }
  0x50   :  { %607 = vmatmul.bf16.vlgmr.msra.gmra.mxu0 %v12211_v50  ;;  %620 = vmatmul.bf16.vlgmr.msra.gmra.mxu1 %v12211_v50  ;;  %v7536_v24 = vld [vmem:[#allocation2 + $0xf8] sm:$0xf0]  ;;  %v7531_v26 = vor.u32 %v10958_v18, %v7528_v20  ;;  %v7535_v27 = vor.u32 %v10963_v22, %v7534_v21  ;;  %v7494_v28 = vld [vmem:[#allocation2 + $0x90] sm:$0xf]  ;;  %v10950_v30 = vld [vmem:[#allocation2 + $0x94] sm:$0xf] }
  0x51   :  { %651 = vmatpush.bf16.msrb.mxu0 %v7655_v40  ;;  %664 = vmatpush.bf16.msrb.mxu1 %v7659_v41  ;;  %v10954_v29 = vld [vmem:[#allocation2 + $0xac] sm:$0xf0]  ;;  %v7539_v31 = vor.u32 %v10959_v23, %v7536_v24  ;;  %v7496_v32 = vld [vmem:[#allocation2 + $0xb0] sm:$0xf0]  ;;  %v7502_v33 = vld [vmem:[#allocation2 + $0x98] sm:$0xf] }
  0x52   :  { %677 = vmatpush.bf16.msrb.mxu2 %v7663_v42  ;;  %646 = vmatmul.bf16.vlgmr.msra.gmra.mxu3 %v12211_v50  ;;  %v10955_v34 = vld [vmem:[#allocation2 + $0xb4] sm:$0xf0]  ;;  %v10951_v35 = vld [vmem:[#allocation2 + $0x9c] sm:$0xf]  ;;  %v7495_v37 = vor.u32 %v10954_v29, %v7494_v28  ;;  %v7499_v38 = vor.u32 %v10950_v30, %v7496_v32  ;;  %v7462_v40 = vld [vmem:[#allocation2 + $0x50] sm:$0xf] }
  0x53   :  { %690 = vmatpush.bf16.msrb.mxu3 %v7667_v46  ;;  %633 = vmatmul.bf16.vlgmr.msra.gmra.mxu2 %v12211_v50  ;;  %v7504_v36 = vld [vmem:[#allocation2 + $0xb8] sm:$0xf0]  ;;  %v7503_v39 = vor.u32 %v10955_v34, %v7502_v33  ;;  %v10946_v41 = vld [vmem:[#allocation2 + $0x6c] sm:$0xf0]  ;;  %v10942_v42 = vld [vmem:[#allocation2 + $0x54] sm:$0xf] }
  0x54   :  { %v7507_v43 = vor.u32 %v10951_v35, %v7504_v36  ;;  %v7464_v44 = vld [vmem:[#allocation2 + $0x70] sm:$0xf0]  ;;  %v7470_v45 = vld [vmem:[#allocation2 + $0x58] sm:$0xf]  ;;  %v10943_v47 = vld [vmem:[#allocation2 + $0x5c] sm:$0xf]  ;;  %v7463_v49 = vor.u32 %v10946_v41, %v7462_v40 }
  0x55   :  { %652 = vmatpush.bf16.msrb.mxu0 %v7623_v53  ;;  %665 = vmatpush.bf16.msrb.mxu1 %v7627_v54  ;;  %v10947_v46 = vld [vmem:[#allocation2 + $0x74] sm:$0xf0]  ;;  %v7472_v48 = vld [vmem:[#allocation2 + $0x78] sm:$0xf0]  ;;  %v7430_v51 = vld [vmem:[#allocation2 + $0x10] sm:$0xf]  ;;  %v7467_v52 = vor.u32 %v10942_v42, %v7464_v44 }
  0x56   :  { %678 = vmatpush.bf16.msrb.mxu2 %v7631_v55  ;;  %v7471_v53 = vor.u32 %v10947_v46, %v7470_v45  ;;  %v10938_v54 = vld [vmem:[#allocation2 + $0x2c] sm:$0xf0]  ;;  %v10934_v55 = vld [vmem:[#allocation2 + $0x14] sm:$0xf]  ;;  %v7475_v57 = vor.u32 %v10943_v47, %v7472_v48  ;;  %v7438_v58 = vld [vmem:[#allocation2 + $0x18] sm:$0xf] }
  0x57   :  { %691 = vmatpush.bf16.msrb.mxu3 %v7635_v59  ;;  %v7432_v56 = vld [vmem:[#allocation2 + $0x30] sm:$0xf0]  ;;  %v10939_v59 = vld [vmem:[#allocation2 + $0x34] sm:$0xf0]  ;;  %v10935_v60 = vld [vmem:[#allocation2 + $0x1c] sm:$0xf]  ;;  %v7431_v0 = vor.u32 %v10938_v54, %v7430_v51 }
  0x58   :  { %v7440_v61 = vld [vmem:[#allocation2 + $0x38] sm:$0xf0]  ;;  %v7782_v62 = vld [vmem:[#allocation4 + $0xe0] sm:$0xf]  ;;  %v11026_v63 = vld [vmem:[#allocation4 + $0xec] sm:$0xf0]  ;;  %v7439_v4 = vor.u32 %v10939_v59, %v7438_v58 }
  0x59   :  { %653 = vmatpush.bf16.msrb.mxu0 %v7591_v1  ;;  %666 = vmatpush.bf16.msrb.mxu1 %v7595_v2  ;;  %v7910_v1 = vld [vmem:[#allocation4 + $0x1e0] sm:$0xf]  ;;  %v11058_v2 = vld [vmem:[#allocation4 + $0x1ec] sm:$0xf0]  ;;  %v7443_v5 = vor.u32 %v10935_v60, %v7440_v61  ;;  %v7783_v6 = vor.u32 %v11026_v63, %v7782_v62 }
  0x5a   :  { %679 = vmatpush.bf16.msrb.mxu2 %v7599_v3  ;;  %v7435_v3 = vor.u32 %v10934_v55, %v7432_v56  ;;  %v8038_v8 = vld [vmem:[#allocation4 + $0x2e0] sm:$0xf]  ;;  %v11090_v9 = vld [vmem:[#allocation4 + $0x2ec] sm:$0xf0]  ;;  %v7911_v10 = vor.u32 %v11058_v2, %v7910_v1 }
  0x5b   :  { %692 = vmatpush.bf16.msrb.mxu3 %v7603_v7  ;;  %v7766_v7 = vld [vmem:[#allocation4 + $0xc0] sm:$0xf]  ;;  %v11022_v11 = vld [vmem:[#allocation4 + $0xcc] sm:$0xf0]  ;;  %v8039_v16 = vor.u32 %v11090_v9, %v8038_v8 }
  0x5c   :  { %v8166_v12 = vld [vmem:[#allocation4 + $0x3e0] sm:$0xf]  ;;  %v7767_v17 = vor.u32 %v11022_v11, %v7766_v7  ;;  %v11086_v21 = vld [vmem:[#allocation4 + $0x2cc] sm:$0xf0] }
  0x5d   :  { %654 = vmatpush.bf16.msrb.mxu0 %v7559_v13  ;;  %667 = vmatpush.bf16.msrb.mxu1 %v7563_v14  ;;  %v11122_v13 = vld [vmem:[#allocation4 + $0x3ec] sm:$0xf0]  ;;  %v7894_v14 = vld [vmem:[#allocation4 + $0x1c0] sm:$0xf] }
  0x5e   :  { %680 = vmatpush.bf16.msrb.mxu2 %v7567_v15  ;;  %v11054_v15 = vld [vmem:[#allocation4 + $0x1cc] sm:$0xf0]  ;;  %v8167_v18 = vor.u32 %v11122_v13, %v8166_v12  ;;  %v8022_v20 = vld [vmem:[#allocation4 + $0x2c0] sm:$0xf] }
  0x5f   :  { %693 = vmatpush.bf16.msrb.mxu3 %v7571_v19  ;;  %v7750_v19 = vld [vmem:[#allocation4 + $0xa0] sm:$0xf]  ;;  %v7895_v22 = vor.u32 %v11054_v15, %v7894_v14  ;;  %v11018_v23 = vld [vmem:[#allocation4 + $0xac] sm:$0xf0]  ;;  %v8023_v28 = vor.u32 %v11086_v21, %v8022_v20 }
  0x60   :  { %v8150_v24 = vld [vmem:[#allocation4 + $0x3c0] sm:$0xf]  ;;  %v7751_v29 = vor.u32 %v11018_v23, %v7750_v19  ;;  %v11082_v33 = vld [vmem:[#allocation4 + $0x2ac] sm:$0xf0] }
  0x61   :  { %655 = vmatpush.bf16.msrb.mxu0 %v7527_v25  ;;  %668 = vmatpush.bf16.msrb.mxu1 %v7531_v26  ;;  %v11118_v25 = vld [vmem:[#allocation4 + $0x3cc] sm:$0xf0]  ;;  %v7878_v26 = vld [vmem:[#allocation4 + $0x1a0] sm:$0xf] }
  0x62   :  { %681 = vmatpush.bf16.msrb.mxu2 %v7535_v27  ;;  %v11050_v27 = vld [vmem:[#allocation4 + $0x1ac] sm:$0xf0]  ;;  %v8151_v30 = vor.u32 %v11118_v25, %v8150_v24  ;;  %v8006_v32 = vld [vmem:[#allocation4 + $0x2a0] sm:$0xf] }
  0x63   :  { %694 = vmatpush.bf16.msrb.mxu3 %v7539_v31  ;;  %v7734_v31 = vld [vmem:[#allocation4 + $0x80] sm:$0xf]  ;;  %v7879_v34 = vor.u32 %v11050_v27, %v7878_v26  ;;  %v11014_v35 = vld [vmem:[#allocation4 + $0x8c] sm:$0xf0]  ;;  %v8007_v40 = vor.u32 %v11082_v33, %v8006_v32 }
  0x64   :  { %v8134_v36 = vld [vmem:[#allocation4 + $0x3a0] sm:$0xf]  ;;  %v11078_v44 = vld [vmem:[#allocation4 + $0x28c] sm:$0xf0] }
  0x65   :  { %656 = vmatpush.bf16.msrb.mxu0 %v7495_v37  ;;  %669 = vmatpush.bf16.msrb.mxu1 %v7499_v38  ;;  %v11114_v37 = vld [vmem:[#allocation4 + $0x3ac] sm:$0xf0]  ;;  %v7862_v38 = vld [vmem:[#allocation4 + $0x180] sm:$0xf] }
  0x66   :  { %682 = vmatpush.bf16.msrb.mxu2 %v7503_v39  ;;  %v11046_v39 = vld [vmem:[#allocation4 + $0x18c] sm:$0xf0]  ;;  %v8135_v41 = vor.u32 %v11114_v37, %v8134_v36  ;;  %v7718_v42 = vld [vmem:[#allocation4 + $0x60] sm:$0xf] }
  0x67   :  { %695 = vmatpush.bf16.msrb.mxu3 %v7507_v43  ;;  %v7990_v43 = vld [vmem:[#allocation4 + $0x280] sm:$0xf]  ;;  %v7863_v45 = vor.u32 %v11046_v39, %v7862_v38  ;;  %v11010_v46 = vld [vmem:[#allocation4 + $0x6c] sm:$0xf0] }
  0x68   :  { %v8118_v47 = vld [vmem:[#allocation4 + $0x380] sm:$0xf]  ;;  %v11110_v48 = vld [vmem:[#allocation4 + $0x38c] sm:$0xf0] }
  0x69   :  { %657 = vmatpush.bf16.msrb.mxu0 %v7463_v49  ;;  %670 = vmatpush.bf16.msrb.mxu1 %v7467_v52  ;;  %v7846_v49 = vld [vmem:[#allocation4 + $0x160] sm:$0xf]  ;;  %v11042_v51 = vld [vmem:[#allocation4 + $0x16c] sm:$0xf0]  ;;  %v7991_v52 = vor.u32 %v11078_v44, %v7990_v43  ;;  %v8119_v54 = vor.u32 %v11110_v48, %v8118_v47 }
  0x6a   :  { %683 = vmatpush.bf16.msrb.mxu2 %v7471_v53  ;;  %v7719_v53 = vor.u32 %v11010_v46, %v7718_v42  ;;  %v7702_v55 = vld [vmem:[#allocation4 + $0x40] sm:$0xf]  ;;  %v7847_v58 = vor.u32 %v11042_v51, %v7846_v49  ;;  %v11006_v59 = vld [vmem:[#allocation4 + $0x4c] sm:$0xf0] }
  0x6b   :  { %696 = vmatpush.bf16.msrb.mxu3 %v7475_v57  ;;  %v7974_v56 = vld [vmem:[#allocation4 + $0x260] sm:$0xf]  ;;  %v11074_v57 = vld [vmem:[#allocation4 + $0x26c] sm:$0xf0]  ;;  %v7703_v1 = vor.u32 %v11006_v59, %v7702_v55 }
  0x6c   :  { %v8102_v60 = vld [vmem:[#allocation4 + $0x360] sm:$0xf]  ;;  %v11106_v61 = vld [vmem:[#allocation4 + $0x36c] sm:$0xf0] }
  0x6d   :  { %658 = vmatpush.bf16.msrb.mxu0 %v7431_v0  ;;  %671 = vmatpush.bf16.msrb.mxu1 %v7435_v3  ;;  %v7830_v62 = vld [vmem:[#allocation4 + $0x140] sm:$0xf]  ;;  %v11038_v63 = vld [vmem:[#allocation4 + $0x14c] sm:$0xf0]  ;;  %v7975_v0 = vor.u32 %v11074_v57, %v7974_v56  ;;  %v8103_v2 = vor.u32 %v11106_v61, %v8102_v60 }
  0x6e   :  { %684 = vmatpush.bf16.msrb.mxu2 %v7439_v4  ;;  %v7686_v3 = vld [vmem:[#allocation4 + $0x20] sm:$0xf]  ;;  %v11002_v7 = vld [vmem:[#allocation4 + $0x2c] sm:$0xf0] }
  0x6f   :  { %697 = vmatpush.bf16.msrb.mxu3 %v7443_v5  ;;  %v7958_v4 = vld [vmem:[#allocation4 + $0x240] sm:$0xf]  ;;  %v11070_v5 = vld [vmem:[#allocation4 + $0x24c] sm:$0xf0]  ;;  %v7687_v14 = vor.u32 %v11002_v7, %v7686_v3 }
  0x70   :  { %659 = vmatmul.bf16.vlgmr.msrb.gmra.mxu0 %v12211_v50  ;;  %672 = vmatmul.bf16.vlgmr.msrb.gmra.mxu1 %v12211_v50  ;;  %v8086_v8 = vld [vmem:[#allocation4 + $0x340] sm:$0xf]  ;;  %v11102_v9 = vld [vmem:[#allocation4 + $0x34c] sm:$0xf0]  ;;  %v7959_v12 = vor.u32 %v11070_v5, %v7958_v4 }
  0x71   :  { %2266 = vmatpush.bf16.msra.mxu0 %v7783_v6  ;;  %2279 = vmatpush.bf16.msra.mxu1 %v7911_v10  ;;  %v7831_v6 = vor.u32 %v11038_v63, %v7830_v62  ;;  %v7814_v10 = vld [vmem:[#allocation4 + $0x120] sm:$0xf]  ;;  %v11034_v11 = vld [vmem:[#allocation4 + $0x12c] sm:$0xf0]  ;;  %v8087_v15 = vor.u32 %v11102_v9, %v8086_v8 }
  0x72   :  { %685 = vmatmul.bf16.vlgmr.msrb.gmra.mxu2 %v12211_v50  ;;  %698 = vmatmul.bf16.vlgmr.msrb.gmra.mxu3 %v12211_v50  ;;  %v7735_v50 = vor.u32 %v11014_v35, %v7734_v31  ;;  %v7670_v13 = vld [vmem:[#allocation4] sm:$0xf]  ;;  %v7815_v19 = vor.u32 %v11034_v11, %v7814_v10  ;;  %v11030_v23 = vld [vmem:[#allocation4 + $0x10c] sm:$0xf0] }
  0x73   :  { %2292 = vmatpush.bf16.msra.mxu2 %v8039_v16  ;;  %2305 = vmatpush.bf16.msra.mxu3 %v8167_v18  ;;  %v10998_v16 = vld [vmem:[#allocation4 + $0xc] sm:$0xf0]  ;;  %v7798_v20 = vld [vmem:[#allocation4 + $0x100] sm:$0xf] }
  0x74   :  { %v11066_v18 = vld [vmem:[#allocation4 + $0x22c] sm:$0xf0]  ;;  %v8070_v21 = vld [vmem:[#allocation4 + $0x320] sm:$0xf]  ;;  %v7799_v35 = vor.u32 %v11030_v23, %v7798_v20 }
  0x75   :  { %2267 = vmatpush.bf16.msra.mxu0 %v7767_v17  ;;  %2280 = vmatpush.bf16.msra.mxu1 %v7895_v22  ;;  %v7942_v17 = vld [vmem:[#allocation4 + $0x220] sm:$0xf]  ;;  %v11098_v22 = vld [vmem:[#allocation4 + $0x32c] sm:$0xf0] }
  0x76   :  { %v8294_v24 = vld [vmem:[#allocation4 + $0x4e0] sm:$0xf]  ;;  %v11154_v25 = vld [vmem:[#allocation4 + $0x4ec] sm:$0xf0] }
  0x77   :  { %2293 = vmatpush.bf16.msra.mxu2 %v8023_v28  ;;  %2306 = vmatpush.bf16.msra.mxu3 %v8151_v30  ;;  %v8422_v26 = vld [vmem:[#allocation4 + $0x5e0] sm:$0xf]  ;;  %v11186_v27 = vld [vmem:[#allocation4 + $0x5ec] sm:$0xf0]  ;;  %v7943_v28 = vor.u32 %v11066_v18, %v7942_v17  ;;  %v8071_v30 = vor.u32 %v11098_v22, %v8070_v21  ;;  %v8295_v36 = vor.u32 %v11154_v25, %v8294_v24 }
  0x78   :  { %v8278_v31 = vld [vmem:[#allocation4 + $0x4c0] sm:$0xf]  ;;  %v11062_v33 = vld [vmem:[#allocation4 + $0x20c] sm:$0xf0] }
  0x79   :  { %2268 = vmatpush.bf16.msra.mxu0 %v7751_v29  ;;  %2281 = vmatpush.bf16.msra.mxu1 %v7879_v34  ;;  %v7671_v29 = vor.u32 %v10998_v16, %v7670_v13  ;;  %v7926_v32 = vld [vmem:[#allocation4 + $0x200] sm:$0xf]  ;;  %v11094_v37 = vld [vmem:[#allocation4 + $0x30c] sm:$0xf0] }
  0x7a   :  { %v8054_v34 = vld [vmem:[#allocation4 + $0x300] sm:$0xf]  ;;  %v11218_v39 = vld [vmem:[#allocation4 + $0x6ec] sm:$0xf0] }
  0x7b   :  { %2294 = vmatpush.bf16.msra.mxu2 %v8007_v40  ;;  %2307 = vmatpush.bf16.msra.mxu3 %v8135_v41  ;;  %v8550_v38 = vld [vmem:[#allocation4 + $0x6e0] sm:$0xf]  ;;  %v8423_v40 = vor.u32 %v11186_v27, %v8422_v26  ;;  %v11250_v42 = vld [vmem:[#allocation4 + $0x7ec] sm:$0xf0]  ;;  %v8055_v46 = vor.u32 %v11094_v37, %v8054_v34 }
  0x7c   :  { %v8678_v41 = vld [vmem:[#allocation4 + $0x7e0] sm:$0xf]  ;;  %v11182_v44 = vld [vmem:[#allocation4 + $0x5cc] sm:$0xf0]  ;;  %v8551_v47 = vor.u32 %v11218_v39, %v8550_v38 }
  0x7d   :  { %2269 = vmatpush.bf16.msra.mxu0 %v7735_v50  ;;  %2282 = vmatpush.bf16.msra.mxu1 %v7863_v45  ;;  %v11150_v50 = vld [vmem:[#allocation4 + $0x4cc] sm:$0xf0]  ;;  %v8406_v43 = vld [vmem:[#allocation4 + $0x5c0] sm:$0xf]  ;;  %v7927_v45 = vor.u32 %v11062_v33, %v7926_v32  ;;  %v8679_v49 = vor.u32 %v11250_v42, %v8678_v41 }
  0x7e   :  { %v8279_v48 = vor.u32 %v11150_v50, %v8278_v31  ;;  %v8262_v51 = vld [vmem:[#allocation4 + $0x4a0] sm:$0xf]  ;;  %v11146_v55 = vld [vmem:[#allocation4 + $0x4ac] sm:$0xf0] }
  0x7f   :  { %2295 = vmatpush.bf16.msra.mxu2 %v7991_v52  ;;  %2308 = vmatpush.bf16.msra.mxu3 %v8119_v54  ;;  %v8534_v52 = vld [vmem:[#allocation4 + $0x6c0] sm:$0xf]  ;;  %v8407_v54 = vor.u32 %v11182_v44, %v8406_v43  ;;  %v11246_v57 = vld [vmem:[#allocation4 + $0x7cc] sm:$0xf0]  ;;  %v8263_v61 = vor.u32 %v11146_v55, %v8262_v51 }
  0x80   :  { %v8662_v56 = vld [vmem:[#allocation4 + $0x7c0] sm:$0xf]  ;;  %v11178_v59 = vld [vmem:[#allocation4 + $0x5ac] sm:$0xf0] }
  0x81   :  { %2270 = vmatpush.bf16.msra.mxu0 %v7719_v53  ;;  %2283 = vmatpush.bf16.msra.mxu1 %v7847_v58  ;;  %v11214_v53 = vld [vmem:[#allocation4 + $0x6cc] sm:$0xf0]  ;;  %v8390_v58 = vld [vmem:[#allocation4 + $0x5a0] sm:$0xf]  ;;  %v8663_v62 = vor.u32 %v11246_v57, %v8662_v56 }
  0x82   :  { %v8535_v60 = vor.u32 %v11214_v53, %v8534_v52  ;;  %v8246_v63 = vld [vmem:[#allocation4 + $0x480] sm:$0xf]  ;;  %v11142_v3 = vld [vmem:[#allocation4 + $0x48c] sm:$0xf0] }
  0x83   :  { %2296 = vmatpush.bf16.msra.mxu2 %v7975_v0  ;;  %2309 = vmatpush.bf16.msra.mxu3 %v8103_v2  ;;  %v8518_v0 = vld [vmem:[#allocation4 + $0x6a0] sm:$0xf]  ;;  %v8391_v2 = vor.u32 %v11178_v59, %v8390_v58  ;;  %v11242_v5 = vld [vmem:[#allocation4 + $0x7ac] sm:$0xf0]  ;;  %v8247_v9 = vor.u32 %v11142_v3, %v8246_v63 }
  0x84   :  { %v8646_v4 = vld [vmem:[#allocation4 + $0x7a0] sm:$0xf]  ;;  %v11174_v7 = vld [vmem:[#allocation4 + $0x58c] sm:$0xf0] }
  0x85   :  { %2271 = vmatpush.bf16.msra.mxu0 %v7703_v1  ;;  %2284 = vmatpush.bf16.msra.mxu1 %v7831_v6  ;;  %v11210_v1 = vld [vmem:[#allocation4 + $0x6ac] sm:$0xf0]  ;;  %v8374_v6 = vld [vmem:[#allocation4 + $0x580] sm:$0xf]  ;;  %v8647_v10 = vor.u32 %v11242_v5, %v8646_v4 }
  0x86   :  { %v8519_v8 = vor.u32 %v11210_v1, %v8518_v0  ;;  %v8230_v11 = vld [vmem:[#allocation4 + $0x460] sm:$0xf]  ;;  %v11206_v13 = vld [vmem:[#allocation4 + $0x68c] sm:$0xf0] }
  0x87   :  { %2297 = vmatpush.bf16.msra.mxu2 %v7959_v12  ;;  %2310 = vmatpush.bf16.msra.mxu3 %v8087_v15  ;;  %v8502_v12 = vld [vmem:[#allocation4 + $0x680] sm:$0xf]  ;;  %v11138_v15 = vld [vmem:[#allocation4 + $0x46c] sm:$0xf0] }
  0x88   :  { %v8630_v16 = vld [vmem:[#allocation4 + $0x780] sm:$0xf]  ;;  %v11238_v17 = vld [vmem:[#allocation4 + $0x78c] sm:$0xf0]  ;;  %v8503_v20 = vor.u32 %v11206_v13, %v8502_v12  ;;  %v8231_v21 = vor.u32 %v11138_v15, %v8230_v11  ;;  %v7784_v11 = vld [vmem:[#allocation4 + $0xf0] sm:$0xf0] }
  0x89   :  { %2272 = vmatpush.bf16.msra.mxu0 %v7687_v14  ;;  %2285 = vmatpush.bf16.msra.mxu1 %v7815_v19  ;;  %v8375_v14 = vor.u32 %v11174_v7, %v8374_v6  ;;  %v8358_v18 = vld [vmem:[#allocation4 + $0x560] sm:$0xf]  ;;  %v11170_v19 = vld [vmem:[#allocation4 + $0x56c] sm:$0xf0]  ;;  %v8631_v22 = vor.u32 %v11238_v17, %v8630_v16  ;;  %v11056_v13 = vld [vmem:[#allocation4 + $0x1e4] sm:$0xf] }
  0x8a   :  { %v8359_v23 = vor.u32 %v11170_v19, %v8358_v18  ;;  %v8214_v24 = vld [vmem:[#allocation4 + $0x440] sm:$0xf]  ;;  %v11134_v25 = vld [vmem:[#allocation4 + $0x44c] sm:$0xf0] }
  0x8b   :  { %2298 = vmatpush.bf16.msra.mxu2 %v7943_v28  ;;  %2311 = vmatpush.bf16.msra.mxu3 %v8071_v30  ;;  %v8342_v26 = vld [vmem:[#allocation4 + $0x540] sm:$0xf]  ;;  %v11166_v27 = vld [vmem:[#allocation4 + $0x54c] sm:$0xf0]  ;;  %v8215_v28 = vor.u32 %v11134_v25, %v8214_v24  ;;  %v11052_v25 = vld [vmem:[#allocation4 + $0x1c4] sm:$0xf] }
  0x8c   :  { %v8486_v30 = vld [vmem:[#allocation4 + $0x660] sm:$0xf]  ;;  %v11202_v31 = vld [vmem:[#allocation4 + $0x66c] sm:$0xf0] }
  0x8d   :  { %2273 = vmatpush.bf16.msra.mxu0 %v7671_v29  ;;  %2286 = vmatpush.bf16.msra.mxu1 %v7799_v35  ;;  %v8343_v29 = vor.u32 %v11166_v27, %v8342_v26  ;;  %v8614_v32 = vld [vmem:[#allocation4 + $0x760] sm:$0xf]  ;;  %v8487_v33 = vor.u32 %v11202_v31, %v8486_v30  ;;  %v11234_v34 = vld [vmem:[#allocation4 + $0x76c] sm:$0xf0]  ;;  %v7896_v26 = vld [vmem:[#allocation4 + $0x1d0] sm:$0xf0] }
  0x8e   :  { %v8615_v35 = vor.u32 %v11234_v34, %v8614_v32  ;;  %v11130_v37 = vld [vmem:[#allocation4 + $0x42c] sm:$0xf0]  ;;  %v8326_v39 = vld [vmem:[#allocation4 + $0x520] sm:$0xf]  ;;  %v11088_v32 = vld [vmem:[#allocation4 + $0x2e4] sm:$0xf] }
  0x8f   :  { %2299 = vmatpush.bf16.msra.mxu2 %v7927_v45  ;;  %2312 = vmatpush.bf16.msra.mxu3 %v8055_v46  ;;  %v8470_v41 = vld [vmem:[#allocation4 + $0x640] sm:$0xf]  ;;  %v11198_v42 = vld [vmem:[#allocation4 + $0x64c] sm:$0xf0]  ;;  %v11120_v34 = vld [vmem:[#allocation4 + $0x3e4] sm:$0xf] }
  0x90   :  { %v8598_v43 = vld [vmem:[#allocation4 + $0x740] sm:$0xf]  ;;  %v8471_v44 = vor.u32 %v11198_v42, %v8470_v41  ;;  %v11230_v45 = vld [vmem:[#allocation4 + $0x74c] sm:$0xf0]  ;;  %v11048_v41 = vld [vmem:[#allocation4 + $0x1a4] sm:$0xf] }
  0x91   :  { %2318 = vmatpush.bf16.msrb.mxu0 %v8295_v36  ;;  %2331 = vmatpush.bf16.msrb.mxu1 %v8423_v40  ;;  %v8198_v36 = vld [vmem:[#allocation4 + $0x420] sm:$0xf]  ;;  %v11162_v40 = vld [vmem:[#allocation4 + $0x52c] sm:$0xf0]  ;;  %v8599_v46 = vor.u32 %v11230_v45, %v8598_v43  ;;  %v7880_v42 = vld [vmem:[#allocation4 + $0x1b0] sm:$0xf0] }
  0x92   :  { %v8199_v38 = vor.u32 %v11130_v37, %v8198_v36  ;;  %v8327_v50 = vor.u32 %v11162_v40, %v8326_v39  ;;  %v11158_v52 = vld [vmem:[#allocation4 + $0x50c] sm:$0xf0]  ;;  %v8582_v57 = vld [vmem:[#allocation4 + $0x720] sm:$0xf]  ;;  %v7899_v37 = vor.u32 %v11052_v25, %v7896_v26  ;;  %v11016_v39 = vld [vmem:[#allocation4 + $0xa4] sm:$0xf] }
  0x93   :  { %2344 = vmatpush.bf16.msrb.mxu2 %v8551_v47  ;;  %2357 = vmatpush.bf16.msrb.mxu3 %v8679_v49  ;;  %v8182_v47 = vld [vmem:[#allocation4 + $0x400] sm:$0xf]  ;;  %v11194_v55 = vld [vmem:[#allocation4 + $0x62c] sm:$0xf0]  ;;  %v7752_v40 = vld [vmem:[#allocation4 + $0xb0] sm:$0xf0] }
  0x94   :  { %v8310_v49 = vld [vmem:[#allocation4 + $0x500] sm:$0xf]  ;;  %v11226_v58 = vld [vmem:[#allocation4 + $0x72c] sm:$0xf0] }
  0x95   :  { %2319 = vmatpush.bf16.msrb.mxu0 %v8279_v48  ;;  %2332 = vmatpush.bf16.msrb.mxu1 %v8407_v54  ;;  %v11126_v48 = vld [vmem:[#allocation4 + $0x40c] sm:$0xf0]  ;;  %v8311_v53 = vor.u32 %v11158_v52, %v8310_v49  ;;  %v8454_v54 = vld [vmem:[#allocation4 + $0x620] sm:$0xf]  ;;  %v8583_v59 = vor.u32 %v11226_v58, %v8582_v57  ;;  %v8024_v49 = vld [vmem:[#allocation4 + $0x2d0] sm:$0xf0] }
  0x96   :  { %v8183_v51 = vor.u32 %v11126_v48, %v8182_v47  ;;  %v8455_v56 = vor.u32 %v11194_v55, %v8454_v54  ;;  %v8566_v63 = vld [vmem:[#allocation4 + $0x700] sm:$0xf]  ;;  %v11222_v0 = vld [vmem:[#allocation4 + $0x70c] sm:$0xf0]  ;;  %v7755_v47 = vor.u32 %v11016_v39, %v7752_v40  ;;  %v11084_v48 = vld [vmem:[#allocation4 + $0x2c4] sm:$0xf] }
  0x97   :  { %2345 = vmatpush.bf16.msrb.mxu2 %v8535_v60  ;;  %2358 = vmatpush.bf16.msrb.mxu3 %v8663_v62  ;;  %v8438_v60 = vld [vmem:[#allocation4 + $0x600] sm:$0xf]  ;;  %v8567_v1 = vor.u32 %v11222_v0, %v8566_v63  ;;  %v8152_v54 = vld [vmem:[#allocation4 + $0x3d0] sm:$0xf0]  ;;  %v11012_v55 = vld [vmem:[#allocation4 + $0x84] sm:$0xf] }
  0x98   :  { %v260_v3 = vld [vmem:[#allocation16] ss:$8 sm:$0xf0]  ;;  %v11044_v57 = vld [vmem:[#allocation4 + $0x184] sm:$0xf] }
  0x99   :  { %2320 = vmatpush.bf16.msrb.mxu0 %v8263_v61  ;;  %2333 = vmatpush.bf16.msrb.mxu1 %v8391_v2  ;;  %v11190_v61 = vld [vmem:[#allocation4 + $0x60c] sm:$0xf0]  ;;  %v7864_v58 = vld [vmem:[#allocation4 + $0x190] sm:$0xf0]  ;;  %v11080_v0 = vld [vmem:[#allocation4 + $0x2a4] sm:$0xf] }
  0x9a   :  { %v8439_v62 = vor.u32 %v11190_v61, %v8438_v60  ;;  %v259_v2 = vld [vmem:[#allocation16] ss:$8 sm:$0xf]  ;;  %v8027_v60 = vor.u32 %v11084_v48, %v8024_v49  ;;  %v7672_v48 = vld [vmem:[#allocation4 + $0x10] sm:$0xf0] }
  0x9b   :  { %2346 = vmatpush.bf16.msrb.mxu2 %v8519_v8  ;;  %2359 = vmatpush.bf16.msrb.mxu3 %v8647_v10  ;;  %v12221_v4 = vor.u32 %v260_v3, %v259_v2  ;;  %v11024_v10 = vld [vmem:[#allocation4 + $0xe4] sm:$0xf]  ;;  %v7867_v3 = vor.u32 %v11044_v57, %v7864_v58  ;;  %v8296_v58 = vld [vmem:[#allocation4 + $0x4f0] sm:$0xf0] }
  0x9c   :  { %v7787_v18 = vor.u32 %v11024_v10, %v7784_v11  ;;  %v11112_v2 = vld [vmem:[#allocation4 + $0x3a4] sm:$0xf] }
  0x9d   :  { %2321 = vmatpush.bf16.msrb.mxu0 %v8247_v9  ;;  %2334 = vmatpush.bf16.msrb.mxu1 %v8375_v14  ;;  %v263_v5 = vperm.slane %v12221_v4, 0  ;;  %v264_v6 = vperm.slane %v12221_v4, 1  ;;  %v7912_v14 = vld [vmem:[#allocation4 + $0x1f0] sm:$0xf0]  ;;  %v265_v17 = vperm.slane %v12221_v4, 2 }
  0x9f   :  { %2347 = vmatpush.bf16.msrb.mxu2 %v8503_v20  ;;  %2360 = vmatpush.bf16.msrb.mxu3 %v8631_v22  ;;  %v266_v20 = vperm.slane %v12221_v4, 3  ;;  %v11020_v22 = vld [vmem:[#allocation4 + $0xc4] sm:$0xf] }
  0xa1   :  { %2322 = vmatpush.bf16.msrb.mxu0 %v8231_v21  ;;  %2335 = vmatpush.bf16.msrb.mxu1 %v8359_v23  ;;  %v7915_v21 = vor.u32 %v11056_v13, %v7912_v14  ;;  %v7768_v23 = vld [vmem:[#allocation4 + $0xd0] sm:$0xf0]  ;;  %v11076_v13 = vld [vmem:[#allocation4 + $0x284] sm:$0xf] }
  0xa2   :  { %v7771_v31 = vor.u32 %v11020_v22, %v7768_v23  ;;  %v7992_v14 = vld [vmem:[#allocation4 + $0x290] sm:$0xf0] }
  0xa3   :  { %2348 = vmatpush.bf16.msrb.mxu2 %v8487_v33  ;;  %2361 = vmatpush.bf16.msrb.mxu3 %v8615_v35  ;;  %v8040_v33 = vld [vmem:[#allocation4 + $0x2f0] sm:$0xf0]  ;;  %v7995_v23 = vor.u32 %v11076_v13, %v7992_v14  ;;  %v11148_v14 = vld [vmem:[#allocation4 + $0x4c4] sm:$0xf] }
  0xa4   :  { %v7832_v22 = vld [vmem:[#allocation4 + $0x150] sm:$0xf0] }
  0xa5   :  { %2323 = vmatpush.bf16.msrb.mxu0 %v8215_v28  ;;  %2336 = vmatpush.bf16.msrb.mxu1 %v8343_v29 }
  0xa7   :  { %2349 = vmatpush.bf16.msrb.mxu2 %v8471_v44  ;;  %2362 = vmatpush.bf16.msrb.mxu3 %v8599_v46  ;;  %v8043_v44 = vor.u32 %v11088_v32, %v8040_v33  ;;  %v11000_v32 = vld [vmem:[#allocation4 + $0x24] sm:$0xf]  ;;  %v7688_v33 = vld [vmem:[#allocation4 + $0x30] sm:$0xf0] }
  0xa8   :  { %v7691_v40 = vor.u32 %v11000_v32, %v7688_v33  ;;  %v8552_v32 = vld [vmem:[#allocation4 + $0x6f0] sm:$0xf0]  ;;  %v11248_v33 = vld [vmem:[#allocation4 + $0x7e4] sm:$0xf] }
  0xa9   :  { %2324 = vmatpush.bf16.msrb.mxu0 %v8199_v38  ;;  %2337 = vmatpush.bf16.msrb.mxu1 %v8327_v50  ;;  %v8168_v38 = vld [vmem:[#allocation4 + $0x3f0] sm:$0xf0] }
  0xaa   :  { %v8171_v46 = vor.u32 %v11120_v34, %v8168_v38  ;;  %v267_v34 = vperm.slane %v12221_v4, 4 }
  0xab   :  { %2350 = vmatpush.bf16.msrb.mxu2 %v8455_v56  ;;  %2363 = vmatpush.bf16.msrb.mxu3 %v8583_v59  ;;  %v7736_v56 = vld [vmem:[#allocation4 + $0x90] sm:$0xf0] }
  0xac   :  { %v7739_v63 = vor.u32 %v11012_v55, %v7736_v56  ;;  %v11152_v55 = vld [vmem:[#allocation4 + $0x4e4] sm:$0xf] }
  0xad   :  { %2325 = vmatpush.bf16.msrb.mxu0 %v8183_v51  ;;  %2338 = vmatpush.bf16.msrb.mxu1 %v8311_v53  ;;  %v11116_v51 = vld [vmem:[#allocation4 + $0x3c4] sm:$0xf]  ;;  %v7883_v53 = vor.u32 %v11048_v41, %v7880_v42  ;;  %v7960_v41 = vld [vmem:[#allocation4 + $0x250] sm:$0xf0] }
  0xae   :  { %v11100_v42 = vld [vmem:[#allocation4 + $0x344] sm:$0xf] }
  0xaf   :  { %2351 = vmatpush.bf16.msrb.mxu2 %v8439_v62  ;;  %2364 = vmatpush.bf16.msrb.mxu3 %v8567_v1  ;;  %v8155_v62 = vor.u32 %v11116_v51, %v8152_v54  ;;  %v8008_v1 = vld [vmem:[#allocation4 + $0x2b0] sm:$0xf0] }
  0xb0   :  { %v8011_v10 = vor.u32 %v11080_v0, %v8008_v1  ;;  %v7800_v54 = vld [vmem:[#allocation4 + $0x110] sm:$0xf0]  ;;  %v11064_v0 = vld [vmem:[#allocation4 + $0x224] sm:$0xf] }
  0xb1   :  { %v7944_v1 = vld [vmem:[#allocation4 + $0x230] sm:$0xf0] }
  0xb2   :  { %v7947_v13 = vor.u32 %v11064_v0, %v7944_v1  ;;  %v11208_v1 = vld [vmem:[#allocation4 + $0x6a4] sm:$0xf] }
  0xcd   :  { %v608_v7 = vpop.f32.mrf.mxu0  ;;  %v621_v9 = vpop.f32.mrf.mxu1 }
  0xce   :  { %v609_v8 = vadd.f32 %v608_v7, %v263_v5  ;;  %v622_v12 = vadd.f32 %v621_v9, %v264_v6  ;;  %v8136_v5 = vld [vmem:[#allocation4 + $0x3b0] sm:$0xf0]  ;;  %v11008_v6 = vld [vmem:[#allocation4 + $0x64] sm:$0xf] }
  0xcf   :  { %v7720_v7 = vld [vmem:[#allocation4 + $0x70] sm:$0xf0]  ;;  %v8139_v11 = vor.u32 %v11112_v2, %v8136_v5 }
  0xd0   :  { %v703_v15 = vmax.f32 %v609_v8, 0.0  ;;  %v704_v16 = vmax.f32 %v622_v12, 0.0  ;;  %v11040_v8 = vld [vmem:[#allocation4 + $0x164] sm:$0xf]  ;;  %v7848_v9 = vld [vmem:[#allocation4 + $0x170] sm:$0xf0]  ;;  %v7723_v12 = vor.u32 %v11008_v6, %v7720_v7 }
  0xd1   :  { %v11096_v6 = vld [vmem:[#allocation4 + $0x324] sm:$0xf]  ;;  %v8072_v7 = vld [vmem:[#allocation4 + $0x330] sm:$0xf0] }
  0xd2   :  { %v12226_v19 = vpack.c.bf16 %v703_v15, %v703_v15  ;;  %v12229_v24 = vpack.c.bf16 %v704_v16, %v704_v16  ;;  %v11108_v15 = vld [vmem:[#allocation4 + $0x384] sm:$0xf]  ;;  %v7851_v16 = vor.u32 %v11040_v8, %v7848_v9  ;;  %v270_v9 = vperm.slane %v12221_v4, 7 }
  0xd4   :  { %2274 = vmatmul.bf16.vlgmr.msra.gmra.mxu0 %v12226_v19  ;;  %2287 = vmatmul.bf16.vlgmr.msra.gmra.mxu1 %v12229_v24 }
  0xd5   :  { %v647_v29 = vpop.f32.mrf.mxu3  ;;  %2370 = vmatpush.bf16.msra.mxu0 %v7787_v18  ;;  %v610_v30 = vpop.f32.mrf.mxu0  ;;  %2383 = vmatpush.bf16.msra.mxu1 %v7915_v21  ;;  %v11004_v18 = vld [vmem:[#allocation4 + $0x44] sm:$0xf] }
  0xd6   :  { %v634_v27 = vpop.f32.mrf.mxu2  ;;  %v648_v35 = vadd.f32 %v647_v29, %v266_v20  ;;  %v623_v36 = vpop.f32.mrf.mxu1  ;;  %v7704_v20 = vld [vmem:[#allocation4 + $0x50] sm:$0xf0]  ;;  %v11036_v21 = vld [vmem:[#allocation4 + $0x144] sm:$0xf] }
  0xd7   :  { %v635_v28 = vadd.f32 %v634_v27, %v265_v17  ;;  %v8120_v17 = vld [vmem:[#allocation4 + $0x390] sm:$0xf0]  ;;  %v7707_v26 = vor.u32 %v11004_v18, %v7704_v20  ;;  %v11072_v27 = vld [vmem:[#allocation4 + $0x264] sm:$0xf]  ;;  %v7835_v30 = vor.u32 %v11036_v21, %v7832_v22  ;;  %v8075_v18 = vor.u32 %v11096_v6, %v8072_v7 }
  0xd8   :  { %v706_v43 = vmax.f32 %v648_v35, 0.0  ;;  %v8123_v25 = vor.u32 %v11108_v15, %v8120_v17  ;;  %v11104_v29 = vld [vmem:[#allocation4 + $0x364] sm:$0xf]  ;;  %v7816_v36 = vld [vmem:[#allocation4 + $0x130] sm:$0xf0] }
  0xd9   :  { %v705_v50 = vmax.f32 %v635_v28, 0.0  ;;  %2371 = vmatpush.bf16.msra.mxu0 %v7771_v31  ;;  %2384 = vmatpush.bf16.msra.mxu1 %v7899_v37  ;;  %v7976_v28 = vld [vmem:[#allocation4 + $0x270] sm:$0xf0]  ;;  %v11032_v35 = vld [vmem:[#allocation4 + $0x124] sm:$0xf]  ;;  %v268_v37 = vperm.slane %v12221_v4, 5 }
  0xda   :  { %v12235_v52 = vpack.c.bf16 %v706_v43, %v706_v43  ;;  %v8104_v31 = vld [vmem:[#allocation4 + $0x370] sm:$0xf0]  ;;  %v7979_v38 = vor.u32 %v11072_v27, %v7976_v28  ;;  %v11060_v21 = vld [vmem:[#allocation4 + $0x204] sm:$0xf] }
  0xdb   :  { %v12233_v45 = vpack.c.bf16 %v705_v50, %v705_v50  ;;  %v8107_v39 = vor.u32 %v11104_v29, %v8104_v31  ;;  %v11068_v50 = vld [vmem:[#allocation4 + $0x244] sm:$0xf]  ;;  %v8280_v15 = vld [vmem:[#allocation4 + $0x4d0] sm:$0xf0] }
  0xdc   :  { %2313 = vmatmul.bf16.vlgmr.msra.gmra.mxu3 %v12235_v52  ;;  %v7963_v57 = vor.u32 %v11068_v50, %v7960_v41  ;;  %v8408_v20 = vld [vmem:[#allocation4 + $0x5d0] sm:$0xf0]  ;;  %v11216_v28 = vld [vmem:[#allocation4 + $0x6e4] sm:$0xf]  ;;  %v8283_v31 = vor.u32 %v11148_v14, %v8280_v15 }
  0xdd   :  { %2300 = vmatmul.bf16.vlgmr.msra.gmra.mxu2 %v12233_v45  ;;  %2409 = vmatpush.bf16.msra.mxu3 %v8171_v46  ;;  %v649_v61 = vpop.f32.mrf.mxu3  ;;  %v8088_v46 = vld [vmem:[#allocation4 + $0x350] sm:$0xf0]  ;;  %v11176_v41 = vld [vmem:[#allocation4 + $0x5a4] sm:$0xf] }
  0xde   :  { %2396 = vmatpush.bf16.msra.mxu2 %v8043_v44  ;;  %v636_v59 = vpop.f32.mrf.mxu2  ;;  %2372 = vmatpush.bf16.msra.mxu0 %v7755_v47  ;;  %v7819_v44 = vor.u32 %v11032_v35, %v7816_v36  ;;  %v10996_v47 = vld [vmem:[#allocation4 + $0x4] sm:$0xf]  ;;  %v7928_v22 = vld [vmem:[#allocation4 + $0x210] sm:$0xf0] }
  0xdf   :  { %2385 = vmatpush.bf16.msra.mxu1 %v7883_v53  ;;  %v11028_v53 = vld [vmem:[#allocation4 + $0x104] sm:$0xf]  ;;  %v8056_v27 = vld [vmem:[#allocation4 + $0x310] sm:$0xf0] }
  0xe0   :  { %v11184_v59 = vld [vmem:[#allocation4 + $0x5e4] sm:$0xf]  ;;  %v7803_v5 = vor.u32 %v11028_v53, %v7800_v54  ;;  %v8648_v6 = vld [vmem:[#allocation4 + $0x7b0] sm:$0xf0] }
  0xe1   :  { %2410 = vmatpush.bf16.msra.mxu3 %v8155_v62  ;;  %v8091_v62 = vor.u32 %v11100_v42, %v8088_v46  ;;  %v8392_v42 = vld [vmem:[#allocation4 + $0x5b0] sm:$0xf0]  ;;  %v11244_v53 = vld [vmem:[#allocation4 + $0x7c4] sm:$0xf] }
  0xe2   :  { %2397 = vmatpush.bf16.msra.mxu2 %v8027_v60  ;;  %2373 = vmatpush.bf16.msra.mxu0 %v7739_v63  ;;  %v8424_v60 = vld [vmem:[#allocation4 + $0x5f0] sm:$0xf0]  ;;  %v7675_v63 = vor.u32 %v10996_v47, %v7672_v48  ;;  %v8395_v54 = vor.u32 %v11176_v41, %v8392_v42  ;;  %v11136_v7 = vld [vmem:[#allocation4 + $0x464] sm:$0xf] }
  0xe3   :  { %2386 = vmatpush.bf16.msra.mxu1 %v7867_v3  ;;  %v269_v3 = vperm.slane %v12221_v4, 6  ;;  %v11204_v15 = vld [vmem:[#allocation4 + $0x684] sm:$0xf] }
  0xe4   :  { %v11228_v41 = vld [vmem:[#allocation4 + $0x744] sm:$0xf] }
  0xe5   :  { %2411 = vmatpush.bf16.msra.mxu3 %v8139_v11 }
  0xe6   :  { %2398 = vmatpush.bf16.msra.mxu2 %v8011_v10  ;;  %2374 = vmatpush.bf16.msra.mxu0 %v7723_v12  ;;  %v8299_v10 = vor.u32 %v11152_v55, %v8296_v58  ;;  %v8427_v12 = vor.u32 %v11184_v59, %v8424_v60  ;;  %v8664_v55 = vld [vmem:[#allocation4 + $0x7d0] sm:$0xf0]  ;;  %v11172_v59 = vld [vmem:[#allocation4 + $0x584] sm:$0xf] }
  0xe7   :  { %2387 = vmatpush.bf16.msra.mxu1 %v7851_v16  ;;  %v11180_v16 = vld [vmem:[#allocation4 + $0x5c4] sm:$0xf]  ;;  %v8376_v60 = vld [vmem:[#allocation4 + $0x590] sm:$0xf0] }
  0xe8   :  { %v8411_v36 = vor.u32 %v11180_v16, %v8408_v20  ;;  %v8504_v16 = vld [vmem:[#allocation4 + $0x690] sm:$0xf0]  ;;  %v11236_v20 = vld [vmem:[#allocation4 + $0x784] sm:$0xf] }
  0xe9   :  { %2412 = vmatpush.bf16.msra.mxu3 %v8123_v25 }
  0xea   :  { %2399 = vmatpush.bf16.msra.mxu2 %v7995_v23  ;;  %2375 = vmatpush.bf16.msra.mxu0 %v7707_v26  ;;  %v11092_v26 = vld [vmem:[#allocation4 + $0x304] sm:$0xf] }
  0xeb   :  { %2388 = vmatpush.bf16.msra.mxu1 %v7835_v30  ;;  %v8059_v50 = vor.u32 %v11092_v26, %v8056_v27  ;;  %v8507_v26 = vor.u32 %v11204_v15, %v8504_v16  ;;  %v11220_v15 = vld [vmem:[#allocation4 + $0x704] sm:$0xf]  ;;  %v8568_v16 = vld [vmem:[#allocation4 + $0x710] sm:$0xf0] }
  0xed   :  { %v660_v43 = vpop.f32.mrf.mxu0  ;;  %v673_v51 = vpop.f32.mrf.mxu1  ;;  %2413 = vmatpush.bf16.msra.mxu3 %v8107_v39  ;;  %v8264_v39 = vld [vmem:[#allocation4 + $0x4b0] sm:$0xf0] }
  0xee   :  { %v661_v49 = vadd.f32 %v660_v43, %v267_v34  ;;  %v674_v56 = vadd.f32 %v673_v51, %v268_v37  ;;  %2400 = vmatpush.bf16.msra.mxu2 %v7979_v38  ;;  %2376 = vmatpush.bf16.msra.mxu0 %v7691_v40  ;;  %v8680_v34 = vld [vmem:[#allocation4 + $0x7f0] sm:$0xf0]  ;;  %v7931_v37 = vor.u32 %v11060_v21, %v7928_v22  ;;  %v11144_v38 = vld [vmem:[#allocation4 + $0x4a4] sm:$0xf] }
  0xef   :  { %2389 = vmatpush.bf16.msra.mxu1 %v7819_v44  ;;  %v8555_v44 = vor.u32 %v11216_v28, %v8552_v32  ;;  %v8683_v47 = vor.u32 %v11248_v33, %v8680_v34  ;;  %v8267_v48 = vor.u32 %v11144_v38, %v8264_v39  ;;  %v8536_v51 = vld [vmem:[#allocation4 + $0x6d0] sm:$0xf0]  ;;  %v11132_v22 = vld [vmem:[#allocation4 + $0x444] sm:$0xf] }
  0xf0   :  { %v707_v61 = vmax.f32 %v661_v49, 0.0  ;;  %v708_v2 = vmax.f32 %v674_v56, 0.0  ;;  %v11212_v49 = vld [vmem:[#allocation4 + $0x6c4] sm:$0xf]  ;;  %v8632_v21 = vld [vmem:[#allocation4 + $0x790] sm:$0xf0] }
  0xf1   :  { %2414 = vmatpush.bf16.msra.mxu3 %v8091_v62  ;;  %v11140_v56 = vld [vmem:[#allocation4 + $0x484] sm:$0xf]  ;;  %v8539_v62 = vor.u32 %v11212_v49, %v8536_v51  ;;  %v8635_v27 = vor.u32 %v11236_v20, %v8632_v21  ;;  %v8616_v33 = vld [vmem:[#allocation4 + $0x770] sm:$0xf0] }
  0xf2   :  { %v12242_v8 = vpack.c.bf16 %v707_v61, %v707_v61  ;;  %v12245_v11 = vpack.c.bf16 %v708_v2, %v708_v2  ;;  %2401 = vmatpush.bf16.msra.mxu2 %v7963_v57  ;;  %2377 = vmatpush.bf16.msra.mxu0 %v7675_v63  ;;  %v8248_v57 = vld [vmem:[#allocation4 + $0x490] sm:$0xf0]  ;;  %v8667_v63 = vor.u32 %v11244_v53, %v8664_v55  ;;  %v11200_v28 = vld [vmem:[#allocation4 + $0x664] sm:$0xf] }
  0xf3   :  { %2390 = vmatpush.bf16.msra.mxu1 %v7803_v5  ;;  %v8251_v0 = vor.u32 %v11140_v56, %v8248_v57  ;;  %v8520_v2 = vld [vmem:[#allocation4 + $0x6b0] sm:$0xf0]  ;;  %v11240_v5 = vld [vmem:[#allocation4 + $0x7a4] sm:$0xf]  ;;  %v11027_v56 = vld [vmem:[#allocation4 + $0xf4] sm:$0xf0] }
  0xf4   :  { %2326 = vmatmul.bf16.vlgmr.msrb.gmra.mxu0 %v12242_v8  ;;  %2339 = vmatmul.bf16.vlgmr.msrb.gmra.mxu1 %v12245_v11  ;;  %v8651_v14 = vor.u32 %v11240_v5, %v8648_v6  ;;  %v11232_v32 = vld [vmem:[#allocation4 + $0x764] sm:$0xf]  ;;  %v8184_v49 = vld [vmem:[#allocation4 + $0x410] sm:$0xf0]  ;;  %v7918_v57 = vld [vmem:[#allocation4 + $0x1e8] sm:$0xf] }
  0xf5   :  { %v686_v17 = vpop.f32.mrf.mxu2  ;;  %v699_v25 = vpop.f32.mrf.mxu3  ;;  %2415 = vmatpush.bf16.msra.mxu3 %v8075_v18  ;;  %v11128_v34 = vld [vmem:[#allocation4 + $0x424] sm:$0xf]  ;;  %v8619_v39 = vor.u32 %v11232_v32, %v8616_v33  ;;  %v8312_v53 = vld [vmem:[#allocation4 + $0x510] sm:$0xf0]  ;;  %v7774_v5 = vld [vmem:[#allocation4 + $0xc8] sm:$0xf] }
  0xf6   :  { %v687_v23 = vadd.f32 %v686_v17, %v269_v3  ;;  %v662_v4 = vpop.f32.mrf.mxu0  ;;  %v700_v29 = vadd.f32 %v699_v25, %v270_v9  ;;  %2422 = vmatpush.bf16.msrb.mxu0 %v8299_v10  ;;  %v675_v30 = vpop.f32.mrf.mxu1  ;;  %2402 = vmatpush.bf16.msra.mxu2 %v7947_v13  ;;  %v8379_v3 = vor.u32 %v11172_v59, %v8376_v60  ;;  %v8232_v9 = vld [vmem:[#allocation4 + $0x470] sm:$0xf0]  ;;  %v11168_v10 = vld [vmem:[#allocation4 + $0x564] sm:$0xf]  ;;  %v8030_v32 = vld [vmem:[#allocation4 + $0x2c8] sm:$0xf] }
  0xf7   :  { %2435 = vmatpush.bf16.msrb.mxu1 %v8427_v12  ;;  %v8360_v12 = vld [vmem:[#allocation4 + $0x570] sm:$0xf0]  ;;  %v8523_v13 = vor.u32 %v11208_v1, %v8520_v2  ;;  %v8235_v17 = vor.u32 %v11136_v7, %v8232_v9  ;;  %v11164_v25 = vld [vmem:[#allocation4 + $0x544] sm:$0xf]  ;;  %v11023_v7 = vld [vmem:[#allocation4 + $0xd4] sm:$0xf0] }
  0xf8   :  { %v709_v35 = vmax.f32 %v687_v23, 0.0  ;;  %v710_v40 = vmax.f32 %v700_v29, 0.0  ;;  %v8363_v18 = vor.u32 %v11168_v10, %v8360_v12  ;;  %v8216_v23 = vld [vmem:[#allocation4 + $0x450] sm:$0xf0]  ;;  %v11156_v51 = vld [vmem:[#allocation4 + $0x504] sm:$0xf]  ;;  %v7775_v20 = vor.u32 %v11023_v7, %v7774_v5 }
  0xf9   :  { %2416 = vmatpush.bf16.msra.mxu3 %v8059_v50  ;;  %v8344_v4 = vld [vmem:[#allocation4 + $0x550] sm:$0xf0]  ;;  %v8219_v30 = vor.u32 %v11132_v22, %v8216_v23  ;;  %v11192_v60 = vld [vmem:[#allocation4 + $0x624] sm:$0xf]  ;;  %v7902_v9 = vld [vmem:[#allocation4 + $0x1c8] sm:$0xf] }
  0xfa   :  { %v12249_v43 = vpack.c.bf16 %v709_v35, %v709_v35  ;;  %v12251_v46 = vpack.c.bf16 %v710_v40, %v710_v40  ;;  %2423 = vmatpush.bf16.msrb.mxu0 %v8283_v31  ;;  %2403 = vmatpush.bf16.msra.mxu2 %v7931_v37  ;;  %v8488_v29 = vld [vmem:[#allocation4 + $0x670] sm:$0xf0]  ;;  %v8347_v31 = vor.u32 %v11164_v25, %v8344_v4  ;;  %v11196_v40 = vld [vmem:[#allocation4 + $0x644] sm:$0xf]  ;;  %v11055_v10 = vld [vmem:[#allocation4 + $0x1d4] sm:$0xf0] }
  0xfb   :  { %2436 = vmatpush.bf16.msrb.mxu1 %v8411_v36  ;;  %v8200_v35 = vld [vmem:[#allocation4 + $0x430] sm:$0xf0]  ;;  %v11160_v36 = vld [vmem:[#allocation4 + $0x524] sm:$0xf]  ;;  %v8491_v38 = vor.u32 %v11200_v28, %v8488_v29  ;;  %v7903_v21 = vor.u32 %v11055_v10, %v7902_v9  ;;  %v8174_v22 = vld [vmem:[#allocation4 + $0x3e8] sm:$0xf]  ;;  %v8571_v29 = vor.u32 %v11220_v15, %v8568_v16 }
  0xfc   :  { %2352 = vmatmul.bf16.vlgmr.msrb.gmra.mxu2 %v12249_v43  ;;  %2365 = vmatmul.bf16.vlgmr.msrb.gmra.mxu3 %v12251_v46  ;;  %v8328_v37 = vld [vmem:[#allocation4 + $0x530] sm:$0xf0]  ;;  %v8203_v42 = vor.u32 %v11128_v34, %v8200_v35  ;;  %v11123_v23 = vld [vmem:[#allocation4 + $0x3f4] sm:$0xf0]  ;;  %v7758_v25 = vld [vmem:[#allocation4 + $0xa8] sm:$0xf] }
  0xfd   :  { %v688_v58 = vpop.f32.mrf.mxu2  ;;  %v701_v61 = vpop.f32.mrf.mxu3  ;;  %2461 = vmatpush.bf16.msrb.mxu3 %v8683_v47  ;;  %v8472_v50 = vld [vmem:[#allocation4 + $0x650] sm:$0xf0]  ;;  %v11051_v28 = vld [vmem:[#allocation4 + $0x1b4] sm:$0xf0]  ;;  %v7838_v5 = vld [vmem:[#allocation4 + $0x148] sm:$0xf] }
  0xfe   :  { %2448 = vmatpush.bf16.msrb.mxu2 %v8555_v44  ;;  %2424 = vmatpush.bf16.msrb.mxu0 %v8267_v48  ;;  %v8331_v44 = vor.u32 %v11160_v36, %v8328_v37  ;;  %v8600_v47 = vld [vmem:[#allocation4 + $0x750] sm:$0xf0]  ;;  %v11124_v48 = vld [vmem:[#allocation4 + $0x404] sm:$0xf]  ;;  %v8475_v55 = vor.u32 %v11196_v40, %v8472_v50  ;;  %v11059_v58 = vld [vmem:[#allocation4 + $0x1f4] sm:$0xf0] }
  0xff   :  { %2437 = vmatpush.bf16.msrb.mxu1 %v8395_v54  ;;  %v7790_v54 = vld [vmem:[#allocation4 + $0xe8] sm:$0xf]  ;;  %v8603_v59 = vor.u32 %v11228_v41, %v8600_v47  ;;  %v8456_v61 = vld [vmem:[#allocation4 + $0x630] sm:$0xf0]  ;;  %v11087_v33 = vld [vmem:[#allocation4 + $0x2d4] sm:$0xf0] }
 0x100   :  { %v8584_v1 = vld [vmem:[#allocation4 + $0x730] sm:$0xf0]  ;;  %v7791_v2 = vor.u32 %v11027_v56, %v7790_v54  ;;  %v8459_v6 = vor.u32 %v11192_v60, %v8456_v61  ;;  %v8158_v36 = vld [vmem:[#allocation4 + $0x3c8] sm:$0xf]  ;;  %v11119_v37 = vld [vmem:[#allocation4 + $0x3d4] sm:$0xf0]  ;;  %v8031_v41 = vor.u32 %v11087_v33, %v8030_v32 }
 0x101   :  { %2462 = vmatpush.bf16.msrb.mxu3 %v8667_v63  ;;  %v8315_v63 = vor.u32 %v11156_v51, %v8312_v53  ;;  %v7870_v40 = vld [vmem:[#allocation4 + $0x188] sm:$0xf]  ;;  %v11047_v50 = vld [vmem:[#allocation4 + $0x194] sm:$0xf0] }
 0x102   :  { %2449 = vmatpush.bf16.msrb.mxu2 %v8539_v62  ;;  %2425 = vmatpush.bf16.msrb.mxu0 %v8251_v0  ;;  %v8187_v62 = vor.u32 %v11124_v48, %v8184_v49  ;;  %v11224_v0 = vld [vmem:[#allocation4 + $0x724] sm:$0xf]  ;;  %v11083_v47 = vld [vmem:[#allocation4 + $0x2b4] sm:$0xf0]  ;;  %v7871_v49 = vor.u32 %v11047_v50, %v7870_v40  ;;  %v8142_v51 = vld [vmem:[#allocation4 + $0x3a8] sm:$0xf] }
 0x103   :  { %2438 = vmatpush.bf16.msrb.mxu1 %v8379_v3  ;;  %v7919_v3 = vor.u32 %v11059_v58, %v7918_v57  ;;  %v8587_v12 = vor.u32 %v11224_v0, %v8584_v1  ;;  %v11115_v53 = vld [vmem:[#allocation4 + $0x3b4] sm:$0xf0]  ;;  %v7726_v54 = vld [vmem:[#allocation4 + $0x68] sm:$0xf] }
 0x104   :  { %2378 = vmatmul.bf16.vlgmr.msra.gmra.mxu0 %v12226_v19  ;;  %2391 = vmatmul.bf16.vlgmr.msra.gmra.mxu1 %v12229_v24  ;;  %v7854_v56 = vld [vmem:[#allocation4 + $0x168] sm:$0xf]  ;;  %v11043_v57 = vld [vmem:[#allocation4 + $0x174] sm:$0xf0] }
 0x105   :  { %2463 = vmatpush.bf16.msrb.mxu3 %v8651_v14  ;;  %v8440_v14 = vld [vmem:[#allocation4 + $0x610] sm:$0xf0]  ;;  %v7998_v60 = vld [vmem:[#allocation4 + $0x288] sm:$0xf]  ;;  %v11079_v61 = vld [vmem:[#allocation4 + $0x294] sm:$0xf0] }
 0x106   :  { %2450 = vmatpush.bf16.msrb.mxu2 %v8523_v13  ;;  %2426 = vmatpush.bf16.msrb.mxu0 %v8235_v17  ;;  %v11188_v13 = vld [vmem:[#allocation4 + $0x604] sm:$0xf]  ;;  %v8046_v17 = vld [vmem:[#allocation4 + $0x2e8] sm:$0xf]  ;;  %v11111_v1 = vld [vmem:[#allocation4 + $0x394] sm:$0xf0]  ;;  %v7999_v7 = vor.u32 %v11079_v61, %v7998_v60 }
 0x107   :  { %2439 = vmatpush.bf16.msrb.mxu1 %v8363_v18  ;;  %v11091_v18 = vld [vmem:[#allocation4 + $0x2f4] sm:$0xf0]  ;;  %v8443_v4 = vor.u32 %v11188_v13, %v8440_v14  ;;  %v8126_v0 = vld [vmem:[#allocation4 + $0x388] sm:$0xf] }
 0x108   :  { %v8127_v9 = vor.u32 %v11111_v1, %v8126_v0  ;;  %v7982_v10 = vld [vmem:[#allocation4 + $0x268] sm:$0xf]  ;;  %v11107_v16 = vld [vmem:[#allocation4 + $0x374] sm:$0xf0] }
 0x109   :  { %2464 = vmatpush.bf16.msrb.mxu3 %v8635_v27  ;;  %v7886_v27 = vld [vmem:[#allocation4 + $0x1a8] sm:$0xf]  ;;  %v11031_v33 = vld [vmem:[#allocation4 + $0x114] sm:$0xf0] }
 0x10a   :  { %2451 = vmatpush.bf16.msrb.mxu2 %v8507_v26  ;;  %2427 = vmatpush.bf16.msrb.mxu0 %v8219_v30  ;;  %v11019_v26 = vld [vmem:[#allocation4 + $0xb4] sm:$0xf0]  ;;  %v8047_v30 = vor.u32 %v11091_v18, %v8046_v17  ;;  %v7887_v35 = vor.u32 %v11051_v28, %v7886_v27  ;;  %v8110_v15 = vld [vmem:[#allocation4 + $0x368] sm:$0xf] }
 0x10b   :  { %2440 = vmatpush.bf16.msrb.mxu1 %v8347_v31  ;;  %v8175_v31 = vor.u32 %v11123_v23, %v8174_v22  ;;  %v7759_v34 = vor.u32 %v11019_v26, %v7758_v25  ;;  %v7694_v17 = vld [vmem:[#allocation4 + $0x28] sm:$0xf]  ;;  %v11003_v18 = vld [vmem:[#allocation4 + $0x34] sm:$0xf0]  ;;  %v8111_v23 = vor.u32 %v11107_v16, %v8110_v15 }
 0x10c   :  { %2404 = vmatmul.bf16.vlgmr.msra.gmra.mxu2 %v12233_v45  ;;  %2417 = vmatmul.bf16.vlgmr.msra.gmra.mxu3 %v12235_v52  ;;  %v7966_v25 = vld [vmem:[#allocation4 + $0x248] sm:$0xf]  ;;  %v7695_v27 = vor.u32 %v11003_v18, %v7694_v17  ;;  %v11067_v50 = vld [vmem:[#allocation4 + $0x234] sm:$0xf0] }
 0x10d   :  { %2465 = vmatpush.bf16.msrb.mxu3 %v8619_v39  ;;  %v11015_v39 = vld [vmem:[#allocation4 + $0x94] sm:$0xf0]  ;;  %v8094_v26 = vld [vmem:[#allocation4 + $0x348] sm:$0xf] }
 0x10e   :  { %2452 = vmatpush.bf16.msrb.mxu2 %v8491_v38  ;;  %2428 = vmatpush.bf16.msrb.mxu0 %v8203_v42  ;;  %v7742_v38 = vld [vmem:[#allocation4 + $0x88] sm:$0xf]  ;;  %v8159_v42 = vor.u32 %v11119_v37, %v8158_v36  ;;  %v11155_v36 = vld [vmem:[#allocation4 + $0x4f4] sm:$0xf0] }
 0x10f   :  { %2441 = vmatpush.bf16.msrb.mxu1 %v8331_v44  ;;  %v8014_v44 = vld [vmem:[#allocation4 + $0x2a8] sm:$0xf]  ;;  %v7743_v48 = vor.u32 %v11015_v39, %v7742_v38  ;;  %v11187_v38 = vld [vmem:[#allocation4 + $0x5f4] sm:$0xf0] }
 0x110   :  { %v8015_v58 = vor.u32 %v11083_v47, %v8014_v44  ;;  %v7806_v32 = vld [vmem:[#allocation4 + $0x108] sm:$0xf]  ;;  %v11099_v47 = vld [vmem:[#allocation4 + $0x334] sm:$0xf0] }
 0x111   :  { %2466 = vmatpush.bf16.msrb.mxu3 %v8603_v59  ;;  %v8143_v59 = vor.u32 %v11115_v53, %v8142_v51  ;;  %v8430_v37 = vld [vmem:[#allocation4 + $0x5e8] sm:$0xf]  ;;  %v11095_v61 = vld [vmem:[#allocation4 + $0x314] sm:$0xf0] }
 0x112   :  { %2453 = vmatpush.bf16.msrb.mxu2 %v8475_v55  ;;  %2429 = vmatpush.bf16.msrb.mxu0 %v8187_v62  ;;  %v11011_v55 = vld [vmem:[#allocation4 + $0x74] sm:$0xf0]  ;;  %v7950_v40 = vld [vmem:[#allocation4 + $0x228] sm:$0xf] }
 0x113   :  { %2442 = vmatpush.bf16.msrb.mxu1 %v8315_v63  ;;  %v7727_v62 = vor.u32 %v11011_v55, %v7726_v54  ;;  %v7855_v63 = vor.u32 %v11043_v57, %v7854_v56  ;;  %v8078_v44 = vld [vmem:[#allocation4 + $0x328] sm:$0xf]  ;;  %v7951_v53 = vor.u32 %v11067_v50, %v7950_v40  ;;  %v11151_v54 = vld [vmem:[#allocation4 + $0x4d4] sm:$0xf0] }
 0x114   :  { %v8286_v51 = vld [vmem:[#allocation4 + $0x4c8] sm:$0xf]  ;;  %v11183_v56 = vld [vmem:[#allocation4 + $0x5d4] sm:$0xf0]  ;;  %v8079_v57 = vor.u32 %v11099_v47, %v8078_v44 }
 0x115   :  { %2467 = vmatpush.bf16.msrb.mxu3 %v8587_v12  ;;  %2430 = vmatmul.bf16.vlgmr.msrb.gmra.mxu0 %v12242_v8  ;;  %v11075_v12 = vld [vmem:[#allocation4 + $0x274] sm:$0xf0]  ;;  %v8414_v55 = vld [vmem:[#allocation4 + $0x5c8] sm:$0xf]  ;;  %v8287_v0 = vor.u32 %v11151_v54, %v8286_v51 }
 0x116   :  { %2474 = vmatpush.bf16.msra.mxu0 %v7791_v2  ;;  %2454 = vmatpush.bf16.msrb.mxu2 %v8459_v6  ;;  %v7710_v2 = vld [vmem:[#allocation4 + $0x48] sm:$0xf]  ;;  %v11039_v6 = vld [vmem:[#allocation4 + $0x154] sm:$0xf0]  ;;  %v7983_v22 = vor.u32 %v11075_v12, %v7982_v10  ;;  %v8415_v1 = vor.u32 %v11183_v56, %v8414_v55 }
 0x117   :  { %2487 = vmatpush.bf16.msra.mxu1 %v7919_v3  ;;  %v11007_v3 = vld [vmem:[#allocation4 + $0x54] sm:$0xf0]  ;;  %v7839_v14 = vor.u32 %v11039_v6, %v7838_v5  ;;  %v8062_v60 = vld [vmem:[#allocation4 + $0x308] sm:$0xf] }
 0x118   :  { %2443 = vmatmul.bf16.vlgmr.msrb.gmra.mxu1 %v12245_v11  ;;  %v7711_v13 = vor.u32 %v11007_v3, %v7710_v2  ;;  %v8686_v2 = vld [vmem:[#allocation4 + $0x7e8] sm:$0xf]  ;;  %v11251_v3 = vld [vmem:[#allocation4 + $0x7f4] sm:$0xf0] }
 0x119   :  { %2468 = vmatpush.bf16.msrb.mxu3 %v8571_v29  ;;  %v11103_v29 = vld [vmem:[#allocation4 + $0x354] sm:$0xf0]  ;;  %v8270_v6 = vld [vmem:[#allocation4 + $0x4a8] sm:$0xf] }
 0x11a   :  { %2475 = vmatpush.bf16.msra.mxu0 %v7775_v20  ;;  %2455 = vmatpush.bf16.msrb.mxu2 %v8443_v4  ;;  %v7822_v20 = vld [vmem:[#allocation4 + $0x128] sm:$0xf]  ;;  %v11071_v4 = vld [vmem:[#allocation4 + $0x254] sm:$0xf0]  ;;  %v8095_v39 = vor.u32 %v11103_v29, %v8094_v26 }
 0x11b   :  { %2488 = vmatpush.bf16.msra.mxu1 %v7903_v21  ;;  %v11035_v21 = vld [vmem:[#allocation4 + $0x134] sm:$0xf0]  ;;  %v8398_v12 = vld [vmem:[#allocation4 + $0x5a8] sm:$0xf] }
 0x11c   :  { %2469 = vmatmul.bf16.vlgmr.msrb.gmra.mxu3 %v12251_v46  ;;  %v7823_v28 = vor.u32 %v11035_v21, %v7822_v20  ;;  %v8542_v15 = vld [vmem:[#allocation4 + $0x6c8] sm:$0xf]  ;;  %v11215_v16 = vld [vmem:[#allocation4 + $0x6d4] sm:$0xf0] }
 0x11d   :  { %2513 = vmatpush.bf16.msra.mxu3 %v8175_v31  ;;  %2456 = vmatmul.bf16.vlgmr.msrb.gmra.mxu2 %v12249_v43  ;;  %v10999_v31 = vld [vmem:[#allocation4 + $0x14] sm:$0xf0]  ;;  %v8670_v18 = vld [vmem:[#allocation4 + $0x7c8] sm:$0xf] }
 0x11e   :  { %2500 = vmatpush.bf16.msra.mxu2 %v8047_v30  ;;  %2476 = vmatpush.bf16.msra.mxu0 %v7759_v34  ;;  %v7678_v30 = vld [vmem:[#allocation4 + $0x8] sm:$0xf]  ;;  %v11247_v20 = vld [vmem:[#allocation4 + $0x7d4] sm:$0xf0] }
 0x11f   :  { %2489 = vmatpush.bf16.msra.mxu1 %v7887_v35  ;;  %v8302_v34 = vld [vmem:[#allocation4 + $0x4e8] sm:$0xf]  ;;  %v7967_v35 = vor.u32 %v11071_v4, %v7966_v25  ;;  %v8543_v25 = vor.u32 %v11215_v16, %v8542_v15  ;;  %v11175_v26 = vld [vmem:[#allocation4 + $0x594] sm:$0xf0] }
 0x120   :  { %v8382_v4 = vld [vmem:[#allocation4 + $0x588] sm:$0xf]  ;;  %v11211_v29 = vld [vmem:[#allocation4 + $0x6b4] sm:$0xf0] }
 0x121   :  { %2514 = vmatpush.bf16.msra.mxu3 %v8159_v42  ;;  %v7807_v42 = vor.u32 %v11031_v33, %v7806_v32  ;;  %v11243_v32 = vld [vmem:[#allocation4 + $0x7b4] sm:$0xf0]  ;;  %v8383_v33 = vor.u32 %v11175_v26, %v8382_v4  ;;  %v8510_v40 = vld [vmem:[#allocation4 + $0x688] sm:$0xf] }
 0x122   :  { %2501 = vmatpush.bf16.msra.mxu2 %v8031_v41  ;;  %2477 = vmatpush.bf16.msra.mxu0 %v7743_v48  ;;  %v7679_v41 = vor.u32 %v10999_v31, %v7678_v30  ;;  %v8303_v48 = vor.u32 %v11155_v36, %v8302_v34  ;;  %v8654_v31 = vld [vmem:[#allocation4 + $0x7a8] sm:$0xf]  ;;  %v11207_v50 = vld [vmem:[#allocation4 + $0x694] sm:$0xf0] }
 0x123   :  { %2490 = vmatpush.bf16.msra.mxu1 %v7871_v49  ;;  %v8431_v49 = vor.u32 %v11187_v38, %v8430_v37  ;;  %v8238_v34 = vld [vmem:[#allocation4 + $0x468] sm:$0xf]  ;;  %v11171_v38 = vld [vmem:[#allocation4 + $0x574] sm:$0xf0]  ;;  %v8511_v51 = vor.u32 %v11207_v50, %v8510_v40 }
 0x124   :  { %v8366_v37 = vld [vmem:[#allocation4 + $0x568] sm:$0xf]  ;;  %v11239_v44 = vld [vmem:[#allocation4 + $0x794] sm:$0xf0] }
 0x125   :  { %2515 = vmatpush.bf16.msra.mxu3 %v8143_v59  ;;  %v11063_v59 = vld [vmem:[#allocation4 + $0x214] sm:$0xf0]  ;;  %v8367_v47 = vor.u32 %v11171_v38, %v8366_v37  ;;  %v8494_v56 = vld [vmem:[#allocation4 + $0x668] sm:$0xf] }
 0x126   :  { %2502 = vmatpush.bf16.msra.mxu2 %v8015_v58  ;;  %2478 = vmatpush.bf16.msra.mxu0 %v7727_v62  ;;  %v7934_v58 = vld [vmem:[#allocation4 + $0x208] sm:$0xf]  ;;  %v11167_v54 = vld [vmem:[#allocation4 + $0x554] sm:$0xf0] }
 0x127   :  { %2491 = vmatpush.bf16.msra.mxu1 %v7855_v63  ;;  %v8558_v62 = vld [vmem:[#allocation4 + $0x6e8] sm:$0xf]  ;;  %v11219_v63 = vld [vmem:[#allocation4 + $0x6f4] sm:$0xf0]  ;;  %v7935_v5 = vor.u32 %v11063_v59, %v7934_v58 }
 0x128   :  { %v8559_v10 = vor.u32 %v11219_v63, %v8558_v62  ;;  %v8622_v59 = vld [vmem:[#allocation4 + $0x768] sm:$0xf]  ;;  %v11131_v63 = vld [vmem:[#allocation4 + $0x434] sm:$0xf0] }
 0x129   :  { %2516 = vmatpush.bf16.msra.mxu3 %v8127_v9  ;;  %v8063_v9 = vor.u32 %v11095_v61, %v8062_v60  ;;  %v11235_v60 = vld [vmem:[#allocation4 + $0x774] sm:$0xf0]  ;;  %v8206_v62 = vld [vmem:[#allocation4 + $0x428] sm:$0xf] }
 0x12a   :  { %2503 = vmatpush.bf16.msra.mxu2 %v7999_v7  ;;  %2479 = vmatpush.bf16.msra.mxu0 %v7711_v13  ;;  %v11147_v7 = vld [vmem:[#allocation4 + $0x4b4] sm:$0xf0]  ;;  %v8318_v15 = vld [vmem:[#allocation4 + $0x508] sm:$0xf] }
 0x12b   :  { %2492 = vmatpush.bf16.msra.mxu1 %v7839_v14  ;;  %v11179_v13 = vld [vmem:[#allocation4 + $0x5b4] sm:$0xf0]  ;;  %v8687_v14 = vor.u32 %v11251_v3, %v8686_v2  ;;  %v8271_v17 = vor.u32 %v11147_v7, %v8270_v6  ;;  %v8623_v3 = vor.u32 %v11235_v60, %v8622_v59  ;;  %v8207_v7 = vor.u32 %v11131_v63, %v8206_v62  ;;  %v8446_v38 = vld [vmem:[#allocation4 + $0x608] sm:$0xf]  ;;  %v11085_v60 = vld [vmem:[#allocation4 + $0x2cc] sm:$0xf] }
 0x12c   :  { %v8399_v21 = vor.u32 %v11179_v13, %v8398_v12  ;;  %v11163_v2 = vld [vmem:[#allocation4 + $0x534] sm:$0xf0]  ;;  %v8190_v12 = vld [vmem:[#allocation4 + $0x408] sm:$0xf]  ;;  %v11117_v63 = vld [vmem:[#allocation4 + $0x3cc] sm:$0xf] }
 0x12d   :  { %2517 = vmatpush.bf16.msra.mxu3 %v8111_v23  ;;  %v11143_v23 = vld [vmem:[#allocation4 + $0x494] sm:$0xf0]  ;;  %v8574_v40 = vld [vmem:[#allocation4 + $0x708] sm:$0xf] }
 0x12e   :  { %2504 = vmatpush.bf16.msra.mxu2 %v7983_v22  ;;  %2480 = vmatpush.bf16.msra.mxu0 %v7695_v27  ;;  %v8254_v22 = vld [vmem:[#allocation4 + $0x488] sm:$0xf]  ;;  %v8671_v27 = vor.u32 %v11247_v20, %v8670_v18  ;;  %v11199_v6 = vld [vmem:[#allocation4 + $0x654] sm:$0xf0]  ;;  %v11025_v18 = vld [vmem:[#allocation4 + $0xec] sm:$0xf] }
 0x12f   :  { %2493 = vmatpush.bf16.msra.mxu1 %v7823_v28  ;;  %v8526_v28 = vld [vmem:[#allocation4 + $0x6a8] sm:$0xf]  ;;  %v8255_v30 = vor.u32 %v11143_v23, %v8254_v22  ;;  %v11159_v16 = vld [vmem:[#allocation4 + $0x514] sm:$0xf0]  ;;  %v7792_v20 = vld [vmem:[#allocation4 + $0xf8] sm:$0xf0] }
 0x130   :  { %v8527_v36 = vor.u32 %v11211_v29, %v8526_v28  ;;  %v7920_v23 = vld [vmem:[#allocation4 + $0x1f8] sm:$0xf0]  ;;  %v11195_v4 = vld [vmem:[#allocation4 + $0x634] sm:$0xf0]  ;;  %v8319_v29 = vor.u32 %v11159_v16, %v8318_v15  ;;  %v11113_v16 = vld [vmem:[#allocation4 + $0x3ac] sm:$0xf] }
 0x131   :  { %2518 = vmatpush.bf16.msra.mxu3 %v8095_v39  ;;  %v8655_v39 = vor.u32 %v11243_v32, %v8654_v31  ;;  %v11227_v28 = vld [vmem:[#allocation4 + $0x734] sm:$0xf0]  ;;  %v11021_v31 = vld [vmem:[#allocation4 + $0xcc] sm:$0xf] }
 0x132   :  { %2505 = vmatpush.bf16.msra.mxu2 %v7967_v35  ;;  %2481 = vmatpush.bf16.msra.mxu0 %v7679_v41  ;;  %v11139_v35 = vld [vmem:[#allocation4 + $0x474] sm:$0xf0] }
 0x133   :  { %2494 = vmatpush.bf16.msra.mxu1 %v7807_v42  ;;  %v8239_v41 = vor.u32 %v11139_v35, %v8238_v34  ;;  %v8638_v42 = vld [vmem:[#allocation4 + $0x788] sm:$0xf]  ;;  %v7776_v34 = vld [vmem:[#allocation4 + $0xd8] sm:$0xf0]  ;;  %v11053_v35 = vld [vmem:[#allocation4 + $0x1cc] sm:$0xf] }
 0x134   :  { %v8639_v55 = vor.u32 %v11239_v44, %v8638_v42  ;;  %v11223_v50 = vld [vmem:[#allocation4 + $0x714] sm:$0xf0]  ;;  %v8048_v42 = vld [vmem:[#allocation4 + $0x2f8] sm:$0xf0]  ;;  %v7779_v44 = vor.u32 %v11021_v31, %v7776_v34 }
 0x135   :  { %2519 = vmatpush.bf16.msra.mxu3 %v8079_v57  ;;  %2482 = vmatmul.bf16.vlgmr.msra.gmra.mxu0 %v12226_v19  ;;  %v11203_v57 = vld [vmem:[#allocation4 + $0x674] sm:$0xf0] }
 0x136   :  { %2526 = vmatpush.bf16.msrb.mxu0 %v8303_v48  ;;  %2506 = vmatpush.bf16.msra.mxu2 %v7951_v53  ;;  %v8222_v48 = vld [vmem:[#allocation4 + $0x448] sm:$0xf] }
 0x137   :  { %2539 = vmatpush.bf16.msrb.mxu1 %v8431_v49  ;;  %v11135_v49 = vld [vmem:[#allocation4 + $0x454] sm:$0xf0]  ;;  %v8350_v53 = vld [vmem:[#allocation4 + $0x548] sm:$0xf] }
 0x138   :  { %2495 = vmatmul.bf16.vlgmr.msra.gmra.mxu1 %v12229_v24  ;;  %v8223_v58 = vor.u32 %v11135_v49, %v8222_v48  ;;  %v8351_v61 = vor.u32 %v11167_v54, %v8350_v53  ;;  %v8176_v48 = vld [vmem:[#allocation4 + $0x3f8] sm:$0xf0]  ;;  %v11017_v53 = vld [vmem:[#allocation4 + $0xac] sm:$0xf] }
 0x139   :  { %2520 = vmatpush.bf16.msra.mxu3 %v8063_v9  ;;  %v8606_v9 = vld [vmem:[#allocation4 + $0x748] sm:$0xf]  ;;  %v7760_v54 = vld [vmem:[#allocation4 + $0xb8] sm:$0xf0] }
 0x13a   :  { %2527 = vmatpush.bf16.msrb.mxu0 %v8287_v0  ;;  %2507 = vmatpush.bf16.msra.mxu2 %v7935_v5  ;;  %v8495_v0 = vor.u32 %v11203_v57, %v8494_v56  ;;  %v8478_v5 = vld [vmem:[#allocation4 + $0x648] sm:$0xf]  ;;  %v11049_v57 = vld [vmem:[#allocation4 + $0x1ac] sm:$0xf]  ;;  %v7763_v62 = vor.u32 %v11017_v53, %v7760_v54  ;;  %v7824_v54 = vld [vmem:[#allocation4 + $0x138] sm:$0xf0] }
 0x13b   :  { %2540 = vmatpush.bf16.msrb.mxu1 %v8415_v1  ;;  %v8334_v1 = vld [vmem:[#allocation4 + $0x528] sm:$0xf]  ;;  %v11033_v53 = vld [vmem:[#allocation4 + $0x12c] sm:$0xf] }
 0x13c   :  { %2521 = vmatmul.bf16.vlgmr.msra.gmra.mxu3 %v12235_v52  ;;  %v8335_v13 = vor.u32 %v11163_v2, %v8334_v1  ;;  %v11013_v2 = vld [vmem:[#allocation4 + $0x8c] sm:$0xf] }
 0x13d   :  { %2565 = vmatpush.bf16.msrb.mxu3 %v8687_v14  ;;  %2508 = vmatmul.bf16.vlgmr.msra.gmra.mxu2 %v12233_v45  ;;  %v11127_v14 = vld [vmem:[#allocation4 + $0x414] sm:$0xf0] }
 0x13e   :  { %2552 = vmatpush.bf16.msrb.mxu2 %v8559_v10  ;;  %2528 = vmatpush.bf16.msrb.mxu0 %v8271_v17  ;;  %v11231_v10 = vld [vmem:[#allocation4 + $0x754] sm:$0xf0]  ;;  %v8479_v17 = vor.u32 %v11199_v6, %v8478_v5  ;;  %v8191_v26 = vor.u32 %v11127_v14, %v8190_v12  ;;  %v8016_v14 = vld [vmem:[#allocation4 + $0x2b8] sm:$0xf0] }
 0x13f   :  { %2541 = vmatpush.bf16.msrb.mxu1 %v8399_v21  ;;  %v11057_v21 = vld [vmem:[#allocation4 + $0x1ec] sm:$0xf]  ;;  %v8607_v22 = vor.u32 %v11231_v10, %v8606_v9  ;;  %v7872_v9 = vld [vmem:[#allocation4 + $0x198] sm:$0xf0] }
 0x140   :  { %v7923_v32 = vor.u32 %v11057_v21, %v7920_v23  ;;  %v7728_v21 = vld [vmem:[#allocation4 + $0x78] sm:$0xf0]  ;;  %v11041_v23 = vld [vmem:[#allocation4 + $0x16c] sm:$0xf] }
 0x141   :  { %2566 = vmatpush.bf16.msrb.mxu3 %v8671_v27  ;;  %v8590_v27 = vld [vmem:[#allocation4 + $0x728] sm:$0xf] }
 0x142   :  { %2553 = vmatpush.bf16.msrb.mxu2 %v8543_v25  ;;  %2529 = vmatpush.bf16.msrb.mxu0 %v8255_v30  ;;  %v8462_v25 = vld [vmem:[#allocation4 + $0x628] sm:$0xf]  ;;  %v7795_v30 = vor.u32 %v11025_v18, %v7792_v20  ;;  %v8591_v37 = vor.u32 %v11227_v28, %v8590_v27  ;;  %v11009_v20 = vld [vmem:[#allocation4 + $0x6c] sm:$0xf]  ;;  %v8000_v27 = vld [vmem:[#allocation4 + $0x298] sm:$0xf0] }
 0x143   :  { %2542 = vmatpush.bf16.msrb.mxu1 %v8383_v33  ;;  %v8463_v33 = vor.u32 %v11195_v4, %v8462_v25  ;;  %v7856_v25 = vld [vmem:[#allocation4 + $0x178] sm:$0xf0]  ;;  %v7731_v28 = vor.u32 %v11009_v20, %v7728_v21 }
 0x144   :  { %v7859_v31 = vor.u32 %v11041_v23, %v7856_v25  ;;  %v8080_v20 = vld [vmem:[#allocation4 + $0x338] sm:$0xf0]  ;;  %v11149_v23 = vld [vmem:[#allocation4 + $0x4cc] sm:$0xf] }
 0x145   :  { %2567 = vmatpush.bf16.msrb.mxu3 %v8655_v39  ;;  %v11191_v39 = vld [vmem:[#allocation4 + $0x614] sm:$0xf0] }
 0x146   :  { %2554 = vmatpush.bf16.msrb.mxu2 %v8527_v36  ;;  %2530 = vmatpush.bf16.msrb.mxu0 %v8239_v41  ;;  %v7904_v36 = vld [vmem:[#allocation4 + $0x1d8] sm:$0xf0]  ;;  %v11089_v41 = vld [vmem:[#allocation4 + $0x2ec] sm:$0xf] }
 0x147   :  { %2543 = vmatpush.bf16.msrb.mxu1 %v8367_v47  ;;  %v11121_v47 = vld [vmem:[#allocation4 + $0x3ec] sm:$0xf]  ;;  %v7907_v49 = vor.u32 %v11053_v35, %v7904_v36  ;;  %v8051_v56 = vor.u32 %v11089_v41, %v8048_v42 }
 0x148   :  { %v8179_v59 = vor.u32 %v11121_v47, %v8176_v48  ;;  %v11037_v36 = vld [vmem:[#allocation4 + $0x14c] sm:$0xf] }
 0x149   :  { %2568 = vmatpush.bf16.msrb.mxu3 %v8639_v55  ;;  %v8575_v55 = vor.u32 %v11223_v50, %v8574_v40  ;;  %v11073_v40 = vld [vmem:[#allocation4 + $0x26c] sm:$0xf]  ;;  %v7984_v50 = vld [vmem:[#allocation4 + $0x278] sm:$0xf0] }
 0x14a   :  { %2555 = vmatpush.bf16.msrb.mxu2 %v8511_v51  ;;  %2531 = vmatpush.bf16.msrb.mxu0 %v8223_v58  ;;  %v8447_v51 = vor.u32 %v11191_v39, %v8446_v38  ;;  %v7888_v58 = vld [vmem:[#allocation4 + $0x1b8] sm:$0xf0]  ;;  %v11105_v42 = vld [vmem:[#allocation4 + $0x36c] sm:$0xf] }
 0x14b   :  { %2544 = vmatpush.bf16.msrb.mxu1 %v8351_v61  ;;  %v8032_v61 = vld [vmem:[#allocation4 + $0x2d8] sm:$0xf0]  ;;  %v7891_v1 = vor.u32 %v11049_v57, %v7888_v58  ;;  %v11001_v48 = vld [vmem:[#allocation4 + $0x2c] sm:$0xf] }
 0x14c   :  { %v8035_v6 = vor.u32 %v11085_v60, %v8032_v61  ;;  %v11069_v57 = vld [vmem:[#allocation4 + $0x24c] sm:$0xf]  ;;  %v7968_v58 = vld [vmem:[#allocation4 + $0x258] sm:$0xf0] }
 0x14d   :  { %2569 = vmatpush.bf16.msrb.mxu3 %v8623_v3  ;;  %v7744_v3 = vld [vmem:[#allocation4 + $0x98] sm:$0xf0]  ;;  %v11101_v61 = vld [vmem:[#allocation4 + $0x34c] sm:$0xf] }
 0x14e   :  { %2556 = vmatpush.bf16.msrb.mxu2 %v8495_v0  ;;  %2532 = vmatpush.bf16.msrb.mxu0 %v8207_v7  ;;  %v8160_v0 = vld [vmem:[#allocation4 + $0x3d8] sm:$0xf0]  ;;  %v11045_v7 = vld [vmem:[#allocation4 + $0x18c] sm:$0xf]  ;;  %v7747_v15 = vor.u32 %v11013_v2, %v7744_v3 }
 0x14f   :  { %2545 = vmatpush.bf16.msrb.mxu1 %v8335_v13  ;;  %v8163_v10 = vor.u32 %v11117_v63, %v8160_v0  ;;  %v11081_v13 = vld [vmem:[#allocation4 + $0x2ac] sm:$0xf]  ;;  %v7875_v18 = vor.u32 %v11045_v7, %v7872_v9  ;;  %v7827_v0 = vor.u32 %v11033_v53, %v7824_v54  ;;  %v7808_v3 = vld [vmem:[#allocation4 + $0x118] sm:$0xf0] }
 0x150   :  { %v10997_v63 = vld [vmem:[#allocation4 + $0xc] sm:$0xf]  ;;  %v8304_v9 = vld [vmem:[#allocation4 + $0x4f8] sm:$0xf0] }
 0x151   :  { %2570 = vmatpush.bf16.msrb.mxu3 %v8607_v22  ;;  %v12269_v5 = vpop.f32.mrf.mxu0  ;;  %v12271_v12 = vpop.f32.mrf.mxu1  ;;  %v8019_v22 = vor.u32 %v11081_v13, %v8016_v14  ;;  %v11029_v2 = vld [vmem:[#allocation4 + $0x10c] sm:$0xf]  ;;  %v8432_v14 = vld [vmem:[#allocation4 + $0x5f8] sm:$0xf0] }
 0x152   :  { %2557 = vmatpush.bf16.msrb.mxu2 %v8479_v17  ;;  %2533 = vmatpush.bf16.msrb.mxu0 %v8191_v26  ;;  %v8144_v17 = vld [vmem:[#allocation4 + $0x3b8] sm:$0xf0]  ;;  %v11077_v26 = vld [vmem:[#allocation4 + $0x28c] sm:$0xf]  ;;  %v7811_v21 = vor.u32 %v11029_v2, %v7808_v3 }
 0x153   :  { %2546 = vmatpush.bf16.msrb.mxu1 %v8319_v29  ;;  %v8147_v4 = vor.u32 %v11113_v16, %v8144_v17  ;;  %v11109_v29 = vld [vmem:[#allocation4 + $0x38c] sm:$0xf]  ;;  %v8003_v35 = vor.u32 %v11077_v26, %v8000_v27  ;;  %v7952_v16 = vld [vmem:[#allocation4 + $0x238] sm:$0xf0] }
 0x154   :  { %v11153_v7 = vld [vmem:[#allocation4 + $0x4ec] sm:$0xf]  ;;  %v8288_v26 = vld [vmem:[#allocation4 + $0x4d8] sm:$0xf0] }
 0x155   :  { %2571 = vmatpush.bf16.msrb.mxu3 %v8591_v37  ;;  %2534 = vmatmul.bf16.vlgmr.msrb.gmra.mxu0 %v12242_v8  ;;  %v7840_v37 = vld [vmem:[#allocation4 + $0x158] sm:$0xf0]  ;;  %v11181_v27 = vld [vmem:[#allocation4 + $0x5cc] sm:$0xf] }
 0x156   :  { %2578 = vmatpush.bf16.msra.mxu0 %v7795_v30  ;;  %2558 = vmatpush.bf16.msrb.mxu2 %v8463_v33  ;;  %v8128_v30 = vld [vmem:[#allocation4 + $0x398] sm:$0xf0]  ;;  %v7843_v47 = vor.u32 %v11037_v36, %v7840_v37  ;;  %v11217_v36 = vld [vmem:[#allocation4 + $0x6ec] sm:$0xf] }
 0x157   :  { %2591 = vmatpush.bf16.msra.mxu1 %v7923_v32  ;;  %v11005_v32 = vld [vmem:[#allocation4 + $0x4c] sm:$0xf]  ;;  %v7712_v33 = vld [vmem:[#allocation4 + $0x58] sm:$0xf0]  ;;  %v8131_v38 = vor.u32 %v11109_v29, %v8128_v30 }
 0x158   :  { %2547 = vmatmul.bf16.vlgmr.msrb.gmra.mxu1 %v12245_v11  ;;  %v7715_v41 = vor.u32 %v11005_v32, %v7712_v33  ;;  %v7936_v32 = vld [vmem:[#allocation4 + $0x218] sm:$0xf0]  ;;  %v11093_v33 = vld [vmem:[#allocation4 + $0x30c] sm:$0xf] }
 0x159   :  { %2572 = vmatpush.bf16.msrb.mxu3 %v8575_v55  ;;  %v2277_v34 = vpop.f32.mrf.mxu0  ;;  %v2290_v39 = vpop.f32.mrf.mxu1  ;;  %v8560_v37 = vld [vmem:[#allocation4 + $0x6f8] sm:$0xf0]  ;;  %v11213_v54 = vld [vmem:[#allocation4 + $0x6cc] sm:$0xf] }
 0x15a   :  { %2579 = vmatpush.bf16.msra.mxu0 %v7779_v44  ;;  %2559 = vmatpush.bf16.msrb.mxu2 %v8447_v51  ;;  %v8112_v44 = vld [vmem:[#allocation4 + $0x378] sm:$0xf0]  ;;  %v7987_v51 = vor.u32 %v11073_v40, %v7984_v50  ;;  %v11249_v39 = vld [vmem:[#allocation4 + $0x7ec] sm:$0xf] }
 0x15b   :  { %2592 = vmatpush.bf16.msra.mxu1 %v7907_v49  ;;  %v7696_v49 = vld [vmem:[#allocation4 + $0x38] sm:$0xf0]  ;;  %v11209_v3 = vld [vmem:[#allocation4 + $0x6ac] sm:$0xf] }
 0x15c   :  { %2573 = vmatmul.bf16.vlgmr.msrb.gmra.mxu3 %v12251_v46  ;;  %v7699_v60 = vor.u32 %v11001_v48, %v7696_v49  ;;  %v8688_v40 = vld [vmem:[#allocation4 + $0x7f8] sm:$0xf0]  ;;  %v8563_v48 = vor.u32 %v11217_v36, %v8560_v37  ;;  %v11177_v49 = vld [vmem:[#allocation4 + $0x5ac] sm:$0xf] }
 0x15d   :  { %2617 = vmatpush.bf16.msra.mxu3 %v8179_v59  ;;  %2560 = vmatmul.bf16.vlgmr.msrb.gmra.mxu2 %v12249_v43  ;;  %v8691_v53 = vor.u32 %v11249_v39, %v8688_v40  ;;  %v8624_v39 = vld [vmem:[#allocation4 + $0x778] sm:$0xf0] }
 0x15e   :  { %2604 = vmatpush.bf16.msra.mxu2 %v8051_v56  ;;  %2580 = vmatpush.bf16.msra.mxu0 %v7763_v62  ;;  %v8115_v56 = vor.u32 %v11105_v42, %v8112_v44  ;;  %v8096_v62 = vld [vmem:[#allocation4 + $0x358] sm:$0xf0]  ;;  %v11145_v42 = vld [vmem:[#allocation4 + $0x4ac] sm:$0xf] }
 0x15f   :  { %2593 = vmatpush.bf16.msra.mxu1 %v7891_v1  ;;  %v12277_v59 = vpop.f32.mrf.mxu3  ;;  %v7680_v1 = vld [vmem:[#allocation4 + $0x18] sm:$0xf0]  ;;  %v8099_v13 = vor.u32 %v11101_v61, %v8096_v62  ;;  %v11141_v62 = vld [vmem:[#allocation4 + $0x48c] sm:$0xf] }
 0x160   :  { %v12275_v55 = vpop.f32.mrf.mxu2  ;;  %v7683_v17 = vor.u32 %v10997_v63, %v7680_v1  ;;  %v8272_v44 = vld [vmem:[#allocation4 + $0x4b8] sm:$0xf0] }
 0x161   :  { %2618 = vmatpush.bf16.msra.mxu3 %v8163_v10  ;;  %v11185_v10 = vld [vmem:[#allocation4 + $0x5ec] sm:$0xf]  ;;  %v8256_v63 = vld [vmem:[#allocation4 + $0x498] sm:$0xf0] }
 0x162   :  { %2605 = vmatpush.bf16.msra.mxu2 %v8035_v6  ;;  %2581 = vmatpush.bf16.msra.mxu0 %v7747_v15  ;;  %v7971_v6 = vor.u32 %v11069_v57, %v7968_v58  ;;  %v11065_v15 = vld [vmem:[#allocation4 + $0x22c] sm:$0xf]  ;;  %v8435_v25 = vor.u32 %v11185_v10, %v8432_v14  ;;  %v8275_v57 = vor.u32 %v11145_v42, %v8272_v44  ;;  %v8384_v1 = vld [vmem:[#allocation4 + $0x598] sm:$0xf0] }
 0x163   :  { %2594 = vmatpush.bf16.msra.mxu1 %v7875_v18  ;;  %v11097_v18 = vld [vmem:[#allocation4 + $0x32c] sm:$0xf] }
 0x164   :  { %v8083_v30 = vor.u32 %v11097_v18, %v8080_v20  ;;  %v11245_v58 = vld [vmem:[#allocation4 + $0x7cc] sm:$0xf]  ;;  %v8368_v20 = vld [vmem:[#allocation4 + $0x578] sm:$0xf0] }
 0x165   :  { %2619 = vmatpush.bf16.msra.mxu3 %v8147_v4  ;;  %v7955_v4 = vor.u32 %v11065_v15, %v7952_v16  ;;  %v11241_v10 = vld [vmem:[#allocation4 + $0x7ac] sm:$0xf]  ;;  %v8240_v16 = vld [vmem:[#allocation4 + $0x478] sm:$0xf0] }
 0x166   :  { %2606 = vmatpush.bf16.msra.mxu2 %v8019_v22  ;;  %2582 = vmatpush.bf16.msra.mxu0 %v7731_v28  ;;  %v8307_v22 = vor.u32 %v11153_v7, %v8304_v9  ;;  %v8416_v28 = vld [vmem:[#allocation4 + $0x5d8] sm:$0xf0]  ;;  %v8259_v9 = vor.u32 %v11141_v62, %v8256_v63  ;;  %v11137_v15 = vld [vmem:[#allocation4 + $0x46c] sm:$0xf] }
 0x167   :  { %2595 = vmatpush.bf16.msra.mxu1 %v7859_v31  ;;  %v11061_v31 = vld [vmem:[#allocation4 + $0x20c] sm:$0xf]  ;;  %v2316_v34 = vpop.f32.mrf.mxu3  ;;  %v8419_v50 = vor.u32 %v11181_v27, %v8416_v28  ;;  %v12287_v28 = vld [vmem:[#allocation16 + $0x1] ss:$8 sm:$0xf] }
 0x168   :  { %v2303_v29 = vpop.f32.mrf.mxu2  ;;  %v11169_v18 = vld [vmem:[#allocation4 + $0x56c] sm:$0xf]  ;;  %v8192_v63 = vld [vmem:[#allocation4 + $0x418] sm:$0xf0] }
 0x169   :  { %2620 = vmatpush.bf16.msra.mxu3 %v8131_v38  ;;  %v8291_v38 = vor.u32 %v11149_v23, %v8288_v26  ;;  %v8243_v23 = vor.u32 %v11137_v15, %v8240_v16  ;;  %v8371_v26 = vor.u32 %v11169_v18, %v8368_v20  ;;  %v11133_v27 = vld [vmem:[#allocation4 + $0x44c] sm:$0xf]  ;;  %v8464_v15 = vld [vmem:[#allocation4 + $0x638] sm:$0xf0] }
 0x16a   :  { %2607 = vmatpush.bf16.msra.mxu2 %v8003_v35  ;;  %2583 = vmatpush.bf16.msra.mxu0 %v7715_v41  ;;  %v8064_v35 = vld [vmem:[#allocation4 + $0x318] sm:$0xf0]  ;;  %v7939_v41 = vor.u32 %v11061_v31, %v7936_v32  ;;  %v11201_v34 = vld [vmem:[#allocation4 + $0x66c] sm:$0xf] }
 0x16b   :  { %2596 = vmatpush.bf16.msra.mxu1 %v7843_v47  ;;  %v8067_v47 = vor.u32 %v11093_v33, %v8064_v35  ;;  %v8352_v31 = vld [vmem:[#allocation4 + $0x558] sm:$0xf0]  ;;  %v11161_v44 = vld [vmem:[#allocation4 + $0x52c] sm:$0xf] }
 0x16c   :  { %v8496_v35 = vld [vmem:[#allocation4 + $0x678] sm:$0xf0]  ;;  %v11225_v18 = vld [vmem:[#allocation4 + $0x72c] sm:$0xf] }
 0x16d   :  { %2621 = vmatpush.bf16.msra.mxu3 %v8115_v56  ;;  %v8544_v56 = vld [vmem:[#allocation4 + $0x6d8] sm:$0xf0]  ;;  %v8499_v42 = vor.u32 %v11201_v34, %v8496_v35 }
 0x16e   :  { %2608 = vmatpush.bf16.msra.mxu2 %v7987_v51  ;;  %2584 = vmatpush.bf16.msra.mxu0 %v7699_v60  ;;  %v8400_v51 = vld [vmem:[#allocation4 + $0x5b8] sm:$0xf0] }
 0x16f   :  { %2597 = vmatpush.bf16.msra.mxu1 %v7827_v0  ;;  %v8672_v60 = vld [vmem:[#allocation4 + $0x7d8] sm:$0xf0]  ;;  %v8403_v61 = vor.u32 %v11177_v49, %v8400_v51  ;;  %v11173_v0 = vld [vmem:[#allocation4 + $0x58c] sm:$0xf] }
 0x170   :  { %v8387_v14 = vor.u32 %v11173_v0, %v8384_v1  ;;  %v11197_v51 = vld [vmem:[#allocation4 + $0x64c] sm:$0xf]  ;;  %v8320_v0 = vld [vmem:[#allocation4 + $0x518] sm:$0xf0] }
 0x171   :  { %2622 = vmatpush.bf16.msra.mxu3 %v8099_v13  ;;  %v12281_v2 = vpop.f32.mrf.mxu0  ;;  %v12284_v7 = vpop.f32.mrf.mxu1  ;;  %v8656_v13 = vld [vmem:[#allocation4 + $0x7b8] sm:$0xf0] }
 0x172   :  { %2609 = vmatpush.bf16.msra.mxu2 %v7971_v6  ;;  %2585 = vmatpush.bf16.msra.mxu0 %v7683_v17  ;;  %v8528_v6 = vld [vmem:[#allocation4 + $0x6b8] sm:$0xf0] }
 0x173   :  { %2598 = vmatpush.bf16.msra.mxu1 %v7811_v21  ;;  %v8531_v17 = vor.u32 %v11209_v3, %v8528_v6  ;;  %v8659_v21 = vor.u32 %v11241_v10, %v8656_v13  ;;  %v11267_v3 = vld [vmem:[#allocation6 + $0x74] sm:$0xf0]  ;;  %v8814_v6 = vld [vmem:[#allocation6 + $0xf0] sm:$0xf]  ;;  %v8592_v20 = vld [vmem:[#allocation4 + $0x738] sm:$0xf0] }
 0x174   :  { %v11283_v13 = vld [vmem:[#allocation6 + $0xf4] sm:$0xf0]  ;;  %v8576_v34 = vld [vmem:[#allocation4 + $0x718] sm:$0xf0] }
 0x175   :  { %2623 = vmatpush.bf16.msra.mxu3 %v8083_v30  ;;  %2586 = vmatmul.bf16.vlgmr.msra.gmra.mxu0 %v12226_v19  ;;  %v8547_v19 = vor.u32 %v11213_v54, %v8544_v56  ;;  %v11165_v30 = vld [vmem:[#allocation4 + $0x54c] sm:$0xf] }
 0x176   :  { %2630 = vmatpush.bf16.msrb.mxu0 %v8307_v22  ;;  %2610 = vmatpush.bf16.msra.mxu2 %v7955_v4  ;;  %v11205_v22 = vld [vmem:[#allocation4 + $0x68c] sm:$0xf]  ;;  %v8640_v4 = vld [vmem:[#allocation4 + $0x798] sm:$0xf0]  ;;  %v8355_v40 = vor.u32 %v11165_v30, %v8352_v31 }
 0x177   :  { %2643 = vmatpush.bf16.msrb.mxu1 %v8435_v25  ;;  %v11237_v25 = vld [vmem:[#allocation4 + $0x78c] sm:$0xf]  ;;  %v8448_v31 = vld [vmem:[#allocation4 + $0x618] sm:$0xf0] }
 0x178   :  { %2599 = vmatmul.bf16.vlgmr.msra.gmra.mxu1 %v12229_v24  ;;  %v8675_v24 = vor.u32 %v11245_v58, %v8672_v60  ;;  %v8643_v33 = vor.u32 %v11237_v25, %v8640_v4  ;;  %v8608_v58 = vld [vmem:[#allocation4 + $0x758] sm:$0xf0]  ;;  %v11125_v60 = vld [vmem:[#allocation4 + $0x40c] sm:$0xf]  ;;  %v8742_v4 = vld [vmem:[#allocation6 + $0x60] sm:$0xf] }
 0x179   :  { %2624 = vmatpush.bf16.msra.mxu3 %v8067_v47  ;;  %v2329_v32 = vpop.f32.mrf.mxu0  ;;  %v2342_v36 = vpop.f32.mrf.mxu1  ;;  %v8336_v47 = vld [vmem:[#allocation4 + $0x538] sm:$0xf0]  ;;  %v11189_v30 = vld [vmem:[#allocation4 + $0x60c] sm:$0xf] }
 0x17a   :  { %2631 = vmatpush.bf16.msrb.mxu0 %v8291_v38  ;;  %2611 = vmatpush.bf16.msra.mxu2 %v7939_v41  ;;  %v11233_v38 = vld [vmem:[#allocation4 + $0x76c] sm:$0xf]  ;;  %v8208_v41 = vld [vmem:[#allocation4 + $0x438] sm:$0xf0]  ;;  %v8339_v62 = vor.u32 %v11161_v44, %v8336_v47  ;;  %v8798_v44 = vld [vmem:[#allocation6 + $0xd0] sm:$0xf] }
 0x17b   :  { %2644 = vmatpush.bf16.msrb.mxu1 %v8419_v50  ;;  %v11129_v50 = vld [vmem:[#allocation4 + $0x42c] sm:$0xf]  ;;  %v8627_v49 = vor.u32 %v11233_v38, %v8624_v39  ;;  %v8451_v39 = vor.u32 %v11189_v30, %v8448_v31  ;;  %v11279_v47 = vld [vmem:[#allocation6 + $0xd4] sm:$0xf0]  ;;  %v8766_v31 = vld [vmem:[#allocation6 + $0x90] sm:$0xf] }
 0x17c   :  { %2625 = vmatmul.bf16.vlgmr.msra.gmra.mxu3 %v12235_v52  ;;  %v8224_v52 = vld [vmem:[#allocation4 + $0x458] sm:$0xf0]  ;;  %v8211_v56 = vor.u32 %v11129_v50, %v8208_v41  ;;  %v11263_v50 = vld [vmem:[#allocation6 + $0x54] sm:$0xf0] }
 0x17d   :  { %2669 = vmatpush.bf16.msrb.mxu3 %v8691_v53  ;;  %2612 = vmatmul.bf16.vlgmr.msra.gmra.mxu2 %v12233_v45  ;;  %v8512_v45 = vld [vmem:[#allocation4 + $0x698] sm:$0xf0]  ;;  %v8227_v37 = vor.u32 %v11133_v27, %v8224_v52  ;;  %v8806_v27 = vld [vmem:[#allocation6 + $0xe0] sm:$0xf]  ;;  %v8595_v52 = vor.u32 %v11225_v18, %v8592_v20 }
 0x17e   :  { %2656 = vmatpush.bf16.msrb.mxu2 %v8563_v48  ;;  %2632 = vmatpush.bf16.msrb.mxu0 %v8275_v57  ;;  %v8515_v29 = vor.u32 %v11205_v22, %v8512_v45  ;;  %v978_v48 = vperm.slane %v12287_v28, 0  ;;  %v8480_v53 = vld [vmem:[#allocation4 + $0x658] sm:$0xf0]  ;;  %v11229_v57 = vld [vmem:[#allocation4 + $0x74c] sm:$0xf] }
 0x17f   :  { %2645 = vmatpush.bf16.msrb.mxu1 %v8403_v61  ;;  %v12290_v54 = vpop.f32.mrf.mxu2  ;;  %v12292_v61 = vpop.f32.mrf.mxu3  ;;  %v8483_v1 = vor.u32 %v11197_v51, %v8480_v53  ;;  %v8611_v10 = vor.u32 %v11229_v57, %v8608_v58  ;;  %v8799_v53 = vor.u32 %v11279_v47, %v8798_v44  ;;  %v11261_v57 = vld [vmem:[#allocation6 + $0x44] sm:$0xf0]  ;;  %v8790_v58 = vld [vmem:[#allocation6 + $0xc0] sm:$0xf]  ;;  %v8752_v44 = vld [vmem:[#allocation6 + $0x78] sm:$0xf0] }
 0x180   :  { %v8774_v20 = vld [vmem:[#allocation6 + $0xa0] sm:$0xf] }
 0x181   :  { %2670 = vmatpush.bf16.msrb.mxu3 %v8675_v24  ;;  %v8750_v24 = vld [vmem:[#allocation6 + $0x70] sm:$0xf]  ;;  %v2392_v16 = vpop.f32.mrf.mxu1 }
 0x182   :  { %2657 = vmatpush.bf16.msrb.mxu2 %v8547_v19  ;;  %2633 = vmatpush.bf16.msrb.mxu0 %v8259_v9  ;;  %v11157_v19 = vld [vmem:[#allocation4 + $0x50c] sm:$0xf]  ;;  %v2379_v9 = vpop.f32.mrf.mxu0  ;;  %v8751_v45 = vor.u32 %v11267_v3, %v8750_v24  ;;  %v8782_v3 = vld [vmem:[#allocation6 + $0xb0] sm:$0xf] }
 0x183   :  { %2646 = vmatpush.bf16.msrb.mxu1 %v8387_v14  ;;  %v11193_v14 = vld [vmem:[#allocation4 + $0x62c] sm:$0xf]  ;;  %v8323_v22 = vor.u32 %v11157_v19, %v8320_v0  ;;  %v8718_v0 = vld [vmem:[#allocation6 + $0x30] sm:$0xf] }
 0x184   :  { %v8467_v25 = vor.u32 %v11193_v14, %v8464_v15  ;;  %v8878_v14 = vld [vmem:[#allocation6 + $0x170] sm:$0xf] }
 0x185   :  { %2671 = vmatpush.bf16.msrb.mxu3 %v8659_v21  ;;  %v2276_v21 = vadd.f32 %v12269_v5, %v978_v48 }
 0x186   :  { %2658 = vmatpush.bf16.msrb.mxu2 %v8531_v17  ;;  %2634 = vmatpush.bf16.msrb.mxu0 %v8243_v23  ;;  %v8195_v17 = vor.u32 %v11125_v60, %v8192_v63  ;;  %v8815_v23 = vor.u32 %v11283_v13, %v8814_v6  ;;  %v11275_v6 = vld [vmem:[#allocation6 + $0xb4] sm:$0xf0] }
 0x187   :  { %2647 = vmatpush.bf16.msrb.mxu1 %v8371_v26  ;;  %v11265_v26 = vld [vmem:[#allocation6 + $0x64] sm:$0xf0]  ;;  %v2355_v32 = vpop.f32.mrf.mxu2  ;;  %v2289_v5 = vadd.f32 %v12271_v12, %v2276_v21  ;;  %v2368_v35 = vpop.f32.mrf.mxu3  ;;  %v8783_v15 = vor.u32 %v11275_v6, %v8782_v3  ;;  %v11291_v3 = vld [vmem:[#allocation6 + $0x134] sm:$0xf0] }
 0x188   :  { %v8743_v36 = vor.u32 %v11265_v26, %v8742_v4  ;;  %v11273_v21 = vld [vmem:[#allocation6 + $0xa4] sm:$0xf0]  ;;  %v8870_v4 = vld [vmem:[#allocation6 + $0x160] sm:$0xf]  ;;  %v11271_v32 = vld [vmem:[#allocation6 + $0x94] sm:$0xf0] }
 0x189   :  { %2672 = vmatpush.bf16.msrb.mxu3 %v8643_v33  ;;  %v11221_v33 = vld [vmem:[#allocation4 + $0x70c] sm:$0xf]  ;;  %v2394_v12 = vpop.f32.mrf.mxu1  ;;  %v2302_v48 = vadd.f32 %v12275_v55, %v2289_v5  ;;  %v11297_v26 = vld [vmem:[#allocation6 + $0x164] sm:$0xf0]  ;;  %v8862_v35 = vld [vmem:[#allocation6 + $0x150] sm:$0xf] }
 0x18a   :  { %2659 = vmatpush.bf16.msrb.mxu2 %v8515_v29  ;;  %2635 = vmatpush.bf16.msrb.mxu0 %v8227_v37  ;;  %v11281_v29 = vld [vmem:[#allocation6 + $0xe4] sm:$0xf0]  ;;  %v979_v37 = vperm.slane %v12287_v28, 1  ;;  %v2381_v41 = vpop.f32.mrf.mxu0  ;;  %v8871_v30 = vor.u32 %v11297_v26, %v8870_v4  ;;  %v11282_v12 = vld [vmem:[#allocation6 + $0xf4] sm:$0xf] }
 0x18b   :  { %2648 = vmatpush.bf16.msrb.mxu1 %v8355_v40  ;;  %v8807_v38 = vor.u32 %v11281_v29, %v8806_v27  ;;  %v8734_v40 = vld [vmem:[#allocation6 + $0x50] sm:$0xf]  ;;  %v8775_v27 = vor.u32 %v11273_v21, %v8774_v20  ;;  %v11255_v29 = vld [vmem:[#allocation6 + $0x14] sm:$0xf0]  ;;  %v11269_v41 = vld [vmem:[#allocation6 + $0x84] sm:$0xf0] }
 0x18c   :  { %v2380_v51 = vadd.f32 %v2379_v9, %v979_v37  ;;  %v8767_v37 = vor.u32 %v11271_v32, %v8766_v31  ;;  %v11276_v4 = vld [vmem:[#allocation6 + $0xc4] sm:$0xf]  ;;  %v8792_v26 = vld [vmem:[#allocation6 + $0xc8] sm:$0xf0]  ;;  %v11258_v32 = vld [vmem:[#allocation6 + $0x34] sm:$0xf] }
 0x18d   :  { %2673 = vmatpush.bf16.msrb.mxu3 %v8627_v49  ;;  %v8735_v49 = vor.u32 %v11263_v50, %v8734_v40  ;;  %v8758_v40 = vld [vmem:[#allocation6 + $0x80] sm:$0xf]  ;;  %v8795_v31 = vor.u32 %v11276_v4, %v8792_v26  ;;  %v11286_v26 = vld [vmem:[#allocation6 + $0x114] sm:$0xf] }
 0x18e   :  { %2660 = vmatpush.bf16.msrb.mxu2 %v8499_v42  ;;  %2636 = vmatpush.bf16.msrb.mxu0 %v8211_v56  ;;  %v8579_v42 = vor.u32 %v11221_v33, %v8576_v34  ;;  %v8726_v56 = vld [vmem:[#allocation6 + $0x40] sm:$0xf]  ;;  %v2393_v55 = vadd.f32 %v2392_v16, %v2380_v51 }
 0x18f   :  { %2649 = vmatpush.bf16.msrb.mxu1 %v8339_v62  ;;  %v2405_v60 = vpop.f32.mrf.mxu2  ;;  %v2315_v62 = vadd.f32 %v12277_v59, %v2302_v48  ;;  %v2418_v63 = vpop.f32.mrf.mxu3  ;;  %v8710_v16 = vld [vmem:[#allocation6 + $0x20] sm:$0xf]  ;;  %v8816_v48 = vld [vmem:[#allocation6 + $0xf8] sm:$0xf0] }
 0x190   :  { %v2406_v9 = vadd.f32 %v2405_v60, %v2393_v55  ;;  %v8744_v55 = vld [vmem:[#allocation6 + $0x68] sm:$0xf0] }
 0x191   :  { %2674 = vmatpush.bf16.msrb.mxu3 %v8611_v10  ;;  %v2328_v24 = vadd.f32 %v12281_v2, %v2315_v62 }
 0x192   :  { %2661 = vmatpush.bf16.msrb.mxu2 %v8483_v1  ;;  %2637 = vmatpush.bf16.msrb.mxu0 %v8195_v17  ;;  %v11259_v1 = vld [vmem:[#allocation6 + $0x34] sm:$0xf0]  ;;  %v2431_v10 = vpop.f32.mrf.mxu0  ;;  %v11257_v17 = vld [vmem:[#allocation6 + $0x24] sm:$0xf0] }
 0x193   :  { %2650 = vmatpush.bf16.msrb.mxu1 %v8323_v22  ;;  %v8719_v59 = vor.u32 %v11259_v1, %v8718_v0  ;;  %v2341_v18 = vadd.f32 %v12284_v7, %v2328_v24  ;;  %v2419_v22 = vadd.f32 %v2418_v63, %v2406_v9  ;;  %v8819_v63 = vor.u32 %v11282_v12, %v8816_v48  ;;  %v11280_v0 = vld [vmem:[#allocation6 + $0xe4] sm:$0xf]  ;;  %v8808_v1 = vld [vmem:[#allocation6 + $0xe8] sm:$0xf0]  ;;  %v8846_v24 = vld [vmem:[#allocation6 + $0x130] sm:$0xf] }
 0x194   :  { %v8776_v12 = vld [vmem:[#allocation6 + $0xa8] sm:$0xf0] }
 0x195   :  { %2675 = vmatpush.bf16.msrb.mxu3 %v8595_v52  ;;  %2638 = vmatmul.bf16.vlgmr.msrb.gmra.mxu0 %v12242_v8  ;;  %v11277_v8 = vld [vmem:[#allocation6 + $0xc4] sm:$0xf0]  ;;  %v2444_v13 = vpop.f32.mrf.mxu1  ;;  %v8702_v52 = vld [vmem:[#allocation6 + $0x10] sm:$0xf]  ;;  %v2432_v7 = vadd.f32 %v2431_v10, %v2419_v22 }
 0x196   :  { %3081 = vmatpush.bf16.msra.mxu0 %v8751_v45  ;;  %2662 = vmatpush.bf16.msrb.mxu2 %v8467_v25  ;;  %v8791_v19 = vor.u32 %v11277_v8, %v8790_v58  ;;  %v2354_v45 = vadd.f32 %v12290_v54, %v2341_v18  ;;  %v8711_v25 = vor.u32 %v11257_v17, %v8710_v16  ;;  %v8736_v16 = vld [vmem:[#allocation6 + $0x58] sm:$0xf0] }
 0x197   :  { %3094 = vmatpush.bf16.msra.mxu1 %v8815_v23  ;;  %v2407_v2 = vpop.f32.mrf.mxu2  ;;  %v2420_v23 = vpop.f32.mrf.mxu3  ;;  %v8703_v54 = vor.u32 %v11255_v29, %v8702_v52  ;;  %v2445_v47 = vadd.f32 %v2444_v13, %v2432_v7  ;;  %v8759_v8 = vor.u32 %v11269_v41, %v8758_v40  ;;  %v8847_v13 = vor.u32 %v11291_v3, %v8846_v24  ;;  %v8800_v18 = vld [vmem:[#allocation6 + $0xd8] sm:$0xf0]  ;;  %v11287_v52 = vld [vmem:[#allocation6 + $0x114] sm:$0xf0]  ;;  %v11256_v41 = vld [vmem:[#allocation6 + $0x24] sm:$0xf] }
 0x198   :  { %2651 = vmatmul.bf16.vlgmr.msrb.gmra.mxu1 %v12245_v11  ;;  %v8727_v11 = vor.u32 %v11261_v57, %v8726_v56  ;;  %v2367_v34 = vadd.f32 %v12292_v61, %v2354_v45  ;;  %v8854_v56 = vld [vmem:[#allocation6 + $0x140] sm:$0xf]  ;;  %v11293_v57 = vld [vmem:[#allocation6 + $0x144] sm:$0xf0]  ;;  %v11260_v23 = vld [vmem:[#allocation6 + $0x44] sm:$0xf] }
 0x199   :  { %2676 = vmatpush.bf16.msrb.mxu3 %v8579_v42  ;;  %v11266_v42 = vld [vmem:[#allocation6 + $0x74] sm:$0xf]  ;;  %v8855_v62 = vor.u32 %v11293_v57, %v8854_v56  ;;  %v8720_v7 = vld [vmem:[#allocation6 + $0x38] sm:$0xf0]  ;;  %v11268_v3 = vld [vmem:[#allocation6 + $0x84] sm:$0xf] }
 0x19a   :  { %3082 = vmatpush.bf16.msra.mxu0 %v8743_v36  ;;  %2663 = vmatpush.bf16.msrb.mxu2 %v8451_v39  ;;  %v2433_v33 = vpop.f32.mrf.mxu0  ;;  %v11295_v36 = vld [vmem:[#allocation6 + $0x154] sm:$0xf0]  ;;  %v11253_v39 = vld [vmem:[#allocation6 + $0x4] sm:$0xf0]  ;;  %v8755_v60 = vor.u32 %v11266_v42, %v8752_v44  ;;  %v8880_v40 = vld [vmem:[#allocation6 + $0x178] sm:$0xf0] }
 0x19b   :  { %3095 = vmatpush.bf16.msra.mxu1 %v8807_v38  ;;  %v8694_v38 = vld [vmem:[#allocation6] sm:$0xf]  ;;  %v8863_v50 = vor.u32 %v11295_v36, %v8862_v35  ;;  %v11274_v33 = vld [vmem:[#allocation6 + $0xb4] sm:$0xf]  ;;  %v11285_v35 = vld [vmem:[#allocation6 + $0x104] sm:$0xf0] }
 0x19c   :  { %2677 = vmatmul.bf16.vlgmr.msrb.gmra.mxu3 %v12251_v46  ;;  %v11298_v36 = vld [vmem:[#allocation6 + $0x174] sm:$0xf]  ;;  %v8712_v42 = vld [vmem:[#allocation6 + $0x28] sm:$0xf0]  ;;  %v8704_v56 = vld [vmem:[#allocation6 + $0x18] sm:$0xf0] }
 0x19d   :  { %2664 = vmatmul.bf16.vlgmr.msrb.gmra.mxu2 %v12249_v43  ;;  %v11299_v43 = vld [vmem:[#allocation6 + $0x174] sm:$0xf0]  ;;  %v2446_v5 = vpop.f32.mrf.mxu1  ;;  %v8883_v44 = vor.u32 %v11298_v36, %v8880_v40  ;;  %v8715_v48 = vor.u32 %v11256_v41, %v8712_v42  ;;  %v11313_v36 = vld [vmem:[#allocation6 + $0x1e4] sm:$0xf0] }
 0x19e   :  { %3083 = vmatpush.bf16.msra.mxu0 %v8735_v49  ;;  %v8879_v46 = vor.u32 %v11299_v43, %v8878_v14  ;;  %v2682_v49 = vmax.f32 %v2367_v34, 0.0  ;;  %v11289_v14 = vld [vmem:[#allocation6 + $0x124] sm:$0xf0]  ;;  %v8811_v43 = vor.u32 %v11280_v0, %v8808_v1  ;;  %v8784_v34 = vld [vmem:[#allocation6 + $0xb8] sm:$0xf0] }
 0x19f   :  { %3096 = vmatpush.bf16.msra.mxu1 %v8799_v53  ;;  %v2470_v51 = vpop.f32.mrf.mxu3  ;;  %v8695_v53 = vor.u32 %v11253_v39, %v8694_v38  ;;  %v8723_v38 = vor.u32 %v11258_v32, %v8720_v7  ;;  %v11252_v0 = vld [vmem:[#allocation6 + $0x4] sm:$0xf]  ;;  %v8696_v1 = vld [vmem:[#allocation6 + $0x8] sm:$0xf0]  ;;  %v8942_v7 = vld [vmem:[#allocation6 + $0x1f0] sm:$0xf] }
 0x1a0   :  { %3107 = vmatpush.bf16.msra.mxu2 %v8879_v46  ;;  %v2457_v61 = vpop.f32.mrf.mxu2  ;;  %v12307_v6 = vpack.c.bf16 %v2682_v49, %v2682_v49  ;;  %v11278_v46 = vld [vmem:[#allocation6 + $0xd4] sm:$0xf]  ;;  %v11296_v49 = vld [vmem:[#allocation6 + $0x164] sm:$0xf]  ;;  %v8824_v32 = vld [vmem:[#allocation6 + $0x108] sm:$0xf0] }
 0x1a1   :  { %v2458_v58 = vadd.f32 %v2457_v61, %v2445_v47  ;;  %v8803_v45 = vor.u32 %v11278_v46, %v8800_v18  ;;  %v11272_v47 = vld [vmem:[#allocation6 + $0xa4] sm:$0xf]  ;;  %v8872_v61 = vld [vmem:[#allocation6 + $0x168] sm:$0xf0]  ;;  %v11290_v46 = vld [vmem:[#allocation6 + $0x134] sm:$0xf] }
 0x1a2   :  { %3084 = vmatpush.bf16.msra.mxu0 %v8727_v11  ;;  %v11264_v11 = vld [vmem:[#allocation6 + $0x64] sm:$0xf]  ;;  %v8875_v57 = vor.u32 %v11296_v49, %v8872_v61  ;;  %v8848_v18 = vld [vmem:[#allocation6 + $0x138] sm:$0xf0]  ;;  %v11311_v41 = vld [vmem:[#allocation6 + $0x1d4] sm:$0xf0] }
 0x1a3   :  { %3097 = vmatpush.bf16.msra.mxu1 %v8791_v19  ;;  %v2471_v19 = vadd.f32 %v2470_v51, %v2458_v58  ;;  %v8747_v10 = vor.u32 %v11264_v11, %v8744_v55  ;;  %v8779_v51 = vor.u32 %v11272_v47, %v8776_v12  ;;  %v11270_v58 = vld [vmem:[#allocation6 + $0x94] sm:$0xf]  ;;  %v8864_v55 = vld [vmem:[#allocation6 + $0x158] sm:$0xf0]  ;;  %v8918_v12 = vld [vmem:[#allocation6 + $0x1c0] sm:$0xf] }
 0x1a4   :  { %3108 = vmatpush.bf16.msra.mxu2 %v8871_v30  ;;  %v11294_v11 = vld [vmem:[#allocation6 + $0x154] sm:$0xf] }
 0x1a5   :  { %v2683_v9 = vmax.f32 %v2471_v19, 0.0  ;;  %v8867_v24 = vor.u32 %v11294_v11, %v8864_v55 }
 0x1a6   :  { %3085 = vmatpush.bf16.msra.mxu0 %v8719_v59  ;;  %v8838_v59 = vld [vmem:[#allocation6 + $0x120] sm:$0xf] }
 0x1a7   :  { %3098 = vmatpush.bf16.msra.mxu1 %v8783_v15  ;;  %v11262_v15 = vld [vmem:[#allocation6 + $0x54] sm:$0xf]  ;;  %v12309_v17 = vpack.c.bf16 %v2683_v9, %v2683_v9  ;;  %v8839_v20 = vor.u32 %v11289_v14, %v8838_v59  ;;  %v2472_v22 = vpop.f32.mrf.mxu3  ;;  %v8760_v9 = vld [vmem:[#allocation6 + $0x88] sm:$0xf0]  ;;  %v8699_v59 = vor.u32 %v11252_v0, %v8696_v1  ;;  %v11292_v14 = vld [vmem:[#allocation6 + $0x144] sm:$0xf] }
 0x1a8   :  { %3109 = vmatpush.bf16.msra.mxu2 %v8863_v50  ;;  %v2459_v21 = vpop.f32.mrf.mxu2  ;;  %v8739_v2 = vor.u32 %v11262_v15, %v8736_v16  ;;  %v8787_v50 = vor.u32 %v11274_v33, %v8784_v34  ;;  %v8763_v15 = vor.u32 %v11268_v3, %v8760_v9  ;;  %v8840_v22 = vld [vmem:[#allocation6 + $0x128] sm:$0xf0]  ;;  %v8894_v0 = vld [vmem:[#allocation6 + $0x190] sm:$0xf]  ;;  %v11303_v1 = vld [vmem:[#allocation6 + $0x194] sm:$0xf0] }
 0x1a9   :  { %v11288_v21 = vld [vmem:[#allocation6 + $0x124] sm:$0xf]  ;;  %v8886_v9 = vld [vmem:[#allocation6 + $0x180] sm:$0xf] }
 0x1aa   :  { %3086 = vmatpush.bf16.msra.mxu0 %v8711_v25  ;;  %v8728_v25 = vld [vmem:[#allocation6 + $0x48] sm:$0xf0] }
 0x1ab   :  { %3099 = vmatpush.bf16.msra.mxu1 %v8775_v27  ;;  %v8830_v27 = vld [vmem:[#allocation6 + $0x110] sm:$0xf]  ;;  %v8731_v29 = vor.u32 %v11260_v23, %v8728_v25  ;;  %v8843_v23 = vor.u32 %v11288_v21, %v8840_v22  ;;  %v11310_v22 = vld [vmem:[#allocation6 + $0x1d4] sm:$0xf] }
 0x1ac   :  { %3110 = vmatpush.bf16.msra.mxu2 %v8855_v62  ;;  %v8831_v30 = vor.u32 %v11287_v52, %v8830_v27  ;;  %v8832_v27 = vld [vmem:[#allocation6 + $0x118] sm:$0xf0] }
 0x1ad   :  { %v8835_v52 = vor.u32 %v11286_v26, %v8832_v27  ;;  %v8920_v26 = vld [vmem:[#allocation6 + $0x1c8] sm:$0xf0] }
 0x1ae   :  { %3087 = vmatpush.bf16.msra.mxu0 %v8703_v54  ;;  %v8822_v54 = vld [vmem:[#allocation6 + $0x100] sm:$0xf] }
 0x1af   :  { %3100 = vmatpush.bf16.msra.mxu1 %v8767_v37  ;;  %v8823_v39 = vor.u32 %v11285_v35, %v8822_v54  ;;  %v11315_v54 = vld [vmem:[#allocation6 + $0x1f4] sm:$0xf0] }
 0x1b0   :  { %3111 = vmatpush.bf16.msra.mxu2 %v8847_v13  ;;  %v8943_v35 = vor.u32 %v11315_v54, %v8942_v7  ;;  %v981_v7 = vperm.slane %v12287_v28, 3 }
 0x1b2   :  { %3088 = vmatpush.bf16.msra.mxu0 %v8695_v53  ;;  %v12313_v5 = vpop.f32.mrf.mxu0  ;;  %v11254_v53 = vld [vmem:[#allocation6 + $0x14] sm:$0xf]  ;;  %3120 = vmatpush.bf16.msra.mxu3 %v8943_v35 }
 0x1b3   :  { %3101 = vmatpush.bf16.msra.mxu1 %v8759_v8  ;;  %v8768_v8 = vld [vmem:[#allocation6 + $0x98] sm:$0xf0]  ;;  %v11302_v35 = vld [vmem:[#allocation6 + $0x194] sm:$0xf] }
 0x1b4   :  { %3112 = vmatpush.bf16.msra.mxu2 %v8839_v20  ;;  %v8771_v19 = vor.u32 %v11270_v58, %v8768_v8  ;;  %v8851_v20 = vor.u32 %v11290_v46, %v8848_v18  ;;  %v11307_v58 = vld [vmem:[#allocation6 + $0x1b4] sm:$0xf0]  ;;  %v8936_v46 = vld [vmem:[#allocation6 + $0x1e8] sm:$0xf0] }
 0x1b5   :  { %3089 = vmatmul.bf16.vlgmr.msra.gmra.mxu0 %v12307_v6  ;;  %v12315_v37 = vpop.f32.mrf.mxu1 }
 0x1b6   :  { %3133 = vmatpush.bf16.msrb.mxu0 %v8755_v60  ;;  %3102 = vmatmul.bf16.vlgmr.msra.gmra.mxu1 %v12309_v17 }
 0x1b7   :  { %3146 = vmatpush.bf16.msrb.mxu1 %v8819_v63  ;;  %v8707_v63 = vor.u32 %v11254_v53, %v8704_v56 }
 0x1b8   :  { %3113 = vmatpush.bf16.msra.mxu2 %v8831_v30 }
 0x1ba   :  { %3134 = vmatpush.bf16.msrb.mxu0 %v8747_v10  ;;  %v2485_v60 = vpop.f32.mrf.mxu0 }
 0x1bb   :  { %3147 = vmatpush.bf16.msrb.mxu1 %v8811_v43  ;;  %v8856_v43 = vld [vmem:[#allocation6 + $0x148] sm:$0xf0]  ;;  %v8902_v60 = vld [vmem:[#allocation6 + $0x1a0] sm:$0xf] }
 0x1bc   :  { %3114 = vmatpush.bf16.msra.mxu2 %v8823_v39  ;;  %v8859_v16 = vor.u32 %v11292_v14, %v8856_v43  ;;  %v8944_v43 = vld [vmem:[#allocation6 + $0x1f8] sm:$0xf0] }
 0x1bd   :  { %v2498_v62 = vpop.f32.mrf.mxu1 }
 0x1be   :  { %3135 = vmatpush.bf16.msrb.mxu0 %v8739_v2  ;;  %v980_v2 = vperm.slane %v12287_v28, 2  ;;  %v11305_v62 = vld [vmem:[#allocation6 + $0x1a4] sm:$0xf0] }
 0x1bf   :  { %3148 = vmatpush.bf16.msrb.mxu1 %v8803_v45  ;;  %v2522_v13 = vpop.f32.mrf.mxu3  ;;  %v8903_v55 = vor.u32 %v11305_v62, %v8902_v60 }
 0x1c0   :  { %3159 = vmatpush.bf16.msrb.mxu2 %v8883_v44  ;;  %v2509_v10 = vpop.f32.mrf.mxu2  ;;  %v2484_v4 = vadd.f32 %v12313_v5, %v980_v2  ;;  %v8934_v5 = vld [vmem:[#allocation6 + $0x1e0] sm:$0xf]  ;;  %v8928_v2 = vld [vmem:[#allocation6 + $0x1d8] sm:$0xf0] }
 0x1c2   :  { %3136 = vmatpush.bf16.msrb.mxu0 %v8731_v29  ;;  %v2497_v29 = vadd.f32 %v12315_v37, %v2484_v4  ;;  %v11308_v4 = vld [vmem:[#allocation6 + $0x1c4] sm:$0xf] }
 0x1c3   :  { %3149 = vmatpush.bf16.msrb.mxu1 %v8795_v31  ;;  %v11284_v31 = vld [vmem:[#allocation6 + $0x104] sm:$0xf]  ;;  %v8923_v27 = vor.u32 %v11308_v4, %v8920_v26  ;;  %v11329_v4 = vld [vmem:[#allocation7 + $0x68] sm:$0xff] }
 0x1c4   :  { %3160 = vmatpush.bf16.msrb.mxu2 %v8875_v57  ;;  %v2510_v33 = vadd.f32 %v2509_v10, %v2497_v29  ;;  %v8827_v34 = vor.u32 %v11284_v31, %v8824_v32  ;;  %v8910_v57 = vld [vmem:[#allocation6 + $0x1b0] sm:$0xf]  ;;  %v11301_v10 = vld [vmem:[#allocation6 + $0x184] sm:$0xf0]  ;;  %v8912_v29 = vld [vmem:[#allocation6 + $0x1b8] sm:$0xf0] }
 0x1c5   :  { %v8911_v8 = vor.u32 %v11307_v58, %v8910_v57  ;;  %v8887_v14 = vor.u32 %v11301_v10, %v8886_v9  ;;  %v11304_v31 = vld [vmem:[#allocation6 + $0x1a4] sm:$0xf]  ;;  %v8904_v32 = vld [vmem:[#allocation6 + $0x1a8] sm:$0xf0] }
 0x1c6   :  { %3137 = vmatpush.bf16.msrb.mxu0 %v8723_v38  ;;  %v8935_v38 = vor.u32 %v11313_v36, %v8934_v5  ;;  %v11316_v26 = vld [vmem:[#allocation7] sm:$0xff] }
 0x1c7   :  { %3150 = vmatpush.bf16.msrb.mxu1 %v8787_v50  ;;  %v2524_v25 = vpop.f32.mrf.mxu3  ;;  %v8926_v50 = vld [vmem:[#allocation6 + $0x1d0] sm:$0xf] }
 0x1c8   :  { %3161 = vmatpush.bf16.msrb.mxu2 %v8867_v24  ;;  %v2511_v45 = vpop.f32.mrf.mxu2  ;;  %3121 = vmatpush.bf16.msra.mxu3 %v8935_v38  ;;  %v8927_v42 = vor.u32 %v11311_v41, %v8926_v50  ;;  %v8895_v24 = vor.u32 %v11303_v1, %v8894_v0 }
 0x1c9   :  { %v8931_v45 = vor.u32 %v11310_v22, %v8928_v2  ;;  %v11318_v2 = vld [vmem:[#allocation7 + $0x10] sm:$0xff] }
 0x1ca   :  { %3138 = vmatpush.bf16.msrb.mxu0 %v8715_v48  ;;  %v11309_v48 = vld [vmem:[#allocation6 + $0x1c4] sm:$0xf0] }
 0x1cb   :  { %3151 = vmatpush.bf16.msrb.mxu1 %v8779_v51  ;;  %v8919_v51 = vor.u32 %v11309_v48, %v8918_v12 }
 0x1cc   :  { %3162 = vmatpush.bf16.msrb.mxu2 %v8859_v16  ;;  %3122 = vmatpush.bf16.msra.mxu3 %v8927_v42  ;;  %v11312_v16 = vld [vmem:[#allocation6 + $0x1e4] sm:$0xf] }
 0x1cd   :  { %v8939_v18 = vor.u32 %v11312_v16, %v8936_v46  ;;  %v11330_v16 = vld [vmem:[#allocation7 + $0x70] sm:$0xff]  ;;  %v11321_v46 = vld [vmem:[#allocation7 + $0x28] sm:$0xff] }
 0x1ce   :  { %3139 = vmatpush.bf16.msrb.mxu0 %v8707_v63 }
 0x1cf   :  { %3152 = vmatpush.bf16.msrb.mxu1 %v8771_v19 }
 0x1d0   :  { %3163 = vmatpush.bf16.msrb.mxu2 %v8851_v20  ;;  %3123 = vmatpush.bf16.msra.mxu3 %v8919_v51 }
 0x1d2   :  { %3140 = vmatpush.bf16.msrb.mxu0 %v8699_v59  ;;  %v2535_v30 = vpop.f32.mrf.mxu0 }
 0x1d3   :  { %3153 = vmatpush.bf16.msrb.mxu1 %v8763_v15 }
 0x1d4   :  { %3164 = vmatpush.bf16.msrb.mxu2 %v8843_v23  ;;  %3124 = vmatpush.bf16.msra.mxu3 %v8911_v8  ;;  %v2755_v8 = vld [vmem:[#allocation16 + $0x2] ss:$8 sm:$0x3] }
 0x1d5   :  { %3141 = vmatmul.bf16.vlgmr.msrb.gmra.mxu0 %v12307_v6  ;;  %v2548_v6 = vpop.f32.mrf.mxu1  ;;  %v2757_v60 = vperm.slane %v2755_v8, 0  ;;  %v2758_v1 = vperm.slane %v2755_v8, 1 }
 0x1d6   :  { %3154 = vmatmul.bf16.vlgmr.msrb.gmra.mxu1 %v12309_v17  ;;  %v2523_v17 = vadd.f32 %v2522_v13, %v2510_v33  ;;  %v11314_v13 = vld [vmem:[#allocation6 + $0x1f4] sm:$0xf] }
 0x1d7   :  { %v8947_v15 = vor.u32 %v11314_v13, %v8944_v43  ;;  %v11331_v43 = vld [vmem:[#allocation7 + $0x78] sm:$0xff] }
 0x1d8   :  { %3165 = vmatpush.bf16.msrb.mxu2 %v8835_v52  ;;  %v2536_v39 = vadd.f32 %v2535_v30, %v2523_v17  ;;  %3125 = vmatpush.bf16.msra.mxu3 %v8903_v55  ;;  %v11306_v52 = vld [vmem:[#allocation6 + $0x1b4] sm:$0xf]  ;;  %v8896_v17 = vld [vmem:[#allocation6 + $0x198] sm:$0xf0] }
 0x1d9   :  { %v8915_v30 = vor.u32 %v11306_v52, %v8912_v29  ;;  %v8899_v5 = vor.u32 %v11302_v35, %v8896_v17  ;;  %3331 = vmatpush.bf16.msra.mxu1 %v11331_v43  ;;  %v11327_v52 = vld [vmem:[#allocation7 + $0x58] sm:$0xff]  ;;  %v11326_v29 = vld [vmem:[#allocation7 + $0x50] sm:$0xff] }
 0x1da   :  { %v2537_v40 = vpop.f32.mrf.mxu0  ;;  %v2549_v44 = vadd.f32 %v2548_v6, %v2536_v39  ;;  %v8907_v6 = vor.u32 %v11304_v31, %v8904_v32  ;;  %v11300_v39 = vld [vmem:[#allocation6 + $0x184] sm:$0xf]  ;;  %v11339_v32 = vld [vmem:[#allocation9 + $0x38] sm:$0xff] }
 0x1db   :  { %v8888_v40 = vld [vmem:[#allocation6 + $0x188] sm:$0xf0]  ;;  %v11324_v31 = vld [vmem:[#allocation7 + $0x40] sm:$0xff] }
 0x1dc   :  { %3166 = vmatpush.bf16.msrb.mxu2 %v8827_v34  ;;  %3126 = vmatpush.bf16.msra.mxu3 %v8895_v24  ;;  %v8891_v41 = vor.u32 %v11300_v39, %v8888_v40 }
 0x1dd   :  { %v2550_v37 = vpop.f32.mrf.mxu1  ;;  %3332 = vmatpush.bf16.msra.mxu1 %v11330_v16 }
 0x1df   :  { %v2574_v61 = vpop.f32.mrf.mxu3 }
 0x1e0   :  { %v2561_v47 = vpop.f32.mrf.mxu2  ;;  %3127 = vmatpush.bf16.msra.mxu3 %v8887_v14  ;;  %v11323_v14 = vld [vmem:[#allocation7 + $0x38] sm:$0xff] }
 0x1e1   :  { %v2562_v49 = vadd.f32 %v2561_v47, %v2549_v44  ;;  %3318 = vmatpush.bf16.msra.mxu0 %v11323_v14  ;;  %3333 = vmatpush.bf16.msra.mxu1 %v11329_v4  ;;  %v3443_v4 = vld [vmem:[#allocation16 + $0x5] ss:$0 sm:$0xff] }
 0x1e3   :  { %v2575_v53 = vadd.f32 %v2574_v61, %v2562_v49 }
 0x1e4   :  { %3172 = vmatpush.bf16.msrb.mxu3 %v8947_v15  ;;  %v11322_v15 = vld [vmem:[#allocation7 + $0x30] sm:$0xff] }
 0x1e5   :  { %v2684_v56 = vmax.f32 %v2575_v53, 0.0  ;;  %3319 = vmatpush.bf16.msra.mxu0 %v11322_v15 }
 0x1e7   :  { %v2688_v63 = vpack.c.bf16 %v2684_v56, %v2684_v56  ;;  %v2576_v19 = vpop.f32.mrf.mxu3 }
 0x1e8   :  { %v2563_v11 = vpop.f32.mrf.mxu2  ;;  %3173 = vmatpush.bf16.msrb.mxu3 %v8939_v18 }
 0x1e9   :  { %3115 = vmatmul.bf16.vlgmr.msra.gmra.mxu2 %v2688_v63  ;;  %3320 = vmatpush.bf16.msra.mxu0 %v11321_v46 }
 0x1ea   :  { %3411 = vmatpush.bf16.msra.mxu2 %v11339_v32  ;;  %v11356_v32 = vld [vmem:[#allocation9 + $0xc0] sm:$0xff] }
 0x1ec   :  { %3174 = vmatpush.bf16.msrb.mxu3 %v8931_v45 }
 0x1f0   :  { %3175 = vmatpush.bf16.msrb.mxu3 %v8923_v27  ;;  %v11328_v27 = vld [vmem:[#allocation7 + $0x60] sm:$0xff] }
 0x1f1   :  { %3334 = vmatpush.bf16.msra.mxu1 %v11328_v27 }
 0x1f2   :  { %v2587_v3 = vpop.f32.mrf.mxu0 }
 0x1f3   :  { %v2588_v54 = vadd.f32 %v2587_v3, %v981_v7  ;;  %v11338_v7 = vld [vmem:[#allocation9 + $0x30] sm:$0xff] }
 0x1f4   :  { %3176 = vmatpush.bf16.msrb.mxu3 %v8915_v30  ;;  %v11325_v30 = vld [vmem:[#allocation7 + $0x48] sm:$0xff]  ;;  %3412 = vmatpush.bf16.msra.mxu2 %v11338_v7  ;;  %v11371_v7 = vld [vmem:[#allocation9 + $0x138] sm:$0xff] }
 0x1f5   :  { %v2600_v59 = vpop.f32.mrf.mxu1  ;;  %3335 = vmatpush.bf16.msra.mxu1 %v11327_v52 }
 0x1f6   :  { %v2601_v36 = vadd.f32 %v2600_v59, %v2588_v54 }
 0x1f8   :  { %3177 = vmatpush.bf16.msrb.mxu3 %v8907_v6 }
 0x1f9   :  { %3167 = vmatmul.bf16.vlgmr.msrb.gmra.mxu2 %v2688_v63  ;;  %3336 = vmatpush.bf16.msra.mxu1 %v11326_v29 }
 0x1fa   :  { %v2589_v20 = vpop.f32.mrf.mxu0 }
 0x1fb   :  { %v11320_v20 = vld [vmem:[#allocation7 + $0x20] sm:$0xff] }
 0x1fc   :  { %3178 = vmatpush.bf16.msrb.mxu3 %v8899_v5  ;;  %3321 = vmatpush.bf16.msra.mxu0 %v11320_v20  ;;  %v11348_v20 = vld [vmem:[#allocation9 + $0x80] sm:$0xff] }
 0x1fd   :  { %v2602_v21 = vpop.f32.mrf.mxu1  ;;  %3337 = vmatpush.bf16.msra.mxu1 %v11325_v30 }
 0x1fe   :  { %v11319_v21 = vld [vmem:[#allocation7 + $0x18] sm:$0xff] }
 0x1ff   :  { %v2626_v25 = vpop.f32.mrf.mxu3 }
 0x200   :  { %v2613_v23 = vpop.f32.mrf.mxu2  ;;  %3179 = vmatpush.bf16.msrb.mxu3 %v8891_v41  ;;  %3322 = vmatpush.bf16.msra.mxu0 %v11319_v21  ;;  %v11336_v41 = vld [vmem:[#allocation9 + $0x20] sm:$0xff]  ;;  %v11363_v21 = vld [vmem:[#allocation9 + $0xf8] sm:$0xff] }
 0x201   :  { %v2614_v37 = vadd.f32 %v2613_v23, %v2601_v36  ;;  %3338 = vmatpush.bf16.msra.mxu1 %v11324_v31  ;;  %v11357_v31 = vld [vmem:[#allocation9 + $0xc8] sm:$0xff] }
 0x203   :  { %v2627_v42 = vadd.f32 %v2626_v25, %v2614_v37  ;;  %v11317_v25 = vld [vmem:[#allocation7 + $0x8] sm:$0xff] }
 0x204   :  { %3323 = vmatpush.bf16.msra.mxu0 %v11318_v2  ;;  %v11361_v2 = vld [vmem:[#allocation9 + $0xe8] sm:$0xff] }
 0x205   :  { %3654 = vmatpush.bf16.msrb.mxu1 %v11363_v21 }
 0x207   :  { %v2628_v34 = vpop.f32.mrf.mxu3 }
 0x208   :  { %v2615_v33 = vpop.f32.mrf.mxu2  ;;  %3324 = vmatpush.bf16.msra.mxu0 %v11317_v25  ;;  %v11358_v25 = vld [vmem:[#allocation9 + $0xd0] sm:$0xff] }
 0x20c   :  { %3325 = vmatpush.bf16.msra.mxu0 %v11316_v26 }
 0x212   :  { %v2639_v38 = vpop.f32.mrf.mxu0 }
 0x213   :  { %v2640_v28 = vadd.f32 %v2639_v38, %v2627_v42  ;;  %v11335_v42 = vld [vmem:[#allocation9 + $0x18] sm:$0xff] }
 0x215   :  { %v2652_v50 = vpop.f32.mrf.mxu1 }
 0x216   :  { %v2653_v12 = vadd.f32 %v2652_v50, %v2640_v28  ;;  %v11337_v50 = vld [vmem:[#allocation9 + $0x28] sm:$0xff]  ;;  %v11334_v28 = vld [vmem:[#allocation9 + $0x10] sm:$0xff] }
 0x217   :  { %3413 = vmatpush.bf16.msra.mxu2 %v11337_v50  ;;  %v11364_v50 = vld [vmem:[#allocation9 + $0x100] sm:$0xff] }
 0x21a   :  { %v2641_v44 = vpop.f32.mrf.mxu0 }
 0x21b   :  { %3414 = vmatpush.bf16.msra.mxu2 %v11336_v41  ;;  %v11333_v44 = vld [vmem:[#allocation9 + $0x8] sm:$0xff]  ;;  %v11379_v41 = vld [vmem:[#allocation9 + $0x178] sm:$0xff] }
 0x21d   :  { %v2654_v47 = vpop.f32.mrf.mxu1 }
 0x21e   :  { %v11332_v47 = vld [vmem:[#allocation9] sm:$0xff] }
 0x21f   :  { %v2678_v61 = vpop.f32.mrf.mxu3  ;;  %3415 = vmatpush.bf16.msra.mxu2 %v11335_v42  ;;  %v11378_v42 = vld [vmem:[#allocation9 + $0x170] sm:$0xff] }
 0x220   :  { %v2665_v48 = vpop.f32.mrf.mxu2 }
 0x221   :  { %v2666_v49 = vadd.f32 %v2665_v48, %v2653_v12  ;;  %v11347_v12 = vld [vmem:[#allocation9 + $0x78] sm:$0xff]  ;;  %v11346_v48 = vld [vmem:[#allocation9 + $0x70] sm:$0xff] }
 0x223   :  { %v2679_v51 = vadd.f32 %v2678_v61, %v2666_v49  ;;  %3416 = vmatpush.bf16.msra.mxu2 %v11334_v28  ;;  %v11345_v49 = vld [vmem:[#allocation9 + $0x68] sm:$0xff] }
 0x224   :  { %v11377_v28 = vld [vmem:[#allocation9 + $0x168] sm:$0xff] }
 0x225   :  { %v2685_v53 = vmax.f32 %v2679_v51, 0.0  ;;  %v11344_v51 = vld [vmem:[#allocation9 + $0x60] sm:$0xff] }
 0x227   :  { %v2689_v56 = vpack.c.bf16 %v2685_v53, %v2685_v53  ;;  %v2680_v58 = vpop.f32.mrf.mxu3  ;;  %3417 = vmatpush.bf16.msra.mxu2 %v11333_v44  ;;  %v11343_v53 = vld [vmem:[#allocation9 + $0x58] sm:$0xff]  ;;  %v11376_v44 = vld [vmem:[#allocation9 + $0x160] sm:$0xff] }
 0x228   :  { %v2667_v57 = vpop.f32.mrf.mxu2  ;;  %v3221_v58 = vld [vmem:[#allocation16 + $0x3] ss:$0 sm:$0xff] }
 0x229   :  { %3128 = vmatmul.bf16.vlgmr.msra.gmra.mxu3 %v2689_v56  ;;  %v11342_v57 = vld [vmem:[#allocation9 + $0x50] sm:$0xff] }
 0x22a   :  { %3492 = vmatpush.bf16.msra.mxu3 %v11347_v12  ;;  %v11374_v12 = vld [vmem:[#allocation9 + $0x150] sm:$0xff] }
 0x22b   :  { %3418 = vmatpush.bf16.msra.mxu2 %v11332_v47  ;;  %v11375_v47 = vld [vmem:[#allocation9 + $0x158] sm:$0xff] }
 0x22e   :  { %3493 = vmatpush.bf16.msra.mxu3 %v11346_v48  ;;  %v3605_v48 = vld [vmem:[#allocation16 + $0x7] ss:$0 sm:$0xff] }
 0x22f   :  { %3735 = vmatpush.bf16.msrb.mxu2 %v11371_v7 }
 0x232   :  { %v3090_v62 = vpop.f32.mrf.mxu0  ;;  %3494 = vmatpush.bf16.msra.mxu3 %v11345_v49 }
 0x233   :  { %v3091_v63 = vadd.f32 %v3090_v62, %v2757_v60  ;;  %v3103_v11 = vpop.f32.mrf.mxu1 }
 0x235   :  { %v3104_v55 = vadd.f32 %v3103_v11, %v3091_v63 }
 0x236   :  { %3495 = vmatpush.bf16.msra.mxu3 %v11344_v51 }
 0x239   :  { %3180 = vmatmul.bf16.vlgmr.msrb.gmra.mxu3 %v2689_v56 }
 0x23a   :  { %v3092_v19 = vpop.f32.mrf.mxu0  ;;  %3496 = vmatpush.bf16.msra.mxu3 %v11343_v53 }
 0x23b   :  { %v3105_v0 = vpop.f32.mrf.mxu1  ;;  %v11341_v19 = vld [vmem:[#allocation9 + $0x48] sm:$0xff] }
 0x23c   :  { %v11340_v0 = vld [vmem:[#allocation9 + $0x40] sm:$0xff] }
 0x23e   :  { %3497 = vmatpush.bf16.msra.mxu3 %v11342_v57  ;;  %v11373_v57 = vld [vmem:[#allocation9 + $0x148] sm:$0xff] }
 0x242   :  { %3498 = vmatpush.bf16.msra.mxu3 %v11341_v19  ;;  %v3686_v19 = vld [vmem:[#allocation16 + $0x40] ss:$0 sm:$0xff] }
 0x246   :  { %3499 = vmatpush.bf16.msra.mxu3 %v11340_v0 }
 0x24a   :  { %3816 = vmatpush.bf16.msrb.mxu3 %v11379_v41 }
 0x24e   :  { %3817 = vmatpush.bf16.msrb.mxu3 %v11378_v42 }
 0x252   :  { %v3142_v24 = vpop.f32.mrf.mxu0  ;;  %3818 = vmatpush.bf16.msrb.mxu3 %v11377_v28 }
 0x253   :  { %v3143_v3 = vadd.f32 %v3142_v24, %v2758_v1  ;;  %v3155_v9 = vpop.f32.mrf.mxu1  ;;  %v11355_v1 = vld [vmem:[#allocation9 + $0xb8] sm:$0xff]  ;;  %v11354_v24 = vld [vmem:[#allocation9 + $0xb0] sm:$0xff] }
 0x254   :  { %3573 = vmatpush.bf16.msrb.mxu0 %v11355_v1 }
 0x255   :  { %v3156_v10 = vadd.f32 %v3155_v9, %v3143_v3  ;;  %v11353_v3 = vld [vmem:[#allocation9 + $0xa8] sm:$0xff]  ;;  %v11352_v9 = vld [vmem:[#allocation9 + $0xa0] sm:$0xff] }
 0x256   :  { %3819 = vmatpush.bf16.msrb.mxu3 %v11376_v44 }
 0x258   :  { %3574 = vmatpush.bf16.msrb.mxu0 %v11354_v24 }
 0x25a   :  { %v3144_v13 = vpop.f32.mrf.mxu0  ;;  %3820 = vmatpush.bf16.msrb.mxu3 %v11375_v47  ;;  %v11405_v47 = vld [vmem:[#allocation9 + $0x248] sm:$0xff] }
 0x25b   :  { %v3157_v59 = vpop.f32.mrf.mxu1  ;;  %v11350_v13 = vld [vmem:[#allocation9 + $0x90] sm:$0xff] }
 0x25c   :  { %3575 = vmatpush.bf16.msrb.mxu0 %v11353_v3  ;;  %v3362_v59 = vld [vmem:[#allocation16 + $0x4] ss:$0 sm:$0xff] }
 0x25e   :  { %3821 = vmatpush.bf16.msrb.mxu3 %v11374_v12  ;;  %v11404_v12 = vld [vmem:[#allocation9 + $0x240] sm:$0xff] }
 0x260   :  { %3576 = vmatpush.bf16.msrb.mxu0 %v11352_v9 }
 0x262   :  { %3822 = vmatpush.bf16.msrb.mxu3 %v11373_v57  ;;  %v11425_v57 = vld [vmem:[#allocation10 + $0x64] sm:$0xf0] }
 0x26c   :  { %v3116_v18 = vpop.f32.mrf.mxu2 }
 0x26d   :  { %v3117_v33 = vadd.f32 %v3116_v18, %v3104_v55  ;;  %v11349_v18 = vld [vmem:[#allocation9 + $0x88] sm:$0xff] }
 0x274   :  { %v3118_v22 = vpop.f32.mrf.mxu2 }
 0x275   :  { %v11362_v22 = vld [vmem:[#allocation9 + $0xf0] sm:$0xff] }
 0x276   :  { %3655 = vmatpush.bf16.msrb.mxu1 %v11362_v22 }
 0x27a   :  { %3656 = vmatpush.bf16.msrb.mxu1 %v11361_v2 }
 0x27c   :  { %v3168_v45 = vpop.f32.mrf.mxu2 }
 0x27d   :  { %v3169_v5 = vadd.f32 %v3168_v45, %v3156_v10  ;;  %v11351_v10 = vld [vmem:[#allocation9 + $0x98] sm:$0xff]  ;;  %v11360_v45 = vld [vmem:[#allocation9 + $0xe0] sm:$0xff] }
 0x27e   :  { %3577 = vmatpush.bf16.msrb.mxu0 %v11351_v10  ;;  %3657 = vmatpush.bf16.msrb.mxu1 %v11360_v45  ;;  %v11381_v10 = vld [vmem:[#allocation9 + $0x188] sm:$0xff] }
 0x282   :  { %3578 = vmatpush.bf16.msrb.mxu0 %v11350_v13  ;;  %v11380_v13 = vld [vmem:[#allocation9 + $0x180] sm:$0xff] }
 0x284   :  { %v3170_v23 = vpop.f32.mrf.mxu2 }
 0x285   :  { %v11359_v23 = vld [vmem:[#allocation9 + $0xd8] sm:$0xff] }
 0x286   :  { %3579 = vmatpush.bf16.msrb.mxu0 %v11349_v18  ;;  %3658 = vmatpush.bf16.msrb.mxu1 %v11359_v23  ;;  %v3767_v18 = vld [vmem:[#allocation16 + $0x41] ss:$0 sm:$0xff]  ;;  %v11389_v23 = vld [vmem:[#allocation9 + $0x1c8] sm:$0xff] }
 0x28a   :  { %3580 = vmatpush.bf16.msrb.mxu0 %v11348_v20  ;;  %3659 = vmatpush.bf16.msrb.mxu1 %v11358_v25  ;;  %v11388_v25 = vld [vmem:[#allocation9 + $0x1c0] sm:$0xff] }
 0x28e   :  { %3660 = vmatpush.bf16.msrb.mxu1 %v11357_v31  ;;  %v3848_v31 = vld [vmem:[#allocation16 + $0x42] ss:$0 sm:$0xff] }
 0x292   :  { %3661 = vmatpush.bf16.msrb.mxu1 %v11356_v32 }
 0x2ac   :  { %v3129_v6 = vpop.f32.mrf.mxu3 }
 0x2ad   :  { %v3130_v34 = vadd.f32 %v3129_v6, %v3117_v33  ;;  %v11370_v33 = vld [vmem:[#allocation9 + $0x130] sm:$0xff]  ;;  %v11369_v6 = vld [vmem:[#allocation9 + $0x128] sm:$0xff] }
 0x2ae   :  { %3736 = vmatpush.bf16.msrb.mxu2 %v11370_v33 }
 0x2af   :  { %v3185_v54 = vmax.f32 %v3130_v34, 0.0  ;;  %v11368_v34 = vld [vmem:[#allocation9 + $0x120] sm:$0xff] }
 0x2b1   :  { %v3187_v35 = vpack.c.bf16 %v3185_v54, %v3185_v54  ;;  %v11367_v54 = vld [vmem:[#allocation9 + $0x118] sm:$0xff] }
 0x2b2   :  { %3737 = vmatpush.bf16.msrb.mxu2 %v11369_v6 }
 0x2b3   :  { %3326 = vmatmul.bf16.vlgmr.msra.gmra.mxu0 %v3187_v35  ;;  %v11366_v35 = vld [vmem:[#allocation9 + $0x110] sm:$0xff] }
 0x2b4   :  { %v3131_v17 = vpop.f32.mrf.mxu3 }
 0x2b5   :  { %v3524_v17 = vld [vmem:[#allocation16 + $0x6] ss:$0 sm:$0xff] }
 0x2b6   :  { %3738 = vmatpush.bf16.msrb.mxu2 %v11368_v34 }
 0x2ba   :  { %3739 = vmatpush.bf16.msrb.mxu2 %v11367_v54  ;;  %v11397_v54 = vld [vmem:[#allocation9 + $0x208] sm:$0xff] }
 0x2bc   :  { %v3181_v36 = vpop.f32.mrf.mxu3 }
 0x2bd   :  { %v3182_v38 = vadd.f32 %v3181_v36, %v3169_v5 }
 0x2be   :  { %3740 = vmatpush.bf16.msrb.mxu2 %v11366_v35  ;;  %v11396_v35 = vld [vmem:[#allocation9 + $0x200] sm:$0xff] }
 0x2bf   :  { %v3186_v39 = vmax.f32 %v3182_v38, 0.0 }
 0x2c1   :  { %v3188_v40 = vpack.c.bf16 %v3186_v39, %v3186_v39 }
 0x2c3   :  { %3339 = vmatmul.bf16.vlgmr.msra.gmra.mxu1 %v3188_v40 }
 0x2c4   :  { %v3183_v37 = vpop.f32.mrf.mxu3 }
 0x2c5   :  { %v11365_v37 = vld [vmem:[#allocation9 + $0x108] sm:$0xff] }
 0x2c6   :  { %3741 = vmatpush.bf16.msrb.mxu2 %v11365_v37  ;;  %v3929_v37 = vld [vmem:[#allocation16 + $0x43] ss:$0 sm:$0xff] }
 0x2ca   :  { %3742 = vmatpush.bf16.msrb.mxu2 %v11364_v50 }
 0x330   :  { %v3327_v61 = vpop.f32.mrf.mxu0 }
 0x331   :  { %v3328_v8 = vadd.f32 %v3327_v61, %v3221_v58  ;;  %v11372_v58 = vld [vmem:[#allocation9 + $0x140] sm:$0xff] }
 0x332   :  { %3823 = vmatpush.bf16.msrb.mxu3 %v11372_v58 }
 0x338   :  { %v3329_v56 = vpop.f32.mrf.mxu0 }
 0x340   :  { %v3340_v60 = vpop.f32.mrf.mxu1 }
 0x341   :  { %v3341_v62 = vadd.f32 %v3340_v60, %v3328_v8  ;;  %v11387_v8 = vld [vmem:[#allocation9 + $0x1b8] sm:$0xff]  ;;  %v11386_v60 = vld [vmem:[#allocation9 + $0x1b0] sm:$0xff] }
 0x342   :  { %3897 = vmatpush.bf16.msra.mxu0 %v11387_v8  ;;  %v11424_v8 = vld [vmem:[#allocation10 + $0x64] sm:$0xf] }
 0x343   :  { %v3344_v63 = vmax.f32 %v3341_v62, 0.0  ;;  %v11385_v62 = vld [vmem:[#allocation9 + $0x1a8] sm:$0xff] }
 0x345   :  { %v3345_v11 = vpack.c.bf16 %v3344_v63, %v3344_v63  ;;  %v11384_v63 = vld [vmem:[#allocation9 + $0x1a0] sm:$0xff] }
 0x346   :  { %3898 = vmatpush.bf16.msra.mxu0 %v11386_v60  ;;  %v9384_v60 = vld [vmem:[#allocation10 + $0x68] sm:$0xf0] }
 0x347   :  { %3419 = vmatmul.bf16.vlgmr.msra.gmra.mxu2 %v3345_v11  ;;  %v11383_v11 = vld [vmem:[#allocation9 + $0x198] sm:$0xff] }
 0x348   :  { %v3342_v55 = vpop.f32.mrf.mxu1 }
 0x349   :  { %v11382_v55 = vld [vmem:[#allocation9 + $0x190] sm:$0xff] }
 0x34a   :  { %3899 = vmatpush.bf16.msra.mxu0 %v11385_v62 }
 0x34e   :  { %3900 = vmatpush.bf16.msra.mxu0 %v11384_v63  ;;  %v9387_v63 = vor.u32 %v11424_v8, %v9384_v60  ;;  %v11452_v8 = vld [vmem:[#allocation12 + $0xc4] sm:$0xf]  ;;  %v9496_v60 = vld [vmem:[#allocation12 + $0xd0] sm:$0xf0] }
 0x352   :  { %3901 = vmatpush.bf16.msra.mxu0 %v11383_v11  ;;  %v9374_v11 = vld [vmem:[#allocation10 + $0x50] sm:$0xf] }
 0x356   :  { %3902 = vmatpush.bf16.msra.mxu0 %v11382_v55  ;;  %v11423_v55 = vld [vmem:[#allocation10 + $0x54] sm:$0xf0] }
 0x35a   :  { %3903 = vmatpush.bf16.msra.mxu0 %v11381_v10  ;;  %v11420_v10 = vld [vmem:[#allocation10 + $0x44] sm:$0xf] }
 0x35e   :  { %3904 = vmatpush.bf16.msra.mxu0 %v11380_v13  ;;  %v9368_v13 = vld [vmem:[#allocation10 + $0x48] sm:$0xf0] }
 0x3ca   :  { %v3420_v14 = vpop.f32.mrf.mxu2 }
 0x3cb   :  { %v3421_v43 = vadd.f32 %v3420_v14, %v3362_v59  ;;  %v11395_v59 = vld [vmem:[#allocation9 + $0x1f8] sm:$0xff]  ;;  %v11394_v14 = vld [vmem:[#allocation9 + $0x1f0] sm:$0xff] }
 0x3cc   :  { %3978 = vmatpush.bf16.msra.mxu1 %v11395_v59 }
 0x3cd   :  { %v3424_v15 = vmax.f32 %v3421_v43, 0.0  ;;  %v11393_v43 = vld [vmem:[#allocation9 + $0x1e8] sm:$0xff] }
 0x3cf   :  { %v3425_v16 = vpack.c.bf16 %v3424_v15, %v3424_v15  ;;  %v11392_v15 = vld [vmem:[#allocation9 + $0x1e0] sm:$0xff] }
 0x3d0   :  { %3979 = vmatpush.bf16.msra.mxu1 %v11394_v14  ;;  %v9371_v14 = vor.u32 %v11420_v10, %v9368_v13  ;;  %v9480_v10 = vld [vmem:[#allocation12 + $0xb0] sm:$0xf0]  ;;  %v11480_v13 = vld [vmem:[#allocation12 + $0x1a4] sm:$0xf] }
 0x3d1   :  { %3500 = vmatmul.bf16.vlgmr.msra.gmra.mxu3 %v3425_v16  ;;  %v11391_v16 = vld [vmem:[#allocation9 + $0x1d8] sm:$0xff] }
 0x3d2   :  { %v3422_v46 = vpop.f32.mrf.mxu2 }
 0x3d3   :  { %v11390_v46 = vld [vmem:[#allocation9 + $0x1d0] sm:$0xff] }
 0x3d4   :  { %3980 = vmatpush.bf16.msra.mxu1 %v11393_v43  ;;  %v9358_v43 = vld [vmem:[#allocation10 + $0x30] sm:$0xf] }
 0x3d8   :  { %3981 = vmatpush.bf16.msra.mxu1 %v11392_v15  ;;  %v11419_v15 = vld [vmem:[#allocation10 + $0x34] sm:$0xf0] }
 0x3dc   :  { %3982 = vmatpush.bf16.msra.mxu1 %v11391_v16  ;;  %v11418_v16 = vld [vmem:[#allocation10 + $0x34] sm:$0xf] }
 0x3e0   :  { %3983 = vmatpush.bf16.msra.mxu1 %v11390_v46  ;;  %v9360_v46 = vld [vmem:[#allocation10 + $0x38] sm:$0xf0] }
 0x3e4   :  { %3984 = vmatpush.bf16.msra.mxu1 %v11389_v23 }
 0x3e8   :  { %3985 = vmatpush.bf16.msra.mxu1 %v11388_v25 }
 0x454   :  { %v3501_v26 = vpop.f32.mrf.mxu3 }
 0x455   :  { %v3502_v27 = vadd.f32 %v3501_v26, %v3443_v4  ;;  %v11403_v4 = vld [vmem:[#allocation9 + $0x238] sm:$0xff]  ;;  %v11402_v26 = vld [vmem:[#allocation9 + $0x230] sm:$0xff] }
 0x456   :  { %4059 = vmatpush.bf16.msra.mxu2 %v11403_v4  ;;  %v4010_v4 = vld [vmem:[#allocation16 + $0x44] ss:$0 sm:$0xff] }
 0x457   :  { %v3505_v52 = vmax.f32 %v3502_v27, 0.0  ;;  %v11401_v27 = vld [vmem:[#allocation9 + $0x228] sm:$0xff] }
 0x459   :  { %v3506_v29 = vpack.c.bf16 %v3505_v52, %v3505_v52  ;;  %v11400_v52 = vld [vmem:[#allocation9 + $0x220] sm:$0xff] }
 0x45a   :  { %4060 = vmatpush.bf16.msra.mxu2 %v11402_v26 }
 0x45b   :  { %3581 = vmatmul.bf16.vlgmr.msrb.gmra.mxu0 %v3506_v29  ;;  %v11399_v29 = vld [vmem:[#allocation9 + $0x218] sm:$0xff] }
 0x45c   :  { %v3503_v30 = vpop.f32.mrf.mxu3 }
 0x45d   :  { %v11398_v30 = vld [vmem:[#allocation9 + $0x210] sm:$0xff] }
 0x45e   :  { %4061 = vmatpush.bf16.msra.mxu2 %v11401_v27 }
 0x462   :  { %4062 = vmatpush.bf16.msra.mxu2 %v11400_v52 }
 0x466   :  { %4063 = vmatpush.bf16.msra.mxu2 %v11399_v29 }
 0x46a   :  { %4064 = vmatpush.bf16.msra.mxu2 %v11398_v30 }
 0x46e   :  { %4065 = vmatpush.bf16.msra.mxu2 %v11397_v54  ;;  %v9334_v54 = vld [vmem:[#allocation10] sm:$0xf] }
 0x472   :  { %4066 = vmatpush.bf16.msra.mxu2 %v11396_v35  ;;  %v11413_v35 = vld [vmem:[#allocation10 + $0x4] sm:$0xf0] }
 0x4d8   :  { %v3582_v5 = vpop.f32.mrf.mxu0 }
 0x4d9   :  { %v3583_v36 = vadd.f32 %v3582_v5, %v3524_v17  ;;  %v11411_v17 = vld [vmem:[#allocation9 + $0x278] sm:$0xff]  ;;  %v11410_v5 = vld [vmem:[#allocation9 + $0x270] sm:$0xff] }
 0x4da   :  { %4140 = vmatpush.bf16.msra.mxu3 %v11411_v17  ;;  %v11412_v17 = vld [vmem:[#allocation10 + $0x4] sm:$0xf] }
 0x4db   :  { %v3586_v38 = vmax.f32 %v3583_v36, 0.0  ;;  %v11409_v36 = vld [vmem:[#allocation9 + $0x268] sm:$0xff] }
 0x4dd   :  { %v3587_v39 = vpack.c.bf16 %v3586_v38, %v3586_v38  ;;  %v11408_v38 = vld [vmem:[#allocation9 + $0x260] sm:$0xff] }
 0x4de   :  { %4141 = vmatpush.bf16.msra.mxu3 %v11410_v5  ;;  %v9335_v5 = vor.u32 %v11413_v35, %v9334_v54  ;;  %v9430_v35 = vld [vmem:[#allocation12 + $0x40] sm:$0xf] }
 0x4df   :  { %3662 = vmatmul.bf16.vlgmr.msrb.gmra.mxu1 %v3587_v39  ;;  %v11407_v39 = vld [vmem:[#allocation9 + $0x258] sm:$0xff] }
 0x4e0   :  { %v3584_v40 = vpop.f32.mrf.mxu0 }
 0x4e1   :  { %v11406_v40 = vld [vmem:[#allocation9 + $0x250] sm:$0xff] }
 0x4e2   :  { %4142 = vmatpush.bf16.msra.mxu3 %v11409_v36  ;;  %v9336_v36 = vld [vmem:[#allocation10 + $0x8] sm:$0xf0] }
 0x4e6   :  { %4143 = vmatpush.bf16.msra.mxu3 %v11408_v38  ;;  %v9339_v38 = vor.u32 %v11412_v17, %v9336_v36  ;;  %v11438_v17 = vld [vmem:[#allocation12 + $0x4c] sm:$0xf0] }
 0x4ea   :  { %4144 = vmatpush.bf16.msra.mxu3 %v11407_v39  ;;  %v9510_v39 = vld [vmem:[#allocation12 + $0xe0] sm:$0xf] }
 0x4ee   :  { %4145 = vmatpush.bf16.msra.mxu3 %v11406_v40  ;;  %v11458_v40 = vld [vmem:[#allocation12 + $0xec] sm:$0xf0] }
 0x4f2   :  { %4146 = vmatpush.bf16.msra.mxu3 %v11405_v47 }
 0x4f6   :  { %4147 = vmatpush.bf16.msra.mxu3 %v11404_v12  ;;  %v11488_v12 = vld [vmem:[#allocation12 + $0x1e4] sm:$0xf] }
 0x55c   :  { %v3663_v49 = vpop.f32.mrf.mxu1 }
 0x55d   :  { %v3664_v61 = vadd.f32 %v3663_v49, %v3605_v48  ;;  %v9390_v48 = vld [vmem:[#allocation10 + $0x70] sm:$0xf]  ;;  %v11427_v49 = vld [vmem:[#allocation10 + $0x74] sm:$0xf0] }
 0x55f   :  { %v3667_v51 = vmax.f32 %v3664_v61, 0.0  ;;  %v11426_v61 = vld [vmem:[#allocation10 + $0x74] sm:$0xf] }
 0x561   :  { %v3668_v53 = vpack.c.bf16 %v3667_v51, %v3667_v51  ;;  %v9391_v51 = vor.u32 %v11427_v49, %v9390_v48  ;;  %v9640_v48 = vld [vmem:[#allocation12 + $0x1f0] sm:$0xf0]  ;;  %v9494_v49 = vld [vmem:[#allocation12 + $0xc0] sm:$0xf] }
 0x563   :  { %3743 = vmatmul.bf16.vlgmr.msrb.gmra.mxu2 %v3668_v53  ;;  %v9392_v53 = vld [vmem:[#allocation10 + $0x78] sm:$0xf0]  ;;  %4258 = vmatpush.bf16.msrb.mxu0 %v9391_v51  ;;  %v11454_v51 = vld [vmem:[#allocation12 + $0xcc] sm:$0xf0] }
 0x564   :  { %v3665_v56 = vpop.f32.mrf.mxu1  ;;  %v9395_v58 = vor.u32 %v11426_v61, %v9392_v53  ;;  %v9643_v61 = vor.u32 %v11488_v12, %v9640_v48  ;;  %v9622_v53 = vld [vmem:[#allocation12 + $0x1c0] sm:$0xf] }
 0x565   :  { %v9382_v56 = vld [vmem:[#allocation10 + $0x60] sm:$0xf] }
 0x566   :  { %v9383_v62 = vor.u32 %v11425_v57, %v9382_v56  ;;  %4271 = vmatpush.bf16.msrb.mxu1 %v9395_v58  ;;  %v11486_v56 = vld [vmem:[#allocation12 + $0x1cc] sm:$0xf0]  ;;  %v9495_v57 = vor.u32 %v11454_v51, %v9494_v49  ;;  %v9542_v12 = vld [vmem:[#allocation12 + $0x120] sm:$0xf]  ;;  %v9416_v51 = vld [vmem:[#allocation12 + $0x30] sm:$0xf0] }
 0x567   :  { %v9623_v58 = vor.u32 %v11486_v56, %v9622_v53  ;;  %v11466_v49 = vld [vmem:[#allocation12 + $0x12c] sm:$0xf0]  ;;  %v4091_v53 = vld [vmem:[#allocation16 + $0x45] ss:$0 sm:$0xff] }
 0x568   :  { %4259 = vmatpush.bf16.msrb.mxu0 %v9383_v62  ;;  %v11484_v62 = vld [vmem:[#allocation12 + $0x1c4] sm:$0xf] }
 0x569   :  { %v11464_v56 = vld [vmem:[#allocation12 + $0x124] sm:$0xf] }
 0x56a   :  { %4272 = vmatpush.bf16.msrb.mxu1 %v9387_v63  ;;  %v9499_v63 = vor.u32 %v11452_v8, %v9496_v60  ;;  %v9398_v8 = vld [vmem:[#allocation12] sm:$0xf]  ;;  %v11430_v60 = vld [vmem:[#allocation12 + $0xc] sm:$0xf0] }
 0x5e6   :  { %v3744_v0 = vpop.f32.mrf.mxu2 }
 0x5e7   :  { %v3745_v1 = vadd.f32 %v3744_v0, %v3686_v19  ;;  %v11422_v19 = vld [vmem:[#allocation10 + $0x54] sm:$0xf]  ;;  %v9376_v0 = vld [vmem:[#allocation10 + $0x58] sm:$0xf0] }
 0x5e9   :  { %v3748_v24 = vmax.f32 %v3745_v1, 0.0  ;;  %v9375_v1 = vor.u32 %v11423_v55, %v9374_v11  ;;  %v9624_v11 = vld [vmem:[#allocation12 + $0x1d0] sm:$0xf0]  ;;  %v9478_v55 = vld [vmem:[#allocation12 + $0xa0] sm:$0xf] }
 0x5eb   :  { %v3749_v3 = vpack.c.bf16 %v3748_v24, %v3748_v24  ;;  %v9379_v24 = vor.u32 %v11422_v19, %v9376_v0  ;;  %4260 = vmatpush.bf16.msrb.mxu0 %v9375_v1  ;;  %v11450_v19 = vld [vmem:[#allocation12 + $0xac] sm:$0xf0]  ;;  %v9627_v0 = vor.u32 %v11484_v62, %v9624_v11  ;;  %v9606_v1 = vld [vmem:[#allocation12 + $0x1a0] sm:$0xf] }
 0x5ed   :  { %3824 = vmatmul.bf16.vlgmr.msrb.gmra.mxu3 %v3749_v3  ;;  %v9366_v3 = vld [vmem:[#allocation10 + $0x40] sm:$0xf]  ;;  %4273 = vmatpush.bf16.msrb.mxu1 %v9379_v24  ;;  %v11482_v24 = vld [vmem:[#allocation12 + $0x1ac] sm:$0xf0] }
 0x5ee   :  { %v3746_v9 = vpop.f32.mrf.mxu2 }
 0x5ef   :  { %v11421_v9 = vld [vmem:[#allocation10 + $0x44] sm:$0xf0] }
 0x5f0   :  { %v9367_v59 = vor.u32 %v11421_v9, %v9366_v3  ;;  %v11448_v3 = vld [vmem:[#allocation12 + $0xa4] sm:$0xf]  ;;  %v9479_v9 = vor.u32 %v11450_v19, %v9478_v55  ;;  %v9526_v55 = vld [vmem:[#allocation12 + $0x100] sm:$0xf]  ;;  %v11462_v19 = vld [vmem:[#allocation12 + $0x10c] sm:$0xf0] }
 0x5f1   :  { %4274 = vmatpush.bf16.msrb.mxu1 %v9371_v14  ;;  %v9607_v14 = vor.u32 %v11482_v24, %v9606_v1 }
 0x5f2   :  { %4261 = vmatpush.bf16.msrb.mxu0 %v9367_v59  ;;  %v9608_v59 = vld [vmem:[#allocation12 + $0x1b0] sm:$0xf0] }
 0x670   :  { %v3825_v20 = vpop.f32.mrf.mxu3 }
 0x671   :  { %v3826_v21 = vadd.f32 %v3825_v20, %v3767_v18  ;;  %v9359_v18 = vor.u32 %v11419_v15, %v9358_v43  ;;  %v9363_v20 = vor.u32 %v11418_v16, %v9360_v46  ;;  %v9483_v43 = vor.u32 %v11448_v3, %v9480_v10  ;;  %v9462_v15 = vld [vmem:[#allocation12 + $0x80] sm:$0xf]  ;;  %v11446_v16 = vld [vmem:[#allocation12 + $0x8c] sm:$0xf0]  ;;  %v9400_v3 = vld [vmem:[#allocation12 + $0x10] sm:$0xf0] }
 0x672   :  { %v9590_v46 = vld [vmem:[#allocation12 + $0x180] sm:$0xf]  ;;  %v9528_v10 = vld [vmem:[#allocation12 + $0x110] sm:$0xf0] }
 0x673   :  { %v3829_v22 = vmax.f32 %v3826_v21, 0.0  ;;  %v9350_v21 = vld [vmem:[#allocation10 + $0x20] sm:$0xf]  ;;  %4262 = vmatpush.bf16.msrb.mxu0 %v9359_v18  ;;  %4275 = vmatpush.bf16.msrb.mxu1 %v9363_v20  ;;  %v9611_v18 = vor.u32 %v11480_v13, %v9608_v59  ;;  %v11478_v20 = vld [vmem:[#allocation12 + $0x18c] sm:$0xf0] }
 0x674   :  { %v9518_v13 = vld [vmem:[#allocation12 + $0xe8] sm:$0xf]  ;;  %v11459_v59 = vld [vmem:[#allocation12 + $0xf4] sm:$0xf0] }
 0x675   :  { %v3830_v2 = vpack.c.bf16 %v3829_v22, %v3829_v22  ;;  %v11417_v22 = vld [vmem:[#allocation10 + $0x24] sm:$0xf0] }
 0x676   :  { %v9351_v23 = vor.u32 %v11417_v22, %v9350_v21  ;;  %v11444_v21 = vld [vmem:[#allocation12 + $0x84] sm:$0xf]  ;;  %v9464_v22 = vld [vmem:[#allocation12 + $0x90] sm:$0xf0] }
 0x677   :  { %3905 = vmatmul.bf16.vlgmr.msra.gmra.mxu0 %v3830_v2  ;;  %v11416_v2 = vld [vmem:[#allocation10 + $0x24] sm:$0xf] }
 0x678   :  { %v3827_v45 = vpop.f32.mrf.mxu3  ;;  %4263 = vmatpush.bf16.msrb.mxu0 %v9351_v23  ;;  %v9463_v23 = vor.u32 %v11446_v16, %v9462_v15  ;;  %v11491_v15 = vld [vmem:[#allocation12 + $0x1f4] sm:$0xf0]  ;;  %v11457_v16 = vld [vmem:[#allocation12 + $0xec] sm:$0xf] }
 0x679   :  { %v9352_v45 = vld [vmem:[#allocation10 + $0x28] sm:$0xf0] }
 0x67a   :  { %v9355_v25 = vor.u32 %v11416_v2, %v9352_v45  ;;  %v11476_v2 = vld [vmem:[#allocation12 + $0x184] sm:$0xf]  ;;  %v9592_v45 = vld [vmem:[#allocation12 + $0x190] sm:$0xf0] }
 0x67c   :  { %4276 = vmatpush.bf16.msrb.mxu1 %v9355_v25  ;;  %v9591_v25 = vor.u32 %v11478_v20, %v9590_v46  ;;  %v9399_v46 = vor.u32 %v11430_v60, %v9398_v8  ;;  %v9520_v20 = vld [vmem:[#allocation12 + $0xf8] sm:$0xf0]  ;;  %v11477_v60 = vld [vmem:[#allocation12 + $0x18c] sm:$0xf] }
 0x6f4   :  { %v3906_v32 = vpop.f32.mrf.mxu0 }
 0x6f5   :  { %v3907_v7 = vadd.f32 %v3906_v32, %v3848_v31  ;;  %v9342_v31 = vld [vmem:[#allocation10 + $0x10] sm:$0xf]  ;;  %v11415_v32 = vld [vmem:[#allocation10 + $0x14] sm:$0xf0] }
 0x6f7   :  { %v3910_v33 = vmax.f32 %v3907_v7, 0.0  ;;  %v11414_v7 = vld [vmem:[#allocation10 + $0x14] sm:$0xf] }
 0x6f9   :  { %v3911_v6 = vpack.c.bf16 %v3910_v33, %v3910_v33  ;;  %v9343_v33 = vor.u32 %v11415_v32, %v9342_v31  ;;  %v11440_v31 = vld [vmem:[#allocation12 + $0x64] sm:$0xf]  ;;  %v9448_v32 = vld [vmem:[#allocation12 + $0x70] sm:$0xf0] }
 0x6fa   :  { %v9451_v54 = vor.u32 %v11440_v31, %v9448_v32  ;;  %v11487_v31 = vld [vmem:[#allocation12 + $0x1d4] sm:$0xf0]  ;;  %v11453_v32 = vld [vmem:[#allocation12 + $0xcc] sm:$0xf] }
 0x6fb   :  { %3986 = vmatmul.bf16.vlgmr.msra.gmra.mxu1 %v3911_v6  ;;  %v9344_v6 = vld [vmem:[#allocation10 + $0x18] sm:$0xf0]  ;;  %4264 = vmatpush.bf16.msrb.mxu0 %v9343_v33  ;;  %v9576_v33 = vld [vmem:[#allocation12 + $0x170] sm:$0xf0] }
 0x6fc   :  { %v3908_v34 = vpop.f32.mrf.mxu0 }
 0x6fd   :  { %v9347_v34 = vor.u32 %v11414_v7, %v9344_v6  ;;  %v11472_v7 = vld [vmem:[#allocation12 + $0x164] sm:$0xf] }
 0x6fe   :  { %v9579_v36 = vor.u32 %v11472_v7, %v9576_v33  ;;  %v9504_v33 = vld [vmem:[#allocation12 + $0xd8] sm:$0xf0] }
 0x6ff   :  { %4277 = vmatpush.bf16.msrb.mxu1 %v9347_v34  ;;  %4265 = vmatpush.bf16.msrb.mxu0 %v9335_v5  ;;  %v9558_v5 = vld [vmem:[#allocation12 + $0x140] sm:$0xf] }
 0x703   :  { %4278 = vmatpush.bf16.msrb.mxu1 %v9339_v38  ;;  %v11470_v38 = vld [vmem:[#allocation12 + $0x14c] sm:$0xf0] }
 0x707   :  { %4722 = vmatpush.bf16.msra.mxu1 %v9643_v61  ;;  %v11432_v61 = vld [vmem:[#allocation12 + $0x24] sm:$0xf] }
 0x708   :  { %v9419_v11 = vor.u32 %v11432_v61, %v9416_v51  ;;  %v9598_v61 = vld [vmem:[#allocation12 + $0x188] sm:$0xf] }
 0x70b   :  { %4723 = vmatpush.bf16.msra.mxu1 %v9627_v0  ;;  %v11428_v0 = vld [vmem:[#allocation12 + $0x4] sm:$0xf] }
 0x70f   :  { %4724 = vmatpush.bf16.msra.mxu1 %v9611_v18  ;;  %v9527_v18 = vor.u32 %v11462_v19, %v9526_v55  ;;  %v11443_v55 = vld [vmem:[#allocation12 + $0x74] sm:$0xf0]  ;;  %v9582_v19 = vld [vmem:[#allocation12 + $0x168] sm:$0xf] }
 0x778   :  { %v3987_v50 = vpop.f32.mrf.mxu1 }
 0x779   :  { %v3988_v41 = vadd.f32 %v3987_v50, %v3929_v37  ;;  %v9638_v37 = vld [vmem:[#allocation12 + $0x1e0] sm:$0xf]  ;;  %v9511_v50 = vor.u32 %v11458_v40, %v9510_v39  ;;  %v11436_v39 = vld [vmem:[#allocation12 + $0x44] sm:$0xf]  ;;  %v9432_v40 = vld [vmem:[#allocation12 + $0x50] sm:$0xf0] }
 0x77b   :  { %v3991_v42 = vmax.f32 %v3988_v41, 0.0  ;;  %v11490_v41 = vld [vmem:[#allocation12 + $0x1ec] sm:$0xf0]  ;;  %4683 = vmatpush.bf16.msrb.mxu2 %v9511_v50  ;;  %v9560_v50 = vld [vmem:[#allocation12 + $0x150] sm:$0xf0] }
 0x77d   :  { %v3992_v28 = vpack.c.bf16 %v3991_v42, %v3991_v42  ;;  %v11456_v42 = vld [vmem:[#allocation12 + $0xe4] sm:$0xf] }
 0x77f   :  { %4067 = vmatmul.bf16.vlgmr.msra.gmra.mxu2 %v3992_v28  ;;  %v9512_v28 = vld [vmem:[#allocation12 + $0xf0] sm:$0xf0] }
 0x780   :  { %v3989_v44 = vpop.f32.mrf.mxu1  ;;  %v9515_v47 = vor.u32 %v11456_v42, %v9512_v28  ;;  %4684 = vmatpush.bf16.msrb.mxu2 %v9495_v57  ;;  %v9559_v42 = vor.u32 %v11470_v38, %v9558_v5  ;;  %v9435_v28 = vor.u32 %v11436_v39, %v9432_v40  ;;  %v9544_v57 = vld [vmem:[#allocation12 + $0x130] sm:$0xf0]  ;;  %v11451_v38 = vld [vmem:[#allocation12 + $0xb4] sm:$0xf0]  ;;  %v9614_v39 = vld [vmem:[#allocation12 + $0x1a8] sm:$0xf] }
 0x781   :  { %v9639_v44 = vor.u32 %v11490_v41, %v9638_v37  ;;  %v11468_v37 = vld [vmem:[#allocation12 + $0x144] sm:$0xf]  ;;  %v9431_v41 = vor.u32 %v11438_v17, %v9430_v35  ;;  %v9547_v24 = vor.u32 %v11464_v56, %v9544_v57  ;;  %v9507_v17 = vor.u32 %v11453_v32, %v9504_v33  ;;  %v11445_v56 = vld [vmem:[#allocation12 + $0x8c] sm:$0xf]  ;;  %v9472_v57 = vld [vmem:[#allocation12 + $0x98] sm:$0xf0] }
 0x782   :  { %4709 = vmatpush.bf16.msra.mxu0 %v9515_v47  ;;  %v11434_v47 = vld [vmem:[#allocation12 + $0x2c] sm:$0xf0]  ;;  %v9563_v48 = vor.u32 %v11468_v37, %v9560_v50  ;;  %v11483_v37 = vld [vmem:[#allocation12 + $0x1b4] sm:$0xf0]  ;;  %v11449_v50 = vld [vmem:[#allocation12 + $0xac] sm:$0xf]  ;;  %v9475_v8 = vor.u32 %v11445_v56, %v9472_v57 }
 0x783   :  { %4696 = vmatpush.bf16.msrb.mxu3 %v9639_v44  ;;  %v9414_v44 = vld [vmem:[#allocation12 + $0x20] sm:$0xf]  ;;  %v11465_v32 = vld [vmem:[#allocation12 + $0x12c] sm:$0xf] }
 0x784   :  { %4685 = vmatpush.bf16.msrb.mxu2 %v9479_v9  ;;  %v11460_v9 = vld [vmem:[#allocation12 + $0x104] sm:$0xf]  ;;  %v9878_v56 = vld [vmem:[#allocation13 + $0x1c0] sm:$0xf] }
 0x785   :  { %v11552_v57 = vld [vmem:[#allocation13 + $0x1dc] sm:$0xf0] }
 0x786   :  { %4710 = vmatpush.bf16.msra.mxu0 %v9499_v63  ;;  %v9543_v63 = vor.u32 %v11466_v49, %v9542_v12  ;;  %v11447_v49 = vld [vmem:[#allocation12 + $0x94] sm:$0xf0] }
 0x787   :  { %4697 = vmatpush.bf16.msrb.mxu3 %v9623_v58  ;;  %v9415_v58 = vor.u32 %v11434_v47, %v9414_v44  ;;  %v11481_v44 = vld [vmem:[#allocation12 + $0x1ac] sm:$0xf]  ;;  %v9616_v47 = vld [vmem:[#allocation12 + $0x1b8] sm:$0xf0] }
 0x788   :  { %4686 = vmatpush.bf16.msrb.mxu2 %v9463_v23  ;;  %v9531_v23 = vor.u32 %v11460_v9, %v9528_v10  ;;  %v9619_v12 = vor.u32 %v11481_v44, %v9616_v47 }
 0x78a   :  { %4711 = vmatpush.bf16.msra.mxu0 %v9483_v43 }
 0x78b   :  { %4698 = vmatpush.bf16.msrb.mxu3 %v9607_v14  ;;  %v9646_v14 = vld [vmem:[#allocation12 + $0x1e8] sm:$0xf] }
 0x78f   :  { %4699 = vmatpush.bf16.msrb.mxu3 %v9591_v25  ;;  %v9519_v25 = vor.u32 %v11459_v59, %v9518_v13  ;;  %v11473_v13 = vld [vmem:[#allocation12 + $0x16c] sm:$0xf]  ;;  %v9584_v59 = vld [vmem:[#allocation12 + $0x178] sm:$0xf0] }
 0x802   :  { %v4068_v26 = vpop.f32.mrf.mxu2 }
 0x803   :  { %v4069_v27 = vadd.f32 %v4068_v26, %v4010_v4  ;;  %v9467_v4 = vor.u32 %v11444_v21, %v9464_v22  ;;  %v9446_v26 = vld [vmem:[#allocation12 + $0x60] sm:$0xf]  ;;  %v11489_v21 = vld [vmem:[#allocation12 + $0x1ec] sm:$0xf]  ;;  %v9648_v22 = vld [vmem:[#allocation12 + $0x1f8] sm:$0xf0] }
 0x805   :  { %v4072_v52 = vmax.f32 %v4069_v27, 0.0  ;;  %v11442_v27 = vld [vmem:[#allocation12 + $0x6c] sm:$0xf0]  ;;  %4712 = vmatpush.bf16.msra.mxu0 %v9467_v4  ;;  %v9647_v4 = vor.u32 %v11491_v15, %v9646_v14  ;;  %v9438_v14 = vld [vmem:[#allocation12 + $0x48] sm:$0xf] }
 0x806   :  { %v9447_v6 = vor.u32 %v11442_v27, %v9446_v26  ;;  %v9502_v26 = vld [vmem:[#allocation12 + $0xc8] sm:$0xf]  ;;  %v11455_v27 = vld [vmem:[#allocation12 + $0xd4] sm:$0xf0] }
 0x807   :  { %v4073_v29 = vpack.c.bf16 %v4072_v52, %v4072_v52  ;;  %v9574_v52 = vld [vmem:[#allocation12 + $0x160] sm:$0xf]  ;;  %v11439_v15 = vld [vmem:[#allocation12 + $0x54] sm:$0xf0] }
 0x808   :  { %4687 = vmatpush.bf16.msrb.mxu2 %v9447_v6  ;;  %v11485_v6 = vld [vmem:[#allocation12 + $0x1cc] sm:$0xf] }
 0x809   :  { %4148 = vmatmul.bf16.vlgmr.msra.gmra.mxu3 %v4073_v29  ;;  %v9595_v29 = vor.u32 %v11476_v2, %v9592_v45  ;;  %4713 = vmatpush.bf16.msra.mxu0 %v9451_v54  ;;  %v9403_v45 = vor.u32 %v11428_v0, %v9400_v3  ;;  %v9503_v54 = vor.u32 %v11455_v27, %v9502_v26  ;;  %v9456_v3 = vld [vmem:[#allocation12 + $0x78] sm:$0xf0]  ;;  %v9550_v27 = vld [vmem:[#allocation12 + $0x128] sm:$0xf] }
 0x80a   :  { %v4070_v30 = vpop.f32.mrf.mxu2 }
 0x80b   :  { %v11474_v30 = vld [vmem:[#allocation12 + $0x16c] sm:$0xf0]  ;;  %4725 = vmatpush.bf16.msra.mxu1 %v9595_v29  ;;  %v9651_v29 = vor.u32 %v11489_v21, %v9648_v22  ;;  %v11437_v21 = vld [vmem:[#allocation12 + $0x4c] sm:$0xf]  ;;  %v9440_v22 = vld [vmem:[#allocation12 + $0x58] sm:$0xf0] }
 0x80c   :  { %v9575_v34 = vor.u32 %v11474_v30, %v9574_v52  ;;  %4688 = vmatpush.bf16.msrb.mxu2 %v9431_v41  ;;  %v9523_v52 = vor.u32 %v11457_v16, %v9520_v20  ;;  %v9630_v30 = vld [vmem:[#allocation12 + $0x1c8] sm:$0xf]  ;;  %v9488_v41 = vld [vmem:[#allocation12 + $0xb8] sm:$0xf0] }
 0x80d   :  { %4714 = vmatpush.bf16.msra.mxu0 %v9435_v28  ;;  %v9631_v35 = vor.u32 %v11487_v31, %v9630_v30  ;;  %v9491_v28 = vor.u32 %v11449_v50, %v9488_v41  ;;  %v9566_v16 = vld [vmem:[#allocation12 + $0x148] sm:$0xf]  ;;  %v9424_v31 = vld [vmem:[#allocation12 + $0x38] sm:$0xf0] }
 0x80e   :  { %4700 = vmatpush.bf16.msrb.mxu3 %v9575_v34  ;;  %v9632_v34 = vld [vmem:[#allocation12 + $0x1d8] sm:$0xf0] }
 0x80f   :  { %4726 = vmatpush.bf16.msra.mxu1 %v9579_v36  ;;  %v9635_v5 = vor.u32 %v11485_v6, %v9632_v34  ;;  %v9486_v36 = vld [vmem:[#allocation12 + $0xa8] sm:$0xf] }
 0x810   :  { %4689 = vmatpush.bf16.msrb.mxu2 %v9415_v58  ;;  %v9487_v40 = vor.u32 %v11451_v38, %v9486_v36  ;;  %v9406_v34 = vld [vmem:[#allocation12 + $0x8] sm:$0xf]  ;;  %v11429_v36 = vld [vmem:[#allocation12 + $0xc] sm:$0xf]  ;;  %v9408_v38 = vld [vmem:[#allocation12 + $0x18] sm:$0xf0] }
 0x811   :  { %4715 = vmatpush.bf16.msra.mxu0 %v9419_v11  ;;  %v9454_v11 = vld [vmem:[#allocation12 + $0x68] sm:$0xf]  ;;  %v9411_v41 = vor.u32 %v11429_v36, %v9408_v38  ;;  %v11656_v36 = vld [vmem:[#allocation13 + $0x51c] sm:$0xf0] }
 0x812   :  { %4701 = vmatpush.bf16.msrb.mxu3 %v9559_v42  ;;  %v9615_v42 = vor.u32 %v11483_v37, %v9614_v39  ;;  %v9455_v0 = vor.u32 %v11443_v55, %v9454_v11  ;;  %v11461_v39 = vld [vmem:[#allocation12 + $0x10c] sm:$0xf]  ;;  %v11680_v11 = vld [vmem:[#allocation13 + $0x5dc] sm:$0xf0] }
 0x813   :  { %4727 = vmatpush.bf16.msra.mxu1 %v9563_v48  ;;  %v9470_v48 = vld [vmem:[#allocation12 + $0x88] sm:$0xf] }
 0x814   :  { %4690 = vmatpush.bf16.msrb.mxu2 %v9399_v46  ;;  %v9471_v51 = vor.u32 %v11447_v49, %v9470_v48  ;;  %v11471_v46 = vld [vmem:[#allocation12 + $0x154] sm:$0xf0] }
 0x815   :  { %4716 = vmatpush.bf16.msra.mxu0 %v9403_v45  ;;  %v9567_v20 = vor.u32 %v11471_v46, %v9566_v16  ;;  %v9443_v45 = vor.u32 %v11437_v21, %v9440_v22  ;;  %v11672_v16 = vld [vmem:[#allocation13 + $0x59c] sm:$0xf0] }
 0x816   :  { %4702 = vmatpush.bf16.msrb.mxu3 %v9543_v63  ;;  %v10070_v21 = vld [vmem:[#allocation13 + $0x340] sm:$0xf] }
 0x817   :  { %4728 = vmatpush.bf16.msra.mxu1 %v9547_v24  ;;  %v11441_v24 = vld [vmem:[#allocation12 + $0x6c] sm:$0xf]  ;;  %v11600_v22 = vld [vmem:[#allocation13 + $0x35c] sm:$0xf0] }
 0x818   :  { %4735 = vmatpush.bf16.msra.mxu2 %v9519_v25  ;;  %v9459_v10 = vor.u32 %v11441_v24, %v9456_v3  ;;  %v9422_v25 = vld [vmem:[#allocation12 + $0x28] sm:$0xf]  ;;  %v11608_v24 = vld [vmem:[#allocation13 + $0x39c] sm:$0xf0]  ;;  %v9879_v3 = vor.u32 %v11552_v57, %v9878_v56 }
 0x819   :  { %v9718_v56 = vld [vmem:[#allocation13 + $0x80] sm:$0xf] }
 0x81a   :  { %4703 = vmatpush.bf16.msrb.mxu3 %v9527_v18  ;;  %v9439_v18 = vor.u32 %v11439_v15, %v9438_v14  ;;  %v10358_v15 = vld [vmem:[#allocation13 + $0x580] sm:$0xf] }
 0x81b   :  { %4729 = vmatpush.bf16.msra.mxu1 %v9531_v23  ;;  %v9568_v23 = vld [vmem:[#allocation12 + $0x158] sm:$0xf0]  ;;  %v11512_v57 = vld [vmem:[#allocation13 + $0x9c] sm:$0xf0] }
 0x81c   :  { %4736 = vmatpush.bf16.msra.mxu2 %v9503_v54  ;;  %v11431_v54 = vld [vmem:[#allocation12 + $0x14] sm:$0xf0] }
 0x81d   :  { %v9407_v37 = vor.u32 %v11431_v54, %v9406_v34  ;;  %v10550_v54 = vld [vmem:[#allocation13 + $0x700] sm:$0xf] }
 0x81e   :  { %4748 = vmatpush.bf16.msra.mxu3 %v9647_v4  ;;  %v11435_v4 = vld [vmem:[#allocation12 + $0x34] sm:$0xf0] }
 0x81f   :  { %v9423_v30 = vor.u32 %v11435_v4, %v9422_v25  ;;  %v10582_v4 = vld [vmem:[#allocation13 + $0x740] sm:$0xf] }
 0x820   :  { %4737 = vmatpush.bf16.msra.mxu2 %v9487_v40  ;;  %v9536_v40 = vld [vmem:[#allocation12 + $0x118] sm:$0xf0] }
 0x822   :  { %4749 = vmatpush.bf16.msra.mxu3 %v9631_v35  ;;  %v9534_v35 = vld [vmem:[#allocation12 + $0x108] sm:$0xf] }
 0x824   :  { %4738 = vmatpush.bf16.msra.mxu2 %v9471_v51  ;;  %v10134_v51 = vld [vmem:[#allocation13 + $0x3c0] sm:$0xf] }
 0x826   :  { %4750 = vmatpush.bf16.msra.mxu3 %v9615_v42  ;;  %v9539_v42 = vor.u32 %v11461_v39, %v9536_v40  ;;  %v10006_v39 = vld [vmem:[#allocation13 + $0x2c0] sm:$0xf] }
 0x827   :  { %v11584_v40 = vld [vmem:[#allocation13 + $0x2dc] sm:$0xf0] }
 0x828   :  { %4739 = vmatpush.bf16.msra.mxu2 %v9455_v0 }
 0x82c   :  { %4740 = vmatpush.bf16.msra.mxu2 %v9439_v18 }
 0x830   :  { %4741 = vmatpush.bf16.msra.mxu2 %v9423_v30  ;;  %v10071_v30 = vor.u32 %v11600_v22, %v10070_v21  ;;  %v9654_v21 = vld [vmem:[#allocation13] sm:$0xf] }
 0x831   :  { %v11496_v22 = vld [vmem:[#allocation13 + $0x1c] sm:$0xf0] }
 0x834   :  { %4742 = vmatpush.bf16.msra.mxu2 %v9407_v37 }
 0x88c   :  { %v4149_v62 = vpop.f32.mrf.mxu3 }
 0x88d   :  { %v4150_v1 = vadd.f32 %v4149_v62, %v4091_v53  ;;  %v11479_v53 = vld [vmem:[#allocation12 + $0x194] sm:$0xf0]  ;;  %v9600_v62 = vld [vmem:[#allocation12 + $0x198] sm:$0xf0] }
 0x88e   :  { %v9599_v58 = vor.u32 %v11479_v53, %v9598_v61  ;;  %v9603_v63 = vor.u32 %v11477_v60, %v9600_v62  ;;  %v11616_v53 = vld [vmem:[#allocation13 + $0x3dc] sm:$0xf0] }
 0x88f   :  { %v4153_v43 = vmax.f32 %v4150_v1, 0.0  ;;  %v11475_v1 = vld [vmem:[#allocation12 + $0x174] sm:$0xf0]  ;;  %v10135_v0 = vor.u32 %v11616_v53, %v10134_v51  ;;  %v11576_v51 = vld [vmem:[#allocation13 + $0x29c] sm:$0xf0] }
 0x890   :  { %4751 = vmatpush.bf16.msra.mxu3 %v9599_v58  ;;  %v9583_v9 = vor.u32 %v11475_v1, %v9582_v19  ;;  %v10646_v58 = vld [vmem:[#allocation13 + $0x7c0] sm:$0xf] }
 0x891   :  { %v4154_v2 = vpack.c.bf16 %v4153_v43, %v4153_v43  ;;  %v9587_v43 = vor.u32 %v11473_v13, %v9584_v59  ;;  %v10102_v1 = vld [vmem:[#allocation13 + $0x380] sm:$0xf] }
 0x892   :  { %v10614_v59 = vld [vmem:[#allocation13 + $0x780] sm:$0xf] }
 0x893   :  { %4266 = vmatmul.bf16.vlgmr.msrb.gmra.mxu0 %v4154_v2  ;;  %4279 = vmatmul.bf16.vlgmr.msrb.gmra.mxu1 %v4154_v2  ;;  %v11469_v2 = vld [vmem:[#allocation12 + $0x14c] sm:$0xf] }
 0x894   :  { %v4151_v7 = vpop.f32.mrf.mxu3  ;;  %4761 = vmatpush.bf16.msrb.mxu0 %v9523_v52  ;;  %4774 = vmatpush.bf16.msrb.mxu1 %v9651_v29  ;;  %v9571_v26 = vor.u32 %v11469_v2, %v9568_v23  ;;  %v11467_v52 = vld [vmem:[#allocation12 + $0x134] sm:$0xf0]  ;;  %v11433_v29 = vld [vmem:[#allocation12 + $0x2c] sm:$0xf]  ;;  %v11536_v23 = vld [vmem:[#allocation13 + $0x15c] sm:$0xf0] }
 0x895   :  { %4752 = vmatpush.bf16.msra.mxu3 %v9583_v9  ;;  %v9552_v7 = vld [vmem:[#allocation12 + $0x138] sm:$0xf0]  ;;  %v9551_v33 = vor.u32 %v11467_v52, %v9550_v27  ;;  %v9427_v6 = vor.u32 %v11433_v29, %v9424_v31  ;;  %v9846_v9 = vld [vmem:[#allocation13 + $0x180] sm:$0xf] }
 0x896   :  { %v11728_v27 = vld [vmem:[#allocation13 + $0x75c] sm:$0xf0] }
 0x897   :  { %v10326_v52 = vld [vmem:[#allocation13 + $0x540] sm:$0xf]  ;;  %v10583_v34 = vor.u32 %v11728_v27, %v10582_v4  ;;  %v9880_v4 = vld [vmem:[#allocation13 + $0x1e0] sm:$0xf0] }
 0x898   :  { %4762 = vmatpush.bf16.msrb.mxu0 %v9507_v17  ;;  %4775 = vmatpush.bf16.msrb.mxu1 %v9635_v5  ;;  %v9555_v17 = vor.u32 %v11465_v32, %v9552_v7  ;;  %v11463_v5 = vld [vmem:[#allocation12 + $0x114] sm:$0xf0]  ;;  %v11664_v29 = vld [vmem:[#allocation13 + $0x55c] sm:$0xf0] }
 0x899   :  { %4753 = vmatpush.bf16.msra.mxu3 %v9567_v20  ;;  %v9535_v50 = vor.u32 %v11463_v5, %v9534_v35  ;;  %v10103_v20 = vor.u32 %v11608_v24, %v10102_v1  ;;  %v10038_v31 = vld [vmem:[#allocation13 + $0x300] sm:$0xf]  ;;  %v10327_v35 = vor.u32 %v11664_v29, %v10326_v52  ;;  %v9655_v29 = vor.u32 %v11496_v22, %v9654_v21  ;;  %v11556_v22 = vld [vmem:[#allocation13 + $0x204] sm:$0xf] }
 0x89a   :  { %v11592_v32 = vld [vmem:[#allocation13 + $0x31c] sm:$0xf0] }
 0x89b   :  { %v10294_v5 = vld [vmem:[#allocation13 + $0x500] sm:$0xf]  ;;  %v10039_v38 = vor.u32 %v11592_v32, %v10038_v31  ;;  %v10648_v31 = vld [vmem:[#allocation13 + $0x7e0] sm:$0xf0] }
 0x89c   :  { %4763 = vmatpush.bf16.msrb.mxu0 %v9491_v28  ;;  %4776 = vmatpush.bf16.msrb.mxu1 %v9619_v12  ;;  %v4172_v28 = vld [vmem:[#allocation16 + $0x46] ss:$8 sm:$0x3]  ;;  %v9942_v1 = vld [vmem:[#allocation13 + $0x240] sm:$0xf] }
 0x89d   :  { %4754 = vmatpush.bf16.msra.mxu3 %v9551_v33  ;;  %v4174_v44 = vperm.slane %v4172_v28, 0  ;;  %v4175_v47 = vperm.slane %v4172_v28, 1  ;;  %v9782_v33 = vld [vmem:[#allocation13 + $0x100] sm:$0xf] }
 0x89e   :  { %v10518_v28 = vld [vmem:[#allocation13 + $0x6c0] sm:$0xf] }
 0x89f   :  { %v11568_v24 = vld [vmem:[#allocation13 + $0x25c] sm:$0xf0] }
 0x8a0   :  { %4764 = vmatpush.bf16.msrb.mxu0 %v9475_v8  ;;  %4777 = vmatpush.bf16.msrb.mxu1 %v9603_v63  ;;  %v11744_v8 = vld [vmem:[#allocation13 + $0x7dc] sm:$0xf0] }
 0x8a1   :  { %4755 = vmatpush.bf16.msra.mxu3 %v9535_v50  ;;  %v10390_v63 = vld [vmem:[#allocation13 + $0x5c0] sm:$0xf]  ;;  %v10647_v13 = vor.u32 %v11744_v8, %v10646_v58 }
 0x8a2   :  { %v10391_v14 = vor.u32 %v11680_v11, %v10390_v63  ;;  %v9750_v50 = vld [vmem:[#allocation13 + $0xc0] sm:$0xf] }
 0x8a3   :  { %v10486_v8 = vld [vmem:[#allocation13 + $0x680] sm:$0xf] }
 0x8a4   :  { %4765 = vmatpush.bf16.msrb.mxu0 %v9459_v10  ;;  %4778 = vmatpush.bf16.msrb.mxu1 %v9587_v43  ;;  %v11544_v10 = vld [vmem:[#allocation13 + $0x19c] sm:$0xf0] }
 0x8a5   :  { %v11736_v43 = vld [vmem:[#allocation13 + $0x79c] sm:$0xf0]  ;;  %v9847_v2 = vor.u32 %v11544_v10, %v9846_v9 }
 0x8a6   :  { %v10615_v25 = vor.u32 %v11736_v43, %v10614_v59  ;;  %v10230_v63 = vld [vmem:[#allocation13 + $0x480] sm:$0xf] }
 0x8a7   :  { %v11640_v11 = vld [vmem:[#allocation13 + $0x49c] sm:$0xf0] }
 0x8a8   :  { %4766 = vmatpush.bf16.msrb.mxu0 %v9443_v45  ;;  %4779 = vmatpush.bf16.msrb.mxu1 %v9571_v26  ;;  %v9814_v45 = vld [vmem:[#allocation13 + $0x140] sm:$0xf]  ;;  %v10359_v26 = vor.u32 %v11672_v16, %v10358_v15 }
 0x8a9   :  { %v9815_v7 = vor.u32 %v11536_v23, %v9814_v45  ;;  %v9686_v9 = vld [vmem:[#allocation13 + $0x40] sm:$0xf]  ;;  %v10136_v23 = vld [vmem:[#allocation13 + $0x3e0] sm:$0xf0] }
 0x8aa   :  { %v11504_v10 = vld [vmem:[#allocation13 + $0x5c] sm:$0xf0] }
 0x8ab   :  { %v10454_v59 = vld [vmem:[#allocation13 + $0x640] sm:$0xf] }
 0x8ac   :  { %4767 = vmatpush.bf16.msrb.mxu0 %v9427_v6  ;;  %4780 = vmatpush.bf16.msrb.mxu1 %v9555_v17  ;;  %v11528_v6 = vld [vmem:[#allocation13 + $0x11c] sm:$0xf0] }
 0x8ad   :  { %v11720_v17 = vld [vmem:[#allocation13 + $0x71c] sm:$0xf0]  ;;  %v9783_v37 = vor.u32 %v11528_v6, %v9782_v33  ;;  %v10104_v6 = vld [vmem:[#allocation13 + $0x3a0] sm:$0xf0] }
 0x8ae   :  { %v11696_v43 = vld [vmem:[#allocation13 + $0x65c] sm:$0xf0] }
 0x8af   :  { %v10198_v15 = vld [vmem:[#allocation13 + $0x440] sm:$0xf] }
 0x8b0   :  { %4768 = vmatpush.bf16.msrb.mxu0 %v9411_v41  ;;  %4781 = vmatpush.bf16.msrb.mxu1 %v9539_v42  ;;  %v11520_v41 = vld [vmem:[#allocation13 + $0xdc] sm:$0xf0]  ;;  %v10551_v42 = vor.u32 %v11720_v17, %v10550_v54  ;;  %v9848_v54 = vld [vmem:[#allocation13 + $0x1a0] sm:$0xf0] }
 0x8b1   :  { %v9751_v53 = vor.u32 %v11520_v41, %v9750_v50  ;;  %v11632_v16 = vld [vmem:[#allocation13 + $0x45c] sm:$0xf0]  ;;  %v11588_v41 = vld [vmem:[#allocation13 + $0x304] sm:$0xf] }
 0x8b2   :  { %v10199_v45 = vor.u32 %v11632_v16, %v10198_v15  ;;  %v11688_v27 = vld [vmem:[#allocation13 + $0x61c] sm:$0xf0]  ;;  %v10584_v15 = vld [vmem:[#allocation13 + $0x760] sm:$0xf0] }
 0x910   :  { %v4267_v12 = vpop.f32.mrf.mxu0  ;;  %v4280_v48 = vpop.f32.mrf.mxu1 }
 0x911   :  { %v4268_v49 = vadd.f32 %v4267_v12, %v4174_v44  ;;  %v4281_v61 = vadd.f32 %v4280_v48, %v4175_v47  ;;  %v10295_v44 = vor.u32 %v11656_v36, %v10294_v5  ;;  %v11712_v47 = vld [vmem:[#allocation13 + $0x6dc] sm:$0xf0]  ;;  %v11596_v36 = vld [vmem:[#allocation13 + $0x344] sm:$0xf] }
 0x912   :  { %v10262_v12 = vld [vmem:[#allocation13 + $0x4c0] sm:$0xf]  ;;  %v10519_v58 = vor.u32 %v11712_v47, %v10518_v28  ;;  %v10040_v28 = vld [vmem:[#allocation13 + $0x320] sm:$0xf0] }
 0x913   :  { %v4284_v60 = vmax.f32 %v4268_v49, 0.0  ;;  %v4285_v62 = vmax.f32 %v4281_v61, 0.0  ;;  %v11648_v48 = vld [vmem:[#allocation13 + $0x4dc] sm:$0xf0]  ;;  %v10007_v49 = vor.u32 %v11584_v40, %v10006_v39  ;;  %v10072_v39 = vld [vmem:[#allocation13 + $0x360] sm:$0xf0] }
 0x914   :  { %v9974_v61 = vld [vmem:[#allocation13 + $0x280] sm:$0xf]  ;;  %v11532_v40 = vld [vmem:[#allocation13 + $0x144] sm:$0xf]  ;;  %v10075_v50 = vor.u32 %v11596_v36, %v10072_v39 }
 0x915   :  { %v12323_v55 = vpack.c.bf16 %v4284_v60, %v4284_v60  ;;  %v12325_v19 = vpack.c.bf16 %v4285_v62, %v4285_v62  ;;  %v10263_v60 = vor.u32 %v11648_v48, %v10262_v12  ;;  %v11704_v62 = vld [vmem:[#allocation13 + $0x69c] sm:$0xf0]  ;;  %v9784_v47 = vld [vmem:[#allocation13 + $0x120] sm:$0xf0]  ;;  %v10043_v12 = vor.u32 %v11588_v41, %v10040_v28 }
 0x916   :  { %v11700_v36 = vld [vmem:[#allocation13 + $0x684] sm:$0xf] }
 0x917   :  { %4691 = vmatmul.bf16.vlgmr.msrb.gmra.mxu2 %v12323_v55  ;;  %4704 = vmatmul.bf16.vlgmr.msrb.gmra.mxu3 %v12325_v19  ;;  %v11692_v41 = vld [vmem:[#allocation13 + $0x644] sm:$0xf] }
 0x918   :  { %4717 = vmatmul.bf16.vlgmr.msra.gmra.mxu0 %v12323_v55  ;;  %4730 = vmatmul.bf16.vlgmr.msra.gmra.mxu1 %v12325_v19  ;;  %v4269_v46 = vpop.f32.mrf.mxu0  ;;  %v4282_v18 = vpop.f32.mrf.mxu1 }
 0x919   :  { %6365 = vmatpush.bf16.msrb.mxu3 %v10135_v0  ;;  %6352 = vmatpush.bf16.msrb.mxu2 %v9879_v3  ;;  %v9975_v0 = vor.u32 %v11576_v51, %v9974_v61  ;;  %v9719_v3 = vor.u32 %v11512_v57, %v9718_v56  ;;  %v11560_v46 = vld [vmem:[#allocation13 + $0x21c] sm:$0xf0]  ;;  %v9687_v18 = vor.u32 %v11504_v10, %v9686_v9  ;;  %v10008_v61 = vld [vmem:[#allocation13 + $0x2e0] sm:$0xf0] }
 0x91a   :  { %6391 = vmatpush.bf16.msra.mxu1 %v10647_v13  ;;  %6378 = vmatpush.bf16.msra.mxu0 %v10391_v14  ;;  %v10487_v13 = vor.u32 %v11704_v62, %v10486_v8  ;;  %v10231_v14 = vor.u32 %v11640_v11, %v10230_v63  ;;  %v9976_v56 = vld [vmem:[#allocation13 + $0x2a0] sm:$0xf0]  ;;  %v11624_v62 = vld [vmem:[#allocation13 + $0x41c] sm:$0xf0] }
 0x91b   :  { %v11732_v57 = vld [vmem:[#allocation13 + $0x784] sm:$0xf] }
 0x91c   :  { %v10616_v8 = vld [vmem:[#allocation13 + $0x7a0] sm:$0xf0] }
 0x91d   :  { %6366 = vmatpush.bf16.msrb.mxu3 %v10103_v20  ;;  %6353 = vmatpush.bf16.msrb.mxu2 %v9847_v2  ;;  %v11612_v20 = vld [vmem:[#allocation13 + $0x3c4] sm:$0xf]  ;;  %v10455_v2 = vor.u32 %v11696_v43, %v10454_v59  ;;  %v10619_v63 = vor.u32 %v11732_v57, %v10616_v8 }
 0x91e   :  { %6392 = vmatpush.bf16.msra.mxu1 %v10615_v25  ;;  %6379 = vmatpush.bf16.msra.mxu0 %v10359_v26  ;;  %v11548_v25 = vld [vmem:[#allocation13 + $0x1c4] sm:$0xf]  ;;  %v10422_v26 = vld [vmem:[#allocation13 + $0x600] sm:$0xf]  ;;  %v10139_v32 = vor.u32 %v11612_v20, %v10136_v23 }
 0x91f   :  { %v9883_v33 = vor.u32 %v11548_v25, %v9880_v4  ;;  %v10392_v9 = vld [vmem:[#allocation13 + $0x5e0] sm:$0xf0] }
 0x920   :  { %v9944_v59 = vld [vmem:[#allocation13 + $0x260] sm:$0xf0] }
 0x921   :  { %6367 = vmatpush.bf16.msrb.mxu3 %v10071_v30  ;;  %6354 = vmatpush.bf16.msrb.mxu2 %v9815_v7  ;;  %v11740_v30 = vld [vmem:[#allocation13 + $0x7c4] sm:$0xf] }
 0x922   :  { %6393 = vmatpush.bf16.msra.mxu1 %v10583_v34  ;;  %6380 = vmatpush.bf16.msra.mxu0 %v10327_v35  ;;  %v11604_v7 = vld [vmem:[#allocation13 + $0x384] sm:$0xf]  ;;  %v10423_v35 = vor.u32 %v11688_v27, %v10422_v26  ;;  %v10651_v17 = vor.u32 %v11740_v30, %v10648_v31 }
 0x923   :  { %v11540_v34 = vld [vmem:[#allocation13 + $0x184] sm:$0xf]  ;;  %v10107_v5 = vor.u32 %v11604_v7, %v10104_v6 }
 0x924   :  { %v10360_v20 = vld [vmem:[#allocation13 + $0x5a0] sm:$0xf0] }
 0x925   :  { %6368 = vmatpush.bf16.msrb.mxu3 %v10039_v38  ;;  %6355 = vmatpush.bf16.msrb.mxu2 %v9783_v37  ;;  %v9851_v38 = vor.u32 %v11540_v34, %v9848_v54  ;;  %v9816_v37 = vld [vmem:[#allocation13 + $0x160] sm:$0xf0] }
 0x926   :  { %6394 = vmatpush.bf16.msra.mxu1 %v10551_v42  ;;  %6381 = vmatpush.bf16.msra.mxu0 %v10295_v44  ;;  %v9819_v42 = vor.u32 %v11532_v40, %v9816_v37  ;;  %v11524_v44 = vld [vmem:[#allocation13 + $0x104] sm:$0xf] }
 0x927   :  { %4743 = vmatmul.bf16.vlgmr.msra.gmra.mxu2 %v12323_v55  ;;  %4756 = vmatmul.bf16.vlgmr.msra.gmra.mxu3 %v12325_v19  ;;  %v9787_v48 = vor.u32 %v11524_v44, %v9784_v47  ;;  %v11716_v23 = vld [vmem:[#allocation13 + $0x704] sm:$0xf] }
 0x928   :  { %4769 = vmatmul.bf16.vlgmr.msrb.gmra.mxu0 %v12323_v55  ;;  %4782 = vmatmul.bf16.vlgmr.msrb.gmra.mxu1 %v12325_v19  ;;  %v9943_v55 = vor.u32 %v11568_v24, %v9942_v1  ;;  %v9910_v19 = vld [vmem:[#allocation13 + $0x200] sm:$0xf]  ;;  %v9752_v1 = vld [vmem:[#allocation13 + $0xe0] sm:$0xf0] }
 0x929   :  { %6369 = vmatpush.bf16.msrb.mxu3 %v10007_v49  ;;  %6356 = vmatpush.bf16.msrb.mxu2 %v9751_v53  ;;  %v9911_v52 = vor.u32 %v11560_v46, %v9910_v19  ;;  %v11580_v49 = vld [vmem:[#allocation13 + $0x2c4] sm:$0xf] }
 0x92a   :  { %6395 = vmatpush.bf16.msra.mxu1 %v10519_v58  ;;  %6382 = vmatpush.bf16.msra.mxu0 %v10263_v60  ;;  %v10011_v51 = vor.u32 %v11580_v49, %v10008_v61  ;;  %v11572_v53 = vld [vmem:[#allocation13 + $0x284] sm:$0xf]  ;;  %v10166_v60 = vld [vmem:[#allocation13 + $0x400] sm:$0xf] }
 0x92b   :  { %v9979_v58 = vor.u32 %v11572_v53, %v9976_v56  ;;  %v10167_v11 = vor.u32 %v11624_v62, %v10166_v60  ;;  %v11676_v24 = vld [vmem:[#allocation13 + $0x5c4] sm:$0xf] }
 0x92c   :  { %v10395_v10 = vor.u32 %v11676_v24, %v10392_v9  ;;  %v9720_v19 = vld [vmem:[#allocation13 + $0xa0] sm:$0xf0]  ;;  %v11617_v9 = vld [vmem:[#allocation13 + $0x3e4] sm:$0xf0] }
 0x92d   :  { %6370 = vmatpush.bf16.msrb.mxu3 %v9975_v0  ;;  %6357 = vmatpush.bf16.msrb.mxu2 %v9719_v3  ;;  %v11516_v0 = vld [vmem:[#allocation13 + $0xc4] sm:$0xf] }
 0x92e   :  { %6396 = vmatpush.bf16.msra.mxu1 %v10487_v13  ;;  %6383 = vmatpush.bf16.msra.mxu0 %v10231_v14  ;;  %v9755_v3 = vor.u32 %v11516_v0, %v9752_v1  ;;  %v11564_v13 = vld [vmem:[#allocation13 + $0x244] sm:$0xf] }
 0x92f   :  { %v11724_v14 = vld [vmem:[#allocation13 + $0x744] sm:$0xf]  ;;  %v9947_v43 = vor.u32 %v11564_v13, %v9944_v59 }
 0x930   :  { %v10587_v16 = vor.u32 %v11724_v14, %v10584_v15  ;;  %v11668_v46 = vld [vmem:[#allocation13 + $0x584] sm:$0xf] }
 0x931   :  { %6371 = vmatpush.bf16.msrb.mxu3 %v9943_v55  ;;  %6358 = vmatpush.bf16.msrb.mxu2 %v9687_v18  ;;  %v11508_v55 = vld [vmem:[#allocation13 + $0x84] sm:$0xf]  ;;  %v10363_v21 = vor.u32 %v11668_v46, %v10360_v20  ;;  %v9886_v20 = vld [vmem:[#allocation13 + $0x1c8] sm:$0xf] }
 0x932   :  { %6397 = vmatpush.bf16.msra.mxu1 %v10455_v2  ;;  %6384 = vmatpush.bf16.msra.mxu0 %v10199_v45  ;;  %v9723_v18 = vor.u32 %v11508_v55, %v9720_v19  ;;  %v9912_v2 = vld [vmem:[#allocation13 + $0x220] sm:$0xf0]  ;;  %v11609_v55 = vld [vmem:[#allocation13 + $0x3a4] sm:$0xf0] }
 0x933   :  { %v9915_v45 = vor.u32 %v11556_v22, %v9912_v2  ;;  %v10552_v25 = vld [vmem:[#allocation13 + $0x720] sm:$0xf0] }
 0x934   :  { %v10555_v4 = vor.u32 %v11716_v23, %v10552_v25  ;;  %v11500_v26 = vld [vmem:[#allocation13 + $0x44] sm:$0xf]  ;;  %v10078_v23 = vld [vmem:[#allocation13 + $0x348] sm:$0xf] }
 0x935   :  { %6372 = vmatpush.bf16.msrb.mxu3 %v9911_v52  ;;  %6359 = vmatpush.bf16.msrb.mxu2 %v9655_v29  ;;  %v9688_v27 = vld [vmem:[#allocation13 + $0x60] sm:$0xf0]  ;;  %v11601_v25 = vld [vmem:[#allocation13 + $0x364] sm:$0xf0] }
 0x936   :  { %6398 = vmatpush.bf16.msra.mxu1 %v10423_v35  ;;  %6385 = vmatpush.bf16.msra.mxu0 %v10167_v11  ;;  %v11660_v52 = vld [vmem:[#allocation13 + $0x544] sm:$0xf]  ;;  %v9691_v29 = vor.u32 %v11500_v26, %v9688_v27  ;;  %v9854_v26 = vld [vmem:[#allocation13 + $0x188] sm:$0xf] }
 0x937   :  { %v10328_v30 = vld [vmem:[#allocation13 + $0x560] sm:$0xf0]  ;;  %v11545_v27 = vld [vmem:[#allocation13 + $0x1a4] sm:$0xf0] }
 0x938   :  { %v10331_v31 = vor.u32 %v11660_v52, %v10328_v30  ;;  %v10520_v7 = vld [vmem:[#allocation13 + $0x6e0] sm:$0xf0] }
 0x939   :  { %6417 = vmatpush.bf16.msra.mxu3 %v10139_v32  ;;  %6404 = vmatpush.bf16.msra.mxu2 %v9883_v33  ;;  %v11708_v32 = vld [vmem:[#allocation13 + $0x6c4] sm:$0xf] }
 0x93a   :  { %6443 = vmatpush.bf16.msrb.mxu1 %v10651_v17  ;;  %6430 = vmatpush.bf16.msrb.mxu0 %v10395_v10  ;;  %v10523_v33 = vor.u32 %v11708_v32, %v10520_v7  ;;  %v11492_v6 = vld [vmem:[#allocation13 + $0x4] sm:$0xf]  ;;  %v9855_v32 = vor.u32 %v11545_v27, %v9854_v26  ;;  %v10046_v7 = vld [vmem:[#allocation13 + $0x308] sm:$0xf] }
 0x93b   :  { %v9656_v34 = vld [vmem:[#allocation13 + $0x20] sm:$0xf0]  ;;  %v11561_v26 = vld [vmem:[#allocation13 + $0x224] sm:$0xf0] }
 0x93c   :  { %v11652_v54 = vld [vmem:[#allocation13 + $0x504] sm:$0xf]  ;;  %v9659_v35 = vor.u32 %v11492_v6, %v9656_v34  ;;  %v10558_v27 = vld [vmem:[#allocation13 + $0x708] sm:$0xf] }
 0x93d   :  { %6418 = vmatpush.bf16.msra.mxu3 %v10107_v5  ;;  %6405 = vmatpush.bf16.msra.mxu2 %v9851_v38  ;;  %v10296_v17 = vld [vmem:[#allocation13 + $0x520] sm:$0xf0] }
 0x93e   :  { %6444 = vmatpush.bf16.msrb.mxu1 %v10619_v63  ;;  %6431 = vmatpush.bf16.msrb.mxu0 %v10363_v21  ;;  %v10299_v5 = vor.u32 %v11652_v54, %v10296_v17  ;;  %v10488_v38 = vld [vmem:[#allocation13 + $0x6a0] sm:$0xf0]  ;;  %v11553_v21 = vld [vmem:[#allocation13 + $0x1e4] sm:$0xf0] }
 0x93f   :  { %v10491_v39 = vor.u32 %v11700_v36, %v10488_v38  ;;  %v11644_v40 = vld [vmem:[#allocation13 + $0x4c4] sm:$0xf]  ;;  %v9822_v54 = vld [vmem:[#allocation13 + $0x148] sm:$0xf] }
 0x940   :  { %v10264_v37 = vld [vmem:[#allocation13 + $0x4e0] sm:$0xf0]  ;;  %v10014_v38 = vld [vmem:[#allocation13 + $0x2c8] sm:$0xf] }
 0x941   :  { %6419 = vmatpush.bf16.msra.mxu3 %v10075_v50  ;;  %6406 = vmatpush.bf16.msra.mxu2 %v9819_v42  ;;  %v10267_v50 = vor.u32 %v11644_v40, %v10264_v37  ;;  %v10456_v42 = vld [vmem:[#allocation13 + $0x660] sm:$0xf0]  ;;  %v11585_v37 = vld [vmem:[#allocation13 + $0x2e4] sm:$0xf0] }
 0x942   :  { %6445 = vmatpush.bf16.msrb.mxu1 %v10587_v16  ;;  %6432 = vmatpush.bf16.msrb.mxu0 %v10331_v31  ;;  %v10459_v28 = vor.u32 %v11692_v41, %v10456_v42  ;;  %v11636_v44 = vld [vmem:[#allocation13 + $0x484] sm:$0xf]  ;;  %v10110_v16 = vld [vmem:[#allocation13 + $0x388] sm:$0xf]  ;;  %v10079_v31 = vor.u32 %v11601_v25, %v10078_v23 }
 0x943   :  { %v10232_v47 = vld [vmem:[#allocation13 + $0x4a0] sm:$0xf0]  ;;  %v10111_v2 = vor.u32 %v11609_v55, %v10110_v16  ;;  %v11745_v41 = vld [vmem:[#allocation13 + $0x7e4] sm:$0xf0] }
 0x944   :  { %v10424_v49 = vld [vmem:[#allocation13 + $0x620] sm:$0xf0]  ;;  %v9790_v42 = vld [vmem:[#allocation13 + $0x108] sm:$0xf] }
 0x945   :  { %6420 = vmatpush.bf16.msra.mxu3 %v10043_v12  ;;  %6407 = vmatpush.bf16.msra.mxu2 %v9787_v48  ;;  %v10235_v12 = vor.u32 %v11636_v44, %v10232_v47  ;;  %v11684_v48 = vld [vmem:[#allocation13 + $0x604] sm:$0xf]  ;;  %v9918_v25 = vld [vmem:[#allocation13 + $0x208] sm:$0xf] }
 0x946   :  { %6446 = vmatpush.bf16.msrb.mxu1 %v10555_v4  ;;  %6433 = vmatpush.bf16.msrb.mxu0 %v10299_v5  ;;  %v10427_v61 = vor.u32 %v11684_v48, %v10424_v49  ;;  %v10200_v53 = vld [vmem:[#allocation13 + $0x460] sm:$0xf0]  ;;  %v10015_v49 = vor.u32 %v11585_v37, %v10014_v38  ;;  %v10112_v37 = vld [vmem:[#allocation13 + $0x3a8] sm:$0xf0] }
 0x947   :  { %v12335_v57 = vld [vmem:[#allocation16 + $0x47] ss:$8 sm:$0xf] }
 0x948   :  { %v10168_v8 = vld [vmem:[#allocation13 + $0x420] sm:$0xf0]  ;;  %v4356_v60 = vperm.slane %v12335_v57, 1  ;;  %v4355_v1 = vperm.slane %v12335_v57, 0  ;;  %v4358_v30 = vperm.slane %v12335_v57, 3  ;;  %v4357_v36 = vperm.slane %v12335_v57, 2 }
 0x949   :  { %6421 = vmatpush.bf16.msra.mxu3 %v10011_v51  ;;  %6408 = vmatpush.bf16.msra.mxu2 %v9755_v3  ;;  %v11628_v51 = vld [vmem:[#allocation13 + $0x444] sm:$0xf]  ;;  %v10142_v3 = vld [vmem:[#allocation13 + $0x3c8] sm:$0xf] }
 0x94a   :  { %6447 = vmatpush.bf16.msrb.mxu1 %v10523_v33  ;;  %6434 = vmatpush.bf16.msrb.mxu0 %v10267_v50  ;;  %v10203_v56 = vor.u32 %v11628_v51, %v10200_v53  ;;  %v11593_v33 = vld [vmem:[#allocation13 + $0x324] sm:$0xf0] }
 0x94b   :  { %v10047_v5 = vor.u32 %v11593_v33, %v10046_v7  ;;  %v10654_v50 = vld [vmem:[#allocation13 + $0x7c8] sm:$0xf] }
 0x94c   :  { %v9982_v51 = vld [vmem:[#allocation13 + $0x288] sm:$0xf] }
 0x94d   :  { %6422 = vmatpush.bf16.msra.mxu3 %v9979_v58  ;;  %6409 = vmatpush.bf16.msra.mxu2 %v9723_v18  ;;  %v11620_v58 = vld [vmem:[#allocation13 + $0x404] sm:$0xf]  ;;  %v11577_v57 = vld [vmem:[#allocation13 + $0x2a4] sm:$0xf0] }
 0x94e   :  { %6448 = vmatpush.bf16.msrb.mxu1 %v10491_v39  ;;  %6435 = vmatpush.bf16.msrb.mxu0 %v10235_v12  ;;  %v10171_v62 = vor.u32 %v11620_v58, %v10168_v8  ;;  %v10622_v58 = vld [vmem:[#allocation13 + $0x788] sm:$0xf] }
 0x94f   :  { %v11737_v8 = vld [vmem:[#allocation13 + $0x7a4] sm:$0xf0] }
 0x950   :  { %v9694_v7 = vld [vmem:[#allocation13 + $0x48] sm:$0xf] }
 0x951   :  { %6423 = vmatpush.bf16.msra.mxu3 %v9947_v43  ;;  %6410 = vmatpush.bf16.msra.mxu2 %v9691_v29  ;;  %v10143_v43 = vor.u32 %v11617_v9, %v10142_v3  ;;  %v9983_v9 = vor.u32 %v11577_v57, %v9982_v51  ;;  %v11505_v33 = vld [vmem:[#allocation13 + $0x64] sm:$0xf0]  ;;  %v11597_v57 = vld [vmem:[#allocation13 + $0x34c] sm:$0xf] }
 0x952   :  { %6449 = vmatpush.bf16.msrb.mxu1 %v10459_v28  ;;  %6436 = vmatpush.bf16.msrb.mxu0 %v10203_v56  ;;  %v11529_v28 = vld [vmem:[#allocation13 + $0x124] sm:$0xf0]  ;;  %v9695_v38 = vor.u32 %v11505_v33, %v9694_v7  ;;  %v11573_v33 = vld [vmem:[#allocation13 + $0x28c] sm:$0xf] }
 0x953   :  { %v9791_v56 = vor.u32 %v11529_v28, %v9790_v42  ;;  %v10302_v42 = vld [vmem:[#allocation13 + $0x508] sm:$0xf] }
 0x954   :  { %v11657_v28 = vld [vmem:[#allocation13 + $0x524] sm:$0xf0] }
 0x955   :  { %6424 = vmatpush.bf16.msra.mxu3 %v9915_v45  ;;  %6411 = vmatpush.bf16.msra.mxu2 %v9659_v35  ;;  %v9887_v45 = vor.u32 %v11553_v21, %v9886_v20  ;;  %v11537_v35 = vld [vmem:[#allocation13 + $0x164] sm:$0xf0] }
 0x956   :  { %6450 = vmatpush.bf16.msrb.mxu1 %v10427_v61  ;;  %6437 = vmatpush.bf16.msrb.mxu0 %v10171_v62  ;;  %v9823_v40 = vor.u32 %v11537_v35, %v9822_v54  ;;  %v10655_v61 = vor.u32 %v11745_v41, %v10654_v50  ;;  %v11513_v21 = vld [vmem:[#allocation13 + $0xa4] sm:$0xf0]  ;;  %v9919_v54 = vor.u32 %v11561_v26, %v9918_v25  ;;  %v10656_v25 = vld [vmem:[#allocation13 + $0x7e8] sm:$0xf0] }
 0x957   :  { %v9662_v50 = vld [vmem:[#allocation13 + $0x8] sm:$0xf] }
 0x958   :  { %v11497_v41 = vld [vmem:[#allocation13 + $0x24] sm:$0xf0] }
 0x959   :  { %v9663_v51 = vor.u32 %v11497_v41, %v9662_v50 }
 0x995   :  { %v4718_v63 = vpop.f32.mrf.mxu0  ;;  %v4731_v11 = vpop.f32.mrf.mxu1 }
 0x996   :  { %v4719_v0 = vadd.f32 %v4718_v63, %v4356_v60 }
 0x998   :  { %v4732_v24 = vadd.f32 %v4731_v11, %v4719_v0  ;;  %v9758_v11 = vld [vmem:[#allocation13 + $0xc8] sm:$0xf] }
 0x999   :  { %v11521_v0 = vld [vmem:[#allocation13 + $0xe4] sm:$0xf0] }
 0x99a   :  { %v4788_v10 = vmax.f32 %v4732_v24, 0.0  ;;  %v4692_v13 = vpop.f32.mrf.mxu2  ;;  %v4705_v59 = vpop.f32.mrf.mxu3  ;;  %v11681_v24 = vld [vmem:[#allocation13 + $0x5e4] sm:$0xf0]  ;;  %v9759_v55 = vor.u32 %v11521_v0, %v9758_v11  ;;  %v11541_v11 = vld [vmem:[#allocation13 + $0x18c] sm:$0xf] }
 0x99b   :  { %v4693_v14 = vadd.f32 %v4692_v13, %v4355_v1  ;;  %v10398_v1 = vld [vmem:[#allocation13 + $0x5c8] sm:$0xf]  ;;  %v9856_v0 = vld [vmem:[#allocation13 + $0x1a8] sm:$0xf0] }
 0x99c   :  { %v12339_v15 = vpack.c.bf16 %v4788_v10, %v4788_v10  ;;  %v10623_v10 = vor.u32 %v11737_v8, %v10622_v58  ;;  %v9950_v13 = vld [vmem:[#allocation13 + $0x248] sm:$0xf]  ;;  %v10080_v58 = vld [vmem:[#allocation13 + $0x368] sm:$0xf0] }
 0x99d   :  { %v4706_v19 = vadd.f32 %v4705_v59, %v4693_v14  ;;  %v4720_v46 = vpop.f32.mrf.mxu0  ;;  %v4733_v18 = vpop.f32.mrf.mxu1  ;;  %v11569_v59 = vld [vmem:[#allocation13 + $0x264] sm:$0xf0] }
 0x99e   :  { %6373 = vmatmul.bf16.vlgmr.msrb.gmra.mxu3 %v12339_v15  ;;  %v10590_v14 = vld [vmem:[#allocation13 + $0x748] sm:$0xf] }
 0x99f   :  { %v4787_v22 = vmax.f32 %v4706_v19, 0.0  ;;  %6469 = vmatpush.bf16.msrb.mxu3 %v10143_v43  ;;  %v11729_v43 = vld [vmem:[#allocation13 + $0x764] sm:$0xf0]  ;;  %v10399_v19 = vor.u32 %v11681_v24, %v10398_v1  ;;  %v10083_v1 = vor.u32 %v11597_v57, %v10080_v58  ;;  %v10368_v57 = vld [vmem:[#allocation13 + $0x5a8] sm:$0xf0] }
 0x9a0   :  { %v9726_v46 = vld [vmem:[#allocation13 + $0x88] sm:$0xf]  ;;  %v10591_v23 = vor.u32 %v11729_v43, %v10590_v14 }
 0x9a1   :  { %v12342_v4 = vpack.c.bf16 %v4787_v22, %v4787_v22  ;;  %v10366_v22 = vld [vmem:[#allocation13 + $0x588] sm:$0xf] }
 0x9a2   :  { %v4694_v52 = vpop.f32.mrf.mxu2  ;;  %v4707_v29 = vpop.f32.mrf.mxu3  ;;  %v10462_v24 = vld [vmem:[#allocation13 + $0x648] sm:$0xf] }
 0x9a3   :  { %6470 = vmatpush.bf16.msrb.mxu3 %v10111_v2  ;;  %6360 = vmatmul.bf16.vlgmr.msrb.gmra.mxu2 %v12342_v4  ;;  %v11673_v2 = vld [vmem:[#allocation13 + $0x5a4] sm:$0xf0]  ;;  %v9727_v29 = vor.u32 %v11513_v21, %v9726_v46  ;;  %v9824_v46 = vld [vmem:[#allocation13 + $0x168] sm:$0xf0] }
 0x9a4   :  { %6456 = vmatpush.bf16.msrb.mxu2 %v9887_v45  ;;  %v9951_v45 = vor.u32 %v11569_v59, %v9950_v13  ;;  %v11721_v52 = vld [vmem:[#allocation13 + $0x724] sm:$0xf0]  ;;  %v10048_v13 = vld [vmem:[#allocation13 + $0x328] sm:$0xf0]  ;;  %v9859_v59 = vor.u32 %v11541_v11, %v9856_v0 }
 0x9a5   :  { %v4770_v6 = vpop.f32.mrf.mxu0  ;;  %v4783_v34 = vpop.f32.mrf.mxu1  ;;  %v10559_v35 = vor.u32 %v11721_v52, %v10558_v27  ;;  %v10238_v14 = vld [vmem:[#allocation13 + $0x488] sm:$0xf]  ;;  %v10560_v11 = vld [vmem:[#allocation13 + $0x728] sm:$0xf0] }
 0x9a6   :  { %v4771_v17 = vadd.f32 %v4770_v6, %v4358_v30  ;;  %v10367_v30 = vor.u32 %v11673_v2, %v10366_v22  ;;  %v10334_v6 = vld [vmem:[#allocation13 + $0x548] sm:$0xf]  ;;  %v11581_v22 = vld [vmem:[#allocation13 + $0x2cc] sm:$0xf] }
 0x9a7   :  { %6471 = vmatpush.bf16.msrb.mxu3 %v10079_v31  ;;  %v11613_v31 = vld [vmem:[#allocation13 + $0x3cc] sm:$0xf]  ;;  %v11641_v43 = vld [vmem:[#allocation13 + $0x4a4] sm:$0xf0] }
 0x9a8   :  { %v4784_v39 = vadd.f32 %v4783_v34, %v4771_v17  ;;  %6457 = vmatpush.bf16.msrb.mxu2 %v9855_v32  ;;  %v10144_v32 = vld [vmem:[#allocation13 + $0x3e8] sm:$0xf0]  ;;  %v11665_v34 = vld [vmem:[#allocation13 + $0x564] sm:$0xf0]  ;;  %v10239_v2 = vor.u32 %v11641_v43, %v10238_v14 }
 0x9a9   :  { %v10147_v17 = vor.u32 %v11613_v31, %v10144_v32  ;;  %v11689_v21 = vld [vmem:[#allocation13 + $0x624] sm:$0xf0]  ;;  %v9792_v31 = vld [vmem:[#allocation13 + $0x128] sm:$0xf0] }
 0x9aa   :  { %v4790_v44 = vmax.f32 %v4784_v39, 0.0  ;;  %v4744_v47 = vpop.f32.mrf.mxu2  ;;  %v4757_v12 = vpop.f32.mrf.mxu3  ;;  %v10335_v39 = vor.u32 %v11665_v34, %v10334_v6  ;;  %v10206_v27 = vld [vmem:[#allocation13 + $0x448] sm:$0xf]  ;;  %v9984_v34 = vld [vmem:[#allocation13 + $0x2a8] sm:$0xf0] }
 0x9ab   :  { %6472 = vmatpush.bf16.msrb.mxu3 %v10047_v5  ;;  %v4745_v48 = vadd.f32 %v4744_v47, %v4357_v36  ;;  %v10526_v5 = vld [vmem:[#allocation13 + $0x6c8] sm:$0xf]  ;;  %v11549_v47 = vld [vmem:[#allocation13 + $0x1cc] sm:$0xf]  ;;  %v9987_v50 = vor.u32 %v11573_v33, %v9984_v34  ;;  %v10086_v33 = vld [vmem:[#allocation13 + $0x350] sm:$0xf] }
 0x9ac   :  { %v12347_v53 = vpack.c.bf16 %v4790_v44, %v4790_v44  ;;  %6458 = vmatpush.bf16.msrb.mxu2 %v9823_v40  ;;  %v11713_v36 = vld [vmem:[#allocation13 + $0x6e4] sm:$0xf0]  ;;  %v11605_v40 = vld [vmem:[#allocation13 + $0x38c] sm:$0xf] }
 0x9ad   :  { %v4758_v60 = vadd.f32 %v4757_v12, %v4745_v48  ;;  %v4772_v62 = vpop.f32.mrf.mxu0  ;;  %v4785_v63 = vpop.f32.mrf.mxu1  ;;  %v10527_v44 = vor.u32 %v11713_v36, %v10526_v5  ;;  %v9888_v12 = vld [vmem:[#allocation13 + $0x1e8] sm:$0xf0]  ;;  %v10115_v48 = vor.u32 %v11605_v40, %v10112_v37  ;;  %v11633_v52 = vld [vmem:[#allocation13 + $0x464] sm:$0xf0] }
 0x9ae   :  { %6399 = vmatmul.bf16.vlgmr.msra.gmra.mxu1 %v12347_v53  ;;  %6425 = vmatmul.bf16.vlgmr.msra.gmra.mxu3 %v12339_v15  ;;  %v9891_v8 = vor.u32 %v11549_v47, %v9888_v12  ;;  %v11649_v62 = vld [vmem:[#allocation13 + $0x4e4] sm:$0xf0]  ;;  %v10207_v6 = vor.u32 %v11633_v52, %v10206_v27  ;;  %v11677_v40 = vld [vmem:[#allocation13 + $0x5cc] sm:$0xf]  ;;  %v9894_v27 = vld [vmem:[#allocation13 + $0x1d0] sm:$0xf] }
 0x9af   :  { %v4789_v3 = vmax.f32 %v4758_v60, 0.0  ;;  %6473 = vmatpush.bf16.msrb.mxu3 %v10015_v49  ;;  %6495 = vmatpush.bf16.msra.mxu1 %v10655_v61  ;;  %v10494_v49 = vld [vmem:[#allocation13 + $0x688] sm:$0xf]  ;;  %v10400_v37 = vld [vmem:[#allocation13 + $0x5e8] sm:$0xf0] }
 0x9b0   :  { %6459 = vmatpush.bf16.msrb.mxu2 %v9791_v56  ;;  %v11705_v61 = vld [vmem:[#allocation13 + $0x6a4] sm:$0xf0]  ;;  %v10303_v56 = vor.u32 %v11657_v28, %v10302_v42  ;;  %v11565_v42 = vld [vmem:[#allocation13 + $0x24c] sm:$0xf]  ;;  %v11554_v52 = vld [vmem:[#allocation13 + $0x1ec] sm:$0xf0] }
 0x9b1   :  { %v12351_v16 = vpack.c.bf16 %v4789_v3, %v4789_v3  ;;  %v10270_v60 = vld [vmem:[#allocation13 + $0x4c8] sm:$0xf]  ;;  %v10495_v63 = vor.u32 %v11705_v61, %v10494_v49  ;;  %v11725_v47 = vld [vmem:[#allocation13 + $0x74c] sm:$0xf]  ;;  %v10403_v49 = vor.u32 %v11677_v40, %v10400_v37  ;;  %v9895_v34 = vor.u32 %v11554_v52, %v9894_v27 }
 0x9b2   :  { %v4746_v18 = vpop.f32.mrf.mxu2  ;;  %v4759_v20 = vpop.f32.mrf.mxu3  ;;  %v11697_v3 = vld [vmem:[#allocation13 + $0x664] sm:$0xf0]  ;;  %v10592_v12 = vld [vmem:[#allocation13 + $0x768] sm:$0xf0] }
 0x9b3   :  { %6474 = vmatpush.bf16.msrb.mxu3 %v9983_v9  ;;  %6496 = vmatpush.bf16.msra.mxu1 %v10623_v10  ;;  %v10271_v9 = vor.u32 %v11649_v62, %v10270_v60  ;;  %v11589_v10 = vld [vmem:[#allocation13 + $0x30c] sm:$0xf]  ;;  %v10430_v20 = vld [vmem:[#allocation13 + $0x608] sm:$0xf] }
 0x9b4   :  { %6386 = vmatmul.bf16.vlgmr.msra.gmra.mxu0 %v12351_v16  ;;  %6412 = vmatmul.bf16.vlgmr.msra.gmra.mxu2 %v12342_v4  ;;  %v10051_v18 = vor.u32 %v11589_v10, %v10048_v13  ;;  %v10174_v5 = vld [vmem:[#allocation13 + $0x408] sm:$0xf]  ;;  %v11509_v61 = vld [vmem:[#allocation13 + $0x8c] sm:$0xf] }
 0x9b5   :  { %6460 = vmatpush.bf16.msrb.mxu2 %v9759_v55  ;;  %6482 = vmatpush.bf16.msra.mxu0 %v10399_v19  ;;  %v10463_v55 = vor.u32 %v11697_v3, %v10462_v24  ;;  %v11533_v19 = vld [vmem:[#allocation13 + $0x14c] sm:$0xf]  ;;  %v11625_v36 = vld [vmem:[#allocation13 + $0x424] sm:$0xf0]  ;;  %v10150_v24 = vld [vmem:[#allocation13 + $0x3d0] sm:$0xf] }
 0x9b6   :  { %v9827_v26 = vor.u32 %v11533_v19, %v9824_v46  ;;  %v10175_v28 = vor.u32 %v11625_v36, %v10174_v5  ;;  %v11557_v60 = vld [vmem:[#allocation13 + $0x20c] sm:$0xf]  ;;  %v11618_v3 = vld [vmem:[#allocation13 + $0x3ec] sm:$0xf0] }
 0x9b7   :  { %6475 = vmatpush.bf16.msrb.mxu3 %v9951_v45  ;;  %6497 = vmatpush.bf16.msra.mxu1 %v10591_v23  ;;  %v10016_v45 = vld [vmem:[#allocation13 + $0x2e8] sm:$0xf0]  ;;  %v9862_v5 = vld [vmem:[#allocation13 + $0x190] sm:$0xf] }
 0x9b8   :  { %v11741_v23 = vld [vmem:[#allocation13 + $0x7cc] sm:$0xf]  ;;  %v10019_v32 = vor.u32 %v11581_v22, %v10016_v45  ;;  %v11610_v22 = vld [vmem:[#allocation13 + $0x3ac] sm:$0xf0] }
 0x9b9   :  { %6461 = vmatpush.bf16.msrb.mxu2 %v9727_v29  ;;  %6483 = vmatpush.bf16.msra.mxu0 %v10367_v30  ;;  %v10431_v29 = vor.u32 %v11689_v21, %v10430_v20  ;;  %v11525_v30 = vld [vmem:[#allocation13 + $0x10c] sm:$0xf]  ;;  %v10659_v7 = vor.u32 %v11741_v23, %v10656_v25  ;;  %v10118_v21 = vld [vmem:[#allocation13 + $0x390] sm:$0xf] }
 0x9ba   :  { %v9920_v62 = vld [vmem:[#allocation13 + $0x228] sm:$0xf0]  ;;  %v11546_v36 = vld [vmem:[#allocation13 + $0x1ac] sm:$0xf0] }
 0x9bb   :  { %6476 = vmatpush.bf16.msrb.mxu3 %v9919_v54  ;;  %6498 = vmatpush.bf16.msra.mxu1 %v10559_v35  ;;  %v11733_v54 = vld [vmem:[#allocation13 + $0x78c] sm:$0xf]  ;;  %v9923_v14 = vor.u32 %v11557_v60, %v9920_v62  ;;  %v11746_v60 = vld [vmem:[#allocation13 + $0x7ec] sm:$0xf0] }
 0x9bc   :  { %v10624_v35 = vld [vmem:[#allocation13 + $0x7a8] sm:$0xf0] }
 0x9bd   :  { %6462 = vmatpush.bf16.msrb.mxu2 %v9695_v38  ;;  %6484 = vmatpush.bf16.msra.mxu0 %v10335_v39  ;;  %v11517_v38 = vld [vmem:[#allocation13 + $0xcc] sm:$0xf]  ;;  %v10627_v41 = vor.u32 %v11733_v54, %v10624_v35 }
 0x9be   :  { %6451 = vmatmul.bf16.vlgmr.msrb.gmra.mxu1 %v12347_v53  ;;  %6477 = vmatmul.bf16.vlgmr.msrb.gmra.mxu3 %v12339_v15  ;;  %v9760_v39 = vld [vmem:[#allocation13 + $0xe8] sm:$0xf0] }
 0x9bf   :  { %6521 = vmatpush.bf16.msra.mxu3 %v10147_v17  ;;  %6499 = vmatpush.bf16.msra.mxu1 %v10527_v44  ;;  %v9795_v17 = vor.u32 %v11525_v30, %v9792_v31  ;;  %v9952_v44 = vld [vmem:[#allocation13 + $0x268] sm:$0xf0] }
 0x9c0   :  { %v9955_v58 = vor.u32 %v11565_v42, %v9952_v44  ;;  %v9696_v10 = vld [vmem:[#allocation13 + $0x68] sm:$0xf0]  ;;  %v9863_v42 = vor.u32 %v11546_v36, %v9862_v5  ;;  %v11722_v5 = vld [vmem:[#allocation13 + $0x72c] sm:$0xf0] }
 0x9c1   :  { %6463 = vmatpush.bf16.msrb.mxu2 %v9663_v51  ;;  %6485 = vmatpush.bf16.msra.mxu0 %v10303_v56  ;;  %v9728_v51 = vld [vmem:[#allocation13 + $0xa8] sm:$0xf0] }
 0x9c2   :  { %v11669_v56 = vld [vmem:[#allocation13 + $0x58c] sm:$0xf]  ;;  %v9731_v0 = vor.u32 %v11509_v61, %v9728_v51 }
 0x9c3   :  { %6522 = vmatpush.bf16.msra.mxu3 %v10115_v48  ;;  %6500 = vmatpush.bf16.msra.mxu1 %v10495_v63  ;;  %v9763_v48 = vor.u32 %v11517_v38, %v9760_v39  ;;  %v11717_v63 = vld [vmem:[#allocation13 + $0x70c] sm:$0xf] }
 0x9c4   :  { %6438 = vmatmul.bf16.vlgmr.msrb.gmra.mxu0 %v12351_v16  ;;  %6464 = vmatmul.bf16.vlgmr.msrb.gmra.mxu2 %v12342_v4  ;;  %v11661_v13 = vld [vmem:[#allocation13 + $0x54c] sm:$0xf]  ;;  %v10563_v43 = vor.u32 %v11717_v63, %v10560_v11 }
 0x9c5   :  { %6508 = vmatpush.bf16.msra.mxu2 %v9891_v8  ;;  %6486 = vmatpush.bf16.msra.mxu0 %v10271_v9  ;;  %v10595_v8 = vor.u32 %v11725_v47, %v10592_v12  ;;  %v11501_v9 = vld [vmem:[#allocation13 + $0x4c] sm:$0xf]  ;;  %v9830_v12 = vld [vmem:[#allocation13 + $0x150] sm:$0xf] }
 0x9c6   :  { %v11709_v19 = vld [vmem:[#allocation13 + $0x6cc] sm:$0xf] }
 0x9c7   :  { %6523 = vmatpush.bf16.msra.mxu3 %v10083_v1  ;;  %6501 = vmatpush.bf16.msra.mxu1 %v10463_v55  ;;  %v10371_v1 = vor.u32 %v11669_v56, %v10368_v57  ;;  %v10151_v55 = vor.u32 %v11618_v3, %v10150_v24  ;;  %v10528_v46 = vld [vmem:[#allocation13 + $0x6e8] sm:$0xf0]  ;;  %v10022_v56 = vld [vmem:[#allocation13 + $0x2d0] sm:$0xf] }
 0x9c8   :  { %v9664_v45 = vld [vmem:[#allocation13 + $0x28] sm:$0xf0]  ;;  %v11530_v24 = vld [vmem:[#allocation13 + $0x12c] sm:$0xf0] }
 0x9c9   :  { %6509 = vmatpush.bf16.msra.mxu2 %v9859_v59  ;;  %6487 = vmatpush.bf16.msra.mxu0 %v10239_v2  ;;  %v10336_v59 = vld [vmem:[#allocation13 + $0x568] sm:$0xf0] }
 0x9ca   :  { %v10339_v20 = vor.u32 %v11661_v13, %v10336_v59  ;;  %v11493_v2 = vld [vmem:[#allocation13 + $0xc] sm:$0xf]  ;;  %v11578_v59 = vld [vmem:[#allocation13 + $0x2ac] sm:$0xf0] }
 0x9cb   :  { %6524 = vmatpush.bf16.msra.mxu3 %v10051_v18  ;;  %6502 = vmatpush.bf16.msra.mxu1 %v10431_v29  ;;  %v9699_v18 = vor.u32 %v11501_v9, %v9696_v10  ;;  %v11653_v23 = vld [vmem:[#allocation13 + $0x50c] sm:$0xf]  ;;  %v10119_v29 = vor.u32 %v11610_v22, %v10118_v21  ;;  %v9990_v10 = vld [vmem:[#allocation13 + $0x290] sm:$0xf] }
 0x9cc   :  { %v10304_v25 = vld [vmem:[#allocation13 + $0x528] sm:$0xf0]  ;;  %v10406_v21 = vld [vmem:[#allocation13 + $0x5d0] sm:$0xf] }
 0x9cd   :  { %6510 = vmatpush.bf16.msra.mxu2 %v9827_v26  ;;  %6488 = vmatpush.bf16.msra.mxu0 %v10207_v6  ;;  %v10531_v26 = vor.u32 %v11709_v19, %v10528_v46  ;;  %v11701_v30 = vld [vmem:[#allocation13 + $0x68c] sm:$0xf]  ;;  %v11602_v6 = vld [vmem:[#allocation13 + $0x36c] sm:$0xf0] }
 0x9ce   :  { %6503 = vmatmul.bf16.vlgmr.msra.gmra.mxu1 %v12347_v53  ;;  %v10496_v31 = vld [vmem:[#allocation13 + $0x6a8] sm:$0xf0]  ;;  %v10087_v38 = vor.u32 %v11602_v6, %v10086_v33  ;;  %v11682_v22 = vld [vmem:[#allocation13 + $0x5ec] sm:$0xf0] }
 0x9cf   :  { %6525 = vmatpush.bf16.msra.mxu3 %v10019_v32  ;;  %6547 = vmatpush.bf16.msrb.mxu1 %v10659_v7  ;;  %v9667_v32 = vor.u32 %v11493_v2, %v9664_v45  ;;  %v10307_v7 = vor.u32 %v11653_v23, %v10304_v25  ;;  %v11645_v54 = vld [vmem:[#allocation13 + $0x4cc] sm:$0xf]  ;;  %v9991_v2 = vor.u32 %v11578_v59, %v9990_v10  ;;  %v9958_v25 = vld [vmem:[#allocation13 + $0x250] sm:$0xf]  ;;  %v11598_v10 = vld [vmem:[#allocation13 + $0x354] sm:$0xf] }
 0x9d0   :  { %v10272_v35 = vld [vmem:[#allocation13 + $0x4e8] sm:$0xf0]  ;;  %v10407_v52 = vor.u32 %v11682_v22, %v10406_v21  ;;  %v11674_v33 = vld [vmem:[#allocation13 + $0x5ac] sm:$0xf0]  ;;  %v10088_v59 = vld [vmem:[#allocation13 + $0x370] sm:$0xf0] }
 0x9d1   :  { %6511 = vmatpush.bf16.msra.mxu2 %v9795_v17  ;;  %6489 = vmatpush.bf16.msra.mxu0 %v10175_v28  ;;  %v10499_v17 = vor.u32 %v11701_v30, %v10496_v31  ;;  %v11693_v39 = vld [vmem:[#allocation13 + $0x64c] sm:$0xf]  ;;  %v10275_v37 = vor.u32 %v11645_v54, %v10272_v35  ;;  %v11730_v30 = vld [vmem:[#allocation13 + $0x76c] sm:$0xf0] }
 0x9d2   :  { %v10464_v40 = vld [vmem:[#allocation13 + $0x668] sm:$0xf0]  ;;  %v9734_v31 = vld [vmem:[#allocation13 + $0x90] sm:$0xf] }
 0x9d3   :  { %6526 = vmatpush.bf16.msra.mxu3 %v9987_v50  ;;  %6548 = vmatpush.bf16.msrb.mxu1 %v10627_v41  ;;  %v10054_v50 = vld [vmem:[#allocation13 + $0x310] sm:$0xf]  ;;  %v11637_v28 = vld [vmem:[#allocation13 + $0x48c] sm:$0xf]  ;;  %v10467_v47 = vor.u32 %v11693_v39, %v10464_v40  ;;  %v11614_v39 = vld [vmem:[#allocation13 + $0x3d4] sm:$0xf] }
 0x9d4   :  { %6490 = vmatmul.bf16.vlgmr.msra.gmra.mxu0 %v12351_v16  ;;  %v11594_v41 = vld [vmem:[#allocation13 + $0x32c] sm:$0xf0]  ;;  %v10240_v44 = vld [vmem:[#allocation13 + $0x4a8] sm:$0xf0]  ;;  %v10152_v40 = vld [vmem:[#allocation13 + $0x3f0] sm:$0xf0] }
 0x9d5   :  { %6512 = vmatpush.bf16.msra.mxu2 %v9763_v48  ;;  %6534 = vmatpush.bf16.msrb.mxu0 %v10403_v49  ;;  %v11538_v48 = vld [vmem:[#allocation13 + $0x16c] sm:$0xf0]  ;;  %v10055_v49 = vor.u32 %v11594_v41, %v10054_v50  ;;  %v11685_v61 = vld [vmem:[#allocation13 + $0x60c] sm:$0xf]  ;;  %v10243_v57 = vor.u32 %v11637_v28, %v10240_v44 }
 0x9d6   :  { %v10432_v51 = vld [vmem:[#allocation13 + $0x628] sm:$0xf0]  ;;  %v9831_v62 = vor.u32 %v11538_v48, %v9830_v12  ;;  %v11562_v35 = vld [vmem:[#allocation13 + $0x22c] sm:$0xf0] }
 0x9d7   :  { %6527 = vmatpush.bf16.msra.mxu3 %v9955_v58  ;;  %6549 = vmatpush.bf16.msrb.mxu1 %v10595_v8  ;;  %v11586_v58 = vld [vmem:[#allocation13 + $0x2ec] sm:$0xf0]  ;;  %v11629_v63 = vld [vmem:[#allocation13 + $0x44c] sm:$0xf] }
 0x9d8   :  { %v10662_v8 = vld [vmem:[#allocation13 + $0x7d0] sm:$0xf]  ;;  %v10208_v11 = vld [vmem:[#allocation13 + $0x468] sm:$0xf0]  ;;  %v10023_v3 = vor.u32 %v11586_v58, %v10022_v56  ;;  %v10120_v56 = vld [vmem:[#allocation13 + $0x3b0] sm:$0xf0] }
 0x9d9   :  { %6513 = vmatpush.bf16.msra.mxu2 %v9731_v0  ;;  %6535 = vmatpush.bf16.msrb.mxu0 %v10371_v1  ;;  %v10435_v0 = vor.u32 %v11685_v61, %v10432_v51  ;;  %v9798_v1 = vld [vmem:[#allocation13 + $0x110] sm:$0xf]  ;;  %v10663_v9 = vor.u32 %v11746_v60, %v10662_v8  ;;  %v10211_v13 = vor.u32 %v11629_v63, %v10208_v11  ;;  %v11621_v19 = vld [vmem:[#allocation13 + $0x40c] sm:$0xf]  ;;  %v11606_v51 = vld [vmem:[#allocation13 + $0x394] sm:$0xf] }
 0x9da   :  { %v10176_v46 = vld [vmem:[#allocation13 + $0x428] sm:$0xf0]  ;;  %v11506_v50 = vld [vmem:[#allocation13 + $0x6c] sm:$0xf0]  ;;  %v9896_v63 = vld [vmem:[#allocation13 + $0x1f0] sm:$0xf0] }
 0x9db   :  { %6528 = vmatpush.bf16.msra.mxu3 %v9923_v14  ;;  %6550 = vmatpush.bf16.msrb.mxu1 %v10563_v43  ;;  %v10630_v14 = vld [vmem:[#allocation13 + $0x790] sm:$0xf]  ;;  %v10179_v23 = vor.u32 %v11621_v19, %v10176_v46  ;;  %v9864_v19 = vld [vmem:[#allocation13 + $0x1b0] sm:$0xf0] }
 0x9dc   :  { %v11738_v43 = vld [vmem:[#allocation13 + $0x7ac] sm:$0xf0] }
 0x9dd   :  { %6514 = vmatpush.bf16.msra.mxu2 %v9699_v18  ;;  %6536 = vmatpush.bf16.msrb.mxu0 %v10339_v20  ;;  %v9766_v18 = vld [vmem:[#allocation13 + $0xd0] sm:$0xf]  ;;  %v10631_v45 = vor.u32 %v11738_v43, %v10630_v14 }
 0x9de   :  { %6529 = vmatmul.bf16.vlgmr.msra.gmra.mxu3 %v12339_v15  ;;  %v11522_v20 = vld [vmem:[#allocation13 + $0xec] sm:$0xf0] }
 0x9df   :  { %6573 = vmatpush.bf16.msrb.mxu3 %v10151_v55  ;;  %6551 = vmatpush.bf16.msrb.mxu1 %v10531_v26  ;;  %v9799_v55 = vor.u32 %v11530_v24, %v9798_v1  ;;  %v11570_v26 = vld [vmem:[#allocation13 + $0x26c] sm:$0xf0]  ;;  %v9767_v27 = vor.u32 %v11522_v20, %v9766_v18  ;;  %v10091_v18 = vor.u32 %v11598_v10, %v10088_v59  ;;  %v10376_v10 = vld [vmem:[#allocation13 + $0x5b0] sm:$0xf0] }
 0x9e0   :  { %v9959_v6 = vor.u32 %v11570_v26, %v9958_v25  ;;  %v10342_v41 = vld [vmem:[#allocation13 + $0x550] sm:$0xf]  ;;  %v11558_v59 = vld [vmem:[#allocation13 + $0x214] sm:$0xf] }
 0x9e1   :  { %6515 = vmatpush.bf16.msra.mxu2 %v9667_v32  ;;  %6537 = vmatpush.bf16.msrb.mxu0 %v10307_v7  ;;  %v11514_v32 = vld [vmem:[#allocation13 + $0xac] sm:$0xf0] }
 0x9e2   :  { %v10374_v7 = vld [vmem:[#allocation13 + $0x590] sm:$0xf]  ;;  %v9735_v36 = vor.u32 %v11514_v32, %v9734_v31 }
 0x9e3   :  { %6574 = vmatpush.bf16.msrb.mxu3 %v10119_v29  ;;  %6552 = vmatpush.bf16.msrb.mxu1 %v10499_v17  ;;  %v10598_v29 = vld [vmem:[#allocation13 + $0x750] sm:$0xf] }
 0x9e4   :  { %6516 = vmatmul.bf16.vlgmr.msra.gmra.mxu2 %v12342_v4  ;;  %v10599_v54 = vor.u32 %v11730_v30, %v10598_v29  ;;  %v10566_v17 = vld [vmem:[#allocation13 + $0x710] sm:$0xf] }
 0x9e5   :  { %6560 = vmatpush.bf16.msrb.mxu2 %v9895_v34  ;;  %6538 = vmatpush.bf16.msrb.mxu0 %v10275_v37  ;;  %v9926_v34 = vld [vmem:[#allocation13 + $0x210] sm:$0xf]  ;;  %v10567_v44 = vor.u32 %v11722_v5, %v10566_v17 }
 0x9e6   :  { %v9702_v37 = vld [vmem:[#allocation13 + $0x50] sm:$0xf]  ;;  %v9927_v28 = vor.u32 %v11562_v35, %v9926_v34  ;;  %v10664_v35 = vld [vmem:[#allocation13 + $0x7f0] sm:$0xf0] }
 0x9e7   :  { %6575 = vmatpush.bf16.msrb.mxu3 %v10087_v38  ;;  %6553 = vmatpush.bf16.msrb.mxu1 %v10467_v47  ;;  %v10375_v38 = vor.u32 %v11674_v33, %v10374_v7  ;;  %v10155_v47 = vor.u32 %v11614_v39, %v10152_v40  ;;  %v10534_v12 = vld [vmem:[#allocation13 + $0x6d0] sm:$0xf]  ;;  %v11582_v33 = vld [vmem:[#allocation13 + $0x2d4] sm:$0xf] }
 0x9e8   :  { %v11714_v48 = vld [vmem:[#allocation13 + $0x6ec] sm:$0xf0] }
 0x9e9   :  { %6561 = vmatpush.bf16.msrb.mxu2 %v9863_v42  ;;  %6539 = vmatpush.bf16.msrb.mxu0 %v10243_v57  ;;  %v11666_v42 = vld [vmem:[#allocation13 + $0x56c] sm:$0xf0]  ;;  %v10535_v11 = vor.u32 %v11714_v48, %v10534_v12 }
 0x9ea   :  { %v10343_v61 = vor.u32 %v11666_v42, %v10342_v41  ;;  %v9670_v57 = vld [vmem:[#allocation13 + $0x10] sm:$0xf]  ;;  %v9992_v41 = vld [vmem:[#allocation13 + $0x2b0] sm:$0xf0] }
 0x9eb   :  { %6576 = vmatpush.bf16.msrb.mxu3 %v10055_v49  ;;  %6554 = vmatpush.bf16.msrb.mxu1 %v10435_v0  ;;  %v9703_v49 = vor.u32 %v11506_v50, %v9702_v37  ;;  %v11498_v58 = vld [vmem:[#allocation13 + $0x2c] sm:$0xf0]  ;;  %v10123_v0 = vor.u32 %v11606_v51, %v10120_v56  ;;  %v11574_v50 = vld [vmem:[#allocation13 + $0x294] sm:$0xf] }
 0x9ec   :  { %v10310_v8 = vld [vmem:[#allocation13 + $0x510] sm:$0xf]  ;;  %v9671_v1 = vor.u32 %v11498_v58, %v9670_v57  ;;  %v11678_v51 = vld [vmem:[#allocation13 + $0x5d4] sm:$0xf]  ;;  %v9995_v57 = vor.u32 %v11574_v50, %v9992_v41  ;;  %v10094_v50 = vld [vmem:[#allocation13 + $0x358] sm:$0xf] }
 0x9ed   :  { %6562 = vmatpush.bf16.msrb.mxu2 %v9831_v62  ;;  %6540 = vmatpush.bf16.msrb.mxu0 %v10211_v13  ;;  %v11658_v60 = vld [vmem:[#allocation13 + $0x52c] sm:$0xf0]  ;;  %v11550_v62 = vld [vmem:[#allocation13 + $0x1d4] sm:$0xf] }
 0x9ee   :  { %6555 = vmatmul.bf16.vlgmr.msrb.gmra.mxu1 %v12347_v53  ;;  %v10311_v24 = vor.u32 %v11658_v60, %v10310_v8  ;;  %v9899_v13 = vor.u32 %v11550_v62, %v9896_v63  ;;  %v10278_v14 = vld [vmem:[#allocation13 + $0x4d0] sm:$0xf]  ;;  %v10408_v56 = vld [vmem:[#allocation13 + $0x5f0] sm:$0xf0] }
 0x9ef   :  { %6577 = vmatpush.bf16.msrb.mxu3 %v10023_v3  ;;  %6599 = vmatpush.bf16.msra.mxu1 %v10663_v9  ;;  %v10502_v3 = vld [vmem:[#allocation13 + $0x690] sm:$0xf]  ;;  %v11566_v62 = vld [vmem:[#allocation13 + $0x254] sm:$0xf] }
 0x9f0   :  { %v11706_v9 = vld [vmem:[#allocation13 + $0x6ac] sm:$0xf0]  ;;  %v9960_v63 = vld [vmem:[#allocation13 + $0x270] sm:$0xf0] }
 0x9f1   :  { %6563 = vmatpush.bf16.msrb.mxu2 %v9799_v55  ;;  %6541 = vmatpush.bf16.msrb.mxu0 %v10179_v23  ;;  %v11650_v43 = vld [vmem:[#allocation13 + $0x4ec] sm:$0xf0]  ;;  %v11542_v55 = vld [vmem:[#allocation13 + $0x194] sm:$0xf]  ;;  %v10503_v46 = vor.u32 %v11706_v9, %v10502_v3 }
 0x9f2   :  { %v10279_v20 = vor.u32 %v11650_v43, %v10278_v14  ;;  %v10470_v21 = vld [vmem:[#allocation13 + $0x650] sm:$0xf]  ;;  %v10056_v23 = vld [vmem:[#allocation13 + $0x330] sm:$0xf0] }
 0x9f3   :  { %6578 = vmatpush.bf16.msrb.mxu3 %v9991_v2  ;;  %6600 = vmatpush.bf16.msra.mxu1 %v10631_v45  ;;  %v11698_v22 = vld [vmem:[#allocation13 + $0x66c] sm:$0xf0]  ;;  %v11590_v2 = vld [vmem:[#allocation13 + $0x314] sm:$0xf]  ;;  %v9867_v45 = vor.u32 %v11542_v55, %v9864_v19 }
 0x9f4   :  { %6542 = vmatmul.bf16.vlgmr.msrb.gmra.mxu0 %v12351_v16  ;;  %v10246_v25 = vld [vmem:[#allocation13 + $0x490] sm:$0xf]  ;;  %v10471_v29 = vor.u32 %v11698_v22, %v10470_v21  ;;  %v10059_v31 = vor.u32 %v11590_v2, %v10056_v23  ;;  %v9736_v3 = vld [vmem:[#allocation13 + $0xb0] sm:$0xf0]  ;;  %v11619_v21 = vld [vmem:[#allocation13 + $0x3f4] sm:$0xf0] }
 0x9f5   :  { %6564 = vmatpush.bf16.msrb.mxu2 %v9767_v27  ;;  %6586 = vmatpush.bf16.msra.mxu0 %v10407_v52  ;;  %v11642_v26 = vld [vmem:[#allocation13 + $0x4ac] sm:$0xf0]  ;;  %v11534_v27 = vld [vmem:[#allocation13 + $0x154] sm:$0xf] }
 0x9f6   :  { %v9832_v52 = vld [vmem:[#allocation13 + $0x170] sm:$0xf0]  ;;  %v10438_v30 = vld [vmem:[#allocation13 + $0x610] sm:$0xf]  ;;  %v10247_v32 = vor.u32 %v11642_v26, %v10246_v25 }
 0x9f7   :  { %6579 = vmatpush.bf16.msrb.mxu3 %v9959_v6  ;;  %6601 = vmatpush.bf16.msra.mxu1 %v10599_v54  ;;  %v11690_v7 = vld [vmem:[#allocation13 + $0x62c] sm:$0xf0]  ;;  %v10024_v6 = vld [vmem:[#allocation13 + $0x2f0] sm:$0xf0]  ;;  %v9835_v34 = vor.u32 %v11534_v27, %v9832_v52 }
 0x9f8   :  { %v11742_v54 = vld [vmem:[#allocation13 + $0x7d4] sm:$0xf]  ;;  %v10214_v17 = vld [vmem:[#allocation13 + $0x450] sm:$0xf]  ;;  %v10439_v39 = vor.u32 %v11690_v7, %v10438_v30  ;;  %v10027_v40 = vor.u32 %v11582_v33, %v10024_v6  ;;  %v11611_v7 = vld [vmem:[#allocation13 + $0x3b4] sm:$0xf0] }
 0x9f9   :  { %6565 = vmatpush.bf16.msrb.mxu2 %v9735_v36  ;;  %6587 = vmatpush.bf16.msra.mxu0 %v10375_v38  ;;  %v11634_v5 = vld [vmem:[#allocation13 + $0x46c] sm:$0xf0]  ;;  %v11526_v36 = vld [vmem:[#allocation13 + $0x114] sm:$0xf]  ;;  %v10667_v37 = vor.u32 %v11742_v54, %v10664_v35  ;;  %v9902_v35 = vld [vmem:[#allocation13 + $0x1d8] sm:$0xf] }
 0x9fa   :  { %v9800_v38 = vld [vmem:[#allocation13 + $0x130] sm:$0xf0]  ;;  %v10215_v42 = vor.u32 %v11634_v5, %v10214_v17  ;;  %v10182_v12 = vld [vmem:[#allocation13 + $0x410] sm:$0xf]  ;;  %v11555_v17 = vld [vmem:[#allocation13 + $0x1f4] sm:$0xf0] }
 0x9fb   :  { %6580 = vmatpush.bf16.msrb.mxu3 %v9927_v28  ;;  %6602 = vmatpush.bf16.msra.mxu1 %v10567_v44  ;;  %v9803_v28 = vor.u32 %v11526_v36, %v9800_v38  ;;  %v11734_v44 = vld [vmem:[#allocation13 + $0x794] sm:$0xf]  ;;  %v11626_v48 = vld [vmem:[#allocation13 + $0x42c] sm:$0xf0]  ;;  %v9903_v41 = vor.u32 %v11555_v17, %v9902_v35  ;;  %v11683_v35 = vld [vmem:[#allocation13 + $0x5f4] sm:$0xf0] }
 0x9fc   :  { %v10183_v8 = vor.u32 %v11626_v48, %v10182_v12  ;;  %v11670_v9 = vld [vmem:[#allocation13 + $0x594] sm:$0xf]  ;;  %v11547_v12 = vld [vmem:[#allocation13 + $0x1b4] sm:$0xf0] }
 0x9fd   :  { %6566 = vmatpush.bf16.msrb.mxu2 %v9703_v49  ;;  %6588 = vmatpush.bf16.msra.mxu0 %v10343_v61  ;;  %v11518_v49 = vld [vmem:[#allocation13 + $0xd4] sm:$0xf] }
 0x9fe   :  { %6581 = vmatmul.bf16.vlgmr.msrb.gmra.mxu3 %v12339_v15  ;;  %v9768_v61 = vld [vmem:[#allocation13 + $0xf0] sm:$0xf0] }
 0x9ff   :  { %6625 = vmatpush.bf16.msra.mxu3 %v10155_v47  ;;  %6603 = vmatpush.bf16.msra.mxu1 %v10535_v11  ;;  %v10632_v47 = vld [vmem:[#allocation13 + $0x7b0] sm:$0xf0]  ;;  %v9771_v60 = vor.u32 %v11518_v49, %v9768_v61 }
 0xa00   :  { %v10635_v58 = vor.u32 %v11734_v44, %v10632_v47  ;;  %v11726_v11 = vld [vmem:[#allocation13 + $0x754] sm:$0xf]  ;;  %v9870_v47 = vld [vmem:[#allocation13 + $0x198] sm:$0xf] }
 0xa01   :  { %6567 = vmatpush.bf16.msrb.mxu2 %v9671_v1  ;;  %6589 = vmatpush.bf16.msra.mxu0 %v10311_v24  ;;  %v10600_v1 = vld [vmem:[#allocation13 + $0x770] sm:$0xf0] }
 0xa02   :  { %v11510_v24 = vld [vmem:[#allocation13 + $0x94] sm:$0xf]  ;;  %v10603_v14 = vor.u32 %v11726_v11, %v10600_v1  ;;  %v11539_v11 = vld [vmem:[#allocation13 + $0x174] sm:$0xf0] }
 0xa03   :  { %6626 = vmatpush.bf16.msra.mxu3 %v10123_v0  ;;  %6604 = vmatpush.bf16.msra.mxu1 %v10503_v46  ;;  %v10411_v0 = vor.u32 %v11678_v51, %v10408_v56  ;;  %v9739_v43 = vor.u32 %v11510_v24, %v9736_v3  ;;  %v9928_v55 = vld [vmem:[#allocation13 + $0x230] sm:$0xf0]  ;;  %v5052_v24 = vld [vmem:[#allocation16 + $0x80] ss:$8 sm:$0xf] }
 0xa04   :  { %6568 = vmatmul.bf16.vlgmr.msrb.gmra.mxu2 %v12342_v4  ;;  %v11718_v19 = vld [vmem:[#allocation13 + $0x714] sm:$0xf]  ;;  %v9931_v25 = vor.u32 %v11558_v59, %v9928_v55  ;;  %v5053_v3 = vld [vmem:[#allocation16 + $0x80] ss:$8 sm:$0xf0] }
 0xa05   :  { %6612 = vmatpush.bf16.msra.mxu2 %v9899_v13  ;;  %6590 = vmatpush.bf16.msra.mxu0 %v10279_v20  ;;  %v9963_v13 = vor.u32 %v11566_v62, %v9960_v63  ;;  %v10568_v46 = vld [vmem:[#allocation13 + $0x730] sm:$0xf0]  ;;  %v10158_v20 = vld [vmem:[#allocation13 + $0x3d8] sm:$0xf] }
 0xa06   :  { %v11502_v22 = vld [vmem:[#allocation13 + $0x54] sm:$0xf]  ;;  %v10571_v26 = vor.u32 %v11718_v19, %v10568_v46  ;;  %v10159_v27 = vor.u32 %v11619_v21, %v10158_v20  ;;  %v9838_v63 = vld [vmem:[#allocation13 + $0x158] sm:$0xf] }
 0xa07   :  { %6627 = vmatpush.bf16.msra.mxu3 %v10091_v18  ;;  %6605 = vmatpush.bf16.msra.mxu1 %v10471_v29  ;;  %v10379_v18 = vor.u32 %v11670_v9, %v10376_v10  ;;  %v9704_v2 = vld [vmem:[#allocation13 + $0x70] sm:$0xf0]  ;;  %v10030_v59 = vld [vmem:[#allocation13 + $0x2d8] sm:$0xf] }
 0xa08   :  { %v10344_v23 = vld [vmem:[#allocation13 + $0x570] sm:$0xf0]  ;;  %v9707_v30 = vor.u32 %v11502_v22, %v9704_v2  ;;  %v10670_v55 = vld [vmem:[#allocation13 + $0x7d8] sm:$0xf]  ;;  %v12371_v22 = vor.u32 %v5053_v3, %v5052_v24 }
 0xa09   :  { %6613 = vmatpush.bf16.msra.mxu2 %v9867_v45  ;;  %6591 = vmatpush.bf16.msra.mxu0 %v10247_v32  ;;  %v11662_v45 = vld [vmem:[#allocation13 + $0x554] sm:$0xf]  ;;  %v10126_v32 = vld [vmem:[#allocation13 + $0x398] sm:$0xf] }
 0xa0a   :  { %v11710_v52 = vld [vmem:[#allocation13 + $0x6d4] sm:$0xf]  ;;  %v10127_v36 = vor.u32 %v11611_v7, %v10126_v32  ;;  %v11747_v19 = vld [vmem:[#allocation13 + $0x7f4] sm:$0xf0] }
 0xa0b   :  { %6628 = vmatpush.bf16.msra.mxu3 %v10059_v31  ;;  %6606 = vmatpush.bf16.msra.mxu1 %v10439_v39  ;;  %v10536_v29 = vld [vmem:[#allocation13 + $0x6f0] sm:$0xf0]  ;;  %v10347_v31 = vor.u32 %v11662_v45, %v10344_v23  ;;  %v9806_v20 = vld [vmem:[#allocation13 + $0x118] sm:$0xf] }
 0xa0c   :  { %v11494_v33 = vld [vmem:[#allocation13 + $0x14] sm:$0xf]  ;;  %v10539_v5 = vor.u32 %v11710_v52, %v10536_v29  ;;  %v11531_v21 = vld [vmem:[#allocation13 + $0x134] sm:$0xf0] }
 0xa0d   :  { %6614 = vmatpush.bf16.msra.mxu2 %v9835_v34  ;;  %6592 = vmatpush.bf16.msra.mxu0 %v10215_v42  ;;  %v9672_v6 = vld [vmem:[#allocation13 + $0x30] sm:$0xf0]  ;;  %v11603_v42 = vld [vmem:[#allocation13 + $0x374] sm:$0xf0] }
 0xa0e   :  { %6607 = vmatmul.bf16.vlgmr.msra.gmra.mxu1 %v12347_v53  ;;  %v11654_v34 = vld [vmem:[#allocation13 + $0x514] sm:$0xf]  ;;  %v9675_v38 = vor.u32 %v11494_v33, %v9672_v6  ;;  %v10095_v49 = vor.u32 %v11603_v42, %v10094_v50  ;;  %v10638_v52 = vld [vmem:[#allocation13 + $0x798] sm:$0xf]  ;;  %v5056_v33 = vperm.slane %v12371_v22, 0 }
 0xa0f   :  { %6629 = vmatpush.bf16.msra.mxu3 %v10027_v40  ;;  %6651 = vmatpush.bf16.msrb.mxu1 %v10667_v37  ;;  %v10312_v54 = vld [vmem:[#allocation13 + $0x530] sm:$0xf0]  ;;  %v9774_v6 = vld [vmem:[#allocation13 + $0xd8] sm:$0xf] }
 0xa10   :  { %v10315_v39 = vor.u32 %v11654_v34, %v10312_v54  ;;  %v11702_v40 = vld [vmem:[#allocation13 + $0x694] sm:$0xf]  ;;  %v11523_v34 = vld [vmem:[#allocation13 + $0xf4] sm:$0xf0] }
 0xa11   :  { %6615 = vmatpush.bf16.msra.mxu2 %v9803_v28  ;;  %6593 = vmatpush.bf16.msra.mxu0 %v10183_v8  ;;  %v10504_v37 = vld [vmem:[#allocation13 + $0x6b0] sm:$0xf0]  ;;  %v11595_v8 = vld [vmem:[#allocation13 + $0x334] sm:$0xf0] }
 0xa12   :  { %v11646_v28 = vld [vmem:[#allocation13 + $0x4d4] sm:$0xf]  ;;  %v10507_v48 = vor.u32 %v11702_v40, %v10504_v37  ;;  %v10414_v54 = vld [vmem:[#allocation13 + $0x5d8] sm:$0xf] }
 0xa13   :  { %6630 = vmatpush.bf16.msra.mxu3 %v9995_v57  ;;  %6652 = vmatpush.bf16.msrb.mxu1 %v10635_v58  ;;  %v10280_v44 = vld [vmem:[#allocation13 + $0x4f0] sm:$0xf0]  ;;  %v10062_v57 = vld [vmem:[#allocation13 + $0x318] sm:$0xf]  ;;  %v9871_v58 = vor.u32 %v11547_v12, %v9870_v47  ;;  %v10415_v42 = vor.u32 %v11683_v35, %v10414_v54  ;;  %v11599_v35 = vld [vmem:[#allocation13 + $0x35c] sm:$0xf] }
 0xa14   :  { %6594 = vmatmul.bf16.vlgmr.msra.gmra.mxu0 %v12351_v16  ;;  %v10283_v61 = vor.u32 %v11646_v28, %v10280_v44  ;;  %v11694_v51 = vld [vmem:[#allocation13 + $0x654] sm:$0xf]  ;;  %v10063_v9 = vor.u32 %v11595_v8, %v10062_v57  ;;  %v9966_v40 = vld [vmem:[#allocation13 + $0x258] sm:$0xf] }
 0xa15   :  { %6616 = vmatpush.bf16.msra.mxu2 %v9771_v60  ;;  %6638 = vmatpush.bf16.msrb.mxu0 %v10411_v0  ;;  %v10472_v56 = vld [vmem:[#allocation13 + $0x670] sm:$0xf0]  ;;  %v11571_v37 = vld [vmem:[#allocation13 + $0x274] sm:$0xf0] }
 0xa16   :  { %v11638_v60 = vld [vmem:[#allocation13 + $0x494] sm:$0xf]  ;;  %v10475_v1 = vor.u32 %v11694_v51, %v10472_v56  ;;  %v10606_v50 = vld [vmem:[#allocation13 + $0x758] sm:$0xf] }
 0xa17   :  { %6631 = vmatpush.bf16.msra.mxu3 %v9963_v13  ;;  %6653 = vmatpush.bf16.msrb.mxu1 %v10603_v14  ;;  %v10248_v62 = vld [vmem:[#allocation13 + $0x4b0] sm:$0xf0]  ;;  %v11587_v14 = vld [vmem:[#allocation13 + $0x2f4] sm:$0xf0] }
 0xa18   :  { %v11686_v0 = vld [vmem:[#allocation13 + $0x614] sm:$0xf]  ;;  %v10251_v10 = vor.u32 %v11638_v60, %v10248_v62  ;;  %v10031_v23 = vor.u32 %v11587_v14, %v10030_v59  ;;  %v11731_v28 = vld [vmem:[#allocation13 + $0x774] sm:$0xf0] }
 0xa19   :  { %6617 = vmatpush.bf16.msra.mxu2 %v9739_v43  ;;  %6639 = vmatpush.bf16.msrb.mxu0 %v10379_v18  ;;  %v10440_v13 = vld [vmem:[#allocation13 + $0x630] sm:$0xf0]  ;;  %v9839_v43 = vor.u32 %v11539_v11, %v9838_v63  ;;  %v9742_v44 = vld [vmem:[#allocation13 + $0x98] sm:$0xf]  ;;  %v10607_v57 = vor.u32 %v11731_v28, %v10606_v50 }
 0xa1a   :  { %v11630_v46 = vld [vmem:[#allocation13 + $0x454] sm:$0xf]  ;;  %v10443_v2 = vor.u32 %v11686_v0, %v10440_v13  ;;  %v11515_v47 = vld [vmem:[#allocation13 + $0xb4] sm:$0xf0]  ;;  %v11615_v0 = vld [vmem:[#allocation13 + $0x3dc] sm:$0xf] }
 0xa1b   :  { %6632 = vmatpush.bf16.msra.mxu3 %v9931_v25  ;;  %6654 = vmatpush.bf16.msrb.mxu1 %v10571_v26  ;;  %v10216_v18 = vld [vmem:[#allocation13 + $0x470] sm:$0xf0]  ;;  %v10671_v25 = vor.u32 %v11747_v19, %v10670_v55  ;;  %v9998_v26 = vld [vmem:[#allocation13 + $0x298] sm:$0xf] }
 0xa1c   :  { %v10219_v29 = vor.u32 %v11630_v46, %v10216_v18  ;;  %v11622_v32 = vld [vmem:[#allocation13 + $0x414] sm:$0xf]  ;;  %v10382_v12 = vld [vmem:[#allocation13 + $0x598] sm:$0xf] }
 0xa1d   :  { %6618 = vmatpush.bf16.msra.mxu2 %v9707_v30  ;;  %6640 = vmatpush.bf16.msrb.mxu0 %v10347_v31  ;;  %v9807_v30 = vor.u32 %v11531_v21, %v9806_v20  ;;  %v11739_v31 = vld [vmem:[#allocation13 + $0x7b4] sm:$0xf0]  ;;  %v10184_v7 = vld [vmem:[#allocation13 + $0x430] sm:$0xf0]  ;;  %v11607_v20 = vld [vmem:[#allocation13 + $0x39c] sm:$0xf] }
 0xa1e   :  { %6633 = vmatmul.bf16.vlgmr.msra.gmra.mxu3 %v12339_v15  ;;  %v9934_v51 = vld [vmem:[#allocation13 + $0x218] sm:$0xf]  ;;  %v10128_v21 = vld [vmem:[#allocation13 + $0x3b8] sm:$0xf0] }
 0xa1f   :  { %6677 = vmatpush.bf16.msrb.mxu3 %v10159_v27  ;;  %6655 = vmatpush.bf16.msrb.mxu1 %v10539_v5  ;;  %v11579_v27 = vld [vmem:[#allocation13 + $0x2b4] sm:$0xf0]  ;;  %v10639_v5 = vor.u32 %v11739_v31, %v10638_v52  ;;  %v11551_v52 = vld [vmem:[#allocation13 + $0x1dc] sm:$0xf] }
 0xa20   :  { %v9999_v17 = vor.u32 %v11579_v27, %v9998_v26  ;;  %v11563_v8 = vld [vmem:[#allocation13 + $0x234] sm:$0xf0] }
 0xa21   :  { %6619 = vmatpush.bf16.msra.mxu2 %v9675_v38  ;;  %6641 = vmatpush.bf16.msrb.mxu0 %v10315_v39  ;;  %v6374_v45 = vpop.f32.mrf.mxu3  ;;  %v10187_v38 = vor.u32 %v11622_v32, %v10184_v7  ;;  %v9775_v39 = vor.u32 %v11523_v34, %v9774_v6  ;;  %v10574_v60 = vld [vmem:[#allocation13 + $0x718] sm:$0xf]  ;;  %v9935_v13 = vor.u32 %v11563_v8, %v9934_v51  ;;  %v9840_v8 = vld [vmem:[#allocation13 + $0x178] sm:$0xf0] }
 0xa22   :  { %v11723_v62 = vld [vmem:[#allocation13 + $0x734] sm:$0xf0]  ;;  %v10131_v32 = vor.u32 %v11607_v20, %v10128_v21  ;;  %v11575_v21 = vld [vmem:[#allocation13 + $0x29c] sm:$0xf] }
 0xa23   :  { %6678 = vmatpush.bf16.msrb.mxu3 %v10127_v36  ;;  %6656 = vmatpush.bf16.msrb.mxu1 %v10507_v48  ;;  %v11675_v48 = vld [vmem:[#allocation13 + $0x5b4] sm:$0xf0]  ;;  %v10575_v59 = vor.u32 %v11723_v62, %v10574_v60 }
 0xa24   :  { %6620 = vmatmul.bf16.vlgmr.msra.gmra.mxu2 %v12342_v4  ;;  %v10383_v11 = vor.u32 %v11675_v48, %v10382_v12  ;;  %v9710_v24 = vld [vmem:[#allocation13 + $0x58] sm:$0xf]  ;;  %v11591_v12 = vld [vmem:[#allocation13 + $0x31c] sm:$0xf] }
 0xa25   :  { %6664 = vmatpush.bf16.msrb.mxu2 %v9903_v41  ;;  %6642 = vmatpush.bf16.msrb.mxu0 %v10283_v61  ;;  %v9967_v61 = vor.u32 %v11571_v37, %v9966_v40  ;;  %v11507_v3 = vld [vmem:[#allocation13 + $0x74] sm:$0xf0]  ;;  %v11543_v40 = vld [vmem:[#allocation13 + $0x19c] sm:$0xf] }
 0xa26   :  { %v6361_v36 = vpop.f32.mrf.mxu2  ;;  %v10542_v55 = vld [vmem:[#allocation13 + $0x6d8] sm:$0xf]  ;;  %v9711_v46 = vor.u32 %v11507_v3, %v9710_v24  ;;  %v9872_v37 = vld [vmem:[#allocation13 + $0x1b8] sm:$0xf0] }
 0xa27   :  { %6679 = vmatpush.bf16.msrb.mxu3 %v10095_v49  ;;  %6657 = vmatpush.bf16.msrb.mxu1 %v10475_v1  ;;  %v6362_v41 = vadd.f32 %v6361_v36, %v5056_v33  ;;  %v10160_v1 = vld [vmem:[#allocation13 + $0x3f8] sm:$0xf0]  ;;  %v11715_v19 = vld [vmem:[#allocation13 + $0x6f4] sm:$0xf0]  ;;  %v9875_v48 = vor.u32 %v11543_v40, %v9872_v37 }
 0xa28   :  { %v10543_v31 = vor.u32 %v11715_v19, %v10542_v55  ;;  %v10510_v34 = vld [vmem:[#allocation13 + $0x698] sm:$0xf]  ;;  %v10096_v36 = vld [vmem:[#allocation13 + $0x378] sm:$0xf0] }
 0xa29   :  { %6665 = vmatpush.bf16.msrb.mxu2 %v9871_v58  ;;  %6643 = vmatpush.bf16.msrb.mxu0 %v10251_v10  ;;  %v6376_v49 = vpop.f32.mrf.mxu3  ;;  %v6375_v56 = vadd.f32 %v6374_v45, %v6362_v41  ;;  %v9743_v58 = vor.u32 %v11515_v47, %v9742_v44  ;;  %v11667_v10 = vld [vmem:[#allocation13 + $0x574] sm:$0xf0]  ;;  %v11583_v24 = vld [vmem:[#allocation13 + $0x2dc] sm:$0xf] }
 0xa2a   :  { %v11499_v45 = vld [vmem:[#allocation13 + $0x34] sm:$0xf0]  ;;  %v10064_v49 = vld [vmem:[#allocation13 + $0x338] sm:$0xf0] }
 0xa2b   :  { %6680 = vmatpush.bf16.msrb.mxu3 %v10063_v9  ;;  %6658 = vmatpush.bf16.msrb.mxu1 %v10443_v2  ;;  %v6400_v63 = vpop.f32.mrf.mxu1  ;;  %v10350_v9 = vld [vmem:[#allocation13 + $0x558] sm:$0xf]  ;;  %v10032_v3 = vld [vmem:[#allocation13 + $0x2f8] sm:$0xf0] }
 0xa2c   :  { %v10351_v18 = vor.u32 %v11667_v10, %v10350_v9  ;;  %v9678_v2 = vld [vmem:[#allocation13 + $0x18] sm:$0xf]  ;;  %v11743_v10 = vld [vmem:[#allocation13 + $0x7dc] sm:$0xf] }
 0xa2d   :  { %6666 = vmatpush.bf16.msrb.mxu2 %v9839_v43  ;;  %6644 = vmatpush.bf16.msrb.mxu0 %v10219_v29  ;;  %v10163_v43 = vor.u32 %v11615_v0, %v10160_v1  ;;  %v9904_v29 = vld [vmem:[#allocation13 + $0x1f8] sm:$0xf0]  ;;  %v9679_v33 = vor.u32 %v11499_v45, %v9678_v2  ;;  %v11707_v54 = vld [vmem:[#allocation13 + $0x6b4] sm:$0xf0] }
 0xa2e   :  { %6659 = vmatmul.bf16.vlgmr.msrb.gmra.mxu1 %v12347_v53  ;;  %v6363_v14 = vpop.f32.mrf.mxu2  ;;  %v10511_v50 = vor.u32 %v11707_v54, %v10510_v34  ;;  %v10478_v44 = vld [vmem:[#allocation13 + $0x658] sm:$0xf]  ;;  %v9808_v55 = vld [vmem:[#allocation13 + $0x138] sm:$0xf0] }
 0xa2f   :  { %6681 = vmatpush.bf16.msrb.mxu3 %v10031_v23  ;;  %6703 = vmatpush.bf16.msra.mxu1 %v10671_v25  ;;  %v10318_v23 = vld [vmem:[#allocation13 + $0x518] sm:$0xf]  ;;  %v10000_v2 = vld [vmem:[#allocation13 + $0x2b8] sm:$0xf0] }
 0xa30   :  { %v11659_v25 = vld [vmem:[#allocation13 + $0x534] sm:$0xf0]  ;;  %v10003_v54 = vor.u32 %v11575_v21, %v10000_v2  ;;  %v11727_v40 = vld [vmem:[#allocation13 + $0x75c] sm:$0xf] }
 0xa31   :  { %6667 = vmatpush.bf16.msrb.mxu2 %v9807_v30  ;;  %6645 = vmatpush.bf16.msrb.mxu0 %v10187_v38  ;;  %v6387_v26 = vpop.f32.mrf.mxu0  ;;  %v12376_v27 = vpop.f32.mrf.mxu3  ;;  %v10319_v6 = vor.u32 %v11659_v25, %v10318_v23  ;;  %v10286_v38 = vld [vmem:[#allocation13 + $0x4d8] sm:$0xf]  ;;  %v11735_v25 = vld [vmem:[#allocation13 + $0x79c] sm:$0xf] }
 0xa32   :  { %v6388_v30 = vadd.f32 %v6387_v26, %v6375_v56  ;;  %v11699_v47 = vld [vmem:[#allocation13 + $0x674] sm:$0xf0]  ;;  %v10640_v26 = vld [vmem:[#allocation13 + $0x7b8] sm:$0xf0] }
 0xa33   :  { %6682 = vmatpush.bf16.msrb.mxu3 %v9999_v17  ;;  %6704 = vmatpush.bf16.msra.mxu1 %v10639_v5  ;;  %v6402_v7 = vpop.f32.mrf.mxu1  ;;  %v9907_v5 = vor.u32 %v11551_v52, %v9904_v29  ;;  %v11643_v51 = vld [vmem:[#allocation13 + $0x4b4] sm:$0xf0]  ;;  %v10479_v60 = vor.u32 %v11699_v47, %v10478_v44  ;;  %v11671_v44 = vld [vmem:[#allocation13 + $0x59c] sm:$0xf] }
 0xa34   :  { %6646 = vmatmul.bf16.vlgmr.msrb.gmra.mxu0 %v12351_v16  ;;  %v12378_v17 = vadd.f32 %v6400_v63, %v6388_v30  ;;  %v10446_v62 = vld [vmem:[#allocation13 + $0x618] sm:$0xf]  ;;  %v9776_v7 = vld [vmem:[#allocation13 + $0xf8] sm:$0xf0] }
 0xa35   :  { %6668 = vmatpush.bf16.msrb.mxu2 %v9775_v39  ;;  %6690 = vmatpush.bf16.msra.mxu0 %v10415_v42  ;;  %v11651_v39 = vld [vmem:[#allocation13 + $0x4f4] sm:$0xf0]  ;;  %v10099_v42 = vor.u32 %v11599_v35, %v10096_v36  ;;  %v10643_v35 = vor.u32 %v11735_v25, %v10640_v26  ;;  %v10384_v47 = vld [vmem:[#allocation13 + $0x5b8] sm:$0xf0] }
 0xa36   :  { %v10287_v28 = vor.u32 %v11651_v39, %v10286_v38  ;;  %v11691_v1 = vld [vmem:[#allocation13 + $0x634] sm:$0xf0]  ;;  %v11567_v38 = vld [vmem:[#allocation13 + $0x25c] sm:$0xf] }
 0xa37   :  { %6683 = vmatpush.bf16.msrb.mxu3 %v9967_v61  ;;  %6705 = vmatpush.bf16.msra.mxu1 %v10607_v57  ;;  %v12381_v41 = vpop.f32.mrf.mxu2  ;;  %v10254_v61 = vld [vmem:[#allocation13 + $0x498] sm:$0xf]  ;;  %v10447_v19 = vor.u32 %v11691_v1, %v10446_v62  ;;  %v9968_v39 = vld [vmem:[#allocation13 + $0x278] sm:$0xf0] }
 0xa38   :  { %v10255_v0 = vor.u32 %v11643_v51, %v10254_v61  ;;  %v11635_v14 = vld [vmem:[#allocation13 + $0x474] sm:$0xf0]  ;;  %v11559_v51 = vld [vmem:[#allocation13 + $0x21c] sm:$0xf] }
 0xa39   :  { %6669 = vmatpush.bf16.msrb.mxu2 %v9743_v58  ;;  %6691 = vmatpush.bf16.msra.mxu0 %v10383_v11  ;;  %v6389_v56 = vpop.f32.mrf.mxu0  ;;  %v6428_v57 = vpop.f32.mrf.mxu3  ;;  %v11535_v58 = vld [vmem:[#allocation13 + $0x15c] sm:$0xf]  ;;  %v10067_v11 = vor.u32 %v11591_v12, %v10064_v49  ;;  %v10190_v52 = vld [vmem:[#allocation13 + $0x418] sm:$0xf]  ;;  %v9971_v12 = vor.u32 %v11567_v38, %v9968_v39  ;;  %v11754_v38 = vld [vmem:[#allocation15 + $0x30] sm:$0xff] }
 0xa3a   :  { %v9843_v9 = vor.u32 %v11535_v58, %v9840_v8  ;;  %v9936_v56 = vld [vmem:[#allocation13 + $0x238] sm:$0xf0]  ;;  %v10387_v8 = vor.u32 %v11671_v44, %v10384_v47 }
 0xa3b   :  { %6684 = vmatpush.bf16.msrb.mxu3 %v9935_v13  ;;  %6706 = vmatpush.bf16.msra.mxu1 %v10575_v59  ;;  %v12384_v63 = vpop.f32.mrf.mxu1  ;;  %v10672_v13 = vld [vmem:[#allocation13 + $0x7f8] sm:$0xf0]  ;;  %v10222_v59 = vld [vmem:[#allocation13 + $0x458] sm:$0xf] }
 0xa3c   :  { %v10675_v20 = vor.u32 %v11743_v10, %v10672_v13  ;;  %v10223_v45 = vor.u32 %v11635_v14, %v10222_v59  ;;  %v10576_v62 = vld [vmem:[#allocation13 + $0x738] sm:$0xf0] }
 0xa3d   :  { %6670 = vmatpush.bf16.msrb.mxu2 %v9711_v46  ;;  %6692 = vmatpush.bf16.msra.mxu0 %v10351_v18  ;;  %v10035_v18 = vor.u32 %v11583_v24, %v10032_v3  ;;  %v11663_v1 = vld [vmem:[#allocation13 + $0x55c] sm:$0xf] }
 0xa3e   :  { %6685 = vmatmul.bf16.vlgmr.msrb.gmra.mxu3 %v12339_v15  ;;  %v10352_v24 = vld [vmem:[#allocation13 + $0x578] sm:$0xf0] }
 0xa3f   :  { %6729 = vmatpush.bf16.msra.mxu3 %v10163_v43  ;;  %6707 = vmatpush.bf16.msra.mxu1 %v10543_v31  ;;  %v11527_v43 = vld [vmem:[#allocation13 + $0x11c] sm:$0xf]  ;;  %v6415_v46 = vpop.f32.mrf.mxu2  ;;  %v11627_v31 = vld [vmem:[#allocation13 + $0x434] sm:$0xf0]  ;;  %v10355_v14 = vor.u32 %v11663_v1, %v10352_v24  ;;  %v11758_v1 = vld [vmem:[#allocation15 + $0x50] sm:$0xff] }
 0xa40   :  { %v9811_v23 = vor.u32 %v11527_v43, %v9808_v55  ;;  %v11763_v13 = vld [vmem:[#allocation15 + $0x78] sm:$0xff]  ;;  %v11778_v24 = vld [vmem:[#allocation15 + $0xf0] sm:$0xff] }
 0xa41   :  { %6671 = vmatpush.bf16.msrb.mxu2 %v9679_v33  ;;  %6693 = vmatpush.bf16.msra.mxu0 %v10319_v6  ;;  %v12386_v29 = vpop.f32.mrf.mxu0  ;;  %v12388_v30 = vpop.f32.mrf.mxu3  ;;  %v11679_v33 = vld [vmem:[#allocation13 + $0x5dc] sm:$0xf] }
 0xa42   :  { %v10416_v6 = vld [vmem:[#allocation13 + $0x5f8] sm:$0xf0] }
 0xa43   :  { %6730 = vmatpush.bf16.msra.mxu3 %v10131_v32  ;;  %6708 = vmatpush.bf16.msra.mxu1 %v10511_v50  ;;  %v11519_v32 = vld [vmem:[#allocation13 + $0xdc] sm:$0xf]  ;;  %v6454_v34 = vpop.f32.mrf.mxu1  ;;  %v10419_v37 = vor.u32 %v11679_v33, %v10416_v6 }
 0xa44   :  { %6672 = vmatmul.bf16.vlgmr.msrb.gmra.mxu2 %v12342_v4  ;;  %v9779_v36 = vor.u32 %v11519_v32, %v9776_v7  ;;  %v10608_v50 = vld [vmem:[#allocation13 + $0x778] sm:$0xf0] }
 0xa45   :  { %6716 = vmatpush.bf16.msra.mxu2 %v9907_v5  ;;  %6694 = vmatpush.bf16.msra.mxu0 %v10287_v28  ;;  %v10191_v5 = vor.u32 %v11627_v31, %v10190_v52  ;;  %v9744_v28 = vld [vmem:[#allocation13 + $0xb8] sm:$0xf0]  ;;  %v10611_v49 = vor.u32 %v11727_v40, %v10608_v50  ;;  %v11760_v50 = vld [vmem:[#allocation15 + $0x60] sm:$0xff] }
 0xa46   :  { %v11711_v43 = vld [vmem:[#allocation13 + $0x6dc] sm:$0xf] }
 0xa47   :  { %6731 = vmatpush.bf16.msra.mxu3 %v10099_v42  ;;  %6709 = vmatpush.bf16.msra.mxu1 %v10479_v60  ;;  %v11511_v42 = vld [vmem:[#allocation13 + $0x9c] sm:$0xf] }
 0xa48   :  { %v9747_v61 = vor.u32 %v11511_v42, %v9744_v28  ;;  %v11719_v60 = vld [vmem:[#allocation13 + $0x71c] sm:$0xf] }
 0xa49   :  { %6717 = vmatpush.bf16.msra.mxu2 %v9875_v48  ;;  %6695 = vmatpush.bf16.msra.mxu0 %v10255_v0  ;;  %v12391_v48 = vpop.f32.mrf.mxu2  ;;  %v6441_v57 = vpop.f32.mrf.mxu0  ;;  %v9712_v0 = vld [vmem:[#allocation13 + $0x78] sm:$0xf0]  ;;  %v10579_v10 = vor.u32 %v11719_v60, %v10576_v62  ;;  %v11752_v60 = vld [vmem:[#allocation15 + $0x20] sm:$0xff] }
 0xa4a   :  { %v6480_v58 = vpop.f32.mrf.mxu3  ;;  %v10544_v55 = vld [vmem:[#allocation13 + $0x6f8] sm:$0xf0] }
 0xa4b   :  { %6732 = vmatpush.bf16.msra.mxu3 %v10067_v11  ;;  %6710 = vmatpush.bf16.msra.mxu1 %v10447_v19  ;;  %v11503_v11 = vld [vmem:[#allocation13 + $0x5c] sm:$0xf]  ;;  %v12394_v3 = vpop.f32.mrf.mxu1  ;;  %v10547_v2 = vor.u32 %v11711_v43, %v10544_v55  ;;  %v11777_v43 = vld [vmem:[#allocation15 + $0xe8] sm:$0xff] }
 0xa4c   :  { %v9715_v59 = vor.u32 %v11503_v11, %v9712_v0  ;;  %v11495_v19 = vld [vmem:[#allocation13 + $0x1c] sm:$0xf] }
 0xa4d   :  { %6718 = vmatpush.bf16.msra.mxu2 %v9843_v9  ;;  %6696 = vmatpush.bf16.msra.mxu0 %v10223_v45  ;;  %v9939_v9 = vor.u32 %v11559_v51, %v9936_v56  ;;  %v9680_v46 = vld [vmem:[#allocation13 + $0x38] sm:$0xf0]  ;;  %v11762_v45 = vld [vmem:[#allocation15 + $0x70] sm:$0xff] }
 0xa4e   :  { %6711 = vmatmul.bf16.vlgmr.msra.gmra.mxu1 %v12347_v53  ;;  %v11703_v26 = vld [vmem:[#allocation13 + $0x69c] sm:$0xf] }
 0xa4f   :  { %6733 = vmatpush.bf16.msra.mxu3 %v10035_v18  ;;  %6755 = vmatpush.bf16.msrb.mxu1 %v10675_v20  ;;  %v11655_v18 = vld [vmem:[#allocation13 + $0x51c] sm:$0xf] }
 0xa50   :  { %v10320_v20 = vld [vmem:[#allocation13 + $0x538] sm:$0xf0] }
 0xa51   :  { %6719 = vmatpush.bf16.msra.mxu2 %v9811_v23  ;;  %6697 = vmatpush.bf16.msra.mxu0 %v10191_v5  ;;  %v6467_v21 = vpop.f32.mrf.mxu2  ;;  %v9683_v23 = vor.u32 %v11495_v19, %v9680_v46  ;;  %v10323_v25 = vor.u32 %v11655_v18, %v10320_v20  ;;  %v10512_v52 = vld [vmem:[#allocation13 + $0x6b8] sm:$0xf0]  ;;  %v12397_v31 = vpop.f32.mrf.mxu0  ;;  %v11750_v19 = vld [vmem:[#allocation15 + $0x10] sm:$0xff]  ;;  %v5059_v18 = vperm.slane %v12371_v22, 3 }
 0xa52   :  { %v11755_v32 = vld [vmem:[#allocation15 + $0x38] sm:$0xff]  ;;  %v10515_v34 = vor.u32 %v11703_v26, %v10512_v52  ;;  %v11776_v21 = vld [vmem:[#allocation15 + $0xe0] sm:$0xff]  ;;  %v5058_v26 = vperm.slane %v12371_v22, 2 }
 0xa53   :  { %6734 = vmatpush.bf16.msra.mxu3 %v10003_v54  ;;  %6756 = vmatpush.bf16.msrb.mxu1 %v10643_v35  ;;  %v11647_v7 = vld [vmem:[#allocation13 + $0x4dc] sm:$0xf]  ;;  %v6506_v6 = vpop.f32.mrf.mxu1  ;;  %v11761_v54 = vld [vmem:[#allocation15 + $0x68] sm:$0xff] }
 0xa54   :  { %6698 = vmatmul.bf16.vlgmr.msra.gmra.mxu0 %v12351_v16  ;;  %v10288_v33 = vld [vmem:[#allocation13 + $0x4f8] sm:$0xf0] }
 0xa55   :  { %6720 = vmatpush.bf16.msra.mxu2 %v9779_v36  ;;  %6742 = vmatpush.bf16.msrb.mxu0 %v10419_v37  ;;  %v10291_v35 = vor.u32 %v11647_v7, %v10288_v33  ;;  %v11695_v5 = vld [vmem:[#allocation13 + $0x65c] sm:$0xf]  ;;  %v6768_v7 = vmax.f32 %v12378_v17, 0.0  ;;  %v11768_v33 = vld [vmem:[#allocation15 + $0xa0] sm:$0xff]  ;;  %v11794_v17 = vld [vmem:[#allocation15 + $0x170] sm:$0xff] }
 0xa56   :  { %v10480_v36 = vld [vmem:[#allocation13 + $0x678] sm:$0xf0] }
 0xa57   :  { %6735 = vmatpush.bf16.msra.mxu3 %v9971_v12  ;;  %6757 = vmatpush.bf16.msrb.mxu1 %v10611_v49  ;;  %v11639_v39 = vld [vmem:[#allocation13 + $0x49c] sm:$0xf]  ;;  %v10483_v37 = vor.u32 %v11695_v5, %v10480_v36  ;;  %v11753_v12 = vld [vmem:[#allocation15 + $0x28] sm:$0xff]  ;;  %v11774_v5 = vld [vmem:[#allocation15 + $0xd0] sm:$0xff]  ;;  %v6776_v36 = vpack.c.bf16 %v6768_v7, %v6768_v7 }
 0xa58   :  { %v10256_v40 = vld [vmem:[#allocation13 + $0x4b8] sm:$0xf0] }
 0xa59   :  { %6721 = vmatpush.bf16.msra.mxu2 %v9747_v61  ;;  %6743 = vmatpush.bf16.msrb.mxu0 %v10387_v8  ;;  %v10259_v42 = vor.u32 %v11639_v39, %v10256_v40  ;;  %v11687_v28 = vld [vmem:[#allocation13 + $0x61c] sm:$0xf]  ;;  %v6493_v47 = vpop.f32.mrf.mxu0  ;;  %v11786_v40 = vld [vmem:[#allocation15 + $0x130] sm:$0xff] }
 0xa5a   :  { %v10448_v44 = vld [vmem:[#allocation13 + $0x638] sm:$0xf0] }
 0xa5b   :  { %6736 = vmatpush.bf16.msra.mxu3 %v9939_v9  ;;  %6758 = vmatpush.bf16.msrb.mxu1 %v10579_v10  ;;  %v11631_v49 = vld [vmem:[#allocation13 + $0x45c] sm:$0xf]  ;;  %v10451_v56 = vor.u32 %v11687_v28, %v10448_v44  ;;  %v11785_v44 = vld [vmem:[#allocation15 + $0x128] sm:$0xff] }
 0xa5c   :  { %v10224_v61 = vld [vmem:[#allocation13 + $0x478] sm:$0xf0] }
 0xa5d   :  { %6722 = vmatpush.bf16.msra.mxu2 %v9715_v59  ;;  %6744 = vmatpush.bf16.msrb.mxu0 %v10355_v14  ;;  %v11759_v57 = vld [vmem:[#allocation15 + $0x58] sm:$0xff]  ;;  %v10227_v8 = vor.u32 %v11631_v49, %v10224_v61  ;;  %v11757_v14 = vld [vmem:[#allocation15 + $0x48] sm:$0xff]  ;;  %v11772_v49 = vld [vmem:[#allocation15 + $0xc0] sm:$0xff] }
 0xa5e   :  { %6737 = vmatmul.bf16.vlgmr.msra.gmra.mxu3 %v12339_v15  ;;  %v5057_v15 = vperm.slane %v12371_v22, 1  ;;  %v11623_v62 = vld [vmem:[#allocation13 + $0x41c] sm:$0xf] }
 0xa5f   :  { %7310 = vmatpush.bf16.msrb.mxu3 %v11763_v13  ;;  %6759 = vmatpush.bf16.msrb.mxu1 %v10547_v2  ;;  %v10192_v11 = vld [vmem:[#allocation13 + $0x438] sm:$0xf0]  ;;  %v11749_v2 = vld [vmem:[#allocation15 + $0x8] sm:$0xff] }
 0xa60   :  { %v6414_v51 = vadd.f32 %v12381_v41, %v5057_v15  ;;  %v10195_v9 = vor.u32 %v11623_v62, %v10192_v11  ;;  %v11751_v10 = vld [vmem:[#allocation15 + $0x18] sm:$0xff]  ;;  %v5060_v11 = vperm.slane %v12371_v22, 4 }
 0xa61   :  { %6723 = vmatpush.bf16.msra.mxu2 %v9683_v23  ;;  %6745 = vmatpush.bf16.msrb.mxu0 %v10323_v25  ;;  %v6530_v58 = vpop.f32.mrf.mxu3  ;;  %v11771_v13 = vld [vmem:[#allocation15 + $0xb8] sm:$0xff] }
 0xa62   :  { %v6427_v0 = vadd.f32 %v12376_v27, %v6414_v51  ;;  %v11775_v52 = vld [vmem:[#allocation15 + $0xd8] sm:$0xff] }
 0xa63   :  { %7311 = vmatpush.bf16.msrb.mxu3 %v11762_v45  ;;  %6760 = vmatpush.bf16.msrb.mxu1 %v10515_v34  ;;  %v11787_v6 = vld [vmem:[#allocation15 + $0x138] sm:$0xff] }
 0xa64   :  { %6724 = vmatmul.bf16.vlgmr.msra.gmra.mxu2 %v12342_v4  ;;  %v11779_v4 = vld [vmem:[#allocation15 + $0xf8] sm:$0xff]  ;;  %v6440_v41 = vadd.f32 %v12386_v29, %v6427_v0  ;;  %v11770_v29 = vld [vmem:[#allocation15 + $0xb0] sm:$0xff] }
 0xa65   :  { %7297 = vmatpush.bf16.msrb.mxu2 %v11755_v32  ;;  %6746 = vmatpush.bf16.msrb.mxu0 %v10291_v35  ;;  %v6466_v35 = vadd.f32 %v12391_v48, %v5058_v26  ;;  %v11767_v39 = vld [vmem:[#allocation15 + $0x98] sm:$0xff]  ;;  %v11766_v48 = vld [vmem:[#allocation15 + $0x90] sm:$0xff] }
 0xa66   :  { %v6453_v27 = vadd.f32 %v12384_v63, %v6440_v41  ;;  %v11769_v63 = vld [vmem:[#allocation15 + $0xa8] sm:$0xff]  ;;  %v11795_v15 = vld [vmem:[#allocation15 + $0x178] sm:$0xff] }
 0xa67   :  { %7312 = vmatpush.bf16.msrb.mxu3 %v11761_v54  ;;  %6761 = vmatpush.bf16.msrb.mxu1 %v10483_v37  ;;  %v6517_v59 = vpop.f32.mrf.mxu2  ;;  %v6479_v37 = vadd.f32 %v12388_v30, %v6466_v35  ;;  %v11784_v30 = vld [vmem:[#allocation15 + $0x120] sm:$0xff] }
 0xa68   :  { %v6769_v20 = vmax.f32 %v6453_v27, 0.0  ;;  %v6518_v23 = vadd.f32 %v6517_v59, %v5059_v18  ;;  %v11780_v27 = vld [vmem:[#allocation15 + $0x100] sm:$0xff] }
 0xa69   :  { %7298 = vmatpush.bf16.msrb.mxu2 %v11754_v38  ;;  %6747 = vmatpush.bf16.msrb.mxu0 %v10259_v42  ;;  %v6532_v55 = vpop.f32.mrf.mxu3  ;;  %v6492_v47 = vadd.f32 %v12397_v31, %v6479_v37 }
 0xa6a   :  { %v6777_v25 = vpack.c.bf16 %v6769_v20, %v6769_v20  ;;  %v6531_v54 = vadd.f32 %v6530_v58, %v6518_v23  ;;  %v11764_v58 = vld [vmem:[#allocation15 + $0x80] sm:$0xff]  ;;  %v11803_v20 = vld [vmem:[#allocation15 + $0x1b8] sm:$0xff] }
 0xa6b   :  { %7313 = vmatpush.bf16.msrb.mxu3 %v11760_v50  ;;  %6762 = vmatpush.bf16.msrb.mxu1 %v10451_v56  ;;  %v6556_v46 = vpop.f32.mrf.mxu1  ;;  %v11773_v50 = vld [vmem:[#allocation15 + $0xc8] sm:$0xff] }
 0xa6c   :  { %v11765_v56 = vld [vmem:[#allocation15 + $0x88] sm:$0xff] }
 0xa6d   :  { %7299 = vmatpush.bf16.msrb.mxu2 %v11753_v12  ;;  %6748 = vmatpush.bf16.msrb.mxu0 %v10227_v8  ;;  %v11793_v12 = vld [vmem:[#allocation15 + $0x168] sm:$0xff]  ;;  %v11783_v8 = vld [vmem:[#allocation15 + $0x118] sm:$0xff] }
 0xa6e   :  { %6763 = vmatmul.bf16.vlgmr.msrb.gmra.mxu1 %v12347_v53  ;;  %v11756_v53 = vld [vmem:[#allocation15 + $0x40] sm:$0xff] }
 0xa6f   :  { %7314 = vmatpush.bf16.msrb.mxu3 %v11759_v57  ;;  %7336 = vmatpush.bf16.msra.mxu1 %v11779_v4  ;;  %v6519_v45 = vpop.f32.mrf.mxu2  ;;  %v6505_v57 = vadd.f32 %v12394_v3, %v6492_v47  ;;  %v11791_v3 = vld [vmem:[#allocation15 + $0x158] sm:$0xff] }
 0xa70   :  { %v11801_v45 = vld [vmem:[#allocation15 + $0x1a8] sm:$0xff] }
 0xa71   :  { %7300 = vmatpush.bf16.msrb.mxu2 %v11752_v60  ;;  %6749 = vmatpush.bf16.msrb.mxu0 %v10195_v9  ;;  %v6543_v32 = vpop.f32.mrf.mxu0  ;;  %v6770_v31 = vmax.f32 %v6505_v57, 0.0  ;;  %v11792_v60 = vld [vmem:[#allocation15 + $0x160] sm:$0xff] }
 0xa72   :  { %v6544_v38 = vadd.f32 %v6543_v32, %v6531_v54 }
 0xa73   :  { %7315 = vmatpush.bf16.msrb.mxu3 %v11758_v1  ;;  %7337 = vmatpush.bf16.msra.mxu1 %v11778_v24  ;;  %v6558_v34 = vpop.f32.mrf.mxu1  ;;  %v11782_v1 = vld [vmem:[#allocation15 + $0x110] sm:$0xff]  ;;  %v6778_v24 = vpack.c.bf16 %v6770_v31, %v6770_v31 }
 0xa74   :  { %6750 = vmatmul.bf16.vlgmr.msrb.gmra.mxu0 %v12351_v16  ;;  %v11748_v16 = vld [vmem:[#allocation15] sm:$0xff]  ;;  %v6557_v28 = vadd.f32 %v6556_v46, %v6544_v38 }
 0xa75   :  { %7301 = vmatpush.bf16.msrb.mxu2 %v11751_v10  ;;  %7323 = vmatpush.bf16.msra.mxu0 %v11771_v13  ;;  %v11781_v10 = vld [vmem:[#allocation15 + $0x108] sm:$0xff]  ;;  %v11790_v13 = vld [vmem:[#allocation15 + $0x150] sm:$0xff] }
 0xa76   :  { %v6771_v61 = vmax.f32 %v6557_v28, 0.0  ;;  %v11809_v28 = vld [vmem:[#allocation15 + $0x1e8] sm:$0xff] }
 0xa77   :  { %7316 = vmatpush.bf16.msrb.mxu3 %v11757_v14  ;;  %7338 = vmatpush.bf16.msra.mxu1 %v11777_v43 }
 0xa78   :  { %v6779_v4 = vpack.c.bf16 %v6771_v61, %v6771_v61  ;;  %v11807_v61 = vld [vmem:[#allocation15 + $0x1d8] sm:$0xff] }
 0xa79   :  { %7302 = vmatpush.bf16.msrb.mxu2 %v11750_v19  ;;  %7324 = vmatpush.bf16.msra.mxu0 %v11770_v29  ;;  %v6545_v42 = vpop.f32.mrf.mxu0  ;;  %v11789_v19 = vld [vmem:[#allocation15 + $0x148] sm:$0xff] }
 0xa7b   :  { %7317 = vmatpush.bf16.msrb.mxu3 %v11756_v53  ;;  %7339 = vmatpush.bf16.msra.mxu1 %v11776_v21  ;;  %v11788_v53 = vld [vmem:[#allocation15 + $0x140] sm:$0xff] }
 0xa7d   :  { %7303 = vmatpush.bf16.msrb.mxu2 %v11749_v2  ;;  %7325 = vmatpush.bf16.msra.mxu0 %v11769_v63  ;;  %v11802_v2 = vld [vmem:[#allocation15 + $0x1b0] sm:$0xff] }
 0xa7e   :  { %7318 = vmatmul.bf16.vlgmr.msrb.gmra.mxu3 %v6777_v25  ;;  %v11800_v25 = vld [vmem:[#allocation15 + $0x1a0] sm:$0xff] }
 0xa7f   :  { %7340 = vmatpush.bf16.msra.mxu1 %v11775_v52  ;;  %7362 = vmatpush.bf16.msra.mxu3 %v11795_v15  ;;  %v5061_v52 = vperm.slane %v12371_v22, 5 }
 0xa81   :  { %7304 = vmatpush.bf16.msrb.mxu2 %v11748_v16  ;;  %7326 = vmatpush.bf16.msra.mxu0 %v11768_v33  ;;  %v6582_v51 = vpop.f32.mrf.mxu3  ;;  %v11799_v16 = vld [vmem:[#allocation15 + $0x198] sm:$0xff] }
 0xa83   :  { %7341 = vmatpush.bf16.msra.mxu1 %v11774_v5  ;;  %7363 = vmatpush.bf16.msra.mxu3 %v11794_v17  ;;  %v11797_v5 = vld [vmem:[#allocation15 + $0x188] sm:$0xff]  ;;  %v11811_v17 = vld [vmem:[#allocation15 + $0x1f8] sm:$0xff] }
 0xa84   :  { %7305 = vmatmul.bf16.vlgmr.msrb.gmra.mxu2 %v6776_v36 }
 0xa85   :  { %7349 = vmatpush.bf16.msra.mxu2 %v11787_v6  ;;  %7327 = vmatpush.bf16.msra.mxu0 %v11767_v39  ;;  %v11798_v6 = vld [vmem:[#allocation15 + $0x190] sm:$0xff] }
 0xa87   :  { %7342 = vmatpush.bf16.msra.mxu1 %v11773_v50  ;;  %7364 = vmatpush.bf16.msra.mxu3 %v11793_v12  ;;  %v6569_v62 = vpop.f32.mrf.mxu2  ;;  %v11810_v50 = vld [vmem:[#allocation15 + $0x1f0] sm:$0xff]  ;;  %v5062_v12 = vperm.slane %v12371_v22, 6 }
 0xa88   :  { %v6570_v9 = vadd.f32 %v6569_v62, %v5060_v11  ;;  %v11804_v11 = vld [vmem:[#allocation15 + $0x1c0] sm:$0xff] }
 0xa89   :  { %7350 = vmatpush.bf16.msra.mxu2 %v11786_v40  ;;  %7328 = vmatpush.bf16.msra.mxu0 %v11766_v48  ;;  %v6584_v0 = vpop.f32.mrf.mxu3  ;;  %v11796_v40 = vld [vmem:[#allocation15 + $0x180] sm:$0xff] }
 0xa8a   :  { %v6583_v14 = vadd.f32 %v6582_v51, %v6570_v9  ;;  %v5063_v9 = vperm.slane %v12371_v22, 7 }
 0xa8b   :  { %7343 = vmatpush.bf16.msra.mxu1 %v11772_v49  ;;  %7365 = vmatpush.bf16.msra.mxu3 %v11792_v60  ;;  %v6608_v41 = vpop.f32.mrf.mxu1 }
 0xa8d   :  { %7351 = vmatpush.bf16.msra.mxu2 %v11785_v44  ;;  %7329 = vmatpush.bf16.msra.mxu0 %v11765_v56  ;;  %v11808_v44 = vld [vmem:[#allocation15 + $0x1e0] sm:$0xff] }
 0xa8e   :  { %7344 = vmatmul.bf16.vlgmr.msra.gmra.mxu1 %v6779_v4 }
 0xa8f   :  { %7366 = vmatpush.bf16.msra.mxu3 %v11791_v3  ;;  %v6571_v59 = vpop.f32.mrf.mxu2  ;;  %7388 = vmatpush.bf16.msrb.mxu1 %v11811_v17 }
 0xa91   :  { %7352 = vmatpush.bf16.msra.mxu2 %v11784_v30  ;;  %7330 = vmatpush.bf16.msra.mxu0 %v11764_v58  ;;  %v6595_v43 = vpop.f32.mrf.mxu0  ;;  %v11806_v30 = vld [vmem:[#allocation15 + $0x1d0] sm:$0xff]  ;;  %v11805_v58 = vld [vmem:[#allocation15 + $0x1c8] sm:$0xff] }
 0xa92   :  { %v6596_v55 = vadd.f32 %v6595_v43, %v6583_v14 }
 0xa93   :  { %7367 = vmatpush.bf16.msra.mxu3 %v11790_v13  ;;  %v6610_v29 = vpop.f32.mrf.mxu1  ;;  %7389 = vmatpush.bf16.msrb.mxu1 %v11810_v50 }
 0xa94   :  { %7331 = vmatmul.bf16.vlgmr.msra.gmra.mxu0 %v6778_v24  ;;  %v6609_v46 = vadd.f32 %v6608_v41, %v6596_v55 }
 0xa95   :  { %7353 = vmatpush.bf16.msra.mxu2 %v11783_v8  ;;  %7375 = vmatpush.bf16.msrb.mxu0 %v11803_v20 }
 0xa96   :  { %v6772_v18 = vmax.f32 %v6609_v46, 0.0 }
 0xa97   :  { %7368 = vmatpush.bf16.msra.mxu3 %v11789_v19  ;;  %7390 = vmatpush.bf16.msrb.mxu1 %v11809_v28 }
 0xa98   :  { %v6780_v21 = vpack.c.bf16 %v6772_v18, %v6772_v18 }
 0xa99   :  { %7354 = vmatpush.bf16.msra.mxu2 %v11782_v1  ;;  %v6597_v63 = vpop.f32.mrf.mxu0  ;;  %7376 = vmatpush.bf16.msrb.mxu0 %v11802_v2 }
 0xa9b   :  { %7369 = vmatpush.bf16.msra.mxu3 %v11788_v53  ;;  %7391 = vmatpush.bf16.msrb.mxu1 %v11808_v44 }
 0xa9d   :  { %7355 = vmatpush.bf16.msra.mxu2 %v11781_v10  ;;  %7377 = vmatpush.bf16.msrb.mxu0 %v11801_v45 }
 0xa9f   :  { %7392 = vmatpush.bf16.msrb.mxu1 %v11807_v61 }
 0xaa1   :  { %7356 = vmatpush.bf16.msra.mxu2 %v11780_v27  ;;  %v6634_v23 = vpop.f32.mrf.mxu3  ;;  %7378 = vmatpush.bf16.msrb.mxu0 %v11800_v25 }
 0xaa3   :  { %7393 = vmatpush.bf16.msrb.mxu1 %v11806_v30 }
 0xaa4   :  { %7357 = vmatmul.bf16.vlgmr.msra.gmra.mxu2 %v6780_v21  ;;  %v6912_v21 = vld [vmem:[#allocation16 + $0x81] ss:$0 sm:$0xff] }
 0xaa5   :  { %7379 = vmatpush.bf16.msrb.mxu0 %v11799_v16 }
 0xaa7   :  { %v6621_v26 = vpop.f32.mrf.mxu2  ;;  %7394 = vmatpush.bf16.msrb.mxu1 %v11805_v58 }
 0xaa8   :  { %v6622_v33 = vadd.f32 %v6621_v26, %v5061_v52 }
 0xaa9   :  { %v6636_v32 = vpop.f32.mrf.mxu3  ;;  %7380 = vmatpush.bf16.msrb.mxu0 %v11798_v6 }
 0xaaa   :  { %v6635_v54 = vadd.f32 %v6634_v23, %v6622_v33 }
 0xaab   :  { %v6660_v7 = vpop.f32.mrf.mxu1  ;;  %7395 = vmatpush.bf16.msrb.mxu1 %v11804_v11 }
 0xaad   :  { %7381 = vmatpush.bf16.msrb.mxu0 %v11797_v5 }
 0xaaf   :  { %v6623_v34 = vpop.f32.mrf.mxu2 }
 0xab1   :  { %v6647_v35 = vpop.f32.mrf.mxu0  ;;  %7382 = vmatpush.bf16.msrb.mxu0 %v11796_v40 }
 0xab2   :  { %v6648_v36 = vadd.f32 %v6647_v35, %v6635_v54 }
 0xab3   :  { %v6662_v38 = vpop.f32.mrf.mxu1 }
 0xab4   :  { %v6661_v39 = vadd.f32 %v6660_v7, %v6648_v36 }
 0xab6   :  { %v6773_v15 = vmax.f32 %v6661_v39, 0.0 }
 0xab8   :  { %v6781_v37 = vpack.c.bf16 %v6773_v15, %v6773_v15 }
 0xab9   :  { %v6649_v42 = vpop.f32.mrf.mxu0 }
 0xaba   :  { %7370 = vmatmul.bf16.vlgmr.msra.gmra.mxu3 %v6781_v37 }
 0xac1   :  { %v6686_v48 = vpop.f32.mrf.mxu3 }
 0xac7   :  { %v6673_v47 = vpop.f32.mrf.mxu2 }
 0xac8   :  { %v6674_v56 = vadd.f32 %v6673_v47, %v5062_v12 }
 0xac9   :  { %v6688_v49 = vpop.f32.mrf.mxu3 }
 0xaca   :  { %v6687_v4 = vadd.f32 %v6686_v48, %v6674_v56 }
 0xacb   :  { %v6712_v51 = vpop.f32.mrf.mxu1 }
 0xacf   :  { %v6675_v57 = vpop.f32.mrf.mxu2 }
 0xad1   :  { %v6699_v8 = vpop.f32.mrf.mxu0 }
 0xad2   :  { %v6700_v31 = vadd.f32 %v6699_v8, %v6687_v4 }
 0xad3   :  { %v6714_v60 = vpop.f32.mrf.mxu1 }
 0xad4   :  { %v6713_v62 = vadd.f32 %v6712_v51, %v6700_v31 }
 0xad6   :  { %v6774_v0 = vmax.f32 %v6713_v62, 0.0 }
 0xad8   :  { %v6782_v1 = vpack.c.bf16 %v6774_v0, %v6774_v0 }
 0xad9   :  { %v6701_v24 = vpop.f32.mrf.mxu0 }
 0xada   :  { %7383 = vmatmul.bf16.vlgmr.msrb.gmra.mxu0 %v6782_v1 }
 0xae1   :  { %v6738_v3 = vpop.f32.mrf.mxu3 }
 0xae7   :  { %v6725_v41 = vpop.f32.mrf.mxu2 }
 0xae8   :  { %v6726_v59 = vadd.f32 %v6725_v41, %v5063_v9 }
 0xae9   :  { %v6740_v10 = vpop.f32.mrf.mxu3 }
 0xaea   :  { %v6739_v27 = vadd.f32 %v6738_v3, %v6726_v59 }
 0xaeb   :  { %v6764_v13 = vpop.f32.mrf.mxu1 }
 0xaef   :  { %v6727_v14 = vpop.f32.mrf.mxu2 }
 0xaf1   :  { %v6751_v43 = vpop.f32.mrf.mxu0 }
 0xaf2   :  { %v6752_v55 = vadd.f32 %v6751_v43, %v6739_v27 }
 0xaf3   :  { %v6766_v19 = vpop.f32.mrf.mxu1 }
 0xaf4   :  { %v6765_v29 = vadd.f32 %v6764_v13, %v6752_v55 }
 0xaf6   :  { %v6775_v46 = vmax.f32 %v6765_v29, 0.0 }
 0xaf8   :  { %v6783_v18 = vpack.c.bf16 %v6775_v46, %v6775_v46 }
 0xaf9   :  { %v6753_v53 = vpop.f32.mrf.mxu0 }
 0xafa   :  { %7396 = vmatmul.bf16.vlgmr.msrb.gmra.mxu1 %v6783_v18 }
 0xb01   :  { %v7319_v20 = vpop.f32.mrf.mxu3 }
 0xb07   :  { %v7306_v2 = vpop.f32.mrf.mxu2 }
 0xb08   :  { %v7307_v63 = vadd.f32 %v7306_v2, %v6912_v21 }
 0xb09   :  { %v7321_v45 = vpop.f32.mrf.mxu3 }
 0xb0a   :  { %v7320_v23 = vadd.f32 %v7319_v20, %v7307_v63 }
 0xb0b   :  { %v7345_v22 = vpop.f32.mrf.mxu1 }
 0xb0f   :  { %v7308_v25 = vpop.f32.mrf.mxu2 }
 0xb11   :  { %v7332_v26 = vpop.f32.mrf.mxu0 }
 0xb12   :  { %v7333_v52 = vadd.f32 %v7332_v26, %v7320_v23 }
 0xb13   :  { %v7347_v32 = vpop.f32.mrf.mxu1 }
 0xb14   :  { %v7346_v16 = vadd.f32 %v7345_v22, %v7333_v52 }
 0xb19   :  { %v7334_v7 = vpop.f32.mrf.mxu0 }
 0xb27   :  { %v7358_v33 = vpop.f32.mrf.mxu2 }
 0xb28   :  { %v7359_v6 = vadd.f32 %v7358_v33, %v7346_v16 }
 0xb2f   :  { %v7360_v34 = vpop.f32.mrf.mxu2 }
 0xb3d   :  { %v7371_v54 = vpop.f32.mrf.mxu3 }
 0xb3e   :  { %v7372_v38 = vadd.f32 %v7371_v54, %v7359_v6 }
 0xb45   :  { %v7373_v35 = vpop.f32.mrf.mxu3 }
 0xb57   :  { %v7384_v5 = vpop.f32.mrf.mxu0 }
 0xb58   :  { %v7385_v39 = vadd.f32 %v7384_v5, %v7372_v38 }
 0xb5f   :  { %v7386_v36 = vpop.f32.mrf.mxu0 }
 0xb77   :  { %v7397_v40 = vpop.f32.mrf.mxu1 }
 0xb78   :  { %v7398_v15 = vadd.f32 %v7397_v40, %v7385_v39 }
 0xb7a   :  { %7401 = vst [vmem:[%s12432_s11] sm:$0xff] %v7398_v15 }
 0xb7f   :  { %v7399_v17 = vpop.f32.mrf.mxu1 }
 0xb80   :  { %7406 = vsyncpa [#allocation3], 1 }
 0xb81   :  { %7407 = vsyncpa [#allocation5], 1 }
 0xb82   :  { %7408 = vsyncpa [#allocation8], 1 }
 0xb83   :  { %7409 = vsyncpa [#allocation11], 1 }
 0xb84   :  { %7410 = vsyncpa [#allocation14], 1 }
 0xb85   :  { %7411 = vsyncpa [#allocation17], 1 }

</bundles_post_ra>
